<compile_context>
chip_gen: v7x
topology: tpu7x:2x2x1
jax: 0.10.0
libtpu: 0.0.40
codegen_flags: <defaults>
</compile_context>

<pallas_src>
import functools

import jax
import jax.numpy as jnp
import numpy as np
from jax import lax
from jax.experimental import pallas as pl
from jax.experimental.pallas import tpu as pltpu

EPS = 1e-6        # LayerNormalization eps (added to std, like the reference impl)
NEG_INF = -1e9    # masked_fill value


# ---------------------------------------------------------------------------
# shared math helpers (pure jnp -> usable both inside the kernel and in the ref)
# `recip` is a callable: pl.reciprocal (EUP) inside the kernel, exact divide in the ref.
# ---------------------------------------------------------------------------
def _mm(a, b):
    """MXU matmul: bf16 x bf16 -> f32 accumulation (callers pass bf16 operands)."""
    return jnp.dot(a, b, preferred_element_type=jnp.float32)


def _layernorm(x, alpha, bias, recip):
    # Custom LayerNormalization: alpha * (x - mean) / (std + eps) + bias,
    # torch .std() default is unbiased (ddof=1).  Stats in f32, any input dtype.
    xf = x.astype(jnp.float32)
    d = xf.shape[-1]
    mean = jnp.mean(xf, axis=-1, keepdims=True)
    var = jnp.sum((xf - mean) ** 2, axis=-1, keepdims=True) / (d - 1)
    std = jnp.sqrt(var)
    return alpha * (xf - mean) * recip(std + EPS) + bias      # f32


def _attention_core(q, k, v, bias, wo, n_heads, recip):
    # q: (Bt, Sq, D) bf16, k/v: (Bt, Sk, D) bf16
    # bias: additive, broadcastable to (H*Bt, Sq, Sk) f32
    Bt, Sq, D = q.shape
    Sk = k.shape[1]
    H = n_heads
    dk = D // H
    scale = 1.0 / float(np.sqrt(dk))

    def split_heads(t):
        # (Bt, s, D) -> (H*Bt, s, dk); leading axis index n = h*Bt + b
        return jnp.concatenate([t[:, :, h * dk:(h + 1) * dk] for h in range(H)], axis=0)

    qh, kh, vh = split_heads(q), split_heads(k), split_heads(v)
    # single leading batch dim (H*Bt): 2 MXU dots for all batch elements & heads
    s = jnp.einsum('nqd,nkd->nqk', qh, kh,
                   preferred_element_type=jnp.float32) * scale + bias
    s = s - jnp.max(s, axis=-1, keepdims=True)
    p = jnp.exp(s)
    p = p * recip(jnp.sum(p, axis=-1, keepdims=True))
    o = jnp.einsum('nqk,nkd->nqd', p.astype(jnp.bfloat16), vh,
                   preferred_element_type=jnp.float32)        # (H*Bt, Sq, dk) f32
    # merge heads back into disjoint dk column blocks of the model dim
    o = jnp.concatenate([o[h * Bt:(h + 1) * Bt] for h in range(H)], axis=-1)  # (Bt,Sq,D)
    o = o.reshape(Bt * Sq, D).astype(jnp.bfloat16)
    return _mm(o, wo).reshape(Bt, Sq, D)                      # f32


def _decoder_layer(x, enc, tgt_bias, src_bias, lp, n_heads, recip):
    (sa_wqkv, sa_wo, ca_wq, ca_wkv, ca_wo,
     ff_w1, ff_b1, ff_w2, ff_b2,
     ln1_a, ln1_b, ln2_a, ln2_b, ln3_a, ln3_b) = lp
    Bt, S, D = x.shape
    S_src = enc.shape[1]

    # residual 0: self attention (pre-norm); fused QKV projection over Bt*S rows
    h1 = _layernorm(x, ln1_a, ln1_b, recip).astype(jnp.bfloat16)
    qkv = _mm(h1.reshape(Bt * S, D), sa_wqkv).astype(jnp.bfloat16)      # (Bt*S, 3D)
    q = qkv[:, :D].reshape(Bt, S, D)
    k = qkv[:, D:2 * D].reshape(Bt, S, D)
    v = qkv[:, 2 * D:].reshape(Bt, S, D)
    x = x + _attention_core(q, k, v, tgt_bias, sa_wo, n_heads, recip).astype(x.dtype)

    # residual 1: cross attention (only the query side is normalized); fused K|V
    h2 = _layernorm(x, ln2_a, ln2_b, recip).astype(jnp.bfloat16)
    q = _mm(h2.reshape(Bt * S, D), ca_wq).astype(jnp.bfloat16).reshape(Bt, S, D)
    kv = _mm(enc.reshape(Bt * S_src, D), ca_wkv).astype(jnp.bfloat16)   # (Bt*S_src, 2D)
    k = kv[:, :D].reshape(Bt, S_src, D)
    v = kv[:, D:].reshape(Bt, S_src, D)
    x = x + _attention_core(q, k, v, src_bias, ca_wo, n_heads, recip).astype(x.dtype)

    # residual 2: feed forward (Linear -> ReLU -> Linear)
    h3 = _layernorm(x, ln3_a, ln3_b, recip).astype(jnp.bfloat16)
    ff = jnp.maximum(_mm(h3.reshape(Bt * S, D), ff_w1) + ff_b1, 0.0)
    ff = _mm(ff.astype(jnp.bfloat16), ff_w2) + ff_b2                    # (Bt*S, D) f32
    return x + ff.reshape(Bt, S, D).astype(x.dtype)


# ---------------------------------------------------------------------------
# Pallas kernel: a block of batch elements per grid step; whole layer stack +
# final norm fused (x never leaves VMEM between layers).
# ---------------------------------------------------------------------------
def decoder_kernel(src_len_ref, x_ref, enc_ref, w_ref, w2_ref, small_ref, fln_ref,
                   out_ref, *, n_heads):
    recip = lambda t: pl.reciprocal(t, approx=True)     # EUP, ~free bundle slot

    Bt, S, D = x_ref.shape
    S_src = enc_ref.shape[1]
    n_layers = w_ref.shape[0]
    DFF = w2_ref.shape[1]
    H = n_heads

    x = x_ref[...]          # (Bt, S, D)      bf16
    enc = enc_ref[...]      # (Bt, S_src, D)  bf16

    # --- causal target bias generated in-kernel (no (B,S,S) mask DMA) ---------
    rows = lax.broadcasted_iota(jnp.int32, (1, S, S), 1)
    cols = lax.broadcasted_iota(jnp.int32, (1, S, S), 2)
    tgt_bias = jnp.where(rows >= cols, 0.0, NEG_INF)            # (1,S,S) f32

    # --- source padding bias from scalar-prefetched per-batch lengths ---------
    b0 = pl.program_id(0) * Bt
    key_pos = lax.broadcasted_iota(jnp.int32, (1, 1, S_src), 2)
    per_b = jnp.concatenate(
        [jnp.where(key_pos < src_len_ref[b0 + bt], 0.0, NEG_INF) for bt in range(Bt)],
        axis=0)                                                 # (Bt,1,S_src)
    src_bias = jnp.concatenate([per_b] * H, axis=0)             # (H*Bt,1,S_src), n=h*Bt+b

    # --- static layer loop; weights sliced from packed slabs ------------------
    for l in range(n_layers):
        W = w_ref[l]        # (D, 8D+DFF) bf16: [sa_wqkv|sa_wo|ca_wq|ca_wkv|ca_wo|ff_w1]
        Sm = small_ref[l]   # (8, max(D,DFF)) f32
        c1 = 3 * D
        c2 = c1 + D
        c3 = c2 + D
        c4 = c3 + 2 * D
        c5 = c4 + D
        c6 = c5 + DFF
        lp = (W[:, 0:c1], W[:, c1:c2], W[:, c2:c3], W[:, c3:c4], W[:, c4:c5],
              W[:, c5:c6], Sm[0:1, :DFF], w2_ref[l], Sm[1:2, :D],
              Sm[2:3, :D], Sm[3:4, :D], Sm[4:5, :D], Sm[5:6, :D],
              Sm[6:7, :D], Sm[7:8, :D])
        x = _decoder_layer(x, enc, tgt_bias, src_bias, lp, n_heads, recip)

    fln = fln_ref[...]      # (2, D) f32
    out_ref[...] = _layernorm(x, fln[0:1, :], fln[1:2, :], recip).astype(out_ref.dtype)


# ---------------------------------------------------------------------------
# parameter packing: 15 refs/layer -> 3 slabs per stack (+ final-LN slab)
# ---------------------------------------------------------------------------
def _pack_layer_slabs(layer_params, d_model, d_ff):
    smax = max(d_model, d_ff)

    def pad_row(v):
        v = jnp.asarray(v, jnp.float32).reshape(1, -1)
        return jnp.pad(v, ((0, 0), (0, smax - v.shape[1])))

    w_l, w2_l, small_l = [], [], []
    for lp in layer_params:
        (sa_wqkv, sa_wo, ca_wq, ca_wkv, ca_wo,
         ff_w1, ff_b1, ff_w2, ff_b2,
         ln1_a, ln1_b, ln2_a, ln2_b, ln3_a, ln3_b) = lp
        w_l.append(jnp.concatenate(
            [sa_wqkv, sa_wo, ca_wq, ca_wkv, ca_wo, ff_w1], axis=1).astype(jnp.bfloat16))
        w2_l.append(ff_w2.astype(jnp.bfloat16))
        small_l.append(jnp.concatenate(
            [pad_row(ff_b1), pad_row(ff_b2),
             pad_row(ln1_a), pad_row(ln1_b),
             pad_row(ln2_a), pad_row(ln2_b),
             pad_row(ln3_a), pad_row(ln3_b)], axis=0))
    return jnp.stack(w_l), jnp.stack(w2_l), jnp.stack(small_l)


def decoder_forward(x, enc, src_lens, layer_params, final_ln, n_heads,
                    batch_block=None, single_buffer_weights=True):
    B, S, D = x.shape
    _, S_src, _ = enc.shape
    DFF = layer_params[0][5].shape[1]

    if batch_block is None:
        batch_block = B                      # toy sizes: whole batch per grid step
    assert B % batch_block == 0

    w_slab, w2_slab, small_slab = _pack_layer_slabs(layer_params, D, DFF)
    fln = jnp.concatenate([final_ln[0], final_ln[1]], axis=0).astype(jnp.float32)

    # bf16 residual stream shipped from HBM (halves activation DMA)
    x_bf = x.astype(jnp.bfloat16)
    enc_bf = enc.astype(jnp.bfloat16)
    src_lens = src_lens.astype(jnp.int32)

    kernel = functools.partial(decoder_kernel, n_heads=n_heads)

    def build(weight_pipeline_mode):
        wkw = {} if weight_pipeline_mode is None else {"pipeline_mode": weight_pipeline_mode}

        def const_spec(shape):
            nd = len(shape)
            return pl.BlockSpec(shape, lambda b, sl, _nd=nd: (0,) * _nd, **wkw)

        grid_spec = pltpu.PrefetchScalarGridSpec(
            num_scalar_prefetch=1,
            grid=(B // batch_block,),
            in_specs=[
                pl.BlockSpec((batch_block, S, D), lambda b, sl: (b, 0, 0)),      # x
                pl.BlockSpec((batch_block, S_src, D), lambda b, sl: (b, 0, 0)),  # enc out
                const_spec(w_slab.shape),                                        # bf16 weights
                const_spec(w2_slab.shape),                                       # bf16 ff_w2
                const_spec(small_slab.shape),                                    # f32 biases/LN
                const_spec(fln.shape),                                           # final LN
            ],
            out_specs=pl.BlockSpec((batch_block, S, D), lambda b, sl: (b, 0, 0)),
        )
        return pl.pallas_call(
            kernel,
            out_shape=jax.ShapeDtypeStruct((B, S, D), jnp.float32),
            grid_spec=grid_spec,
            compiler_params=pltpu.CompilerParams(dimension_semantics=("parallel",)),
        )

    args = (src_lens, x_bf, enc_bf, w_slab, w2_slab, small_slab, fln)
    if single_buffer_weights:
        try:
            # grid-invariant weight slabs: no need to double-buffer them
            return build(pl.Buffered(1))(*args)
        except Exception:
            pass  # TODO(synk): single-buffered weights unsupported on this JAX; use default
    return build(None)(*args)


# ---------------------------------------------------------------------------
# Pure-JAX reference (same math helpers, exact divide, uses the full mask tensors)
# ---------------------------------------------------------------------------
def ref_forward(x, enc, src_mask, tgt_mask, layer_params, final_ln, n_heads):
    recip = lambda t: 1.0 / t
    outs = []
    for b in range(x.shape[0]):
        xb = x[b:b + 1].astype(jnp.bfloat16)
        encb = enc[b:b + 1].astype(jnp.bfloat16)
        tgt_bias = jnp.where(tgt_mask[b] == 0, NEG_INF, 0.0)[None]   # (1,S,S)
        src_bias = jnp.where(src_mask[b] == 0, NEG_INF, 0.0)[None]   # (1,S,S_src)
        for lp in layer_params:
            xb = _decoder_layer(xb, encb, tgt_bias, src_bias, lp, n_heads, recip)
        outs.append(_layernorm(xb, final_ln[0], final_ln[1], recip))
    return jnp.concatenate(outs, axis=0)


# ---------------------------------------------------------------------------
if __name__ == "__main__":
    B, S, S_SRC, D, H, DFF, N_LAYERS = 2, 8, 8, 32, 4, 64, 2

    keys = iter(jax.random.split(jax.random.PRNGKey(0), 64))

    def w(shape, scale=0.05, dtype=jnp.float32):
        return (scale * jax.random.normal(next(keys), shape)).astype(dtype)

    def make_layer():
        sa_wqkv = jnp.concatenate([w((D, D)), w((D, D)), w((D, D))],
                                  axis=1).astype(jnp.bfloat16)
        sa_wo = w((D, D), dtype=jnp.bfloat16)
        ca_wq = w((D, D), dtype=jnp.bfloat16)
        ca_wkv = jnp.concatenate([w((D, D)), w((D, D))], axis=1).astype(jnp.bfloat16)
        ca_wo = w((D, D), dtype=jnp.bfloat16)
        ff_w1 = w((D, DFF), dtype=jnp.bfloat16)
        ff_b1 = w((1, DFF))
        ff_w2 = w((DFF, D), dtype=jnp.bfloat16)
        ff_b2 = w((1, D))

        def ln():
            a = 1.0 + 0.1 * jax.random.normal(next(keys), (1, D), jnp.float32)
            b = 0.1 * jax.random.normal(next(keys), (1, D), jnp.float32)
            return a, b

        ln1_a, ln1_b = ln()
        ln2_a, ln2_b = ln()
        ln3_a, ln3_b = ln()
        return (sa_wqkv, sa_wo, ca_wq, ca_wkv, ca_wo,
                ff_w1, ff_b1, ff_w2, ff_b2,
                ln1_a, ln1_b, ln2_a, ln2_b, ln3_a, ln3_b)

    layer_params = [make_layer() for _ in range(N_LAYERS)]
    final_ln = (1.0 + 0.1 * jax.random.normal(next(keys), (1, D), jnp.float32),
                0.1 * jax.random.normal(next(keys), (1, D), jnp.float32))

    x = jax.random.normal(next(keys), (B, S, D), jnp.float32)
    enc = jax.random.normal(next(keys), (B, S_SRC, D), jnp.float32)

    # kernel input: per-batch source valid lengths (no mask tensors shipped)
    src_lens = jnp.array([S_SRC, S_SRC - 2], jnp.int32)
    # full masks only for the pure-JAX reference
    tgt_mask = jnp.broadcast_to(jnp.tril(jnp.ones((S, S), jnp.float32)), (B, S, S))
    src_valid = (jnp.arange(S_SRC)[None, :] < src_lens[:, None]).astype(jnp.float32)
    src_mask = jnp.broadcast_to(src_valid[:, None, :], (B, S, S_SRC))

    out = decoder_forward(x, enc, src_lens, layer_params, final_ln, n_heads=H)
    out = jax.block_until_ready(out)

    ref = ref_forward(x, enc, src_mask, tgt_mask, layer_params, final_ln, n_heads=H)
    assert out.shape == (B, S, D)
    # bf16 matmuls + bf16 residual in both paths; remaining diff is approx reciprocal
    # (EUP) and accumulation/layout order.
    np.testing.assert_allclose(np.asarray(out), np.asarray(ref), atol=2e-2, rtol=2e-2)

    print("KERNEL_OK")
</pallas_src>

<mosaic_0001>
module attributes {stable_mosaic.version = 11 : i64} {
  func.func @decoder_kernel(%arg0: i32, %arg1: memref<2xi32, #tpu.memory_space<smem>>, %arg2: memref<2x8x32xbf16, #tpu.memory_space<vmem>>, %arg3: memref<2x8x32xbf16, #tpu.memory_space<vmem>>, %arg4: memref<2x32x320xbf16, #tpu.memory_space<vmem>>, %arg5: memref<2x64x32xbf16, #tpu.memory_space<vmem>>, %arg6: memref<2x8x64xf32, #tpu.memory_space<vmem>>, %arg7: memref<2x32xf32, #tpu.memory_space<vmem>>, %arg8: memref<2x8x32xf32, #tpu.memory_space<vmem>>) attributes {dimension_semantics = [#tpu.dimension_semantics<parallel>], iteration_bounds = array<i64: 1>, scalar_prefetch = 1 : i64, scratch_operands = 0 : i64, tpu.core_type = #tpu.core_type<tc>, window_params = [{transform_indices = @transform_0, window_bounds = array<i64: 2, 8, 32>}, {transform_indices = @transform_1, window_bounds = array<i64: 2, 8, 32>}, {pipeline_mode = #tpu.pipeline_mode<synchronous>, transform_indices = @transform_2, window_bounds = array<i64: 2, 32, 320>}, {pipeline_mode = #tpu.pipeline_mode<synchronous>, transform_indices = @transform_3, window_bounds = array<i64: 2, 64, 32>}, {pipeline_mode = #tpu.pipeline_mode<synchronous>, transform_indices = @transform_4, window_bounds = array<i64: 2, 8, 64>}, {pipeline_mode = #tpu.pipeline_mode<synchronous>, transform_indices = @transform_5, window_bounds = array<i64: 2, 32>}, {transform_indices = @transform_6, window_bounds = array<i64: 2, 8, 32>}]} {
    %c0 = arith.constant 0 : index
    %c0_0 = arith.constant 0 : index
    %c0_1 = arith.constant 0 : index
    %0 = vector.load %arg2[%c0, %c0_0, %c0_1] : memref<2x8x32xbf16, #tpu.memory_space<vmem>>, vector<2x8x32xbf16>
    %c0_2 = arith.constant 0 : index
    %c0_3 = arith.constant 0 : index
    %c0_4 = arith.constant 0 : index
    %1 = vector.load %arg3[%c0_2, %c0_3, %c0_4] : memref<2x8x32xbf16, #tpu.memory_space<vmem>>, vector<2x8x32xbf16>
    %2 = tpu.iota {dimensions = array<i32: 1>} : vector<1x8x8xi32>
    %3 = tpu.iota {dimensions = array<i32: 2>} : vector<1x8x8xi32>
    %4 = arith.cmpi sge, %2, %3 : vector<1x8x8xi32>
    %cst = arith.constant 0.000000e+00 : f32
    %cst_5 = arith.constant -1.000000e+09 : f32
    %5 = vector.broadcast %cst : f32 to vector<1x8x8xf32>
    %6 = vector.broadcast %cst_5 : f32 to vector<1x8x8xf32>
    %7 = arith.select %4, %5, %6 : vector<1x8x8xi1>, vector<1x8x8xf32>
    %c2_i32 = arith.constant 2 : i32
    %8 = arith.muli %arg0, %c2_i32 : i32
    %9 = tpu.iota {dimensions = array<i32: 2>} : vector<1x1x8xi32>
    %c0_i32 = arith.constant 0 : i32
    %10 = arith.addi %8, %c0_i32 : i32
    %11 = arith.index_cast %10 : i32 to index
    %12 = memref.load %arg1[%11] : memref<2xi32, #tpu.memory_space<smem>>
    %13 = vector.broadcast %12 : i32 to vector<1x1x8xi32>
    %14 = arith.cmpi slt, %9, %13 : vector<1x1x8xi32>
    %cst_6 = arith.constant 0.000000e+00 : f32
    %cst_7 = arith.constant -1.000000e+09 : f32
    %15 = vector.broadcast %cst_6 : f32 to vector<1x1x8xf32>
    %16 = vector.broadcast %cst_7 : f32 to vector<1x1x8xf32>
    %17 = arith.select %14, %15, %16 : vector<1x1x8xi1>, vector<1x1x8xf32>
    %c1_i32 = arith.constant 1 : i32
    %18 = arith.addi %8, %c1_i32 : i32
    %19 = arith.index_cast %18 : i32 to index
    %20 = memref.load %arg1[%19] : memref<2xi32, #tpu.memory_space<smem>>
    %21 = vector.broadcast %20 : i32 to vector<1x1x8xi32>
    %22 = arith.cmpi slt, %9, %21 : vector<1x1x8xi32>
    %cst_8 = arith.constant 0.000000e+00 : f32
    %cst_9 = arith.constant -1.000000e+09 : f32
    %23 = vector.broadcast %cst_8 : f32 to vector<1x1x8xf32>
    %24 = vector.broadcast %cst_9 : f32 to vector<1x1x8xf32>
    %25 = arith.select %22, %23, %24 : vector<1x1x8xi1>, vector<1x1x8xf32>
    %26 = tpu.concatenate %17, %25 in 0 : vector<1x1x8xf32>, vector<1x1x8xf32> -> vector<2x1x8xf32>
    %27 = tpu.concatenate %26, %26, %26, %26 in 0 : vector<2x1x8xf32>, vector<2x1x8xf32>, vector<2x1x8xf32>, vector<2x1x8xf32> -> vector<8x1x8xf32>
    %c0_10 = arith.constant 0 : index
    %c0_11 = arith.constant 0 : index
    %c0_12 = arith.constant 0 : index
    %28 = vector.load %arg4[%c0_10, %c0_11, %c0_12] : memref<2x32x320xbf16, #tpu.memory_space<vmem>>, vector<1x32x320xbf16>
    %29 = vector.shape_cast %28 : vector<1x32x320xbf16> to vector<32x320xbf16>
    %c0_13 = arith.constant 0 : index
    %c0_14 = arith.constant 0 : index
    %c0_15 = arith.constant 0 : index
    %30 = vector.load %arg6[%c0_13, %c0_14, %c0_15] : memref<2x8x64xf32, #tpu.memory_space<vmem>>, vector<1x8x64xf32>
    %31 = vector.shape_cast %30 : vector<1x8x64xf32> to vector<8x64xf32>
    %32 = vector.extract_strided_slice %29 {offsets = [0, 0], sizes = [32, 96], strides = [1, 1]} : vector<32x320xbf16> to vector<32x96xbf16>
    %33 = vector.extract_strided_slice %29 {offsets = [0, 96], sizes = [32, 32], strides = [1, 1]} : vector<32x320xbf16> to vector<32x32xbf16>
    %34 = vector.extract_strided_slice %29 {offsets = [0, 128], sizes = [32, 32], strides = [1, 1]} : vector<32x320xbf16> to vector<32x32xbf16>
    %35 = vector.extract_strided_slice %29 {offsets = [0, 160], sizes = [32, 64], strides = [1, 1]} : vector<32x320xbf16> to vector<32x64xbf16>
    %36 = vector.extract_strided_slice %29 {offsets = [0, 224], sizes = [32, 32], strides = [1, 1]} : vector<32x320xbf16> to vector<32x32xbf16>
    %37 = vector.extract_strided_slice %29 {offsets = [0, 256], sizes = [32, 64], strides = [1, 1]} : vector<32x320xbf16> to vector<32x64xbf16>
    %38 = vector.extract_strided_slice %31 {offsets = [0, 0], sizes = [1, 64], strides = [1, 1]} : vector<8x64xf32> to vector<1x64xf32>
    %c0_16 = arith.constant 0 : index
    %c0_17 = arith.constant 0 : index
    %c0_18 = arith.constant 0 : index
    %39 = vector.load %arg5[%c0_16, %c0_17, %c0_18] : memref<2x64x32xbf16, #tpu.memory_space<vmem>>, vector<1x64x32xbf16>
    %40 = vector.shape_cast %39 : vector<1x64x32xbf16> to vector<64x32xbf16>
    %41 = vector.extract_strided_slice %31 {offsets = [1, 0], sizes = [1, 32], strides = [1, 1]} : vector<8x64xf32> to vector<1x32xf32>
    %42 = vector.extract_strided_slice %31 {offsets = [2, 0], sizes = [1, 32], strides = [1, 1]} : vector<8x64xf32> to vector<1x32xf32>
    %43 = vector.extract_strided_slice %31 {offsets = [3, 0], sizes = [1, 32], strides = [1, 1]} : vector<8x64xf32> to vector<1x32xf32>
    %44 = vector.extract_strided_slice %31 {offsets = [4, 0], sizes = [1, 32], strides = [1, 1]} : vector<8x64xf32> to vector<1x32xf32>
    %45 = vector.extract_strided_slice %31 {offsets = [5, 0], sizes = [1, 32], strides = [1, 1]} : vector<8x64xf32> to vector<1x32xf32>
    %46 = vector.extract_strided_slice %31 {offsets = [6, 0], sizes = [1, 32], strides = [1, 1]} : vector<8x64xf32> to vector<1x32xf32>
    %47 = vector.extract_strided_slice %31 {offsets = [7, 0], sizes = [1, 32], strides = [1, 1]} : vector<8x64xf32> to vector<1x32xf32>
    %48 = arith.extf %0 : vector<2x8x32xbf16> to vector<2x8x32xf32>
    %cst_19 = arith.constant dense<0.000000e+00> : vector<2x8xf32>
    %49 = vector.multi_reduction <add>, %48, %cst_19 [2] : vector<2x8x32xf32> to vector<2x8xf32>
    %50 = vector.shape_cast %49 : vector<2x8xf32> to vector<2x8x1xf32>
    %cst_20 = arith.constant 3.200000e+01 : f32
    %51 = vector.broadcast %cst_20 : f32 to vector<2x8x1xf32>
    %52 = arith.divf %50, %51 : vector<2x8x1xf32>
    %53 = vector.broadcast %52 : vector<2x8x1xf32> to vector<2x8x32xf32>
    %54 = arith.subf %48, %53 : vector<2x8x32xf32>
    %55 = arith.mulf %54, %54 : vector<2x8x32xf32>
    %cst_21 = arith.constant dense<0.000000e+00> : vector<2x8xf32>
    %56 = vector.multi_reduction <add>, %55, %cst_21 [2] : vector<2x8x32xf32> to vector<2x8xf32>
    %57 = vector.shape_cast %56 : vector<2x8xf32> to vector<2x8x1xf32>
    %cst_22 = arith.constant 3.100000e+01 : f32
    %58 = vector.broadcast %cst_22 : f32 to vector<2x8x1xf32>
    %59 = arith.divf %57, %58 : vector<2x8x1xf32>
    %60 = math.sqrt %59 : vector<2x8x1xf32>
    %61 = vector.broadcast %52 : vector<2x8x1xf32> to vector<2x8x32xf32>
    %62 = arith.subf %48, %61 : vector<2x8x32xf32>
    %63 = vector.shape_cast %42 : vector<1x32xf32> to vector<1x1x32xf32>
    %64 = vector.broadcast %63 : vector<1x1x32xf32> to vector<2x8x32xf32>
    %65 = arith.mulf %64, %62 : vector<2x8x32xf32>
    %cst_23 = arith.constant 9.99999997E-7 : f32
    %66 = vector.broadcast %cst_23 : f32 to vector<2x8x1xf32>
    %67 = arith.addf %60, %66 : vector<2x8x1xf32>
    %68 = tpu.reciprocal %67 {approx = true} : vector<2x8x1xf32> -> vector<2x8x1xf32>
    %69 = vector.broadcast %68 : vector<2x8x1xf32> to vector<2x8x32xf32>
    %70 = arith.mulf %65, %69 : vector<2x8x32xf32>
    %71 = vector.shape_cast %43 : vector<1x32xf32> to vector<1x1x32xf32>
    %72 = vector.broadcast %71 : vector<1x1x32xf32> to vector<2x8x32xf32>
    %73 = arith.addf %70, %72 : vector<2x8x32xf32>
    %74 = arith.truncf %73 : vector<2x8x32xf32> to vector<2x8x32xbf16>
    %75 = vector.shape_cast %74 : vector<2x8x32xbf16> to vector<16x32xbf16>
    %cst_24 = arith.constant dense<0.000000e+00> : vector<16x96xf32>
    %76 = tpu.matmul %75, %32, %cst_24 {dimension_numbers = #tpu.dot_dimension_numbers<[1], [0], [0], [1], [0, 0, 1, 1], [], []>} : vector<16x32xbf16>, vector<32x96xbf16>, vector<16x96xf32> -> vector<16x96xf32>
    %77 = arith.truncf %76 : vector<16x96xf32> to vector<16x96xbf16>
    %78 = vector.extract_strided_slice %77 {offsets = [0, 0], sizes = [16, 32], strides = [1, 1]} : vector<16x96xbf16> to vector<16x32xbf16>
    %79 = vector.shape_cast %78 : vector<16x32xbf16> to vector<2x8x32xbf16>
    %80 = vector.extract_strided_slice %77 {offsets = [0, 32], sizes = [16, 32], strides = [1, 1]} : vector<16x96xbf16> to vector<16x32xbf16>
    %81 = vector.shape_cast %80 : vector<16x32xbf16> to vector<2x8x32xbf16>
    %82 = vector.extract_strided_slice %77 {offsets = [0, 64], sizes = [16, 32], strides = [1, 1]} : vector<16x96xbf16> to vector<16x32xbf16>
    %83 = vector.shape_cast %82 : vector<16x32xbf16> to vector<2x8x32xbf16>
    %84 = vector.extract_strided_slice %79 {offsets = [0, 0, 0], sizes = [2, 8, 8], strides = [1, 1, 1]} : vector<2x8x32xbf16> to vector<2x8x8xbf16>
    %85 = vector.extract_strided_slice %79 {offsets = [0, 0, 8], sizes = [2, 8, 8], strides = [1, 1, 1]} : vector<2x8x32xbf16> to vector<2x8x8xbf16>
    %86 = vector.extract_strided_slice %79 {offsets = [0, 0, 16], sizes = [2, 8, 8], strides = [1, 1, 1]} : vector<2x8x32xbf16> to vector<2x8x8xbf16>
    %87 = vector.extract_strided_slice %79 {offsets = [0, 0, 24], sizes = [2, 8, 8], strides = [1, 1, 1]} : vector<2x8x32xbf16> to vector<2x8x8xbf16>
    %88 = tpu.concatenate %84, %85, %86, %87 in 0 : vector<2x8x8xbf16>, vector<2x8x8xbf16>, vector<2x8x8xbf16>, vector<2x8x8xbf16> -> vector<8x8x8xbf16>
    %89 = vector.extract_strided_slice %81 {offsets = [0, 0, 0], sizes = [2, 8, 8], strides = [1, 1, 1]} : vector<2x8x32xbf16> to vector<2x8x8xbf16>
    %90 = vector.extract_strided_slice %81 {offsets = [0, 0, 8], sizes = [2, 8, 8], strides = [1, 1, 1]} : vector<2x8x32xbf16> to vector<2x8x8xbf16>
    %91 = vector.extract_strided_slice %81 {offsets = [0, 0, 16], sizes = [2, 8, 8], strides = [1, 1, 1]} : vector<2x8x32xbf16> to vector<2x8x8xbf16>
    %92 = vector.extract_strided_slice %81 {offsets = [0, 0, 24], sizes = [2, 8, 8], strides = [1, 1, 1]} : vector<2x8x32xbf16> to vector<2x8x8xbf16>
    %93 = tpu.concatenate %89, %90, %91, %92 in 0 : vector<2x8x8xbf16>, vector<2x8x8xbf16>, vector<2x8x8xbf16>, vector<2x8x8xbf16> -> vector<8x8x8xbf16>
    %94 = vector.extract_strided_slice %83 {offsets = [0, 0, 0], sizes = [2, 8, 8], strides = [1, 1, 1]} : vector<2x8x32xbf16> to vector<2x8x8xbf16>
    %95 = vector.extract_strided_slice %83 {offsets = [0, 0, 8], sizes = [2, 8, 8], strides = [1, 1, 1]} : vector<2x8x32xbf16> to vector<2x8x8xbf16>
    %96 = vector.extract_strided_slice %83 {offsets = [0, 0, 16], sizes = [2, 8, 8], strides = [1, 1, 1]} : vector<2x8x32xbf16> to vector<2x8x8xbf16>
    %97 = vector.extract_strided_slice %83 {offsets = [0, 0, 24], sizes = [2, 8, 8], strides = [1, 1, 1]} : vector<2x8x32xbf16> to vector<2x8x8xbf16>
    %98 = tpu.concatenate %94, %95, %96, %97 in 0 : vector<2x8x8xbf16>, vector<2x8x8xbf16>, vector<2x8x8xbf16>, vector<2x8x8xbf16> -> vector<8x8x8xbf16>
    "tpu.trace_start"() <{level = 10 : i32, message = "nqd,nkd->nqk"}> : () -> ()
    %cst_25 = arith.constant dense<0.000000e+00> : vector<8x8x8xf32>
    %99 = tpu.matmul %88, %93, %cst_25 {dimension_numbers = #tpu.dot_dimension_numbers<[2], [2], [1], [1], [0, 0, 0, 1, 1, 1], [0], [0]>} : vector<8x8x8xbf16>, vector<8x8x8xbf16>, vector<8x8x8xf32> -> vector<8x8x8xf32>
    "tpu.trace_stop"() : () -> ()
    %cst_26 = arith.constant 0.353553385 : f32
    %100 = vector.broadcast %cst_26 : f32 to vector<8x8x8xf32>
    %101 = arith.mulf %99, %100 : vector<8x8x8xf32>
    %102 = vector.broadcast %7 : vector<1x8x8xf32> to vector<8x8x8xf32>
    %103 = arith.addf %101, %102 : vector<8x8x8xf32>
    %cst_27 = arith.constant dense<0xFF800000> : vector<8x8xf32>
    %104 = vector.multi_reduction <maximumf>, %103, %cst_27 [2] : vector<8x8x8xf32> to vector<8x8xf32>
    %105 = vector.shape_cast %104 : vector<8x8xf32> to vector<8x8x1xf32>
    %106 = vector.broadcast %105 : vector<8x8x1xf32> to vector<8x8x8xf32>
    %107 = arith.subf %103, %106 : vector<8x8x8xf32>
    %108 = math.exp %107 : vector<8x8x8xf32>
    %cst_28 = arith.constant dense<0.000000e+00> : vector<8x8xf32>
    %109 = vector.multi_reduction <add>, %108, %cst_28 [2] : vector<8x8x8xf32> to vector<8x8xf32>
    %110 = vector.shape_cast %109 : vector<8x8xf32> to vector<8x8x1xf32>
    %111 = tpu.reciprocal %110 {approx = true} : vector<8x8x1xf32> -> vector<8x8x1xf32>
    %112 = vector.broadcast %111 : vector<8x8x1xf32> to vector<8x8x8xf32>
    %113 = arith.mulf %108, %112 : vector<8x8x8xf32>
    %114 = arith.truncf %113 : vector<8x8x8xf32> to vector<8x8x8xbf16>
    "tpu.trace_start"() <{level = 10 : i32, message = "nqk,nkd->nqd"}> : () -> ()
    %cst_29 = arith.constant dense<0.000000e+00> : vector<8x8x8xf32>
    %115 = tpu.matmul %114, %98, %cst_29 {dimension_numbers = #tpu.dot_dimension_numbers<[2], [1], [1], [2], [0, 0, 0, 1, 1, 2], [0], [0]>} : vector<8x8x8xbf16>, vector<8x8x8xbf16>, vector<8x8x8xf32> -> vector<8x8x8xf32>
    "tpu.trace_stop"() : () -> ()
    %116 = vector.extract_strided_slice %115 {offsets = [0, 0, 0], sizes = [2, 8, 8], strides = [1, 1, 1]} : vector<8x8x8xf32> to vector<2x8x8xf32>
    %117 = vector.extract_strided_slice %115 {offsets = [2, 0, 0], sizes = [2, 8, 8], strides = [1, 1, 1]} : vector<8x8x8xf32> to vector<2x8x8xf32>
    %118 = vector.extract_strided_slice %115 {offsets = [4, 0, 0], sizes = [2, 8, 8], strides = [1, 1, 1]} : vector<8x8x8xf32> to vector<2x8x8xf32>
    %119 = vector.extract_strided_slice %115 {offsets = [6, 0, 0], sizes = [2, 8, 8], strides = [1, 1, 1]} : vector<8x8x8xf32> to vector<2x8x8xf32>
    %120 = tpu.concatenate %116, %117, %118, %119 in 2 : vector<2x8x8xf32>, vector<2x8x8xf32>, vector<2x8x8xf32>, vector<2x8x8xf32> -> vector<2x8x32xf32>
    %121 = vector.shape_cast %120 : vector<2x8x32xf32> to vector<16x32xf32>
    %122 = arith.truncf %121 : vector<16x32xf32> to vector<16x32xbf16>
    %cst_30 = arith.constant dense<0.000000e+00> : vector<16x32xf32>
    %123 = tpu.matmul %122, %33, %cst_30 {dimension_numbers = #tpu.dot_dimension_numbers<[1], [0], [0], [1], [0, 0, 1, 1], [], []>} : vector<16x32xbf16>, vector<32x32xbf16>, vector<16x32xf32> -> vector<16x32xf32>
    %124 = vector.shape_cast %123 : vector<16x32xf32> to vector<2x8x32xf32>
    %125 = arith.truncf %124 : vector<2x8x32xf32> to vector<2x8x32xbf16>
    %126 = arith.addf %0, %125 : vector<2x8x32xbf16>
    %127 = arith.extf %126 : vector<2x8x32xbf16> to vector<2x8x32xf32>
    %cst_31 = arith.constant dense<0.000000e+00> : vector<2x8xf32>
    %128 = vector.multi_reduction <add>, %127, %cst_31 [2] : vector<2x8x32xf32> to vector<2x8xf32>
    %129 = vector.shape_cast %128 : vector<2x8xf32> to vector<2x8x1xf32>
    %cst_32 = arith.constant 3.200000e+01 : f32
    %130 = vector.broadcast %cst_32 : f32 to vector<2x8x1xf32>
    %131 = arith.divf %129, %130 : vector<2x8x1xf32>
    %132 = vector.broadcast %131 : vector<2x8x1xf32> to vector<2x8x32xf32>
    %133 = arith.subf %127, %132 : vector<2x8x32xf32>
    %134 = arith.mulf %133, %133 : vector<2x8x32xf32>
    %cst_33 = arith.constant dense<0.000000e+00> : vector<2x8xf32>
    %135 = vector.multi_reduction <add>, %134, %cst_33 [2] : vector<2x8x32xf32> to vector<2x8xf32>
    %136 = vector.shape_cast %135 : vector<2x8xf32> to vector<2x8x1xf32>
    %cst_34 = arith.constant 3.100000e+01 : f32
    %137 = vector.broadcast %cst_34 : f32 to vector<2x8x1xf32>
    %138 = arith.divf %136, %137 : vector<2x8x1xf32>
    %139 = math.sqrt %138 : vector<2x8x1xf32>
    %140 = vector.broadcast %131 : vector<2x8x1xf32> to vector<2x8x32xf32>
    %141 = arith.subf %127, %140 : vector<2x8x32xf32>
    %142 = vector.shape_cast %44 : vector<1x32xf32> to vector<1x1x32xf32>
    %143 = vector.broadcast %142 : vector<1x1x32xf32> to vector<2x8x32xf32>
    %144 = arith.mulf %143, %141 : vector<2x8x32xf32>
    %cst_35 = arith.constant 9.99999997E-7 : f32
    %145 = vector.broadcast %cst_35 : f32 to vector<2x8x1xf32>
    %146 = arith.addf %139, %145 : vector<2x8x1xf32>
    %147 = tpu.reciprocal %146 {approx = true} : vector<2x8x1xf32> -> vector<2x8x1xf32>
    %148 = vector.broadcast %147 : vector<2x8x1xf32> to vector<2x8x32xf32>
    %149 = arith.mulf %144, %148 : vector<2x8x32xf32>
    %150 = vector.shape_cast %45 : vector<1x32xf32> to vector<1x1x32xf32>
    %151 = vector.broadcast %150 : vector<1x1x32xf32> to vector<2x8x32xf32>
    %152 = arith.addf %149, %151 : vector<2x8x32xf32>
    %153 = arith.truncf %152 : vector<2x8x32xf32> to vector<2x8x32xbf16>
    %154 = vector.shape_cast %153 : vector<2x8x32xbf16> to vector<16x32xbf16>
    %cst_36 = arith.constant dense<0.000000e+00> : vector<16x32xf32>
    %155 = tpu.matmul %154, %34, %cst_36 {dimension_numbers = #tpu.dot_dimension_numbers<[1], [0], [0], [1], [0, 0, 1, 1], [], []>} : vector<16x32xbf16>, vector<32x32xbf16>, vector<16x32xf32> -> vector<16x32xf32>
    %156 = arith.truncf %155 : vector<16x32xf32> to vector<16x32xbf16>
    %157 = vector.shape_cast %156 : vector<16x32xbf16> to vector<2x8x32xbf16>
    %158 = vector.shape_cast %1 : vector<2x8x32xbf16> to vector<16x32xbf16>
    %cst_37 = arith.constant dense<0.000000e+00> : vector<16x64xf32>
    %159 = tpu.matmul %158, %35, %cst_37 {dimension_numbers = #tpu.dot_dimension_numbers<[1], [0], [0], [1], [0, 0, 1, 1], [], []>} : vector<16x32xbf16>, vector<32x64xbf16>, vector<16x64xf32> -> vector<16x64xf32>
    %160 = arith.truncf %159 : vector<16x64xf32> to vector<16x64xbf16>
    %161 = vector.extract_strided_slice %160 {offsets = [0, 0], sizes = [16, 32], strides = [1, 1]} : vector<16x64xbf16> to vector<16x32xbf16>
    %162 = vector.shape_cast %161 : vector<16x32xbf16> to vector<2x8x32xbf16>
    %163 = vector.extract_strided_slice %160 {offsets = [0, 32], sizes = [16, 32], strides = [1, 1]} : vector<16x64xbf16> to vector<16x32xbf16>
    %164 = vector.shape_cast %163 : vector<16x32xbf16> to vector<2x8x32xbf16>
    %165 = vector.extract_strided_slice %157 {offsets = [0, 0, 0], sizes = [2, 8, 8], strides = [1, 1, 1]} : vector<2x8x32xbf16> to vector<2x8x8xbf16>
    %166 = vector.extract_strided_slice %157 {offsets = [0, 0, 8], sizes = [2, 8, 8], strides = [1, 1, 1]} : vector<2x8x32xbf16> to vector<2x8x8xbf16>
    %167 = vector.extract_strided_slice %157 {offsets = [0, 0, 16], sizes = [2, 8, 8], strides = [1, 1, 1]} : vector<2x8x32xbf16> to vector<2x8x8xbf16>
    %168 = vector.extract_strided_slice %157 {offsets = [0, 0, 24], sizes = [2, 8, 8], strides = [1, 1, 1]} : vector<2x8x32xbf16> to vector<2x8x8xbf16>
    %169 = tpu.concatenate %165, %166, %167, %168 in 0 : vector<2x8x8xbf16>, vector<2x8x8xbf16>, vector<2x8x8xbf16>, vector<2x8x8xbf16> -> vector<8x8x8xbf16>
    %170 = vector.extract_strided_slice %162 {offsets = [0, 0, 0], sizes = [2, 8, 8], strides = [1, 1, 1]} : vector<2x8x32xbf16> to vector<2x8x8xbf16>
    %171 = vector.extract_strided_slice %162 {offsets = [0, 0, 8], sizes = [2, 8, 8], strides = [1, 1, 1]} : vector<2x8x32xbf16> to vector<2x8x8xbf16>
    %172 = vector.extract_strided_slice %162 {offsets = [0, 0, 16], sizes = [2, 8, 8], strides = [1, 1, 1]} : vector<2x8x32xbf16> to vector<2x8x8xbf16>
    %173 = vector.extract_strided_slice %162 {offsets = [0, 0, 24], sizes = [2, 8, 8], strides = [1, 1, 1]} : vector<2x8x32xbf16> to vector<2x8x8xbf16>
    %174 = tpu.concatenate %170, %171, %172, %173 in 0 : vector<2x8x8xbf16>, vector<2x8x8xbf16>, vector<2x8x8xbf16>, vector<2x8x8xbf16> -> vector<8x8x8xbf16>
    %175 = vector.extract_strided_slice %164 {offsets = [0, 0, 0], sizes = [2, 8, 8], strides = [1, 1, 1]} : vector<2x8x32xbf16> to vector<2x8x8xbf16>
    %176 = vector.extract_strided_slice %164 {offsets = [0, 0, 8], sizes = [2, 8, 8], strides = [1, 1, 1]} : vector<2x8x32xbf16> to vector<2x8x8xbf16>
    %177 = vector.extract_strided_slice %164 {offsets = [0, 0, 16], sizes = [2, 8, 8], strides = [1, 1, 1]} : vector<2x8x32xbf16> to vector<2x8x8xbf16>
    %178 = vector.extract_strided_slice %164 {offsets = [0, 0, 24], sizes = [2, 8, 8], strides = [1, 1, 1]} : vector<2x8x32xbf16> to vector<2x8x8xbf16>
    %179 = tpu.concatenate %175, %176, %177, %178 in 0 : vector<2x8x8xbf16>, vector<2x8x8xbf16>, vector<2x8x8xbf16>, vector<2x8x8xbf16> -> vector<8x8x8xbf16>
    "tpu.trace_start"() <{level = 10 : i32, message = "nqd,nkd->nqk"}> : () -> ()
    %cst_38 = arith.constant dense<0.000000e+00> : vector<8x8x8xf32>
    %180 = tpu.matmul %169, %174, %cst_38 {dimension_numbers = #tpu.dot_dimension_numbers<[2], [2], [1], [1], [0, 0, 0, 1, 1, 1], [0], [0]>} : vector<8x8x8xbf16>, vector<8x8x8xbf16>, vector<8x8x8xf32> -> vector<8x8x8xf32>
    "tpu.trace_stop"() : () -> ()
    %cst_39 = arith.constant 0.353553385 : f32
    %181 = vector.broadcast %cst_39 : f32 to vector<8x8x8xf32>
    %182 = arith.mulf %180, %181 : vector<8x8x8xf32>
    %183 = vector.broadcast %27 : vector<8x1x8xf32> to vector<8x8x8xf32>
    %184 = arith.addf %182, %183 : vector<8x8x8xf32>
    %cst_40 = arith.constant dense<0xFF800000> : vector<8x8xf32>
    %185 = vector.multi_reduction <maximumf>, %184, %cst_40 [2] : vector<8x8x8xf32> to vector<8x8xf32>
    %186 = vector.shape_cast %185 : vector<8x8xf32> to vector<8x8x1xf32>
    %187 = vector.broadcast %186 : vector<8x8x1xf32> to vector<8x8x8xf32>
    %188 = arith.subf %184, %187 : vector<8x8x8xf32>
    %189 = math.exp %188 : vector<8x8x8xf32>
    %cst_41 = arith.constant dense<0.000000e+00> : vector<8x8xf32>
    %190 = vector.multi_reduction <add>, %189, %cst_41 [2] : vector<8x8x8xf32> to vector<8x8xf32>
    %191 = vector.shape_cast %190 : vector<8x8xf32> to vector<8x8x1xf32>
    %192 = tpu.reciprocal %191 {approx = true} : vector<8x8x1xf32> -> vector<8x8x1xf32>
    %193 = vector.broadcast %192 : vector<8x8x1xf32> to vector<8x8x8xf32>
    %194 = arith.mulf %189, %193 : vector<8x8x8xf32>
    %195 = arith.truncf %194 : vector<8x8x8xf32> to vector<8x8x8xbf16>
    "tpu.trace_start"() <{level = 10 : i32, message = "nqk,nkd->nqd"}> : () -> ()
    %cst_42 = arith.constant dense<0.000000e+00> : vector<8x8x8xf32>
    %196 = tpu.matmul %195, %179, %cst_42 {dimension_numbers = #tpu.dot_dimension_numbers<[2], [1], [1], [2], [0, 0, 0, 1, 1, 2], [0], [0]>} : vector<8x8x8xbf16>, vector<8x8x8xbf16>, vector<8x8x8xf32> -> vector<8x8x8xf32>
    "tpu.trace_stop"() : () -> ()
    %197 = vector.extract_strided_slice %196 {offsets = [0, 0, 0], sizes = [2, 8, 8], strides = [1, 1, 1]} : vector<8x8x8xf32> to vector<2x8x8xf32>
    %198 = vector.extract_strided_slice %196 {offsets = [2, 0, 0], sizes = [2, 8, 8], strides = [1, 1, 1]} : vector<8x8x8xf32> to vector<2x8x8xf32>
    %199 = vector.extract_strided_slice %196 {offsets = [4, 0, 0], sizes = [2, 8, 8], strides = [1, 1, 1]} : vector<8x8x8xf32> to vector<2x8x8xf32>
    %200 = vector.extract_strided_slice %196 {offsets = [6, 0, 0], sizes = [2, 8, 8], strides = [1, 1, 1]} : vector<8x8x8xf32> to vector<2x8x8xf32>
    %201 = tpu.concatenate %197, %198, %199, %200 in 2 : vector<2x8x8xf32>, vector<2x8x8xf32>, vector<2x8x8xf32>, vector<2x8x8xf32> -> vector<2x8x32xf32>
    %202 = vector.shape_cast %201 : vector<2x8x32xf32> to vector<16x32xf32>
    %203 = arith.truncf %202 : vector<16x32xf32> to vector<16x32xbf16>
    %cst_43 = arith.constant dense<0.000000e+00> : vector<16x32xf32>
    %204 = tpu.matmul %203, %36, %cst_43 {dimension_numbers = #tpu.dot_dimension_numbers<[1], [0], [0], [1], [0, 0, 1, 1], [], []>} : vector<16x32xbf16>, vector<32x32xbf16>, vector<16x32xf32> -> vector<16x32xf32>
    %205 = vector.shape_cast %204 : vector<16x32xf32> to vector<2x8x32xf32>
    %206 = arith.truncf %205 : vector<2x8x32xf32> to vector<2x8x32xbf16>
    %207 = arith.addf %126, %206 : vector<2x8x32xbf16>
    %208 = arith.extf %207 : vector<2x8x32xbf16> to vector<2x8x32xf32>
    %cst_44 = arith.constant dense<0.000000e+00> : vector<2x8xf32>
    %209 = vector.multi_reduction <add>, %208, %cst_44 [2] : vector<2x8x32xf32> to vector<2x8xf32>
    %210 = vector.shape_cast %209 : vector<2x8xf32> to vector<2x8x1xf32>
    %cst_45 = arith.constant 3.200000e+01 : f32
    %211 = vector.broadcast %cst_45 : f32 to vector<2x8x1xf32>
    %212 = arith.divf %210, %211 : vector<2x8x1xf32>
    %213 = vector.broadcast %212 : vector<2x8x1xf32> to vector<2x8x32xf32>
    %214 = arith.subf %208, %213 : vector<2x8x32xf32>
    %215 = arith.mulf %214, %214 : vector<2x8x32xf32>
    %cst_46 = arith.constant dense<0.000000e+00> : vector<2x8xf32>
    %216 = vector.multi_reduction <add>, %215, %cst_46 [2] : vector<2x8x32xf32> to vector<2x8xf32>
    %217 = vector.shape_cast %216 : vector<2x8xf32> to vector<2x8x1xf32>
    %cst_47 = arith.constant 3.100000e+01 : f32
    %218 = vector.broadcast %cst_47 : f32 to vector<2x8x1xf32>
    %219 = arith.divf %217, %218 : vector<2x8x1xf32>
    %220 = math.sqrt %219 : vector<2x8x1xf32>
    %221 = vector.broadcast %212 : vector<2x8x1xf32> to vector<2x8x32xf32>
    %222 = arith.subf %208, %221 : vector<2x8x32xf32>
    %223 = vector.shape_cast %46 : vector<1x32xf32> to vector<1x1x32xf32>
    %224 = vector.broadcast %223 : vector<1x1x32xf32> to vector<2x8x32xf32>
    %225 = arith.mulf %224, %222 : vector<2x8x32xf32>
    %cst_48 = arith.constant 9.99999997E-7 : f32
    %226 = vector.broadcast %cst_48 : f32 to vector<2x8x1xf32>
    %227 = arith.addf %220, %226 : vector<2x8x1xf32>
    %228 = tpu.reciprocal %227 {approx = true} : vector<2x8x1xf32> -> vector<2x8x1xf32>
    %229 = vector.broadcast %228 : vector<2x8x1xf32> to vector<2x8x32xf32>
    %230 = arith.mulf %225, %229 : vector<2x8x32xf32>
    %231 = vector.shape_cast %47 : vector<1x32xf32> to vector<1x1x32xf32>
    %232 = vector.broadcast %231 : vector<1x1x32xf32> to vector<2x8x32xf32>
    %233 = arith.addf %230, %232 : vector<2x8x32xf32>
    %234 = arith.truncf %233 : vector<2x8x32xf32> to vector<2x8x32xbf16>
    %235 = vector.shape_cast %234 : vector<2x8x32xbf16> to vector<16x32xbf16>
    %cst_49 = arith.constant dense<0.000000e+00> : vector<16x64xf32>
    %236 = tpu.matmul %235, %37, %cst_49 {dimension_numbers = #tpu.dot_dimension_numbers<[1], [0], [0], [1], [0, 0, 1, 1], [], []>} : vector<16x32xbf16>, vector<32x64xbf16>, vector<16x64xf32> -> vector<16x64xf32>
    %237 = vector.broadcast %38 : vector<1x64xf32> to vector<16x64xf32>
    %238 = arith.addf %236, %237 : vector<16x64xf32>
    %cst_50 = arith.constant 0.000000e+00 : f32
    %239 = vector.broadcast %cst_50 : f32 to vector<16x64xf32>
    %240 = arith.maximumf %238, %239 : vector<16x64xf32>
    %241 = arith.truncf %240 : vector<16x64xf32> to vector<16x64xbf16>
    %cst_51 = arith.constant dense<0.000000e+00> : vector<16x32xf32>
    %242 = tpu.matmul %241, %40, %cst_51 {dimension_numbers = #tpu.dot_dimension_numbers<[1], [0], [0], [1], [0, 0, 1, 1], [], []>} : vector<16x64xbf16>, vector<64x32xbf16>, vector<16x32xf32> -> vector<16x32xf32>
    %243 = vector.broadcast %41 : vector<1x32xf32> to vector<16x32xf32>
    %244 = arith.addf %242, %243 : vector<16x32xf32>
    %245 = vector.shape_cast %244 : vector<16x32xf32> to vector<2x8x32xf32>
    %246 = arith.truncf %245 : vector<2x8x32xf32> to vector<2x8x32xbf16>
    %247 = arith.addf %207, %246 : vector<2x8x32xbf16>
    %c1 = arith.constant 1 : index
    %c0_52 = arith.constant 0 : index
    %c0_53 = arith.constant 0 : index
    %248 = vector.load %arg4[%c1, %c0_52, %c0_53] : memref<2x32x320xbf16, #tpu.memory_space<vmem>>, vector<1x32x320xbf16>
    %249 = vector.shape_cast %248 : vector<1x32x320xbf16> to vector<32x320xbf16>
    %c1_54 = arith.constant 1 : index
    %c0_55 = arith.constant 0 : index
    %c0_56 = arith.constant 0 : index
    %250 = vector.load %arg6[%c1_54, %c0_55, %c0_56] : memref<2x8x64xf32, #tpu.memory_space<vmem>>, vector<1x8x64xf32>
    %251 = vector.shape_cast %250 : vector<1x8x64xf32> to vector<8x64xf32>
    %252 = vector.extract_strided_slice %249 {offsets = [0, 0], sizes = [32, 96], strides = [1, 1]} : vector<32x320xbf16> to vector<32x96xbf16>
    %253 = vector.extract_strided_slice %249 {offsets = [0, 96], sizes = [32, 32], strides = [1, 1]} : vector<32x320xbf16> to vector<32x32xbf16>
    %254 = vector.extract_strided_slice %249 {offsets = [0, 128], sizes = [32, 32], strides = [1, 1]} : vector<32x320xbf16> to vector<32x32xbf16>
    %255 = vector.extract_strided_slice %249 {offsets = [0, 160], sizes = [32, 64], strides = [1, 1]} : vector<32x320xbf16> to vector<32x64xbf16>
    %256 = vector.extract_strided_slice %249 {offsets = [0, 224], sizes = [32, 32], strides = [1, 1]} : vector<32x320xbf16> to vector<32x32xbf16>
    %257 = vector.extract_strided_slice %249 {offsets = [0, 256], sizes = [32, 64], strides = [1, 1]} : vector<32x320xbf16> to vector<32x64xbf16>
    %258 = vector.extract_strided_slice %251 {offsets = [0, 0], sizes = [1, 64], strides = [1, 1]} : vector<8x64xf32> to vector<1x64xf32>
    %c1_57 = arith.constant 1 : index
    %c0_58 = arith.constant 0 : index
    %c0_59 = arith.constant 0 : index
    %259 = vector.load %arg5[%c1_57, %c0_58, %c0_59] : memref<2x64x32xbf16, #tpu.memory_space<vmem>>, vector<1x64x32xbf16>
    %260 = vector.shape_cast %259 : vector<1x64x32xbf16> to vector<64x32xbf16>
    %261 = vector.extract_strided_slice %251 {offsets = [1, 0], sizes = [1, 32], strides = [1, 1]} : vector<8x64xf32> to vector<1x32xf32>
    %262 = vector.extract_strided_slice %251 {offsets = [2, 0], sizes = [1, 32], strides = [1, 1]} : vector<8x64xf32> to vector<1x32xf32>
    %263 = vector.extract_strided_slice %251 {offsets = [3, 0], sizes = [1, 32], strides = [1, 1]} : vector<8x64xf32> to vector<1x32xf32>
    %264 = vector.extract_strided_slice %251 {offsets = [4, 0], sizes = [1, 32], strides = [1, 1]} : vector<8x64xf32> to vector<1x32xf32>
    %265 = vector.extract_strided_slice %251 {offsets = [5, 0], sizes = [1, 32], strides = [1, 1]} : vector<8x64xf32> to vector<1x32xf32>
    %266 = vector.extract_strided_slice %251 {offsets = [6, 0], sizes = [1, 32], strides = [1, 1]} : vector<8x64xf32> to vector<1x32xf32>
    %267 = vector.extract_strided_slice %251 {offsets = [7, 0], sizes = [1, 32], strides = [1, 1]} : vector<8x64xf32> to vector<1x32xf32>
    %268 = arith.extf %247 : vector<2x8x32xbf16> to vector<2x8x32xf32>
    %cst_60 = arith.constant dense<0.000000e+00> : vector<2x8xf32>
    %269 = vector.multi_reduction <add>, %268, %cst_60 [2] : vector<2x8x32xf32> to vector<2x8xf32>
    %270 = vector.shape_cast %269 : vector<2x8xf32> to vector<2x8x1xf32>
    %cst_61 = arith.constant 3.200000e+01 : f32
    %271 = vector.broadcast %cst_61 : f32 to vector<2x8x1xf32>
    %272 = arith.divf %270, %271 : vector<2x8x1xf32>
    %273 = vector.broadcast %272 : vector<2x8x1xf32> to vector<2x8x32xf32>
    %274 = arith.subf %268, %273 : vector<2x8x32xf32>
    %275 = arith.mulf %274, %274 : vector<2x8x32xf32>
    %cst_62 = arith.constant dense<0.000000e+00> : vector<2x8xf32>
    %276 = vector.multi_reduction <add>, %275, %cst_62 [2] : vector<2x8x32xf32> to vector<2x8xf32>
    %277 = vector.shape_cast %276 : vector<2x8xf32> to vector<2x8x1xf32>
    %cst_63 = arith.constant 3.100000e+01 : f32
    %278 = vector.broadcast %cst_63 : f32 to vector<2x8x1xf32>
    %279 = arith.divf %277, %278 : vector<2x8x1xf32>
    %280 = math.sqrt %279 : vector<2x8x1xf32>
    %281 = vector.broadcast %272 : vector<2x8x1xf32> to vector<2x8x32xf32>
    %282 = arith.subf %268, %281 : vector<2x8x32xf32>
    %283 = vector.shape_cast %262 : vector<1x32xf32> to vector<1x1x32xf32>
    %284 = vector.broadcast %283 : vector<1x1x32xf32> to vector<2x8x32xf32>
    %285 = arith.mulf %284, %282 : vector<2x8x32xf32>
    %cst_64 = arith.constant 9.99999997E-7 : f32
    %286 = vector.broadcast %cst_64 : f32 to vector<2x8x1xf32>
    %287 = arith.addf %280, %286 : vector<2x8x1xf32>
    %288 = tpu.reciprocal %287 {approx = true} : vector<2x8x1xf32> -> vector<2x8x1xf32>
    %289 = vector.broadcast %288 : vector<2x8x1xf32> to vector<2x8x32xf32>
    %290 = arith.mulf %285, %289 : vector<2x8x32xf32>
    %291 = vector.shape_cast %263 : vector<1x32xf32> to vector<1x1x32xf32>
    %292 = vector.broadcast %291 : vector<1x1x32xf32> to vector<2x8x32xf32>
    %293 = arith.addf %290, %292 : vector<2x8x32xf32>
    %294 = arith.truncf %293 : vector<2x8x32xf32> to vector<2x8x32xbf16>
    %295 = vector.shape_cast %294 : vector<2x8x32xbf16> to vector<16x32xbf16>
    %cst_65 = arith.constant dense<0.000000e+00> : vector<16x96xf32>
    %296 = tpu.matmul %295, %252, %cst_65 {dimension_numbers = #tpu.dot_dimension_numbers<[1], [0], [0], [1], [0, 0, 1, 1], [], []>} : vector<16x32xbf16>, vector<32x96xbf16>, vector<16x96xf32> -> vector<16x96xf32>
    %297 = arith.truncf %296 : vector<16x96xf32> to vector<16x96xbf16>
    %298 = vector.extract_strided_slice %297 {offsets = [0, 0], sizes = [16, 32], strides = [1, 1]} : vector<16x96xbf16> to vector<16x32xbf16>
    %299 = vector.shape_cast %298 : vector<16x32xbf16> to vector<2x8x32xbf16>
    %300 = vector.extract_strided_slice %297 {offsets = [0, 32], sizes = [16, 32], strides = [1, 1]} : vector<16x96xbf16> to vector<16x32xbf16>
    %301 = vector.shape_cast %300 : vector<16x32xbf16> to vector<2x8x32xbf16>
    %302 = vector.extract_strided_slice %297 {offsets = [0, 64], sizes = [16, 32], strides = [1, 1]} : vector<16x96xbf16> to vector<16x32xbf16>
    %303 = vector.shape_cast %302 : vector<16x32xbf16> to vector<2x8x32xbf16>
    %304 = vector.extract_strided_slice %299 {offsets = [0, 0, 0], sizes = [2, 8, 8], strides = [1, 1, 1]} : vector<2x8x32xbf16> to vector<2x8x8xbf16>
    %305 = vector.extract_strided_slice %299 {offsets = [0, 0, 8], sizes = [2, 8, 8], strides = [1, 1, 1]} : vector<2x8x32xbf16> to vector<2x8x8xbf16>
    %306 = vector.extract_strided_slice %299 {offsets = [0, 0, 16], sizes = [2, 8, 8], strides = [1, 1, 1]} : vector<2x8x32xbf16> to vector<2x8x8xbf16>
    %307 = vector.extract_strided_slice %299 {offsets = [0, 0, 24], sizes = [2, 8, 8], strides = [1, 1, 1]} : vector<2x8x32xbf16> to vector<2x8x8xbf16>
    %308 = tpu.concatenate %304, %305, %306, %307 in 0 : vector<2x8x8xbf16>, vector<2x8x8xbf16>, vector<2x8x8xbf16>, vector<2x8x8xbf16> -> vector<8x8x8xbf16>
    %309 = vector.extract_strided_slice %301 {offsets = [0, 0, 0], sizes = [2, 8, 8], strides = [1, 1, 1]} : vector<2x8x32xbf16> to vector<2x8x8xbf16>
    %310 = vector.extract_strided_slice %301 {offsets = [0, 0, 8], sizes = [2, 8, 8], strides = [1, 1, 1]} : vector<2x8x32xbf16> to vector<2x8x8xbf16>
    %311 = vector.extract_strided_slice %301 {offsets = [0, 0, 16], sizes = [2, 8, 8], strides = [1, 1, 1]} : vector<2x8x32xbf16> to vector<2x8x8xbf16>
    %312 = vector.extract_strided_slice %301 {offsets = [0, 0, 24], sizes = [2, 8, 8], strides = [1, 1, 1]} : vector<2x8x32xbf16> to vector<2x8x8xbf16>
    %313 = tpu.concatenate %309, %310, %311, %312 in 0 : vector<2x8x8xbf16>, vector<2x8x8xbf16>, vector<2x8x8xbf16>, vector<2x8x8xbf16> -> vector<8x8x8xbf16>
    %314 = vector.extract_strided_slice %303 {offsets = [0, 0, 0], sizes = [2, 8, 8], strides = [1, 1, 1]} : vector<2x8x32xbf16> to vector<2x8x8xbf16>
    %315 = vector.extract_strided_slice %303 {offsets = [0, 0, 8], sizes = [2, 8, 8], strides = [1, 1, 1]} : vector<2x8x32xbf16> to vector<2x8x8xbf16>
    %316 = vector.extract_strided_slice %303 {offsets = [0, 0, 16], sizes = [2, 8, 8], strides = [1, 1, 1]} : vector<2x8x32xbf16> to vector<2x8x8xbf16>
    %317 = vector.extract_strided_slice %303 {offsets = [0, 0, 24], sizes = [2, 8, 8], strides = [1, 1, 1]} : vector<2x8x32xbf16> to vector<2x8x8xbf16>
    %318 = tpu.concatenate %314, %315, %316, %317 in 0 : vector<2x8x8xbf16>, vector<2x8x8xbf16>, vector<2x8x8xbf16>, vector<2x8x8xbf16> -> vector<8x8x8xbf16>
    "tpu.trace_start"() <{level = 10 : i32, message = "nqd,nkd->nqk"}> : () -> ()
    %cst_66 = arith.constant dense<0.000000e+00> : vector<8x8x8xf32>
    %319 = tpu.matmul %308, %313, %cst_66 {dimension_numbers = #tpu.dot_dimension_numbers<[2], [2], [1], [1], [0, 0, 0, 1, 1, 1], [0], [0]>} : vector<8x8x8xbf16>, vector<8x8x8xbf16>, vector<8x8x8xf32> -> vector<8x8x8xf32>
    "tpu.trace_stop"() : () -> ()
    %cst_67 = arith.constant 0.353553385 : f32
    %320 = vector.broadcast %cst_67 : f32 to vector<8x8x8xf32>
    %321 = arith.mulf %319, %320 : vector<8x8x8xf32>
    %322 = vector.broadcast %7 : vector<1x8x8xf32> to vector<8x8x8xf32>
    %323 = arith.addf %321, %322 : vector<8x8x8xf32>
    %cst_68 = arith.constant dense<0xFF800000> : vector<8x8xf32>
    %324 = vector.multi_reduction <maximumf>, %323, %cst_68 [2] : vector<8x8x8xf32> to vector<8x8xf32>
    %325 = vector.shape_cast %324 : vector<8x8xf32> to vector<8x8x1xf32>
    %326 = vector.broadcast %325 : vector<8x8x1xf32> to vector<8x8x8xf32>
    %327 = arith.subf %323, %326 : vector<8x8x8xf32>
    %328 = math.exp %327 : vector<8x8x8xf32>
    %cst_69 = arith.constant dense<0.000000e+00> : vector<8x8xf32>
    %329 = vector.multi_reduction <add>, %328, %cst_69 [2] : vector<8x8x8xf32> to vector<8x8xf32>
    %330 = vector.shape_cast %329 : vector<8x8xf32> to vector<8x8x1xf32>
    %331 = tpu.reciprocal %330 {approx = true} : vector<8x8x1xf32> -> vector<8x8x1xf32>
    %332 = vector.broadcast %331 : vector<8x8x1xf32> to vector<8x8x8xf32>
    %333 = arith.mulf %328, %332 : vector<8x8x8xf32>
    %334 = arith.truncf %333 : vector<8x8x8xf32> to vector<8x8x8xbf16>
    "tpu.trace_start"() <{level = 10 : i32, message = "nqk,nkd->nqd"}> : () -> ()
    %cst_70 = arith.constant dense<0.000000e+00> : vector<8x8x8xf32>
    %335 = tpu.matmul %334, %318, %cst_70 {dimension_numbers = #tpu.dot_dimension_numbers<[2], [1], [1], [2], [0, 0, 0, 1, 1, 2], [0], [0]>} : vector<8x8x8xbf16>, vector<8x8x8xbf16>, vector<8x8x8xf32> -> vector<8x8x8xf32>
    "tpu.trace_stop"() : () -> ()
    %336 = vector.extract_strided_slice %335 {offsets = [0, 0, 0], sizes = [2, 8, 8], strides = [1, 1, 1]} : vector<8x8x8xf32> to vector<2x8x8xf32>
    %337 = vector.extract_strided_slice %335 {offsets = [2, 0, 0], sizes = [2, 8, 8], strides = [1, 1, 1]} : vector<8x8x8xf32> to vector<2x8x8xf32>
    %338 = vector.extract_strided_slice %335 {offsets = [4, 0, 0], sizes = [2, 8, 8], strides = [1, 1, 1]} : vector<8x8x8xf32> to vector<2x8x8xf32>
    %339 = vector.extract_strided_slice %335 {offsets = [6, 0, 0], sizes = [2, 8, 8], strides = [1, 1, 1]} : vector<8x8x8xf32> to vector<2x8x8xf32>
    %340 = tpu.concatenate %336, %337, %338, %339 in 2 : vector<2x8x8xf32>, vector<2x8x8xf32>, vector<2x8x8xf32>, vector<2x8x8xf32> -> vector<2x8x32xf32>
    %341 = vector.shape_cast %340 : vector<2x8x32xf32> to vector<16x32xf32>
    %342 = arith.truncf %341 : vector<16x32xf32> to vector<16x32xbf16>
    %cst_71 = arith.constant dense<0.000000e+00> : vector<16x32xf32>
    %343 = tpu.matmul %342, %253, %cst_71 {dimension_numbers = #tpu.dot_dimension_numbers<[1], [0], [0], [1], [0, 0, 1, 1], [], []>} : vector<16x32xbf16>, vector<32x32xbf16>, vector<16x32xf32> -> vector<16x32xf32>
    %344 = vector.shape_cast %343 : vector<16x32xf32> to vector<2x8x32xf32>
    %345 = arith.truncf %344 : vector<2x8x32xf32> to vector<2x8x32xbf16>
    %346 = arith.addf %247, %345 : vector<2x8x32xbf16>
    %347 = arith.extf %346 : vector<2x8x32xbf16> to vector<2x8x32xf32>
    %cst_72 = arith.constant dense<0.000000e+00> : vector<2x8xf32>
    %348 = vector.multi_reduction <add>, %347, %cst_72 [2] : vector<2x8x32xf32> to vector<2x8xf32>
    %349 = vector.shape_cast %348 : vector<2x8xf32> to vector<2x8x1xf32>
    %cst_73 = arith.constant 3.200000e+01 : f32
    %350 = vector.broadcast %cst_73 : f32 to vector<2x8x1xf32>
    %351 = arith.divf %349, %350 : vector<2x8x1xf32>
    %352 = vector.broadcast %351 : vector<2x8x1xf32> to vector<2x8x32xf32>
    %353 = arith.subf %347, %352 : vector<2x8x32xf32>
    %354 = arith.mulf %353, %353 : vector<2x8x32xf32>
    %cst_74 = arith.constant dense<0.000000e+00> : vector<2x8xf32>
    %355 = vector.multi_reduction <add>, %354, %cst_74 [2] : vector<2x8x32xf32> to vector<2x8xf32>
    %356 = vector.shape_cast %355 : vector<2x8xf32> to vector<2x8x1xf32>
    %cst_75 = arith.constant 3.100000e+01 : f32
    %357 = vector.broadcast %cst_75 : f32 to vector<2x8x1xf32>
    %358 = arith.divf %356, %357 : vector<2x8x1xf32>
    %359 = math.sqrt %358 : vector<2x8x1xf32>
    %360 = vector.broadcast %351 : vector<2x8x1xf32> to vector<2x8x32xf32>
    %361 = arith.subf %347, %360 : vector<2x8x32xf32>
    %362 = vector.shape_cast %264 : vector<1x32xf32> to vector<1x1x32xf32>
    %363 = vector.broadcast %362 : vector<1x1x32xf32> to vector<2x8x32xf32>
    %364 = arith.mulf %363, %361 : vector<2x8x32xf32>
    %cst_76 = arith.constant 9.99999997E-7 : f32
    %365 = vector.broadcast %cst_76 : f32 to vector<2x8x1xf32>
    %366 = arith.addf %359, %365 : vector<2x8x1xf32>
    %367 = tpu.reciprocal %366 {approx = true} : vector<2x8x1xf32> -> vector<2x8x1xf32>
    %368 = vector.broadcast %367 : vector<2x8x1xf32> to vector<2x8x32xf32>
    %369 = arith.mulf %364, %368 : vector<2x8x32xf32>
    %370 = vector.shape_cast %265 : vector<1x32xf32> to vector<1x1x32xf32>
    %371 = vector.broadcast %370 : vector<1x1x32xf32> to vector<2x8x32xf32>
    %372 = arith.addf %369, %371 : vector<2x8x32xf32>
    %373 = arith.truncf %372 : vector<2x8x32xf32> to vector<2x8x32xbf16>
    %374 = vector.shape_cast %373 : vector<2x8x32xbf16> to vector<16x32xbf16>
    %cst_77 = arith.constant dense<0.000000e+00> : vector<16x32xf32>
    %375 = tpu.matmul %374, %254, %cst_77 {dimension_numbers = #tpu.dot_dimension_numbers<[1], [0], [0], [1], [0, 0, 1, 1], [], []>} : vector<16x32xbf16>, vector<32x32xbf16>, vector<16x32xf32> -> vector<16x32xf32>
    %376 = arith.truncf %375 : vector<16x32xf32> to vector<16x32xbf16>
    %377 = vector.shape_cast %376 : vector<16x32xbf16> to vector<2x8x32xbf16>
    %378 = vector.shape_cast %1 : vector<2x8x32xbf16> to vector<16x32xbf16>
    %cst_78 = arith.constant dense<0.000000e+00> : vector<16x64xf32>
    %379 = tpu.matmul %378, %255, %cst_78 {dimension_numbers = #tpu.dot_dimension_numbers<[1], [0], [0], [1], [0, 0, 1, 1], [], []>} : vector<16x32xbf16>, vector<32x64xbf16>, vector<16x64xf32> -> vector<16x64xf32>
    %380 = arith.truncf %379 : vector<16x64xf32> to vector<16x64xbf16>
    %381 = vector.extract_strided_slice %380 {offsets = [0, 0], sizes = [16, 32], strides = [1, 1]} : vector<16x64xbf16> to vector<16x32xbf16>
    %382 = vector.shape_cast %381 : vector<16x32xbf16> to vector<2x8x32xbf16>
    %383 = vector.extract_strided_slice %380 {offsets = [0, 32], sizes = [16, 32], strides = [1, 1]} : vector<16x64xbf16> to vector<16x32xbf16>
    %384 = vector.shape_cast %383 : vector<16x32xbf16> to vector<2x8x32xbf16>
    %385 = vector.extract_strided_slice %377 {offsets = [0, 0, 0], sizes = [2, 8, 8], strides = [1, 1, 1]} : vector<2x8x32xbf16> to vector<2x8x8xbf16>
    %386 = vector.extract_strided_slice %377 {offsets = [0, 0, 8], sizes = [2, 8, 8], strides = [1, 1, 1]} : vector<2x8x32xbf16> to vector<2x8x8xbf16>
    %387 = vector.extract_strided_slice %377 {offsets = [0, 0, 16], sizes = [2, 8, 8], strides = [1, 1, 1]} : vector<2x8x32xbf16> to vector<2x8x8xbf16>
    %388 = vector.extract_strided_slice %377 {offsets = [0, 0, 24], sizes = [2, 8, 8], strides = [1, 1, 1]} : vector<2x8x32xbf16> to vector<2x8x8xbf16>
    %389 = tpu.concatenate %385, %386, %387, %388 in 0 : vector<2x8x8xbf16>, vector<2x8x8xbf16>, vector<2x8x8xbf16>, vector<2x8x8xbf16> -> vector<8x8x8xbf16>
    %390 = vector.extract_strided_slice %382 {offsets = [0, 0, 0], sizes = [2, 8, 8], strides = [1, 1, 1]} : vector<2x8x32xbf16> to vector<2x8x8xbf16>
    %391 = vector.extract_strided_slice %382 {offsets = [0, 0, 8], sizes = [2, 8, 8], strides = [1, 1, 1]} : vector<2x8x32xbf16> to vector<2x8x8xbf16>
    %392 = vector.extract_strided_slice %382 {offsets = [0, 0, 16], sizes = [2, 8, 8], strides = [1, 1, 1]} : vector<2x8x32xbf16> to vector<2x8x8xbf16>
    %393 = vector.extract_strided_slice %382 {offsets = [0, 0, 24], sizes = [2, 8, 8], strides = [1, 1, 1]} : vector<2x8x32xbf16> to vector<2x8x8xbf16>
    %394 = tpu.concatenate %390, %391, %392, %393 in 0 : vector<2x8x8xbf16>, vector<2x8x8xbf16>, vector<2x8x8xbf16>, vector<2x8x8xbf16> -> vector<8x8x8xbf16>
    %395 = vector.extract_strided_slice %384 {offsets = [0, 0, 0], sizes = [2, 8, 8], strides = [1, 1, 1]} : vector<2x8x32xbf16> to vector<2x8x8xbf16>
    %396 = vector.extract_strided_slice %384 {offsets = [0, 0, 8], sizes = [2, 8, 8], strides = [1, 1, 1]} : vector<2x8x32xbf16> to vector<2x8x8xbf16>
    %397 = vector.extract_strided_slice %384 {offsets = [0, 0, 16], sizes = [2, 8, 8], strides = [1, 1, 1]} : vector<2x8x32xbf16> to vector<2x8x8xbf16>
    %398 = vector.extract_strided_slice %384 {offsets = [0, 0, 24], sizes = [2, 8, 8], strides = [1, 1, 1]} : vector<2x8x32xbf16> to vector<2x8x8xbf16>
    %399 = tpu.concatenate %395, %396, %397, %398 in 0 : vector<2x8x8xbf16>, vector<2x8x8xbf16>, vector<2x8x8xbf16>, vector<2x8x8xbf16> -> vector<8x8x8xbf16>
    "tpu.trace_start"() <{level = 10 : i32, message = "nqd,nkd->nqk"}> : () -> ()
    %cst_79 = arith.constant dense<0.000000e+00> : vector<8x8x8xf32>
    %400 = tpu.matmul %389, %394, %cst_79 {dimension_numbers = #tpu.dot_dimension_numbers<[2], [2], [1], [1], [0, 0, 0, 1, 1, 1], [0], [0]>} : vector<8x8x8xbf16>, vector<8x8x8xbf16>, vector<8x8x8xf32> -> vector<8x8x8xf32>
    "tpu.trace_stop"() : () -> ()
    %cst_80 = arith.constant 0.353553385 : f32
    %401 = vector.broadcast %cst_80 : f32 to vector<8x8x8xf32>
    %402 = arith.mulf %400, %401 : vector<8x8x8xf32>
    %403 = vector.broadcast %27 : vector<8x1x8xf32> to vector<8x8x8xf32>
    %404 = arith.addf %402, %403 : vector<8x8x8xf32>
    %cst_81 = arith.constant dense<0xFF800000> : vector<8x8xf32>
    %405 = vector.multi_reduction <maximumf>, %404, %cst_81 [2] : vector<8x8x8xf32> to vector<8x8xf32>
    %406 = vector.shape_cast %405 : vector<8x8xf32> to vector<8x8x1xf32>
    %407 = vector.broadcast %406 : vector<8x8x1xf32> to vector<8x8x8xf32>
    %408 = arith.subf %404, %407 : vector<8x8x8xf32>
    %409 = math.exp %408 : vector<8x8x8xf32>
    %cst_82 = arith.constant dense<0.000000e+00> : vector<8x8xf32>
    %410 = vector.multi_reduction <add>, %409, %cst_82 [2] : vector<8x8x8xf32> to vector<8x8xf32>
    %411 = vector.shape_cast %410 : vector<8x8xf32> to vector<8x8x1xf32>
    %412 = tpu.reciprocal %411 {approx = true} : vector<8x8x1xf32> -> vector<8x8x1xf32>
    %413 = vector.broadcast %412 : vector<8x8x1xf32> to vector<8x8x8xf32>
    %414 = arith.mulf %409, %413 : vector<8x8x8xf32>
    %415 = arith.truncf %414 : vector<8x8x8xf32> to vector<8x8x8xbf16>
    "tpu.trace_start"() <{level = 10 : i32, message = "nqk,nkd->nqd"}> : () -> ()
    %cst_83 = arith.constant dense<0.000000e+00> : vector<8x8x8xf32>
    %416 = tpu.matmul %415, %399, %cst_83 {dimension_numbers = #tpu.dot_dimension_numbers<[2], [1], [1], [2], [0, 0, 0, 1, 1, 2], [0], [0]>} : vector<8x8x8xbf16>, vector<8x8x8xbf16>, vector<8x8x8xf32> -> vector<8x8x8xf32>
    "tpu.trace_stop"() : () -> ()
    %417 = vector.extract_strided_slice %416 {offsets = [0, 0, 0], sizes = [2, 8, 8], strides = [1, 1, 1]} : vector<8x8x8xf32> to vector<2x8x8xf32>
    %418 = vector.extract_strided_slice %416 {offsets = [2, 0, 0], sizes = [2, 8, 8], strides = [1, 1, 1]} : vector<8x8x8xf32> to vector<2x8x8xf32>
    %419 = vector.extract_strided_slice %416 {offsets = [4, 0, 0], sizes = [2, 8, 8], strides = [1, 1, 1]} : vector<8x8x8xf32> to vector<2x8x8xf32>
    %420 = vector.extract_strided_slice %416 {offsets = [6, 0, 0], sizes = [2, 8, 8], strides = [1, 1, 1]} : vector<8x8x8xf32> to vector<2x8x8xf32>
    %421 = tpu.concatenate %417, %418, %419, %420 in 2 : vector<2x8x8xf32>, vector<2x8x8xf32>, vector<2x8x8xf32>, vector<2x8x8xf32> -> vector<2x8x32xf32>
    %422 = vector.shape_cast %421 : vector<2x8x32xf32> to vector<16x32xf32>
    %423 = arith.truncf %422 : vector<16x32xf32> to vector<16x32xbf16>
    %cst_84 = arith.constant dense<0.000000e+00> : vector<16x32xf32>
    %424 = tpu.matmul %423, %256, %cst_84 {dimension_numbers = #tpu.dot_dimension_numbers<[1], [0], [0], [1], [0, 0, 1, 1], [], []>} : vector<16x32xbf16>, vector<32x32xbf16>, vector<16x32xf32> -> vector<16x32xf32>
    %425 = vector.shape_cast %424 : vector<16x32xf32> to vector<2x8x32xf32>
    %426 = arith.truncf %425 : vector<2x8x32xf32> to vector<2x8x32xbf16>
    %427 = arith.addf %346, %426 : vector<2x8x32xbf16>
    %428 = arith.extf %427 : vector<2x8x32xbf16> to vector<2x8x32xf32>
    %cst_85 = arith.constant dense<0.000000e+00> : vector<2x8xf32>
    %429 = vector.multi_reduction <add>, %428, %cst_85 [2] : vector<2x8x32xf32> to vector<2x8xf32>
    %430 = vector.shape_cast %429 : vector<2x8xf32> to vector<2x8x1xf32>
    %cst_86 = arith.constant 3.200000e+01 : f32
    %431 = vector.broadcast %cst_86 : f32 to vector<2x8x1xf32>
    %432 = arith.divf %430, %431 : vector<2x8x1xf32>
    %433 = vector.broadcast %432 : vector<2x8x1xf32> to vector<2x8x32xf32>
    %434 = arith.subf %428, %433 : vector<2x8x32xf32>
    %435 = arith.mulf %434, %434 : vector<2x8x32xf32>
    %cst_87 = arith.constant dense<0.000000e+00> : vector<2x8xf32>
    %436 = vector.multi_reduction <add>, %435, %cst_87 [2] : vector<2x8x32xf32> to vector<2x8xf32>
    %437 = vector.shape_cast %436 : vector<2x8xf32> to vector<2x8x1xf32>
    %cst_88 = arith.constant 3.100000e+01 : f32
    %438 = vector.broadcast %cst_88 : f32 to vector<2x8x1xf32>
    %439 = arith.divf %437, %438 : vector<2x8x1xf32>
    %440 = math.sqrt %439 : vector<2x8x1xf32>
    %441 = vector.broadcast %432 : vector<2x8x1xf32> to vector<2x8x32xf32>
    %442 = arith.subf %428, %441 : vector<2x8x32xf32>
    %443 = vector.shape_cast %266 : vector<1x32xf32> to vector<1x1x32xf32>
    %444 = vector.broadcast %443 : vector<1x1x32xf32> to vector<2x8x32xf32>
    %445 = arith.mulf %444, %442 : vector<2x8x32xf32>
    %cst_89 = arith.constant 9.99999997E-7 : f32
    %446 = vector.broadcast %cst_89 : f32 to vector<2x8x1xf32>
    %447 = arith.addf %440, %446 : vector<2x8x1xf32>
    %448 = tpu.reciprocal %447 {approx = true} : vector<2x8x1xf32> -> vector<2x8x1xf32>
    %449 = vector.broadcast %448 : vector<2x8x1xf32> to vector<2x8x32xf32>
    %450 = arith.mulf %445, %449 : vector<2x8x32xf32>
    %451 = vector.shape_cast %267 : vector<1x32xf32> to vector<1x1x32xf32>
    %452 = vector.broadcast %451 : vector<1x1x32xf32> to vector<2x8x32xf32>
    %453 = arith.addf %450, %452 : vector<2x8x32xf32>
    %454 = arith.truncf %453 : vector<2x8x32xf32> to vector<2x8x32xbf16>
    %455 = vector.shape_cast %454 : vector<2x8x32xbf16> to vector<16x32xbf16>
    %cst_90 = arith.constant dense<0.000000e+00> : vector<16x64xf32>
    %456 = tpu.matmul %455, %257, %cst_90 {dimension_numbers = #tpu.dot_dimension_numbers<[1], [0], [0], [1], [0, 0, 1, 1], [], []>} : vector<16x32xbf16>, vector<32x64xbf16>, vector<16x64xf32> -> vector<16x64xf32>
    %457 = vector.broadcast %258 : vector<1x64xf32> to vector<16x64xf32>
    %458 = arith.addf %456, %457 : vector<16x64xf32>
    %cst_91 = arith.constant 0.000000e+00 : f32
    %459 = vector.broadcast %cst_91 : f32 to vector<16x64xf32>
    %460 = arith.maximumf %458, %459 : vector<16x64xf32>
    %461 = arith.truncf %460 : vector<16x64xf32> to vector<16x64xbf16>
    %cst_92 = arith.constant dense<0.000000e+00> : vector<16x32xf32>
    %462 = tpu.matmul %461, %260, %cst_92 {dimension_numbers = #tpu.dot_dimension_numbers<[1], [0], [0], [1], [0, 0, 1, 1], [], []>} : vector<16x64xbf16>, vector<64x32xbf16>, vector<16x32xf32> -> vector<16x32xf32>
    %463 = vector.broadcast %261 : vector<1x32xf32> to vector<16x32xf32>
    %464 = arith.addf %462, %463 : vector<16x32xf32>
    %465 = vector.shape_cast %464 : vector<16x32xf32> to vector<2x8x32xf32>
    %466 = arith.truncf %465 : vector<2x8x32xf32> to vector<2x8x32xbf16>
    %467 = arith.addf %427, %466 : vector<2x8x32xbf16>
    %c0_93 = arith.constant 0 : index
    %c0_94 = arith.constant 0 : index
    %468 = vector.load %arg7[%c0_93, %c0_94] : memref<2x32xf32, #tpu.memory_space<vmem>>, vector<2x32xf32>
    %469 = vector.extract_strided_slice %468 {offsets = [0, 0], sizes = [1, 32], strides = [1, 1]} : vector<2x32xf32> to vector<1x32xf32>
    %470 = vector.extract_strided_slice %468 {offsets = [1, 0], sizes = [1, 32], strides = [1, 1]} : vector<2x32xf32> to vector<1x32xf32>
    %471 = arith.extf %467 : vector<2x8x32xbf16> to vector<2x8x32xf32>
    %cst_95 = arith.constant dense<0.000000e+00> : vector<2x8xf32>
    %472 = vector.multi_reduction <add>, %471, %cst_95 [2] : vector<2x8x32xf32> to vector<2x8xf32>
    %473 = vector.shape_cast %472 : vector<2x8xf32> to vector<2x8x1xf32>
    %cst_96 = arith.constant 3.200000e+01 : f32
    %474 = vector.broadcast %cst_96 : f32 to vector<2x8x1xf32>
    %475 = arith.divf %473, %474 : vector<2x8x1xf32>
    %476 = vector.broadcast %475 : vector<2x8x1xf32> to vector<2x8x32xf32>
    %477 = arith.subf %471, %476 : vector<2x8x32xf32>
    %478 = arith.mulf %477, %477 : vector<2x8x32xf32>
    %cst_97 = arith.constant dense<0.000000e+00> : vector<2x8xf32>
    %479 = vector.multi_reduction <add>, %478, %cst_97 [2] : vector<2x8x32xf32> to vector<2x8xf32>
    %480 = vector.shape_cast %479 : vector<2x8xf32> to vector<2x8x1xf32>
    %cst_98 = arith.constant 3.100000e+01 : f32
    %481 = vector.broadcast %cst_98 : f32 to vector<2x8x1xf32>
    %482 = arith.divf %480, %481 : vector<2x8x1xf32>
    %483 = math.sqrt %482 : vector<2x8x1xf32>
    %484 = vector.broadcast %475 : vector<2x8x1xf32> to vector<2x8x32xf32>
    %485 = arith.subf %471, %484 : vector<2x8x32xf32>
    %486 = vector.shape_cast %469 : vector<1x32xf32> to vector<1x1x32xf32>
    %487 = vector.broadcast %486 : vector<1x1x32xf32> to vector<2x8x32xf32>
    %488 = arith.mulf %487, %485 : vector<2x8x32xf32>
    %cst_99 = arith.constant 9.99999997E-7 : f32
    %489 = vector.broadcast %cst_99 : f32 to vector<2x8x1xf32>
    %490 = arith.addf %483, %489 : vector<2x8x1xf32>
    %491 = tpu.reciprocal %490 {approx = true} : vector<2x8x1xf32> -> vector<2x8x1xf32>
    %492 = vector.broadcast %491 : vector<2x8x1xf32> to vector<2x8x32xf32>
    %493 = arith.mulf %488, %492 : vector<2x8x32xf32>
    %494 = vector.shape_cast %470 : vector<1x32xf32> to vector<1x1x32xf32>
    %495 = vector.broadcast %494 : vector<1x1x32xf32> to vector<2x8x32xf32>
    %496 = arith.addf %493, %495 : vector<2x8x32xf32>
    %c0_100 = arith.constant 0 : index
    %c0_101 = arith.constant 0 : index
    %c0_102 = arith.constant 0 : index
    %497 = vector.load %arg8[%c0_100, %c0_101, %c0_102] : memref<2x8x32xf32, #tpu.memory_space<vmem>>, vector<2x8x32xf32>
    tpu.vector_store %arg8[%c0_100, %c0_101, %c0_102], %496 {strides = array<i32>} : memref<2x8x32xf32, #tpu.memory_space<vmem>>, vector<2x8x32xf32>,
    return
  }
  func.func @transform_0(%arg0: i32, %arg1: memref<2xi32, #tpu.memory_space<smem>>) -> (i32, i32, i32) {
    %c0_i32 = arith.constant 0 : i32
    %c0_i32_0 = arith.constant 0 : i32
    %c0_i32_1 = arith.constant 0 : i32
    return %arg0, %c0_i32, %c0_i32_0 : i32, i32, i32
  }
  func.func @transform_1(%arg0: i32, %arg1: memref<2xi32, #tpu.memory_space<smem>>) -> (i32, i32, i32) {
    %c0_i32 = arith.constant 0 : i32
    %c0_i32_0 = arith.constant 0 : i32
    %c0_i32_1 = arith.constant 0 : i32
    return %arg0, %c0_i32, %c0_i32_0 : i32, i32, i32
  }
  func.func @transform_2(%arg0: i32, %arg1: memref<2xi32, #tpu.memory_space<smem>>) -> (i32, i32, i32) {
    %c0_i32 = arith.constant 0 : i32
    %c0_i32_0 = arith.constant 0 : i32
    %c0_i32_1 = arith.constant 0 : i32
    %c0_i32_2 = arith.constant 0 : i32
    return %c0_i32, %c0_i32_0, %c0_i32_1 : i32, i32, i32
  }
  func.func @transform_3(%arg0: i32, %arg1: memref<2xi32, #tpu.memory_space<smem>>) -> (i32, i32, i32) {
    %c0_i32 = arith.constant 0 : i32
    %c0_i32_0 = arith.constant 0 : i32
    %c0_i32_1 = arith.constant 0 : i32
    %c0_i32_2 = arith.constant 0 : i32
    return %c0_i32, %c0_i32_0, %c0_i32_1 : i32, i32, i32
  }
  func.func @transform_4(%arg0: i32, %arg1: memref<2xi32, #tpu.memory_space<smem>>) -> (i32, i32, i32) {
    %c0_i32 = arith.constant 0 : i32
    %c0_i32_0 = arith.constant 0 : i32
    %c0_i32_1 = arith.constant 0 : i32
    %c0_i32_2 = arith.constant 0 : i32
    return %c0_i32, %c0_i32_0, %c0_i32_1 : i32, i32, i32
  }
  func.func @transform_5(%arg0: i32, %arg1: memref<2xi32, #tpu.memory_space<smem>>) -> (i32, i32) {
    %c0_i32 = arith.constant 0 : i32
    %c0_i32_0 = arith.constant 0 : i32
    %c0_i32_1 = arith.constant 0 : i32
    return %c0_i32, %c0_i32_0 : i32, i32
  }
  func.func @transform_6(%arg0: i32, %arg1: memref<2xi32, #tpu.memory_space<smem>>) -> (i32, i32, i32) {
    %c0_i32 = arith.constant 0 : i32
    %c0_i32_0 = arith.constant 0 : i32
    %c0_i32_1 = arith.constant 0 : i32
    return %arg0, %c0_i32, %c0_i32_0 : i32, i32, i32
  }
}

module attributes {stable_mosaic.version = 11 : i64} {
  func.func @decoder_kernel(%arg0: i32, %arg1: memref<2xi32, #tpu.memory_space<smem>>, %arg2: memref<2x8x32xbf16, #tpu.memory_space<vmem>>, %arg3: memref<2x8x32xbf16, #tpu.memory_space<vmem>>, %arg4: memref<2x32x320xbf16, #tpu.memory_space<vmem>>, %arg5: memref<2x64x32xbf16, #tpu.memory_space<vmem>>, %arg6: memref<2x8x64xf32, #tpu.memory_space<vmem>>, %arg7: memref<2x32xf32, #tpu.memory_space<vmem>>, %arg8: memref<2x8x32xf32, #tpu.memory_space<vmem>>) attributes {dimension_semantics = [#tpu.dimension_semantics<parallel>], iteration_bounds = array<i64: 1>, scalar_prefetch = 1 : i64, scratch_operands = 0 : i64, tpu.core_type = #tpu.core_type<tc>, window_params = [{transform_indices = @transform_0, window_bounds = array<i64: 2, 8, 32>}, {transform_indices = @transform_1, window_bounds = array<i64: 2, 8, 32>}, {pipeline_mode = #tpu.pipeline_mode<synchronous>, transform_indices = @transform_2, window_bounds = array<i64: 2, 32, 320>}, {pipeline_mode = #tpu.pipeline_mode<synchronous>, transform_indices = @transform_3, window_bounds = array<i64: 2, 64, 32>}, {pipeline_mode = #tpu.pipeline_mode<synchronous>, transform_indices = @transform_4, window_bounds = array<i64: 2, 8, 64>}, {pipeline_mode = #tpu.pipeline_mode<synchronous>, transform_indices = @transform_5, window_bounds = array<i64: 2, 32>}, {transform_indices = @transform_6, window_bounds = array<i64: 2, 8, 32>}]} {
    %c0 = arith.constant 0 : index
    %c0_0 = arith.constant 0 : index
    %c0_1 = arith.constant 0 : index
    %0 = vector.load %arg2[%c0, %c0_0, %c0_1] : memref<2x8x32xbf16, #tpu.memory_space<vmem>>, vector<2x8x32xbf16>
    %c0_2 = arith.constant 0 : index
    %c0_3 = arith.constant 0 : index
    %c0_4 = arith.constant 0 : index
    %1 = vector.load %arg3[%c0_2, %c0_3, %c0_4] : memref<2x8x32xbf16, #tpu.memory_space<vmem>>, vector<2x8x32xbf16>
    %2 = tpu.iota {dimensions = array<i32: 1>} : vector<1x8x8xi32>
    %3 = tpu.iota {dimensions = array<i32: 2>} : vector<1x8x8xi32>
    %4 = arith.cmpi sge, %2, %3 : vector<1x8x8xi32>
    %cst = arith.constant 0.000000e+00 : f32
    %cst_5 = arith.constant -1.000000e+09 : f32
    %5 = vector.broadcast %cst : f32 to vector<1x8x8xf32>
    %6 = vector.broadcast %cst_5 : f32 to vector<1x8x8xf32>
    %7 = arith.select %4, %5, %6 : vector<1x8x8xi1>, vector<1x8x8xf32>
    %c2_i32 = arith.constant 2 : i32
    %8 = arith.muli %arg0, %c2_i32 : i32
    %9 = tpu.iota {dimensions = array<i32: 2>} : vector<1x1x8xi32>
    %c0_i32 = arith.constant 0 : i32
    %10 = arith.addi %8, %c0_i32 : i32
    %11 = arith.index_cast %10 : i32 to index
    %12 = memref.load %arg1[%11] : memref<2xi32, #tpu.memory_space<smem>>
    %13 = vector.broadcast %12 : i32 to vector<1x1x8xi32>
    %14 = arith.cmpi slt, %9, %13 : vector<1x1x8xi32>
    %cst_6 = arith.constant 0.000000e+00 : f32
    %cst_7 = arith.constant -1.000000e+09 : f32
    %15 = vector.broadcast %cst_6 : f32 to vector<1x1x8xf32>
    %16 = vector.broadcast %cst_7 : f32 to vector<1x1x8xf32>
    %17 = arith.select %14, %15, %16 : vector<1x1x8xi1>, vector<1x1x8xf32>
    %c1_i32 = arith.constant 1 : i32
    %18 = arith.addi %8, %c1_i32 : i32
    %19 = arith.index_cast %18 : i32 to index
    %20 = memref.load %arg1[%19] : memref<2xi32, #tpu.memory_space<smem>>
    %21 = vector.broadcast %20 : i32 to vector<1x1x8xi32>
    %22 = arith.cmpi slt, %9, %21 : vector<1x1x8xi32>
    %cst_8 = arith.constant 0.000000e+00 : f32
    %cst_9 = arith.constant -1.000000e+09 : f32
    %23 = vector.broadcast %cst_8 : f32 to vector<1x1x8xf32>
    %24 = vector.broadcast %cst_9 : f32 to vector<1x1x8xf32>
    %25 = arith.select %22, %23, %24 : vector<1x1x8xi1>, vector<1x1x8xf32>
    %26 = tpu.concatenate %17, %25 in 0 : vector<1x1x8xf32>, vector<1x1x8xf32> -> vector<2x1x8xf32>
    %27 = tpu.concatenate %26, %26, %26, %26 in 0 : vector<2x1x8xf32>, vector<2x1x8xf32>, vector<2x1x8xf32>, vector<2x1x8xf32> -> vector<8x1x8xf32>
    %c0_10 = arith.constant 0 : index
    %c0_11 = arith.constant 0 : index
    %c0_12 = arith.constant 0 : index
    %28 = vector.load %arg4[%c0_10, %c0_11, %c0_12] : memref<2x32x320xbf16, #tpu.memory_space<vmem>>, vector<1x32x320xbf16>
    %29 = vector.shape_cast %28 : vector<1x32x320xbf16> to vector<32x320xbf16>
    %c0_13 = arith.constant 0 : index
    %c0_14 = arith.constant 0 : index
    %c0_15 = arith.constant 0 : index
    %30 = vector.load %arg6[%c0_13, %c0_14, %c0_15] : memref<2x8x64xf32, #tpu.memory_space<vmem>>, vector<1x8x64xf32>
    %31 = vector.shape_cast %30 : vector<1x8x64xf32> to vector<8x64xf32>
    %32 = vector.extract_strided_slice %29 {offsets = [0, 0], sizes = [32, 96], strides = [1, 1]} : vector<32x320xbf16> to vector<32x96xbf16>
    %33 = vector.extract_strided_slice %29 {offsets = [0, 96], sizes = [32, 32], strides = [1, 1]} : vector<32x320xbf16> to vector<32x32xbf16>
    %34 = vector.extract_strided_slice %29 {offsets = [0, 128], sizes = [32, 32], strides = [1, 1]} : vector<32x320xbf16> to vector<32x32xbf16>
    %35 = vector.extract_strided_slice %29 {offsets = [0, 160], sizes = [32, 64], strides = [1, 1]} : vector<32x320xbf16> to vector<32x64xbf16>
    %36 = vector.extract_strided_slice %29 {offsets = [0, 224], sizes = [32, 32], strides = [1, 1]} : vector<32x320xbf16> to vector<32x32xbf16>
    %37 = vector.extract_strided_slice %29 {offsets = [0, 256], sizes = [32, 64], strides = [1, 1]} : vector<32x320xbf16> to vector<32x64xbf16>
    %38 = vector.extract_strided_slice %31 {offsets = [0, 0], sizes = [1, 64], strides = [1, 1]} : vector<8x64xf32> to vector<1x64xf32>
    %c0_16 = arith.constant 0 : index
    %c0_17 = arith.constant 0 : index
    %c0_18 = arith.constant 0 : index
    %39 = vector.load %arg5[%c0_16, %c0_17, %c0_18] : memref<2x64x32xbf16, #tpu.memory_space<vmem>>, vector<1x64x32xbf16>
    %40 = vector.shape_cast %39 : vector<1x64x32xbf16> to vector<64x32xbf16>
    %41 = vector.extract_strided_slice %31 {offsets = [1, 0], sizes = [1, 32], strides = [1, 1]} : vector<8x64xf32> to vector<1x32xf32>
    %42 = vector.extract_strided_slice %31 {offsets = [2, 0], sizes = [1, 32], strides = [1, 1]} : vector<8x64xf32> to vector<1x32xf32>
    %43 = vector.extract_strided_slice %31 {offsets = [3, 0], sizes = [1, 32], strides = [1, 1]} : vector<8x64xf32> to vector<1x32xf32>
    %44 = vector.extract_strided_slice %31 {offsets = [4, 0], sizes = [1, 32], strides = [1, 1]} : vector<8x64xf32> to vector<1x32xf32>
    %45 = vector.extract_strided_slice %31 {offsets = [5, 0], sizes = [1, 32], strides = [1, 1]} : vector<8x64xf32> to vector<1x32xf32>
    %46 = vector.extract_strided_slice %31 {offsets = [6, 0], sizes = [1, 32], strides = [1, 1]} : vector<8x64xf32> to vector<1x32xf32>
    %47 = vector.extract_strided_slice %31 {offsets = [7, 0], sizes = [1, 32], strides = [1, 1]} : vector<8x64xf32> to vector<1x32xf32>
    %48 = arith.extf %0 : vector<2x8x32xbf16> to vector<2x8x32xf32>
    %cst_19 = arith.constant dense<0.000000e+00> : vector<2x8xf32>
    %49 = vector.multi_reduction <add>, %48, %cst_19 [2] : vector<2x8x32xf32> to vector<2x8xf32>
    %50 = vector.shape_cast %49 : vector<2x8xf32> to vector<2x8x1xf32>
    %cst_20 = arith.constant 3.200000e+01 : f32
    %51 = vector.broadcast %cst_20 : f32 to vector<2x8x1xf32>
    %52 = arith.divf %50, %51 : vector<2x8x1xf32>
    %53 = vector.broadcast %52 : vector<2x8x1xf32> to vector<2x8x32xf32>
    %54 = arith.subf %48, %53 : vector<2x8x32xf32>
    %55 = arith.mulf %54, %54 : vector<2x8x32xf32>
    %cst_21 = arith.constant dense<0.000000e+00> : vector<2x8xf32>
    %56 = vector.multi_reduction <add>, %55, %cst_21 [2] : vector<2x8x32xf32> to vector<2x8xf32>
    %57 = vector.shape_cast %56 : vector<2x8xf32> to vector<2x8x1xf32>
    %cst_22 = arith.constant 3.100000e+01 : f32
    %58 = vector.broadcast %cst_22 : f32 to vector<2x8x1xf32>
    %59 = arith.divf %57, %58 : vector<2x8x1xf32>
    %60 = math.sqrt %59 : vector<2x8x1xf32>
    %61 = vector.broadcast %52 : vector<2x8x1xf32> to vector<2x8x32xf32>
    %62 = arith.subf %48, %61 : vector<2x8x32xf32>
    %63 = vector.shape_cast %42 : vector<1x32xf32> to vector<1x1x32xf32>
    %64 = vector.broadcast %63 : vector<1x1x32xf32> to vector<2x8x32xf32>
    %65 = arith.mulf %64, %62 : vector<2x8x32xf32>
    %cst_23 = arith.constant 9.99999997E-7 : f32
    %66 = vector.broadcast %cst_23 : f32 to vector<2x8x1xf32>
    %67 = arith.addf %60, %66 : vector<2x8x1xf32>
    %68 = tpu.reciprocal %67 {approx = true} : vector<2x8x1xf32> -> vector<2x8x1xf32>
    %69 = vector.broadcast %68 : vector<2x8x1xf32> to vector<2x8x32xf32>
    %70 = arith.mulf %65, %69 : vector<2x8x32xf32>
    %71 = vector.shape_cast %43 : vector<1x32xf32> to vector<1x1x32xf32>
    %72 = vector.broadcast %71 : vector<1x1x32xf32> to vector<2x8x32xf32>
    %73 = arith.addf %70, %72 : vector<2x8x32xf32>
    %74 = arith.truncf %73 : vector<2x8x32xf32> to vector<2x8x32xbf16>
    %75 = vector.shape_cast %74 : vector<2x8x32xbf16> to vector<16x32xbf16>
    %cst_24 = arith.constant dense<0.000000e+00> : vector<16x96xf32>
    %76 = tpu.matmul %75, %32, %cst_24 {dimension_numbers = #tpu.dot_dimension_numbers<[1], [0], [0], [1], [0, 0, 1, 1], [], []>} : vector<16x32xbf16>, vector<32x96xbf16>, vector<16x96xf32> -> vector<16x96xf32>
    %77 = arith.truncf %76 : vector<16x96xf32> to vector<16x96xbf16>
    %78 = vector.extract_strided_slice %77 {offsets = [0, 0], sizes = [16, 32], strides = [1, 1]} : vector<16x96xbf16> to vector<16x32xbf16>
    %79 = vector.shape_cast %78 : vector<16x32xbf16> to vector<2x8x32xbf16>
    %80 = vector.extract_strided_slice %77 {offsets = [0, 32], sizes = [16, 32], strides = [1, 1]} : vector<16x96xbf16> to vector<16x32xbf16>
    %81 = vector.shape_cast %80 : vector<16x32xbf16> to vector<2x8x32xbf16>
    %82 = vector.extract_strided_slice %77 {offsets = [0, 64], sizes = [16, 32], strides = [1, 1]} : vector<16x96xbf16> to vector<16x32xbf16>
    %83 = vector.shape_cast %82 : vector<16x32xbf16> to vector<2x8x32xbf16>
    %84 = vector.extract_strided_slice %79 {offsets = [0, 0, 0], sizes = [2, 8, 8], strides = [1, 1, 1]} : vector<2x8x32xbf16> to vector<2x8x8xbf16>
    %85 = vector.extract_strided_slice %79 {offsets = [0, 0, 8], sizes = [2, 8, 8], strides = [1, 1, 1]} : vector<2x8x32xbf16> to vector<2x8x8xbf16>
    %86 = vector.extract_strided_slice %79 {offsets = [0, 0, 16], sizes = [2, 8, 8], strides = [1, 1, 1]} : vector<2x8x32xbf16> to vector<2x8x8xbf16>
    %87 = vector.extract_strided_slice %79 {offsets = [0, 0, 24], sizes = [2, 8, 8], strides = [1, 1, 1]} : vector<2x8x32xbf16> to vector<2x8x8xbf16>
    %88 = tpu.concatenate %84, %85, %86, %87 in 0 : vector<2x8x8xbf16>, vector<2x8x8xbf16>, vector<2x8x8xbf16>, vector<2x8x8xbf16> -> vector<8x8x8xbf16>
    %89 = vector.extract_strided_slice %81 {offsets = [0, 0, 0], sizes = [2, 8, 8], strides = [1, 1, 1]} : vector<2x8x32xbf16> to vector<2x8x8xbf16>
    %90 = vector.extract_strided_slice %81 {offsets = [0, 0, 8], sizes = [2, 8, 8], strides = [1, 1, 1]} : vector<2x8x32xbf16> to vector<2x8x8xbf16>
    %91 = vector.extract_strided_slice %81 {offsets = [0, 0, 16], sizes = [2, 8, 8], strides = [1, 1, 1]} : vector<2x8x32xbf16> to vector<2x8x8xbf16>
    %92 = vector.extract_strided_slice %81 {offsets = [0, 0, 24], sizes = [2, 8, 8], strides = [1, 1, 1]} : vector<2x8x32xbf16> to vector<2x8x8xbf16>
    %93 = tpu.concatenate %89, %90, %91, %92 in 0 : vector<2x8x8xbf16>, vector<2x8x8xbf16>, vector<2x8x8xbf16>, vector<2x8x8xbf16> -> vector<8x8x8xbf16>
    %94 = vector.extract_strided_slice %83 {offsets = [0, 0, 0], sizes = [2, 8, 8], strides = [1, 1, 1]} : vector<2x8x32xbf16> to vector<2x8x8xbf16>
    %95 = vector.extract_strided_slice %83 {offsets = [0, 0, 8], sizes = [2, 8, 8], strides = [1, 1, 1]} : vector<2x8x32xbf16> to vector<2x8x8xbf16>
    %96 = vector.extract_strided_slice %83 {offsets = [0, 0, 16], sizes = [2, 8, 8], strides = [1, 1, 1]} : vector<2x8x32xbf16> to vector<2x8x8xbf16>
    %97 = vector.extract_strided_slice %83 {offsets = [0, 0, 24], sizes = [2, 8, 8], strides = [1, 1, 1]} : vector<2x8x32xbf16> to vector<2x8x8xbf16>
    %98 = tpu.concatenate %94, %95, %96, %97 in 0 : vector<2x8x8xbf16>, vector<2x8x8xbf16>, vector<2x8x8xbf16>, vector<2x8x8xbf16> -> vector<8x8x8xbf16>
    "tpu.trace_start"() <{level = 10 : i32, message = "nqd,nkd->nqk"}> : () -> ()
    %cst_25 = arith.constant dense<0.000000e+00> : vector<8x8x8xf32>
    %99 = tpu.matmul %88, %93, %cst_25 {dimension_numbers = #tpu.dot_dimension_numbers<[2], [2], [1], [1], [0, 0, 0, 1, 1, 1], [0], [0]>} : vector<8x8x8xbf16>, vector<8x8x8xbf16>, vector<8x8x8xf32> -> vector<8x8x8xf32>
    "tpu.trace_stop"() : () -> ()
    %cst_26 = arith.constant 0.353553385 : f32
    %100 = vector.broadcast %cst_26 : f32 to vector<8x8x8xf32>
    %101 = arith.mulf %99, %100 : vector<8x8x8xf32>
    %102 = vector.broadcast %7 : vector<1x8x8xf32> to vector<8x8x8xf32>
    %103 = arith.addf %101, %102 : vector<8x8x8xf32>
    %cst_27 = arith.constant dense<0xFF800000> : vector<8x8xf32>
    %104 = vector.multi_reduction <maximumf>, %103, %cst_27 [2] : vector<8x8x8xf32> to vector<8x8xf32>
    %105 = vector.shape_cast %104 : vector<8x8xf32> to vector<8x8x1xf32>
    %106 = vector.broadcast %105 : vector<8x8x1xf32> to vector<8x8x8xf32>
    %107 = arith.subf %103, %106 : vector<8x8x8xf32>
    %108 = math.exp %107 : vector<8x8x8xf32>
    %cst_28 = arith.constant dense<0.000000e+00> : vector<8x8xf32>
    %109 = vector.multi_reduction <add>, %108, %cst_28 [2] : vector<8x8x8xf32> to vector<8x8xf32>
    %110 = vector.shape_cast %109 : vector<8x8xf32> to vector<8x8x1xf32>
    %111 = tpu.reciprocal %110 {approx = true} : vector<8x8x1xf32> -> vector<8x8x1xf32>
    %112 = vector.broadcast %111 : vector<8x8x1xf32> to vector<8x8x8xf32>
    %113 = arith.mulf %108, %112 : vector<8x8x8xf32>
    %114 = arith.truncf %113 : vector<8x8x8xf32> to vector<8x8x8xbf16>
    "tpu.trace_start"() <{level = 10 : i32, message = "nqk,nkd->nqd"}> : () -> ()
    %cst_29 = arith.constant dense<0.000000e+00> : vector<8x8x8xf32>
    %115 = tpu.matmul %114, %98, %cst_29 {dimension_numbers = #tpu.dot_dimension_numbers<[2], [1], [1], [2], [0, 0, 0, 1, 1, 2], [0], [0]>} : vector<8x8x8xbf16>, vector<8x8x8xbf16>, vector<8x8x8xf32> -> vector<8x8x8xf32>
    "tpu.trace_stop"() : () -> ()
    %116 = vector.extract_strided_slice %115 {offsets = [0, 0, 0], sizes = [2, 8, 8], strides = [1, 1, 1]} : vector<8x8x8xf32> to vector<2x8x8xf32>
    %117 = vector.extract_strided_slice %115 {offsets = [2, 0, 0], sizes = [2, 8, 8], strides = [1, 1, 1]} : vector<8x8x8xf32> to vector<2x8x8xf32>
    %118 = vector.extract_strided_slice %115 {offsets = [4, 0, 0], sizes = [2, 8, 8], strides = [1, 1, 1]} : vector<8x8x8xf32> to vector<2x8x8xf32>
    %119 = vector.extract_strided_slice %115 {offsets = [6, 0, 0], sizes = [2, 8, 8], strides = [1, 1, 1]} : vector<8x8x8xf32> to vector<2x8x8xf32>
    %120 = tpu.concatenate %116, %117, %118, %119 in 2 : vector<2x8x8xf32>, vector<2x8x8xf32>, vector<2x8x8xf32>, vector<2x8x8xf32> -> vector<2x8x32xf32>
    %121 = vector.shape_cast %120 : vector<2x8x32xf32> to vector<16x32xf32>
    %122 = arith.truncf %121 : vector<16x32xf32> to vector<16x32xbf16>
    %cst_30 = arith.constant dense<0.000000e+00> : vector<16x32xf32>
    %123 = tpu.matmul %122, %33, %cst_30 {dimension_numbers = #tpu.dot_dimension_numbers<[1], [0], [0], [1], [0, 0, 1, 1], [], []>} : vector<16x32xbf16>, vector<32x32xbf16>, vector<16x32xf32> -> vector<16x32xf32>
    %124 = vector.shape_cast %123 : vector<16x32xf32> to vector<2x8x32xf32>
    %125 = arith.truncf %124 : vector<2x8x32xf32> to vector<2x8x32xbf16>
    %126 = arith.addf %0, %125 : vector<2x8x32xbf16>
    %127 = arith.extf %126 : vector<2x8x32xbf16> to vector<2x8x32xf32>
    %cst_31 = arith.constant dense<0.000000e+00> : vector<2x8xf32>
    %128 = vector.multi_reduction <add>, %127, %cst_31 [2] : vector<2x8x32xf32> to vector<2x8xf32>
    %129 = vector.shape_cast %128 : vector<2x8xf32> to vector<2x8x1xf32>
    %cst_32 = arith.constant 3.200000e+01 : f32
    %130 = vector.broadcast %cst_32 : f32 to vector<2x8x1xf32>
    %131 = arith.divf %129, %130 : vector<2x8x1xf32>
    %132 = vector.broadcast %131 : vector<2x8x1xf32> to vector<2x8x32xf32>
    %133 = arith.subf %127, %132 : vector<2x8x32xf32>
    %134 = arith.mulf %133, %133 : vector<2x8x32xf32>
    %cst_33 = arith.constant dense<0.000000e+00> : vector<2x8xf32>
    %135 = vector.multi_reduction <add>, %134, %cst_33 [2] : vector<2x8x32xf32> to vector<2x8xf32>
    %136 = vector.shape_cast %135 : vector<2x8xf32> to vector<2x8x1xf32>
    %cst_34 = arith.constant 3.100000e+01 : f32
    %137 = vector.broadcast %cst_34 : f32 to vector<2x8x1xf32>
    %138 = arith.divf %136, %137 : vector<2x8x1xf32>
    %139 = math.sqrt %138 : vector<2x8x1xf32>
    %140 = vector.broadcast %131 : vector<2x8x1xf32> to vector<2x8x32xf32>
    %141 = arith.subf %127, %140 : vector<2x8x32xf32>
    %142 = vector.shape_cast %44 : vector<1x32xf32> to vector<1x1x32xf32>
    %143 = vector.broadcast %142 : vector<1x1x32xf32> to vector<2x8x32xf32>
    %144 = arith.mulf %143, %141 : vector<2x8x32xf32>
    %cst_35 = arith.constant 9.99999997E-7 : f32
    %145 = vector.broadcast %cst_35 : f32 to vector<2x8x1xf32>
    %146 = arith.addf %139, %145 : vector<2x8x1xf32>
    %147 = tpu.reciprocal %146 {approx = true} : vector<2x8x1xf32> -> vector<2x8x1xf32>
    %148 = vector.broadcast %147 : vector<2x8x1xf32> to vector<2x8x32xf32>
    %149 = arith.mulf %144, %148 : vector<2x8x32xf32>
    %150 = vector.shape_cast %45 : vector<1x32xf32> to vector<1x1x32xf32>
    %151 = vector.broadcast %150 : vector<1x1x32xf32> to vector<2x8x32xf32>
    %152 = arith.addf %149, %151 : vector<2x8x32xf32>
    %153 = arith.truncf %152 : vector<2x8x32xf32> to vector<2x8x32xbf16>
    %154 = vector.shape_cast %153 : vector<2x8x32xbf16> to vector<16x32xbf16>
    %cst_36 = arith.constant dense<0.000000e+00> : vector<16x32xf32>
    %155 = tpu.matmul %154, %34, %cst_36 {dimension_numbers = #tpu.dot_dimension_numbers<[1], [0], [0], [1], [0, 0, 1, 1], [], []>} : vector<16x32xbf16>, vector<32x32xbf16>, vector<16x32xf32> -> vector<16x32xf32>
    %156 = arith.truncf %155 : vector<16x32xf32> to vector<16x32xbf16>
    %157 = vector.shape_cast %156 : vector<16x32xbf16> to vector<2x8x32xbf16>
    %158 = vector.shape_cast %1 : vector<2x8x32xbf16> to vector<16x32xbf16>
    %cst_37 = arith.constant dense<0.000000e+00> : vector<16x64xf32>
    %159 = tpu.matmul %158, %35, %cst_37 {dimension_numbers = #tpu.dot_dimension_numbers<[1], [0], [0], [1], [0, 0, 1, 1], [], []>} : vector<16x32xbf16>, vector<32x64xbf16>, vector<16x64xf32> -> vector<16x64xf32>
    %160 = arith.truncf %159 : vector<16x64xf32> to vector<16x64xbf16>
    %161 = vector.extract_strided_slice %160 {offsets = [0, 0], sizes = [16, 32], strides = [1, 1]} : vector<16x64xbf16> to vector<16x32xbf16>
    %162 = vector.shape_cast %161 : vector<16x32xbf16> to vector<2x8x32xbf16>
    %163 = vector.extract_strided_slice %160 {offsets = [0, 32], sizes = [16, 32], strides = [1, 1]} : vector<16x64xbf16> to vector<16x32xbf16>
    %164 = vector.shape_cast %163 : vector<16x32xbf16> to vector<2x8x32xbf16>
    %165 = vector.extract_strided_slice %157 {offsets = [0, 0, 0], sizes = [2, 8, 8], strides = [1, 1, 1]} : vector<2x8x32xbf16> to vector<2x8x8xbf16>
    %166 = vector.extract_strided_slice %157 {offsets = [0, 0, 8], sizes = [2, 8, 8], strides = [1, 1, 1]} : vector<2x8x32xbf16> to vector<2x8x8xbf16>
    %167 = vector.extract_strided_slice %157 {offsets = [0, 0, 16], sizes = [2, 8, 8], strides = [1, 1, 1]} : vector<2x8x32xbf16> to vector<2x8x8xbf16>
    %168 = vector.extract_strided_slice %157 {offsets = [0, 0, 24], sizes = [2, 8, 8], strides = [1, 1, 1]} : vector<2x8x32xbf16> to vector<2x8x8xbf16>
    %169 = tpu.concatenate %165, %166, %167, %168 in 0 : vector<2x8x8xbf16>, vector<2x8x8xbf16>, vector<2x8x8xbf16>, vector<2x8x8xbf16> -> vector<8x8x8xbf16>
    %170 = vector.extract_strided_slice %162 {offsets = [0, 0, 0], sizes = [2, 8, 8], strides = [1, 1, 1]} : vector<2x8x32xbf16> to vector<2x8x8xbf16>
    %171 = vector.extract_strided_slice %162 {offsets = [0, 0, 8], sizes = [2, 8, 8], strides = [1, 1, 1]} : vector<2x8x32xbf16> to vector<2x8x8xbf16>
    %172 = vector.extract_strided_slice %162 {offsets = [0, 0, 16], sizes = [2, 8, 8], strides = [1, 1, 1]} : vector<2x8x32xbf16> to vector<2x8x8xbf16>
    %173 = vector.extract_strided_slice %162 {offsets = [0, 0, 24], sizes = [2, 8, 8], strides = [1, 1, 1]} : vector<2x8x32xbf16> to vector<2x8x8xbf16>
    %174 = tpu.concatenate %170, %171, %172, %173 in 0 : vector<2x8x8xbf16>, vector<2x8x8xbf16>, vector<2x8x8xbf16>, vector<2x8x8xbf16> -> vector<8x8x8xbf16>
    %175 = vector.extract_strided_slice %164 {offsets = [0, 0, 0], sizes = [2, 8, 8], strides = [1, 1, 1]} : vector<2x8x32xbf16> to vector<2x8x8xbf16>
    %176 = vector.extract_strided_slice %164 {offsets = [0, 0, 8], sizes = [2, 8, 8], strides = [1, 1, 1]} : vector<2x8x32xbf16> to vector<2x8x8xbf16>
    %177 = vector.extract_strided_slice %164 {offsets = [0, 0, 16], sizes = [2, 8, 8], strides = [1, 1, 1]} : vector<2x8x32xbf16> to vector<2x8x8xbf16>
    %178 = vector.extract_strided_slice %164 {offsets = [0, 0, 24], sizes = [2, 8, 8], strides = [1, 1, 1]} : vector<2x8x32xbf16> to vector<2x8x8xbf16>
    %179 = tpu.concatenate %175, %176, %177, %178 in 0 : vector<2x8x8xbf16>, vector<2x8x8xbf16>, vector<2x8x8xbf16>, vector<2x8x8xbf16> -> vector<8x8x8xbf16>
    "tpu.trace_start"() <{level = 10 : i32, message = "nqd,nkd->nqk"}> : () -> ()
    %cst_38 = arith.constant dense<0.000000e+00> : vector<8x8x8xf32>
    %180 = tpu.matmul %169, %174, %cst_38 {dimension_numbers = #tpu.dot_dimension_numbers<[2], [2], [1], [1], [0, 0, 0, 1, 1, 1], [0], [0]>} : vector<8x8x8xbf16>, vector<8x8x8xbf16>, vector<8x8x8xf32> -> vector<8x8x8xf32>
    "tpu.trace_stop"() : () -> ()
    %cst_39 = arith.constant 0.353553385 : f32
    %181 = vector.broadcast %cst_39 : f32 to vector<8x8x8xf32>
    %182 = arith.mulf %180, %181 : vector<8x8x8xf32>
    %183 = vector.broadcast %27 : vector<8x1x8xf32> to vector<8x8x8xf32>
    %184 = arith.addf %182, %183 : vector<8x8x8xf32>
    %cst_40 = arith.constant dense<0xFF800000> : vector<8x8xf32>
    %185 = vector.multi_reduction <maximumf>, %184, %cst_40 [2] : vector<8x8x8xf32> to vector<8x8xf32>
    %186 = vector.shape_cast %185 : vector<8x8xf32> to vector<8x8x1xf32>
    %187 = vector.broadcast %186 : vector<8x8x1xf32> to vector<8x8x8xf32>
    %188 = arith.subf %184, %187 : vector<8x8x8xf32>
    %189 = math.exp %188 : vector<8x8x8xf32>
    %cst_41 = arith.constant dense<0.000000e+00> : vector<8x8xf32>
    %190 = vector.multi_reduction <add>, %189, %cst_41 [2] : vector<8x8x8xf32> to vector<8x8xf32>
    %191 = vector.shape_cast %190 : vector<8x8xf32> to vector<8x8x1xf32>
    %192 = tpu.reciprocal %191 {approx = true} : vector<8x8x1xf32> -> vector<8x8x1xf32>
    %193 = vector.broadcast %192 : vector<8x8x1xf32> to vector<8x8x8xf32>
    %194 = arith.mulf %189, %193 : vector<8x8x8xf32>
    %195 = arith.truncf %194 : vector<8x8x8xf32> to vector<8x8x8xbf16>
    "tpu.trace_start"() <{level = 10 : i32, message = "nqk,nkd->nqd"}> : () -> ()
    %cst_42 = arith.constant dense<0.000000e+00> : vector<8x8x8xf32>
    %196 = tpu.matmul %195, %179, %cst_42 {dimension_numbers = #tpu.dot_dimension_numbers<[2], [1], [1], [2], [0, 0, 0, 1, 1, 2], [0], [0]>} : vector<8x8x8xbf16>, vector<8x8x8xbf16>, vector<8x8x8xf32> -> vector<8x8x8xf32>
    "tpu.trace_stop"() : () -> ()
    %197 = vector.extract_strided_slice %196 {offsets = [0, 0, 0], sizes = [2, 8, 8], strides = [1, 1, 1]} : vector<8x8x8xf32> to vector<2x8x8xf32>
    %198 = vector.extract_strided_slice %196 {offsets = [2, 0, 0], sizes = [2, 8, 8], strides = [1, 1, 1]} : vector<8x8x8xf32> to vector<2x8x8xf32>
    %199 = vector.extract_strided_slice %196 {offsets = [4, 0, 0], sizes = [2, 8, 8], strides = [1, 1, 1]} : vector<8x8x8xf32> to vector<2x8x8xf32>
    %200 = vector.extract_strided_slice %196 {offsets = [6, 0, 0], sizes = [2, 8, 8], strides = [1, 1, 1]} : vector<8x8x8xf32> to vector<2x8x8xf32>
    %201 = tpu.concatenate %197, %198, %199, %200 in 2 : vector<2x8x8xf32>, vector<2x8x8xf32>, vector<2x8x8xf32>, vector<2x8x8xf32> -> vector<2x8x32xf32>
    %202 = vector.shape_cast %201 : vector<2x8x32xf32> to vector<16x32xf32>
    %203 = arith.truncf %202 : vector<16x32xf32> to vector<16x32xbf16>
    %cst_43 = arith.constant dense<0.000000e+00> : vector<16x32xf32>
    %204 = tpu.matmul %203, %36, %cst_43 {dimension_numbers = #tpu.dot_dimension_numbers<[1], [0], [0], [1], [0, 0, 1, 1], [], []>} : vector<16x32xbf16>, vector<32x32xbf16>, vector<16x32xf32> -> vector<16x32xf32>
    %205 = vector.shape_cast %204 : vector<16x32xf32> to vector<2x8x32xf32>
    %206 = arith.truncf %205 : vector<2x8x32xf32> to vector<2x8x32xbf16>
    %207 = arith.addf %126, %206 : vector<2x8x32xbf16>
    %208 = arith.extf %207 : vector<2x8x32xbf16> to vector<2x8x32xf32>
    %cst_44 = arith.constant dense<0.000000e+00> : vector<2x8xf32>
    %209 = vector.multi_reduction <add>, %208, %cst_44 [2] : vector<2x8x32xf32> to vector<2x8xf32>
    %210 = vector.shape_cast %209 : vector<2x8xf32> to vector<2x8x1xf32>
    %cst_45 = arith.constant 3.200000e+01 : f32
    %211 = vector.broadcast %cst_45 : f32 to vector<2x8x1xf32>
    %212 = arith.divf %210, %211 : vector<2x8x1xf32>
    %213 = vector.broadcast %212 : vector<2x8x1xf32> to vector<2x8x32xf32>
    %214 = arith.subf %208, %213 : vector<2x8x32xf32>
    %215 = arith.mulf %214, %214 : vector<2x8x32xf32>
    %cst_46 = arith.constant dense<0.000000e+00> : vector<2x8xf32>
    %216 = vector.multi_reduction <add>, %215, %cst_46 [2] : vector<2x8x32xf32> to vector<2x8xf32>
    %217 = vector.shape_cast %216 : vector<2x8xf32> to vector<2x8x1xf32>
    %cst_47 = arith.constant 3.100000e+01 : f32
    %218 = vector.broadcast %cst_47 : f32 to vector<2x8x1xf32>
    %219 = arith.divf %217, %218 : vector<2x8x1xf32>
    %220 = math.sqrt %219 : vector<2x8x1xf32>
    %221 = vector.broadcast %212 : vector<2x8x1xf32> to vector<2x8x32xf32>
    %222 = arith.subf %208, %221 : vector<2x8x32xf32>
    %223 = vector.shape_cast %46 : vector<1x32xf32> to vector<1x1x32xf32>
    %224 = vector.broadcast %223 : vector<1x1x32xf32> to vector<2x8x32xf32>
    %225 = arith.mulf %224, %222 : vector<2x8x32xf32>
    %cst_48 = arith.constant 9.99999997E-7 : f32
    %226 = vector.broadcast %cst_48 : f32 to vector<2x8x1xf32>
    %227 = arith.addf %220, %226 : vector<2x8x1xf32>
    %228 = tpu.reciprocal %227 {approx = true} : vector<2x8x1xf32> -> vector<2x8x1xf32>
    %229 = vector.broadcast %228 : vector<2x8x1xf32> to vector<2x8x32xf32>
    %230 = arith.mulf %225, %229 : vector<2x8x32xf32>
    %231 = vector.shape_cast %47 : vector<1x32xf32> to vector<1x1x32xf32>
    %232 = vector.broadcast %231 : vector<1x1x32xf32> to vector<2x8x32xf32>
    %233 = arith.addf %230, %232 : vector<2x8x32xf32>
    %234 = arith.truncf %233 : vector<2x8x32xf32> to vector<2x8x32xbf16>
    %235 = vector.shape_cast %234 : vector<2x8x32xbf16> to vector<16x32xbf16>
    %cst_49 = arith.constant dense<0.000000e+00> : vector<16x64xf32>
    %236 = tpu.matmul %235, %37, %cst_49 {dimension_numbers = #tpu.dot_dimension_numbers<[1], [0], [0], [1], [0, 0, 1, 1], [], []>} : vector<16x32xbf16>, vector<32x64xbf16>, vector<16x64xf32> -> vector<16x64xf32>
    %237 = vector.broadcast %38 : vector<1x64xf32> to vector<16x64xf32>
    %238 = arith.addf %236, %237 : vector<16x64xf32>
    %cst_50 = arith.constant 0.000000e+00 : f32
    %239 = vector.broadcast %cst_50 : f32 to vector<16x64xf32>
    %240 = arith.maximumf %238, %239 : vector<16x64xf32>
    %241 = arith.truncf %240 : vector<16x64xf32> to vector<16x64xbf16>
    %cst_51 = arith.constant dense<0.000000e+00> : vector<16x32xf32>
    %242 = tpu.matmul %241, %40, %cst_51 {dimension_numbers = #tpu.dot_dimension_numbers<[1], [0], [0], [1], [0, 0, 1, 1], [], []>} : vector<16x64xbf16>, vector<64x32xbf16>, vector<16x32xf32> -> vector<16x32xf32>
    %243 = vector.broadcast %41 : vector<1x32xf32> to vector<16x32xf32>
    %244 = arith.addf %242, %243 : vector<16x32xf32>
    %245 = vector.shape_cast %244 : vector<16x32xf32> to vector<2x8x32xf32>
    %246 = arith.truncf %245 : vector<2x8x32xf32> to vector<2x8x32xbf16>
    %247 = arith.addf %207, %246 : vector<2x8x32xbf16>
    %c1 = arith.constant 1 : index
    %c0_52 = arith.constant 0 : index
    %c0_53 = arith.constant 0 : index
    %248 = vector.load %arg4[%c1, %c0_52, %c0_53] : memref<2x32x320xbf16, #tpu.memory_space<vmem>>, vector<1x32x320xbf16>
    %249 = vector.shape_cast %248 : vector<1x32x320xbf16> to vector<32x320xbf16>
    %c1_54 = arith.constant 1 : index
    %c0_55 = arith.constant 0 : index
    %c0_56 = arith.constant 0 : index
    %250 = vector.load %arg6[%c1_54, %c0_55, %c0_56] : memref<2x8x64xf32, #tpu.memory_space<vmem>>, vector<1x8x64xf32>
    %251 = vector.shape_cast %250 : vector<1x8x64xf32> to vector<8x64xf32>
    %252 = vector.extract_strided_slice %249 {offsets = [0, 0], sizes = [32, 96], strides = [1, 1]} : vector<32x320xbf16> to vector<32x96xbf16>
    %253 = vector.extract_strided_slice %249 {offsets = [0, 96], sizes = [32, 32], strides = [1, 1]} : vector<32x320xbf16> to vector<32x32xbf16>
    %254 = vector.extract_strided_slice %249 {offsets = [0, 128], sizes = [32, 32], strides = [1, 1]} : vector<32x320xbf16> to vector<32x32xbf16>
    %255 = vector.extract_strided_slice %249 {offsets = [0, 160], sizes = [32, 64], strides = [1, 1]} : vector<32x320xbf16> to vector<32x64xbf16>
    %256 = vector.extract_strided_slice %249 {offsets = [0, 224], sizes = [32, 32], strides = [1, 1]} : vector<32x320xbf16> to vector<32x32xbf16>
    %257 = vector.extract_strided_slice %249 {offsets = [0, 256], sizes = [32, 64], strides = [1, 1]} : vector<32x320xbf16> to vector<32x64xbf16>
    %258 = vector.extract_strided_slice %251 {offsets = [0, 0], sizes = [1, 64], strides = [1, 1]} : vector<8x64xf32> to vector<1x64xf32>
    %c1_57 = arith.constant 1 : index
    %c0_58 = arith.constant 0 : index
    %c0_59 = arith.constant 0 : index
    %259 = vector.load %arg5[%c1_57, %c0_58, %c0_59] : memref<2x64x32xbf16, #tpu.memory_space<vmem>>, vector<1x64x32xbf16>
    %260 = vector.shape_cast %259 : vector<1x64x32xbf16> to vector<64x32xbf16>
    %261 = vector.extract_strided_slice %251 {offsets = [1, 0], sizes = [1, 32], strides = [1, 1]} : vector<8x64xf32> to vector<1x32xf32>
    %262 = vector.extract_strided_slice %251 {offsets = [2, 0], sizes = [1, 32], strides = [1, 1]} : vector<8x64xf32> to vector<1x32xf32>
    %263 = vector.extract_strided_slice %251 {offsets = [3, 0], sizes = [1, 32], strides = [1, 1]} : vector<8x64xf32> to vector<1x32xf32>
    %264 = vector.extract_strided_slice %251 {offsets = [4, 0], sizes = [1, 32], strides = [1, 1]} : vector<8x64xf32> to vector<1x32xf32>
    %265 = vector.extract_strided_slice %251 {offsets = [5, 0], sizes = [1, 32], strides = [1, 1]} : vector<8x64xf32> to vector<1x32xf32>
    %266 = vector.extract_strided_slice %251 {offsets = [6, 0], sizes = [1, 32], strides = [1, 1]} : vector<8x64xf32> to vector<1x32xf32>
    %267 = vector.extract_strided_slice %251 {offsets = [7, 0], sizes = [1, 32], strides = [1, 1]} : vector<8x64xf32> to vector<1x32xf32>
    %268 = arith.extf %247 : vector<2x8x32xbf16> to vector<2x8x32xf32>
    %cst_60 = arith.constant dense<0.000000e+00> : vector<2x8xf32>
    %269 = vector.multi_reduction <add>, %268, %cst_60 [2] : vector<2x8x32xf32> to vector<2x8xf32>
    %270 = vector.shape_cast %269 : vector<2x8xf32> to vector<2x8x1xf32>
    %cst_61 = arith.constant 3.200000e+01 : f32
    %271 = vector.broadcast %cst_61 : f32 to vector<2x8x1xf32>
    %272 = arith.divf %270, %271 : vector<2x8x1xf32>
    %273 = vector.broadcast %272 : vector<2x8x1xf32> to vector<2x8x32xf32>
    %274 = arith.subf %268, %273 : vector<2x8x32xf32>
    %275 = arith.mulf %274, %274 : vector<2x8x32xf32>
    %cst_62 = arith.constant dense<0.000000e+00> : vector<2x8xf32>
    %276 = vector.multi_reduction <add>, %275, %cst_62 [2] : vector<2x8x32xf32> to vector<2x8xf32>
    %277 = vector.shape_cast %276 : vector<2x8xf32> to vector<2x8x1xf32>
    %cst_63 = arith.constant 3.100000e+01 : f32
    %278 = vector.broadcast %cst_63 : f32 to vector<2x8x1xf32>
    %279 = arith.divf %277, %278 : vector<2x8x1xf32>
    %280 = math.sqrt %279 : vector<2x8x1xf32>
    %281 = vector.broadcast %272 : vector<2x8x1xf32> to vector<2x8x32xf32>
    %282 = arith.subf %268, %281 : vector<2x8x32xf32>
    %283 = vector.shape_cast %262 : vector<1x32xf32> to vector<1x1x32xf32>
    %284 = vector.broadcast %283 : vector<1x1x32xf32> to vector<2x8x32xf32>
    %285 = arith.mulf %284, %282 : vector<2x8x32xf32>
    %cst_64 = arith.constant 9.99999997E-7 : f32
    %286 = vector.broadcast %cst_64 : f32 to vector<2x8x1xf32>
    %287 = arith.addf %280, %286 : vector<2x8x1xf32>
    %288 = tpu.reciprocal %287 {approx = true} : vector<2x8x1xf32> -> vector<2x8x1xf32>
    %289 = vector.broadcast %288 : vector<2x8x1xf32> to vector<2x8x32xf32>
    %290 = arith.mulf %285, %289 : vector<2x8x32xf32>
    %291 = vector.shape_cast %263 : vector<1x32xf32> to vector<1x1x32xf32>
    %292 = vector.broadcast %291 : vector<1x1x32xf32> to vector<2x8x32xf32>
    %293 = arith.addf %290, %292 : vector<2x8x32xf32>
    %294 = arith.truncf %293 : vector<2x8x32xf32> to vector<2x8x32xbf16>
    %295 = vector.shape_cast %294 : vector<2x8x32xbf16> to vector<16x32xbf16>
    %cst_65 = arith.constant dense<0.000000e+00> : vector<16x96xf32>
    %296 = tpu.matmul %295, %252, %cst_65 {dimension_numbers = #tpu.dot_dimension_numbers<[1], [0], [0], [1], [0, 0, 1, 1], [], []>} : vector<16x32xbf16>, vector<32x96xbf16>, vector<16x96xf32> -> vector<16x96xf32>
    %297 = arith.truncf %296 : vector<16x96xf32> to vector<16x96xbf16>
    %298 = vector.extract_strided_slice %297 {offsets = [0, 0], sizes = [16, 32], strides = [1, 1]} : vector<16x96xbf16> to vector<16x32xbf16>
    %299 = vector.shape_cast %298 : vector<16x32xbf16> to vector<2x8x32xbf16>
    %300 = vector.extract_strided_slice %297 {offsets = [0, 32], sizes = [16, 32], strides = [1, 1]} : vector<16x96xbf16> to vector<16x32xbf16>
    %301 = vector.shape_cast %300 : vector<16x32xbf16> to vector<2x8x32xbf16>
    %302 = vector.extract_strided_slice %297 {offsets = [0, 64], sizes = [16, 32], strides = [1, 1]} : vector<16x96xbf16> to vector<16x32xbf16>
    %303 = vector.shape_cast %302 : vector<16x32xbf16> to vector<2x8x32xbf16>
    %304 = vector.extract_strided_slice %299 {offsets = [0, 0, 0], sizes = [2, 8, 8], strides = [1, 1, 1]} : vector<2x8x32xbf16> to vector<2x8x8xbf16>
    %305 = vector.extract_strided_slice %299 {offsets = [0, 0, 8], sizes = [2, 8, 8], strides = [1, 1, 1]} : vector<2x8x32xbf16> to vector<2x8x8xbf16>
    %306 = vector.extract_strided_slice %299 {offsets = [0, 0, 16], sizes = [2, 8, 8], strides = [1, 1, 1]} : vector<2x8x32xbf16> to vector<2x8x8xbf16>
    %307 = vector.extract_strided_slice %299 {offsets = [0, 0, 24], sizes = [2, 8, 8], strides = [1, 1, 1]} : vector<2x8x32xbf16> to vector<2x8x8xbf16>
    %308 = tpu.concatenate %304, %305, %306, %307 in 0 : vector<2x8x8xbf16>, vector<2x8x8xbf16>, vector<2x8x8xbf16>, vector<2x8x8xbf16> -> vector<8x8x8xbf16>
    %309 = vector.extract_strided_slice %301 {offsets = [0, 0, 0], sizes = [2, 8, 8], strides = [1, 1, 1]} : vector<2x8x32xbf16> to vector<2x8x8xbf16>
    %310 = vector.extract_strided_slice %301 {offsets = [0, 0, 8], sizes = [2, 8, 8], strides = [1, 1, 1]} : vector<2x8x32xbf16> to vector<2x8x8xbf16>
    %311 = vector.extract_strided_slice %301 {offsets = [0, 0, 16], sizes = [2, 8, 8], strides = [1, 1, 1]} : vector<2x8x32xbf16> to vector<2x8x8xbf16>
    %312 = vector.extract_strided_slice %301 {offsets = [0, 0, 24], sizes = [2, 8, 8], strides = [1, 1, 1]} : vector<2x8x32xbf16> to vector<2x8x8xbf16>
    %313 = tpu.concatenate %309, %310, %311, %312 in 0 : vector<2x8x8xbf16>, vector<2x8x8xbf16>, vector<2x8x8xbf16>, vector<2x8x8xbf16> -> vector<8x8x8xbf16>
    %314 = vector.extract_strided_slice %303 {offsets = [0, 0, 0], sizes = [2, 8, 8], strides = [1, 1, 1]} : vector<2x8x32xbf16> to vector<2x8x8xbf16>
    %315 = vector.extract_strided_slice %303 {offsets = [0, 0, 8], sizes = [2, 8, 8], strides = [1, 1, 1]} : vector<2x8x32xbf16> to vector<2x8x8xbf16>
    %316 = vector.extract_strided_slice %303 {offsets = [0, 0, 16], sizes = [2, 8, 8], strides = [1, 1, 1]} : vector<2x8x32xbf16> to vector<2x8x8xbf16>
    %317 = vector.extract_strided_slice %303 {offsets = [0, 0, 24], sizes = [2, 8, 8], strides = [1, 1, 1]} : vector<2x8x32xbf16> to vector<2x8x8xbf16>
    %318 = tpu.concatenate %314, %315, %316, %317 in 0 : vector<2x8x8xbf16>, vector<2x8x8xbf16>, vector<2x8x8xbf16>, vector<2x8x8xbf16> -> vector<8x8x8xbf16>
    "tpu.trace_start"() <{level = 10 : i32, message = "nqd,nkd->nqk"}> : () -> ()
    %cst_66 = arith.constant dense<0.000000e+00> : vector<8x8x8xf32>
    %319 = tpu.matmul %308, %313, %cst_66 {dimension_numbers = #tpu.dot_dimension_numbers<[2], [2], [1], [1], [0, 0, 0, 1, 1, 1], [0], [0]>} : vector<8x8x8xbf16>, vector<8x8x8xbf16>, vector<8x8x8xf32> -> vector<8x8x8xf32>
    "tpu.trace_stop"() : () -> ()
    %cst_67 = arith.constant 0.353553385 : f32
    %320 = vector.broadcast %cst_67 : f32 to vector<8x8x8xf32>
    %321 = arith.mulf %319, %320 : vector<8x8x8xf32>
    %322 = vector.broadcast %7 : vector<1x8x8xf32> to vector<8x8x8xf32>
    %323 = arith.addf %321, %322 : vector<8x8x8xf32>
    %cst_68 = arith.constant dense<0xFF800000> : vector<8x8xf32>
    %324 = vector.multi_reduction <maximumf>, %323, %cst_68 [2] : vector<8x8x8xf32> to vector<8x8xf32>
    %325 = vector.shape_cast %324 : vector<8x8xf32> to vector<8x8x1xf32>
    %326 = vector.broadcast %325 : vector<8x8x1xf32> to vector<8x8x8xf32>
    %327 = arith.subf %323, %326 : vector<8x8x8xf32>
    %328 = math.exp %327 : vector<8x8x8xf32>
    %cst_69 = arith.constant dense<0.000000e+00> : vector<8x8xf32>
    %329 = vector.multi_reduction <add>, %328, %cst_69 [2] : vector<8x8x8xf32> to vector<8x8xf32>
    %330 = vector.shape_cast %329 : vector<8x8xf32> to vector<8x8x1xf32>
    %331 = tpu.reciprocal %330 {approx = true} : vector<8x8x1xf32> -> vector<8x8x1xf32>
    %332 = vector.broadcast %331 : vector<8x8x1xf32> to vector<8x8x8xf32>
    %333 = arith.mulf %328, %332 : vector<8x8x8xf32>
    %334 = arith.truncf %333 : vector<8x8x8xf32> to vector<8x8x8xbf16>
    "tpu.trace_start"() <{level = 10 : i32, message = "nqk,nkd->nqd"}> : () -> ()
    %cst_70 = arith.constant dense<0.000000e+00> : vector<8x8x8xf32>
    %335 = tpu.matmul %334, %318, %cst_70 {dimension_numbers = #tpu.dot_dimension_numbers<[2], [1], [1], [2], [0, 0, 0, 1, 1, 2], [0], [0]>} : vector<8x8x8xbf16>, vector<8x8x8xbf16>, vector<8x8x8xf32> -> vector<8x8x8xf32>
    "tpu.trace_stop"() : () -> ()
    %336 = vector.extract_strided_slice %335 {offsets = [0, 0, 0], sizes = [2, 8, 8], strides = [1, 1, 1]} : vector<8x8x8xf32> to vector<2x8x8xf32>
    %337 = vector.extract_strided_slice %335 {offsets = [2, 0, 0], sizes = [2, 8, 8], strides = [1, 1, 1]} : vector<8x8x8xf32> to vector<2x8x8xf32>
    %338 = vector.extract_strided_slice %335 {offsets = [4, 0, 0], sizes = [2, 8, 8], strides = [1, 1, 1]} : vector<8x8x8xf32> to vector<2x8x8xf32>
    %339 = vector.extract_strided_slice %335 {offsets = [6, 0, 0], sizes = [2, 8, 8], strides = [1, 1, 1]} : vector<8x8x8xf32> to vector<2x8x8xf32>
    %340 = tpu.concatenate %336, %337, %338, %339 in 2 : vector<2x8x8xf32>, vector<2x8x8xf32>, vector<2x8x8xf32>, vector<2x8x8xf32> -> vector<2x8x32xf32>
    %341 = vector.shape_cast %340 : vector<2x8x32xf32> to vector<16x32xf32>
    %342 = arith.truncf %341 : vector<16x32xf32> to vector<16x32xbf16>
    %cst_71 = arith.constant dense<0.000000e+00> : vector<16x32xf32>
    %343 = tpu.matmul %342, %253, %cst_71 {dimension_numbers = #tpu.dot_dimension_numbers<[1], [0], [0], [1], [0, 0, 1, 1], [], []>} : vector<16x32xbf16>, vector<32x32xbf16>, vector<16x32xf32> -> vector<16x32xf32>
    %344 = vector.shape_cast %343 : vector<16x32xf32> to vector<2x8x32xf32>
    %345 = arith.truncf %344 : vector<2x8x32xf32> to vector<2x8x32xbf16>
    %346 = arith.addf %247, %345 : vector<2x8x32xbf16>
    %347 = arith.extf %346 : vector<2x8x32xbf16> to vector<2x8x32xf32>
    %cst_72 = arith.constant dense<0.000000e+00> : vector<2x8xf32>
    %348 = vector.multi_reduction <add>, %347, %cst_72 [2] : vector<2x8x32xf32> to vector<2x8xf32>
    %349 = vector.shape_cast %348 : vector<2x8xf32> to vector<2x8x1xf32>
    %cst_73 = arith.constant 3.200000e+01 : f32
    %350 = vector.broadcast %cst_73 : f32 to vector<2x8x1xf32>
    %351 = arith.divf %349, %350 : vector<2x8x1xf32>
    %352 = vector.broadcast %351 : vector<2x8x1xf32> to vector<2x8x32xf32>
    %353 = arith.subf %347, %352 : vector<2x8x32xf32>
    %354 = arith.mulf %353, %353 : vector<2x8x32xf32>
    %cst_74 = arith.constant dense<0.000000e+00> : vector<2x8xf32>
    %355 = vector.multi_reduction <add>, %354, %cst_74 [2] : vector<2x8x32xf32> to vector<2x8xf32>
    %356 = vector.shape_cast %355 : vector<2x8xf32> to vector<2x8x1xf32>
    %cst_75 = arith.constant 3.100000e+01 : f32
    %357 = vector.broadcast %cst_75 : f32 to vector<2x8x1xf32>
    %358 = arith.divf %356, %357 : vector<2x8x1xf32>
    %359 = math.sqrt %358 : vector<2x8x1xf32>
    %360 = vector.broadcast %351 : vector<2x8x1xf32> to vector<2x8x32xf32>
    %361 = arith.subf %347, %360 : vector<2x8x32xf32>
    %362 = vector.shape_cast %264 : vector<1x32xf32> to vector<1x1x32xf32>
    %363 = vector.broadcast %362 : vector<1x1x32xf32> to vector<2x8x32xf32>
    %364 = arith.mulf %363, %361 : vector<2x8x32xf32>
    %cst_76 = arith.constant 9.99999997E-7 : f32
    %365 = vector.broadcast %cst_76 : f32 to vector<2x8x1xf32>
    %366 = arith.addf %359, %365 : vector<2x8x1xf32>
    %367 = tpu.reciprocal %366 {approx = true} : vector<2x8x1xf32> -> vector<2x8x1xf32>
    %368 = vector.broadcast %367 : vector<2x8x1xf32> to vector<2x8x32xf32>
    %369 = arith.mulf %364, %368 : vector<2x8x32xf32>
    %370 = vector.shape_cast %265 : vector<1x32xf32> to vector<1x1x32xf32>
    %371 = vector.broadcast %370 : vector<1x1x32xf32> to vector<2x8x32xf32>
    %372 = arith.addf %369, %371 : vector<2x8x32xf32>
    %373 = arith.truncf %372 : vector<2x8x32xf32> to vector<2x8x32xbf16>
    %374 = vector.shape_cast %373 : vector<2x8x32xbf16> to vector<16x32xbf16>
    %cst_77 = arith.constant dense<0.000000e+00> : vector<16x32xf32>
    %375 = tpu.matmul %374, %254, %cst_77 {dimension_numbers = #tpu.dot_dimension_numbers<[1], [0], [0], [1], [0, 0, 1, 1], [], []>} : vector<16x32xbf16>, vector<32x32xbf16>, vector<16x32xf32> -> vector<16x32xf32>
    %376 = arith.truncf %375 : vector<16x32xf32> to vector<16x32xbf16>
    %377 = vector.shape_cast %376 : vector<16x32xbf16> to vector<2x8x32xbf16>
    %378 = vector.shape_cast %1 : vector<2x8x32xbf16> to vector<16x32xbf16>
    %cst_78 = arith.constant dense<0.000000e+00> : vector<16x64xf32>
    %379 = tpu.matmul %378, %255, %cst_78 {dimension_numbers = #tpu.dot_dimension_numbers<[1], [0], [0], [1], [0, 0, 1, 1], [], []>} : vector<16x32xbf16>, vector<32x64xbf16>, vector<16x64xf32> -> vector<16x64xf32>
    %380 = arith.truncf %379 : vector<16x64xf32> to vector<16x64xbf16>
    %381 = vector.extract_strided_slice %380 {offsets = [0, 0], sizes = [16, 32], strides = [1, 1]} : vector<16x64xbf16> to vector<16x32xbf16>
    %382 = vector.shape_cast %381 : vector<16x32xbf16> to vector<2x8x32xbf16>
    %383 = vector.extract_strided_slice %380 {offsets = [0, 32], sizes = [16, 32], strides = [1, 1]} : vector<16x64xbf16> to vector<16x32xbf16>
    %384 = vector.shape_cast %383 : vector<16x32xbf16> to vector<2x8x32xbf16>
    %385 = vector.extract_strided_slice %377 {offsets = [0, 0, 0], sizes = [2, 8, 8], strides = [1, 1, 1]} : vector<2x8x32xbf16> to vector<2x8x8xbf16>
    %386 = vector.extract_strided_slice %377 {offsets = [0, 0, 8], sizes = [2, 8, 8], strides = [1, 1, 1]} : vector<2x8x32xbf16> to vector<2x8x8xbf16>
    %387 = vector.extract_strided_slice %377 {offsets = [0, 0, 16], sizes = [2, 8, 8], strides = [1, 1, 1]} : vector<2x8x32xbf16> to vector<2x8x8xbf16>
    %388 = vector.extract_strided_slice %377 {offsets = [0, 0, 24], sizes = [2, 8, 8], strides = [1, 1, 1]} : vector<2x8x32xbf16> to vector<2x8x8xbf16>
    %389 = tpu.concatenate %385, %386, %387, %388 in 0 : vector<2x8x8xbf16>, vector<2x8x8xbf16>, vector<2x8x8xbf16>, vector<2x8x8xbf16> -> vector<8x8x8xbf16>
    %390 = vector.extract_strided_slice %382 {offsets = [0, 0, 0], sizes = [2, 8, 8], strides = [1, 1, 1]} : vector<2x8x32xbf16> to vector<2x8x8xbf16>
    %391 = vector.extract_strided_slice %382 {offsets = [0, 0, 8], sizes = [2, 8, 8], strides = [1, 1, 1]} : vector<2x8x32xbf16> to vector<2x8x8xbf16>
    %392 = vector.extract_strided_slice %382 {offsets = [0, 0, 16], sizes = [2, 8, 8], strides = [1, 1, 1]} : vector<2x8x32xbf16> to vector<2x8x8xbf16>
    %393 = vector.extract_strided_slice %382 {offsets = [0, 0, 24], sizes = [2, 8, 8], strides = [1, 1, 1]} : vector<2x8x32xbf16> to vector<2x8x8xbf16>
    %394 = tpu.concatenate %390, %391, %392, %393 in 0 : vector<2x8x8xbf16>, vector<2x8x8xbf16>, vector<2x8x8xbf16>, vector<2x8x8xbf16> -> vector<8x8x8xbf16>
    %395 = vector.extract_strided_slice %384 {offsets = [0, 0, 0], sizes = [2, 8, 8], strides = [1, 1, 1]} : vector<2x8x32xbf16> to vector<2x8x8xbf16>
    %396 = vector.extract_strided_slice %384 {offsets = [0, 0, 8], sizes = [2, 8, 8], strides = [1, 1, 1]} : vector<2x8x32xbf16> to vector<2x8x8xbf16>
    %397 = vector.extract_strided_slice %384 {offsets = [0, 0, 16], sizes = [2, 8, 8], strides = [1, 1, 1]} : vector<2x8x32xbf16> to vector<2x8x8xbf16>
    %398 = vector.extract_strided_slice %384 {offsets = [0, 0, 24], sizes = [2, 8, 8], strides = [1, 1, 1]} : vector<2x8x32xbf16> to vector<2x8x8xbf16>
    %399 = tpu.concatenate %395, %396, %397, %398 in 0 : vector<2x8x8xbf16>, vector<2x8x8xbf16>, vector<2x8x8xbf16>, vector<2x8x8xbf16> -> vector<8x8x8xbf16>
    "tpu.trace_start"() <{level = 10 : i32, message = "nqd,nkd->nqk"}> : () -> ()
    %cst_79 = arith.constant dense<0.000000e+00> : vector<8x8x8xf32>
    %400 = tpu.matmul %389, %394, %cst_79 {dimension_numbers = #tpu.dot_dimension_numbers<[2], [2], [1], [1], [0, 0, 0, 1, 1, 1], [0], [0]>} : vector<8x8x8xbf16>, vector<8x8x8xbf16>, vector<8x8x8xf32> -> vector<8x8x8xf32>
    "tpu.trace_stop"() : () -> ()
    %cst_80 = arith.constant 0.353553385 : f32
    %401 = vector.broadcast %cst_80 : f32 to vector<8x8x8xf32>
    %402 = arith.mulf %400, %401 : vector<8x8x8xf32>
    %403 = vector.broadcast %27 : vector<8x1x8xf32> to vector<8x8x8xf32>
    %404 = arith.addf %402, %403 : vector<8x8x8xf32>
    %cst_81 = arith.constant dense<0xFF800000> : vector<8x8xf32>
    %405 = vector.multi_reduction <maximumf>, %404, %cst_81 [2] : vector<8x8x8xf32> to vector<8x8xf32>
    %406 = vector.shape_cast %405 : vector<8x8xf32> to vector<8x8x1xf32>
    %407 = vector.broadcast %406 : vector<8x8x1xf32> to vector<8x8x8xf32>
    %408 = arith.subf %404, %407 : vector<8x8x8xf32>
    %409 = math.exp %408 : vector<8x8x8xf32>
    %cst_82 = arith.constant dense<0.000000e+00> : vector<8x8xf32>
    %410 = vector.multi_reduction <add>, %409, %cst_82 [2] : vector<8x8x8xf32> to vector<8x8xf32>
    %411 = vector.shape_cast %410 : vector<8x8xf32> to vector<8x8x1xf32>
    %412 = tpu.reciprocal %411 {approx = true} : vector<8x8x1xf32> -> vector<8x8x1xf32>
    %413 = vector.broadcast %412 : vector<8x8x1xf32> to vector<8x8x8xf32>
    %414 = arith.mulf %409, %413 : vector<8x8x8xf32>
    %415 = arith.truncf %414 : vector<8x8x8xf32> to vector<8x8x8xbf16>
    "tpu.trace_start"() <{level = 10 : i32, message = "nqk,nkd->nqd"}> : () -> ()
    %cst_83 = arith.constant dense<0.000000e+00> : vector<8x8x8xf32>
    %416 = tpu.matmul %415, %399, %cst_83 {dimension_numbers = #tpu.dot_dimension_numbers<[2], [1], [1], [2], [0, 0, 0, 1, 1, 2], [0], [0]>} : vector<8x8x8xbf16>, vector<8x8x8xbf16>, vector<8x8x8xf32> -> vector<8x8x8xf32>
    "tpu.trace_stop"() : () -> ()
    %417 = vector.extract_strided_slice %416 {offsets = [0, 0, 0], sizes = [2, 8, 8], strides = [1, 1, 1]} : vector<8x8x8xf32> to vector<2x8x8xf32>
    %418 = vector.extract_strided_slice %416 {offsets = [2, 0, 0], sizes = [2, 8, 8], strides = [1, 1, 1]} : vector<8x8x8xf32> to vector<2x8x8xf32>
    %419 = vector.extract_strided_slice %416 {offsets = [4, 0, 0], sizes = [2, 8, 8], strides = [1, 1, 1]} : vector<8x8x8xf32> to vector<2x8x8xf32>
    %420 = vector.extract_strided_slice %416 {offsets = [6, 0, 0], sizes = [2, 8, 8], strides = [1, 1, 1]} : vector<8x8x8xf32> to vector<2x8x8xf32>
    %421 = tpu.concatenate %417, %418, %419, %420 in 2 : vector<2x8x8xf32>, vector<2x8x8xf32>, vector<2x8x8xf32>, vector<2x8x8xf32> -> vector<2x8x32xf32>
    %422 = vector.shape_cast %421 : vector<2x8x32xf32> to vector<16x32xf32>
    %423 = arith.truncf %422 : vector<16x32xf32> to vector<16x32xbf16>
    %cst_84 = arith.constant dense<0.000000e+00> : vector<16x32xf32>
    %424 = tpu.matmul %423, %256, %cst_84 {dimension_numbers = #tpu.dot_dimension_numbers<[1], [0], [0], [1], [0, 0, 1, 1], [], []>} : vector<16x32xbf16>, vector<32x32xbf16>, vector<16x32xf32> -> vector<16x32xf32>
    %425 = vector.shape_cast %424 : vector<16x32xf32> to vector<2x8x32xf32>
    %426 = arith.truncf %425 : vector<2x8x32xf32> to vector<2x8x32xbf16>
    %427 = arith.addf %346, %426 : vector<2x8x32xbf16>
    %428 = arith.extf %427 : vector<2x8x32xbf16> to vector<2x8x32xf32>
    %cst_85 = arith.constant dense<0.000000e+00> : vector<2x8xf32>
    %429 = vector.multi_reduction <add>, %428, %cst_85 [2] : vector<2x8x32xf32> to vector<2x8xf32>
    %430 = vector.shape_cast %429 : vector<2x8xf32> to vector<2x8x1xf32>
    %cst_86 = arith.constant 3.200000e+01 : f32
    %431 = vector.broadcast %cst_86 : f32 to vector<2x8x1xf32>
    %432 = arith.divf %430, %431 : vector<2x8x1xf32>
    %433 = vector.broadcast %432 : vector<2x8x1xf32> to vector<2x8x32xf32>
    %434 = arith.subf %428, %433 : vector<2x8x32xf32>
    %435 = arith.mulf %434, %434 : vector<2x8x32xf32>
    %cst_87 = arith.constant dense<0.000000e+00> : vector<2x8xf32>
    %436 = vector.multi_reduction <add>, %435, %cst_87 [2] : vector<2x8x32xf32> to vector<2x8xf32>
    %437 = vector.shape_cast %436 : vector<2x8xf32> to vector<2x8x1xf32>
    %cst_88 = arith.constant 3.100000e+01 : f32
    %438 = vector.broadcast %cst_88 : f32 to vector<2x8x1xf32>
    %439 = arith.divf %437, %438 : vector<2x8x1xf32>
    %440 = math.sqrt %439 : vector<2x8x1xf32>
    %441 = vector.broadcast %432 : vector<2x8x1xf32> to vector<2x8x32xf32>
    %442 = arith.subf %428, %441 : vector<2x8x32xf32>
    %443 = vector.shape_cast %266 : vector<1x32xf32> to vector<1x1x32xf32>
    %444 = vector.broadcast %443 : vector<1x1x32xf32> to vector<2x8x32xf32>
    %445 = arith.mulf %444, %442 : vector<2x8x32xf32>
    %cst_89 = arith.constant 9.99999997E-7 : f32
    %446 = vector.broadcast %cst_89 : f32 to vector<2x8x1xf32>
    %447 = arith.addf %440, %446 : vector<2x8x1xf32>
    %448 = tpu.reciprocal %447 {approx = true} : vector<2x8x1xf32> -> vector<2x8x1xf32>
    %449 = vector.broadcast %448 : vector<2x8x1xf32> to vector<2x8x32xf32>
    %450 = arith.mulf %445, %449 : vector<2x8x32xf32>
    %451 = vector.shape_cast %267 : vector<1x32xf32> to vector<1x1x32xf32>
    %452 = vector.broadcast %451 : vector<1x1x32xf32> to vector<2x8x32xf32>
    %453 = arith.addf %450, %452 : vector<2x8x32xf32>
    %454 = arith.truncf %453 : vector<2x8x32xf32> to vector<2x8x32xbf16>
    %455 = vector.shape_cast %454 : vector<2x8x32xbf16> to vector<16x32xbf16>
    %cst_90 = arith.constant dense<0.000000e+00> : vector<16x64xf32>
    %456 = tpu.matmul %455, %257, %cst_90 {dimension_numbers = #tpu.dot_dimension_numbers<[1], [0], [0], [1], [0, 0, 1, 1], [], []>} : vector<16x32xbf16>, vector<32x64xbf16>, vector<16x64xf32> -> vector<16x64xf32>
    %457 = vector.broadcast %258 : vector<1x64xf32> to vector<16x64xf32>
    %458 = arith.addf %456, %457 : vector<16x64xf32>
    %cst_91 = arith.constant 0.000000e+00 : f32
    %459 = vector.broadcast %cst_91 : f32 to vector<16x64xf32>
    %460 = arith.maximumf %458, %459 : vector<16x64xf32>
    %461 = arith.truncf %460 : vector<16x64xf32> to vector<16x64xbf16>
    %cst_92 = arith.constant dense<0.000000e+00> : vector<16x32xf32>
    %462 = tpu.matmul %461, %260, %cst_92 {dimension_numbers = #tpu.dot_dimension_numbers<[1], [0], [0], [1], [0, 0, 1, 1], [], []>} : vector<16x64xbf16>, vector<64x32xbf16>, vector<16x32xf32> -> vector<16x32xf32>
    %463 = vector.broadcast %261 : vector<1x32xf32> to vector<16x32xf32>
    %464 = arith.addf %462, %463 : vector<16x32xf32>
    %465 = vector.shape_cast %464 : vector<16x32xf32> to vector<2x8x32xf32>
    %466 = arith.truncf %465 : vector<2x8x32xf32> to vector<2x8x32xbf16>
    %467 = arith.addf %427, %466 : vector<2x8x32xbf16>
    %c0_93 = arith.constant 0 : index
    %c0_94 = arith.constant 0 : index
    %468 = vector.load %arg7[%c0_93, %c0_94] : memref<2x32xf32, #tpu.memory_space<vmem>>, vector<2x32xf32>
    %469 = vector.extract_strided_slice %468 {offsets = [0, 0], sizes = [1, 32], strides = [1, 1]} : vector<2x32xf32> to vector<1x32xf32>
    %470 = vector.extract_strided_slice %468 {offsets = [1, 0], sizes = [1, 32], strides = [1, 1]} : vector<2x32xf32> to vector<1x32xf32>
    %471 = arith.extf %467 : vector<2x8x32xbf16> to vector<2x8x32xf32>
    %cst_95 = arith.constant dense<0.000000e+00> : vector<2x8xf32>
    %472 = vector.multi_reduction <add>, %471, %cst_95 [2] : vector<2x8x32xf32> to vector<2x8xf32>
    %473 = vector.shape_cast %472 : vector<2x8xf32> to vector<2x8x1xf32>
    %cst_96 = arith.constant 3.200000e+01 : f32
    %474 = vector.broadcast %cst_96 : f32 to vector<2x8x1xf32>
    %475 = arith.divf %473, %474 : vector<2x8x1xf32>
    %476 = vector.broadcast %475 : vector<2x8x1xf32> to vector<2x8x32xf32>
    %477 = arith.subf %471, %476 : vector<2x8x32xf32>
    %478 = arith.mulf %477, %477 : vector<2x8x32xf32>
    %cst_97 = arith.constant dense<0.000000e+00> : vector<2x8xf32>
    %479 = vector.multi_reduction <add>, %478, %cst_97 [2] : vector<2x8x32xf32> to vector<2x8xf32>
    %480 = vector.shape_cast %479 : vector<2x8xf32> to vector<2x8x1xf32>
    %cst_98 = arith.constant 3.100000e+01 : f32
    %481 = vector.broadcast %cst_98 : f32 to vector<2x8x1xf32>
    %482 = arith.divf %480, %481 : vector<2x8x1xf32>
    %483 = math.sqrt %482 : vector<2x8x1xf32>
    %484 = vector.broadcast %475 : vector<2x8x1xf32> to vector<2x8x32xf32>
    %485 = arith.subf %471, %484 : vector<2x8x32xf32>
    %486 = vector.shape_cast %469 : vector<1x32xf32> to vector<1x1x32xf32>
    %487 = vector.broadcast %486 : vector<1x1x32xf32> to vector<2x8x32xf32>
    %488 = arith.mulf %487, %485 : vector<2x8x32xf32>
    %cst_99 = arith.constant 9.99999997E-7 : f32
    %489 = vector.broadcast %cst_99 : f32 to vector<2x8x1xf32>
    %490 = arith.addf %483, %489 : vector<2x8x1xf32>
    %491 = tpu.reciprocal %490 {approx = true} : vector<2x8x1xf32> -> vector<2x8x1xf32>
    %492 = vector.broadcast %491 : vector<2x8x1xf32> to vector<2x8x32xf32>
    %493 = arith.mulf %488, %492 : vector<2x8x32xf32>
    %494 = vector.shape_cast %470 : vector<1x32xf32> to vector<1x1x32xf32>
    %495 = vector.broadcast %494 : vector<1x1x32xf32> to vector<2x8x32xf32>
    %496 = arith.addf %493, %495 : vector<2x8x32xf32>
    %c0_100 = arith.constant 0 : index
    %c0_101 = arith.constant 0 : index
    %c0_102 = arith.constant 0 : index
    %497 = vector.load %arg8[%c0_100, %c0_101, %c0_102] : memref<2x8x32xf32, #tpu.memory_space<vmem>>, vector<2x8x32xf32>
    tpu.vector_store %arg8[%c0_100, %c0_101, %c0_102], %496 {strides = array<i32>} : memref<2x8x32xf32, #tpu.memory_space<vmem>>, vector<2x8x32xf32>,
    return
  }
  func.func @transform_0(%arg0: i32, %arg1: memref<2xi32, #tpu.memory_space<smem>>) -> (i32, i32, i32) {
    %c0_i32 = arith.constant 0 : i32
    %c0_i32_0 = arith.constant 0 : i32
    %c0_i32_1 = arith.constant 0 : i32
    return %arg0, %c0_i32, %c0_i32_0 : i32, i32, i32
  }
  func.func @transform_1(%arg0: i32, %arg1: memref<2xi32, #tpu.memory_space<smem>>) -> (i32, i32, i32) {
    %c0_i32 = arith.constant 0 : i32
    %c0_i32_0 = arith.constant 0 : i32
    %c0_i32_1 = arith.constant 0 : i32
    return %arg0, %c0_i32, %c0_i32_0 : i32, i32, i32
  }
  func.func @transform_2(%arg0: i32, %arg1: memref<2xi32, #tpu.memory_space<smem>>) -> (i32, i32, i32) {
    %c0_i32 = arith.constant 0 : i32
    %c0_i32_0 = arith.constant 0 : i32
    %c0_i32_1 = arith.constant 0 : i32
    %c0_i32_2 = arith.constant 0 : i32
    return %c0_i32, %c0_i32_0, %c0_i32_1 : i32, i32, i32
  }
  func.func @transform_3(%arg0: i32, %arg1: memref<2xi32, #tpu.memory_space<smem>>) -> (i32, i32, i32) {
    %c0_i32 = arith.constant 0 : i32
    %c0_i32_0 = arith.constant 0 : i32
    %c0_i32_1 = arith.constant 0 : i32
    %c0_i32_2 = arith.constant 0 : i32
    return %c0_i32, %c0_i32_0, %c0_i32_1 : i32, i32, i32
  }
  func.func @transform_4(%arg0: i32, %arg1: memref<2xi32, #tpu.memory_space<smem>>) -> (i32, i32, i32) {
    %c0_i32 = arith.constant 0 : i32
    %c0_i32_0 = arith.constant 0 : i32
    %c0_i32_1 = arith.constant 0 : i32
    %c0_i32_2 = arith.constant 0 : i32
    return %c0_i32, %c0_i32_0, %c0_i32_1 : i32, i32, i32
  }
  func.func @transform_5(%arg0: i32, %arg1: memref<2xi32, #tpu.memory_space<smem>>) -> (i32, i32) {
    %c0_i32 = arith.constant 0 : i32
    %c0_i32_0 = arith.constant 0 : i32
    %c0_i32_1 = arith.constant 0 : i32
    return %c0_i32, %c0_i32_0 : i32, i32
  }
  func.func @transform_6(%arg0: i32, %arg1: memref<2xi32, #tpu.memory_space<smem>>) -> (i32, i32, i32) {
    %c0_i32 = arith.constant 0 : i32
    %c0_i32_0 = arith.constant 0 : i32
    %c0_i32_1 = arith.constant 0 : i32
    return %arg0, %c0_i32, %c0_i32_0 : i32, i32, i32
  }
}

</mosaic_0001>

<bundles_post_ra>
// kernel: tpu_custom_call.1
= control target key start
LH: loop header
LB: loop body
LE: loop exit
PB: predicated region body
PF: predicated region fallthrough
CT: control target
= control target key end

     0   :  { %s7740_s0 = inlined_call_operand.hbm [shape: s32[2], index: 0, kind: input, shape index: {}]   ;;  %s7741_s1 = inlined_call_operand.hbm [shape: bf16[2,8,32], index: 1, kind: input, shape index: {}]   ;;  %s7742_s2 = inlined_call_operand.hbm [shape: bf16[2,8,32], index: 2, kind: input, shape index: {}]   ;;  %s7743_s3 = inlined_call_operand.vmem [shape: bf16[2,32,320], index: 3, kind: input, shape index: {}]   ;;  %s7744_s4 = inlined_call_operand.vmem [shape: bf16[2,64,32], index: 4, kind: input, shape index: {}]   ;;  %s7745_s5 = inlined_call_operand.vmem [shape: f32[2,8,64], index: 5, kind: input, shape index: {}]   ;;  %s7746_s6 = inlined_call_operand.vmem [shape: f32[2,32], index: 6, kind: input, shape index: {}]   ;;  %s7747_s7 = inlined_call_operand.hbm [shape: f32[2,8,32], index: 7, kind: output, shape index: {}]  }
   0x1   :  { %s6297_s26 = scalar_lea.hbm %s7740_s0, 16 }
   0x2   :  { %p6298_p0 = scmp.ne.s32.totalorder %s7740_s0, %s6297_s26  ;;  %p6301_p1 = scmp.lt.u32.totalorder %s6297_s26, %s7740_s0 }
   0x4   :  { %p6303_p2 = pnand %p6301_p1, %p6298_p0 }
   0x6   :  { %6306 = shalt.err (!%p6303_p2)  }
   0x7   :  { %s6381_s8 = smov [#allocation3]  }
   0x8   :  { %13 = dma.hbm_to_smem %s7740_s0, 16, %s6381_s8, [#allocation2] }
   0x9   :  { %6373 = dma.done.wait [#allocation2], 16 }
   0xa   :  { %6374 = vsyncadd [#allocation2], 4294967280 }
   0xb   :  { %15 = sfence }
   0xc   :  { %16 = vsyncpa [#allocation5], 0 }
   0xd   :  { %17 = vsyncpa [#allocation8], 0 }
   0xe   :  { %18 = vsyncpa [#allocation6], 0  ;;  %s6382_s11 = smov [#allocation4]   ;;  %s6307_s15 = scalar_lea.hbm %s7741_s1, 128 }
   0xf   :  { %s24_s12 = sshll.u32 %s6382_s11, 4  ;;  %p6308_p3 = scmp.ne.s32.totalorder %s7741_s1, %s6307_s15  ;;  %s25_s12 = int_to_ptr.vmem [resolvable:$true] %s24_s12 }
  0x10   :  { %p6311_p4 = scmp.lt.u32.totalorder %s6307_s15, %s7741_s1 }
  0x12   :  { %p6313_p5 = pnand %p6311_p4, %p6308_p3 }
  0x14   :  { %6316 = shalt.err (!%p6313_p5)
}
  0x15   :  { %s6317_s0 = scalar_lea.vmem %s25_s12, 128  ;;  %p6322_p7 = scmp.lt.s32.totalorder %s25_s12, %s25_s12 }
  0x16   :  { %p6318_p6 = scmp.ne.s32.totalorder %s25_s12, %s6317_s0  ;;  %p6323_p8 = scmp.lt.s32.totalorder %s6317_s0, %s6317_s0 }
  0x18   :  { %p6324_p9 = por %p6323_p8, %p6322_p7 }
  0x1a   :  { %p6325_p10 = pnand %p6324_p9, %p6318_p6 }
  0x1c   :  { %6328 = shalt.err (!%p6325_p10)
}
  0x1d   :  { %s6383_s20 = smov 64   ;;  %s6384_s21 = smov 4  }
  0x1e   :  { %30 = dma.hbm_to_vmem [thread:$0]  %s7741_s1, 128, %s25_s12, [#allocation5], %s6383_s20, %s6383_s20, %s6384_s21  }
  0x1f   :  { %s6385_s24 = smov [#allocation7]   ;;  %s6329_s28 = scalar_lea.hbm %s7742_s2, 128 }
  0x20   :  { %s36_s25 = sshll.u32 %s6385_s24, 4  ;;  %p6330_p11 = scmp.ne.s32.totalorder %s7742_s2, %s6329_s28  ;;  %s37_s25 = int_to_ptr.vmem [resolvable:$true] %s36_s25 }
  0x21   :  { %p6333_p12 = scmp.lt.u32.totalorder %s6329_s28, %s7742_s2 }
  0x23   :  { %p6335_p13 = pnand %p6333_p12, %p6330_p11 }
  0x25   :  { %6338 = shalt.err (!%p6335_p13)
}
  0x26   :  { %s6339_s10 = scalar_lea.vmem %s37_s25, 128  ;;  %p6344_p1 = scmp.lt.s32.totalorder %s37_s25, %s37_s25 }
  0x27   :  { %p6340_p0 = scmp.ne.s32.totalorder %s37_s25, %s6339_s10  ;;  %p6345_p2 = scmp.lt.s32.totalorder %s6339_s10, %s6339_s10 }
  0x29   :  { %p6346_p3 = por %p6345_p2, %p6344_p1 }
  0x2b   :  { %p6347_p4 = pnand %p6346_p3, %p6340_p0 }
  0x2d   :  { %6350 = shalt.err (!%p6347_p4)
}
  0x2e   :  { %42 = dma.hbm_to_vmem [thread:$0]  %s7742_s2, 128, %s37_s25, [#allocation8], %s6383_s20, %s6383_s20, %s6384_s21  }
  0x2f   :  { %6375 = dma.done.wait [#allocation5], 128  }
  0x30   :  { %6376 = vsyncadd [#allocation5], 4294967168 }
  0x31   :  { %6377 = dma.done.wait [#allocation8], 128  }
  0x32   :  { %6378 = vsyncadd [#allocation8], 4294967168  ;;  %v6479_v0 = vld [vmem:[#allocation4] sm:$0xf]  ;;  %vm97_vm0 = vcmask 261120   ;;  %v6386_v17 = vmov 0.0   ;;  %v62_v25 = vlaneseq }
  0x33   :  { %v6481_v1 = vld [vmem:[#allocation4 + $0x4] sm:$0xf]  ;;  %v95_v2 = vunpack.c.l.bf16 %v6479_v0  ;;  %v6492_v16 = vld [vmem:[%s7743_s3] ss:$12 sps:$4 sm:$0xff]   ;;  %5503 = vmatprep.subr.bf16.mxu1 %v6386_v17  ;;  %vm6387_vm1 = vmmov 0   ;;  %5517 = vmatprep.subr.bf16.mxu0 %v6386_v17  ;;  %s6388_s17 = smov 120  }
  0x34   :  { %v96_v3 = vunpack.c.l.bf16 %v6481_v1  ;;  %5507 = vmatprep.mubr.msk.bf16.mxu1 %vm6387_vm1, %v6386_v17  ;;  %5504 = vmatpush3.bf16.msra.mxu1 %v6492_v16  ;;  %v6501_v18 = vld [vmem:[%s7743_s3 + $0x18] ss:$12 sps:$4 sm:$0xff]   ;;  %v6510_v32 = vshrl.u32 %v62_v25, 7  ;;  %s6389_s18 = smov 104   ;;  %s6390_s19 = smov 112   ;;  %vm235_vm6 = vcmask 64512  }
  0x35   :  { %v98_v4 = vsel %vm97_vm0, %v95_v2, 0.0  ;;  %5505 = vmatprep.subr.bf16.mxu1 %v6386_v17  ;;  %5519 = vmatprep.mubr.msk.bf16.mxu0 %vm6387_vm1, %v6386_v17  ;;  %v6516_v38 = vld [vmem:[%s7745_s5] sm:$0xff]  ;;  %s6391_s0 = smov 96   ;;  %vm747_vm8 = vcmask 1043456   ;;  %s6393_s23 = smov 32   ;;  %vm1153_vm9 = vcmask 130048  }
  0x36   :  { %v101_v5 = vsel %vm97_vm0, %v96_v3, 0.0  ;;  %99 = vadd.xlane.f32.xlu0 %v98_v4  ;;  %v136_v37 = vsub.s32 2, %v6510_v32  ;;  %v148_v40 = vsub.s32 3, %v6510_v32  ;;  %s6394_s24 = smov 8   ;;  %s6395_s25 = smov 16   ;;  %vm1156_vm10 = vcmask 195584  }
  0x37   :  { %s6396_s26 = smov 24   ;;  %s69_s29 = sld [smem:[#allocation3]] }
  0x38   :  { %5506 = vmatpush3.bf16.msra.mxu1 %v6501_v18  ;;  %v137_v39 = vrot.slane %v6516_v38, %v136_v37  ;;  %v149_v45 = vrot.slane %v6516_v38, %v148_v40  ;;  %s5152_s30 = sld [smem:[#allocation3 + $0x1]]  ;;  %s6397_s22 = smov [#allocation9]  }
  0x39   :  { %5511 = vmatprep.subr.bf16.mxu1 %v6386_v17  ;;  %s5139_s27 = sshll.u32 %s6397_s22, 4  ;;  %s5140_s27 = int_to_ptr.vmem [resolvable:$true] %s5139_s27 }
  0x3a   :  { %102 = vadd.xlane.f32.xlu0 %v101_v5  ;;  %p6356_p6 = scmp.lt.s32.totalorder %s5140_s27, %s5140_s27 }
  0xc3   :  { %v100_v6 = vpop.xlane.xlu0 %99 }
  0xc4   :  { %v105_v7 = vmul.f32 0.03125, %v100_v6 }
  0xc6   :  { %v107_v8 = vsub.f32 %v95_v2, %v105_v7 }
  0xc7   :  { %v103_v9 = vpop.xlane.xlu0 %102 }
  0xc8   :  { %v106_v10 = vmul.f32 0.03125, %v103_v9  ;;  %v109_v11 = vmul.f32 %v107_v8, %v107_v8  ;;  %v138_v42 = vmul.f32 %v137_v39, %v107_v8 }
  0xca   :  { %v108_v12 = vsub.f32 %v96_v3, %v106_v10  ;;  %v111_v13 = vsel %vm97_vm0, %v109_v11, 0.0 }
  0xcb   :  { %112 = vadd.xlane.f32.xlu1 %v111_v13 }
  0xcc   :  { %v110_v14 = vmul.f32 %v108_v12, %v108_v12  ;;  %v139_v43 = vmul.f32 %v137_v39, %v108_v12 }
  0xce   :  { %v114_v15 = vsel %vm97_vm0, %v110_v14, 0.0 }
  0xcf   :  { %115 = vadd.xlane.f32.xlu1 %v114_v15 }
 0x158   :  { %v113_v19 = vpop.xlane.xlu1 %112 }
 0x159   :  { %v118_v20 = vmul.f32 0.032258064, %v113_v19 }
 0x15b   :  { %6110 = vrsqrt.f32 %v118_v20  ;;  %vm122_vm2 = vcmp.eq.f32.partialorder %v118_v20, inf  ;;  %v125_v26 = vand.u32 2147483648, %v118_v20  ;;  %vm124_vm3 = vcmp.eq.f32.partialorder %v118_v20, 0.0 }
 0x15c   :  { %v116_v21 = vpop.xlane.xlu1 %115 }
 0x15d   :  { %v119_v22 = vmul.f32 0.032258064, %v116_v21 }
 0x15f   :  { %6112 = vrsqrt.f32 %v119_v22  ;;  %vm129_vm4 = vcmp.eq.f32.partialorder %v119_v22, inf  ;;  %v132_v33 = vand.u32 2147483648, %v119_v22  ;;  %vm131_vm5 = vcmp.eq.f32.partialorder %v119_v22, 0.0 }
 0x165   :  { %v6111_v23 = vpop.eup %6110 }
 0x166   :  { %v121_v24 = vmul.f32 %v6111_v23, %v118_v20 }
 0x168   :  { %v123_v27 = vsel %vm122_vm2, %v118_v20, %v121_v24 }
 0x169   :  { %v6113_v28 = vpop.eup %6112  ;;  %v126_v29 = vsel %vm124_vm3, %v125_v26, %v123_v27  ;;  %v6615_v27 = vand.u32 127, %v62_v25 }
 0x16a   :  { %v140_v30 = vadd.f32 1e-06, %v126_v29  ;;  %v128_v31 = vmul.f32 %v6113_v28, %v119_v22  ;;  %v6392_v28 = vmov -1e+09  }
 0x16b   :  { %vm66_vm7 = vcmp.ge.s32.totalorder %v6510_v32, %v6615_v27 }
 0x16c   :  { %v130_v34 = vsel %vm129_vm4, %v119_v22, %v128_v31  ;;  %6114 = vrcp.f32 %v140_v30  ;;  %v6620_v29 = vsel %vm66_vm7, 0.0, %v6392_v28 }
 0x16d   :  { %v133_v35 = vsel %vm131_vm5, %v132_v33, %v130_v34 }
 0x16e   :  { %v141_v36 = vadd.f32 1e-06, %v133_v35 }
 0x170   :  { %6116 = vrcp.f32 %v141_v36 }
 0x176   :  { %v6115_v41 = vpop.eup %6114 }
 0x177   :  { %v144_v44 = vmul.f32 %v6115_v41, %v138_v42 }
 0x179   :  { %v150_v48 = vadd.f32 %v149_v45, %v144_v44 }
 0x17a   :  { %v6117_v46 = vpop.eup %6116 }
 0x17b   :  { %v145_v47 = vmul.f32 %v6117_v46, %v139_v43 }
 0x17d   :  { %v151_v49 = vadd.f32 %v149_v45, %v145_v47 }
 0x17f   :  { %v5311_v50 = vpack.c.bf16 %v151_v49, %v150_v48 }
 0x181   :  { %5508 = vmatmul.mubr.msk.bf16.vlgmr.msra.gmra.mrb[0].mxu1 %vm97_vm0, %v5311_v50 }
 0x182   :  { %5513 = vmatprep.mubr.msk.bf16.mxu1 %vm6387_vm1, %v6386_v17 }
 0x254   :  { %v208_v51 = vpop.f32.mrb[0].mxu1 }
 0x255   :  { %v6528_v52 = vpack.c.bf16 %v208_v51, %v208_v51  ;;  %v5509_v53 = vpop.f32.mrb[1].mxu1 }
 0x256   :  { %v211_v54 = vpop.f32.mrb[2].mxu1 }
 0x257   :  { %v6530_v55 = vpack.c.bf16 %v211_v54, %v211_v54  ;;  %221 = vrot.lane.b32.xlu0 %v6528_v52, %s6388_s17  ;;  %v5510_v56 = vpop.f32.mrb[3].mxu1 }
 0x259   :  { %223 = vrot.lane.b32.xlu1 %v6530_v55, %s6388_s17 }
 0x25b   :  { %229 = vrot.lane.b32.xlu0 %v6528_v52, %s6389_s18 }
 0x25d   :  { %225 = vrot.lane.b32.xlu1 %v6528_v52, %s6390_s19 }
 0x25f   :  { %233 = vrot.lane.b32.xlu0 %v6528_v52, %s6391_s0 }
 0x261   :  { %227 = vrot.lane.b32.xlu1 %v6530_v55, %s6390_s19 }
 0x265   :  { %231 = vrot.lane.b32.xlu1 %v6530_v55, %s6389_s18 }
 0x269   :  { %282 = vrot.lane.b32.xlu1 %v6530_v55, %s6391_s0 }
 0x2c9   :  { %v222_v57 = vpop.permute.xlu0 %221 }
 0x2ca   :  { %v6548_v58 = vcombine.low %v222_v57, %v222_v57 }
 0x2cb   :  { %v224_v59 = vpop.permute.xlu1 %223 }
 0x2cc   :  { %v6550_v60 = vcombine.low %v224_v59, %v224_v59  ;;  %332 = vrot.lane.b32.xlu0 %v6548_v58, %s6391_s0 }
 0x2cd   :  { %v230_v61 = vpop.permute.xlu0 %229 }
 0x2ce   :  { %382 = vrot.lane.b32.xlu1 %v6550_v60, %s6391_s0  ;;  %v6561_v5 = vcombine.low %v230_v61, %v230_v61 }
 0x2cf   :  { %v226_v62 = vpop.permute.xlu1 %225 }
 0x2d0   :  { %v6556_v63 = vcombine.low %v226_v62, %v226_v62 }
 0x2d1   :  { %v234_v2 = vpop.permute.xlu0 %233 }
 0x2d2   :  { %v240_v3 = vsel %vm235_vm6, %v234_v2, 0  ;;  %432 = vrot.lane.b32.xlu0 %v6556_v63, %s6391_s0 }
 0x2d3   :  { %5512 = vmatpush3.bf16.xpose.msra.mxu1 %v240_v3  ;;  %v228_v4 = vpop.permute.xlu1 %227 }
 0x2d4   :  { %v6563_v6 = vcombine.low %v228_v4, %v228_v4  ;;  %5523 = vmatprep.subr.bf16.mxu1 %v6386_v17 }
 0x2d6   :  { %532 = vrot.lane.b32.xlu0 %v6561_v5, %s6391_s0  ;;  %482 = vrot.lane.b32.xlu1 %v6563_v6, %s6391_s0 }
 0x2d7   :  { %v232_v7 = vpop.permute.xlu1 %231 }
 0x2d8   :  { %v6570_v8 = vcombine.low %v232_v7, %v232_v7 }
 0x2da   :  { %5514 = vmatmul.mubr.msk.bf16.vlgmr.msra.gmra.mrb[4].mxu1 %vm235_vm6, %v6528_v52  ;;  %582 = vrot.lane.b32.xlu1 %v6570_v8, %s6391_s0 }
 0x2db   :  { %v283_v9 = vpop.permute.xlu1 %282  ;;  %5525 = vmatprep.mubr.msk.bf16.mxu1 %vm6387_vm1, %v6386_v17 }
 0x2dc   :  { %v288_v10 = vsel %vm235_vm6, %v283_v9, 0 }
 0x2dd   :  { %5518 = vmatpush3.bf16.xpose.msra.mxu0 %v288_v10 }
 0x2de   :  { %5529 = vmatprep.subr.bf16.mxu0 %v6386_v17 }
 0x2e4   :  { %5520 = vmatmul.mubr.msk.bf16.vlgmr.msra.gmra.mrb[0].mxu0 %vm235_vm6, %v6530_v55 }
 0x2e5   :  { %5531 = vmatprep.mubr.msk.bf16.mxu0 %vm6387_vm1, %v6386_v17 }
 0x33e   :  { %v333_v11 = vpop.permute.xlu0 %332 }
 0x33f   :  { %v338_v12 = vsel %vm235_vm6, %v333_v11, 0 }
 0x340   :  { %5524 = vmatpush3.bf16.xpose.msra.mxu1 %v338_v12  ;;  %v383_v13 = vpop.permute.xlu1 %382 }
 0x341   :  { %v388_v14 = vsel %vm235_vm6, %v383_v13, 0  ;;  %5535 = vmatprep.subr.bf16.mxu1 %v6386_v17 }
 0x342   :  { %5530 = vmatpush3.bf16.xpose.msra.mxu0 %v388_v14 }
 0x343   :  { %5541 = vmatprep.subr.bf16.mxu0 %v6386_v17 }
 0x344   :  { %v433_v15 = vpop.permute.xlu0 %432 }
 0x345   :  { %v438_v19 = vsel %vm235_vm6, %v433_v15, 0 }
 0x347   :  { %5526 = vmatmul.mubr.msk.bf16.vlgmr.msra.gmra.mrb[8].mxu1 %vm235_vm6, %v222_v57 }
 0x348   :  { %5536 = vmatpush3.bf16.xpose.msra.mxu1 %v438_v19  ;;  %v483_v20 = vpop.permute.xlu1 %482  ;;  %5537 = vmatprep.mubr.msk.bf16.mxu1 %vm6387_vm1, %v6386_v17  ;;  %v533_v22 = vpop.permute.xlu0 %532 }
 0x349   :  { %v488_v21 = vsel %vm235_vm6, %v483_v20, 0  ;;  %5532 = vmatmul.mubr.msk.bf16.vlgmr.msra.gmra.mrb[4].mxu0 %vm235_vm6, %v224_v59  ;;  %5547 = vmatprep.subr.bf16.mxu1 %v6386_v17  ;;  %v538_v24 = vsel %vm235_vm6, %v533_v22, 0 }
 0x34a   :  { %5542 = vmatpush3.bf16.xpose.msra.mxu0 %v488_v21  ;;  %5543 = vmatprep.mubr.msk.bf16.mxu0 %vm6387_vm1, %v6386_v17 }
 0x34b   :  { %5553 = vmatprep.subr.bf16.mxu0 %v6386_v17 }
 0x34c   :  { %v583_v23 = vpop.permute.xlu1 %582 }
 0x34d   :  { %v588_v26 = vsel %vm235_vm6, %v583_v23, 0 }
 0x34f   :  { %5538 = vmatmul.mubr.msk.bf16.vlgmr.msra.gmra.mrb[12].mxu1 %vm235_vm6, %v226_v62 }
 0x350   :  { %5548 = vmatpush3.bf16.xpose.msra.mxu1 %v538_v24  ;;  %5549 = vmatprep.mubr.msk.bf16.mxu1 %vm6387_vm1, %v6386_v17 }
 0x351   :  { %5544 = vmatmul.mubr.msk.bf16.vlgmr.msra.gmra.mrb[8].mxu0 %vm235_vm6, %v228_v4  ;;  %5559 = vmatprep.subr.bf16.mxu1 %v6386_v17 }
 0x352   :  { %5554 = vmatpush3.bf16.xpose.msra.mxu0 %v588_v26  ;;  %5555 = vmatprep.mubr.msk.bf16.mxu0 %vm6387_vm1, %v6386_v17 }
 0x353   :  { %5565 = vmatprep.subr.bf16.mxu0 %v6386_v17 }
 0x357   :  { %5550 = vmatmul.mubr.msk.bf16.vlgmr.msra.gmra.mrb[16].mxu1 %vm235_vm6, %v230_v61 }
 0x358   :  { %5561 = vmatprep.mubr.msk.bf16.mxu1 %vm6387_vm1, %v6386_v17 }
 0x359   :  { %5556 = vmatmul.mubr.msk.bf16.vlgmr.msra.gmra.mrb[12].mxu0 %vm235_vm6, %v232_v7 }
 0x35a   :  { %5567 = vmatprep.mubr.msk.bf16.mxu0 %vm6387_vm1, %v6386_v17 }
 0x3ad   :  { %v276_v30 = vpop.f32.mrb[4].mxu1 }
 0x3ae   :  { %v630_v31 = vmul.f32 0.35355338, %v276_v30  ;;  %v5515_v33 = vpop.f32.mrb[5].mxu1 }
 0x3af   :  { %v279_v34 = vpop.f32.mrb[6].mxu1 }
 0x3b0   :  { %v5516_v35 = vpop.f32.mrb[7].mxu1  ;;  %v638_v36 = vadd.f32 %v630_v31, %v6620_v29 }
 0x3b2   :  { %v646_v39 = vsel %vm235_vm6, %v638_v36, -inf }
 0x3b3   :  { %647 = vmax.xlane.f32.xlu0 %v646_v39 }
 0x3b7   :  { %v324_v41 = vpop.f32.mrb[0].mxu0 }
 0x3b8   :  { %v631_v25 = vmul.f32 0.35355338, %v324_v41  ;;  %v5521_v42 = vpop.f32.mrb[1].mxu0 }
 0x3b9   :  { %v327_v43 = vpop.f32.mrb[2].mxu0 }
 0x3ba   :  { %v5522_v44 = vpop.f32.mrb[3].mxu0  ;;  %v6625_v45 = vadd.f32 %v631_v25, %v6620_v29 }
 0x3bc   :  { %v649_v46 = vsel %vm235_vm6, %v6625_v45, -inf }
 0x3bd   :  { %650 = vmax.xlane.f32.xlu1 %v649_v46 }
 0x41a   :  { %v374_v47 = vpop.f32.mrb[8].mxu1 }
 0x41b   :  { %v632_v48 = vmul.f32 0.35355338, %v374_v47  ;;  %v5527_v49 = vpop.f32.mrb[9].mxu1 }
 0x41c   :  { %v377_v50 = vpop.f32.mrb[10].mxu1  ;;  %v424_v51 = vpop.f32.mrb[4].mxu0 }
 0x41d   :  { %v633_v53 = vmul.f32 0.35355338, %v424_v51  ;;  %v5528_v54 = vpop.f32.mrb[11].mxu1  ;;  %v5533_v56 = vpop.f32.mrb[5].mxu0  ;;  %v640_v57 = vadd.f32 %v632_v48, %v6620_v29 }
 0x41e   :  { %v427_v59 = vpop.f32.mrb[6].mxu0 }
 0x41f   :  { %v5534_v61 = vpop.f32.mrb[7].mxu0  ;;  %v652_v62 = vsel %vm235_vm6, %v640_v57, -inf  ;;  %v6632_v2 = vadd.f32 %v633_v53, %v6620_v29 }
 0x420   :  { %653 = vmax.xlane.f32.xlu0 %v652_v62 }
 0x421   :  { %v655_v9 = vsel %vm235_vm6, %v6632_v2, -inf }
 0x422   :  { %v474_v3 = vpop.f32.mrb[12].mxu1 }
 0x423   :  { %v634_v4 = vmul.f32 0.35355338, %v474_v3  ;;  %v5539_v7 = vpop.f32.mrb[13].mxu1 }
 0x424   :  { %v524_v10 = vpop.f32.mrb[8].mxu0  ;;  %656 = vmax.xlane.f32.xlu0 %v655_v9  ;;  %v477_v11 = vpop.f32.mrb[14].mxu1 }
 0x425   :  { %v635_v12 = vmul.f32 0.35355338, %v524_v10  ;;  %v5540_v13 = vpop.f32.mrb[15].mxu1  ;;  %v5545_v14 = vpop.f32.mrb[9].mxu0  ;;  %v6637_v15 = vadd.f32 %v634_v4, %v6620_v29 }
 0x426   :  { %v527_v19 = vpop.f32.mrb[10].mxu0 }
 0x427   :  { %v5546_v20 = vpop.f32.mrb[11].mxu0  ;;  %v658_v21 = vsel %vm235_vm6, %v6637_v15, -inf  ;;  %v643_v22 = vadd.f32 %v635_v12, %v6620_v29 }
 0x428   :  { %659 = vmax.xlane.f32.xlu0 %v658_v21 }
 0x429   :  { %v661_v23 = vsel %vm235_vm6, %v643_v22, -inf }
 0x42a   :  { %662 = vmax.xlane.f32.xlu1 %v661_v23  ;;  %v574_v24 = vpop.f32.mrb[16].mxu1 }
 0x42b   :  { %v636_v26 = vmul.f32 0.35355338, %v574_v24  ;;  %v5551_v30 = vpop.f32.mrb[17].mxu1 }
 0x42c   :  { %v577_v31 = vpop.f32.mrb[18].mxu1  ;;  %v624_v33 = vpop.f32.mrb[12].mxu0 }
 0x42d   :  { %v5552_v34 = vpop.f32.mrb[19].mxu1  ;;  %v5557_v35 = vpop.f32.mrb[13].mxu0  ;;  %v6644_v39 = vadd.f32 %v636_v26, %v6620_v29  ;;  %v637_v47 = vmul.f32 0.35355338, %v624_v33 }
 0x42e   :  { %v627_v41 = vpop.f32.mrb[14].mxu0 }
 0x42f   :  { %v5558_v25 = vpop.f32.mrb[15].mxu0  ;;  %v664_v42 = vsel %vm235_vm6, %v6644_v39, -inf  ;;  %v645_v48 = vadd.f32 %v637_v47, %v6620_v29 }
 0x430   :  { %665 = vmax.xlane.f32.xlu0 %v664_v42 }
 0x431   :  { %v667_v50 = vsel %vm235_vm6, %v645_v48, -inf }
 0x43b   :  { %791 = vrot.lane.b32.xlu1 %v6530_v55, %s6383_s20 }
 0x43f   :  { %839 = vrot.lane.b32.xlu1 %v6548_v58, %s6383_s20 }
 0x440   :  { %v648_v43 = vpop.xlane.xlu0 %647 }
 0x441   :  { %v670_v44 = vsub.f32 %v638_v36, %v648_v43 }
 0x443   :  { %v678_v46 = vmul.f32 1.442695, %v670_v44 }
 0x445   :  { %6118 = vpow2.f32 %v678_v46 }
 0x446   :  { %742 = vrot.lane.b32.xlu0 %v6528_v52, %s6383_s20 }
 0x44a   :  { %v651_v52 = vpop.xlane.xlu1 %650 }
 0x44b   :  { %v671_v58 = vsub.f32 %v6625_v45, %v651_v52 }
 0x44d   :  { %v680_v36 = vmul.f32 1.442695, %v671_v58 }
 0x44f   :  { %v6655_v49 = vpop.eup %6118  ;;  %6120 = vpow2.f32 %v680_v36 }
 0x450   :  { %v694_v55 = vsel %vm235_vm6, %v6655_v49, 0.0 }
 0x459   :  { %v6663_v51 = vpop.eup %6120 }
 0x45a   :  { %v697_v53 = vsel %vm235_vm6, %v6663_v51, 0.0 }
 0x463   :  { %668 = vmax.xlane.f32.xlu1 %v667_v50 }
 0x465   :  { %695 = vadd.xlane.f32.xlu0 %v694_v55 }
 0x474   :  { %887 = vrot.lane.b32.xlu1 %v6550_v60, %s6383_s20 }
 0x498   :  { %698 = vadd.xlane.f32.xlu1 %v697_v53 }
 0x4a9   :  { %983 = vrot.lane.b32.xlu1 %v6563_v6, %s6383_s20 }
 0x4ad   :  { %v654_v54 = vpop.xlane.xlu0 %653 }
 0x4ae   :  { %v672_v56 = vsub.f32 %v640_v57, %v654_v54 }
 0x4b0   :  { %v682_v59 = vmul.f32 1.442695, %v672_v56 }
 0x4b1   :  { %v657_v61 = vpop.xlane.xlu0 %656 }
 0x4b2   :  { %6122 = vpow2.f32 %v682_v59  ;;  %v673_v60 = vsub.f32 %v6632_v2, %v657_v61 }
 0x4b4   :  { %v684_v3 = vmul.f32 1.442695, %v673_v60 }
 0x4b5   :  { %v660_v45 = vpop.xlane.xlu0 %659 }
 0x4b6   :  { %6124 = vpow2.f32 %v684_v3  ;;  %v674_v21 = vsub.f32 %v6637_v15, %v660_v45 }
 0x4b7   :  { %v663_v62 = vpop.xlane.xlu1 %662 }
 0x4b8   :  { %v675_v4 = vsub.f32 %v643_v22, %v663_v62  ;;  %v686_v22 = vmul.f32 1.442695, %v674_v21 }
 0x4ba   :  { %v688_v57 = vmul.f32 1.442695, %v675_v4 }
 0x4bb   :  { %v792_v7 = vpop.permute.xlu1 %791 }
 0x4bc   :  { %v6670_v9 = vpop.eup %6122  ;;  %v797_v10 = vsel %vm747_vm8, %v792_v7, 0  ;;  %6126 = vpow2.f32 %v688_v57 }
 0x4bd   :  { %5566 = vmatpush3.bf16.msra.mxu0 %v797_v10  ;;  %v666_v11 = vpop.xlane.xlu0 %665  ;;  %v700_v6 = vsel %vm235_vm6, %v6670_v9, 0.0  ;;  %6128 = vpow2.f32 %v686_v22 }
 0x4be   :  { %701 = vadd.xlane.f32.xlu0 %v700_v6  ;;  %5577 = vmatprep.subr.bf16.mxu0 %v6386_v17  ;;  %v676_v23 = vsub.f32 %v6644_v39, %v666_v11 }
 0x4bf   :  { %v840_v26 = vpop.permute.xlu1 %839 }
 0x4c0   :  { %v6678_v13 = vpop.eup %6124  ;;  %v690_v24 = vmul.f32 1.442695, %v676_v23  ;;  %v845_v46 = vsel %vm747_vm8, %v840_v26, 0 }
 0x4c1   :  { %v743_v2 = vpop.permute.xlu0 %742  ;;  %v703_v14 = vsel %vm235_vm6, %v6678_v13, 0.0 }
 0x4c2   :  { %v749_v12 = vsel %vm747_vm8, %v743_v2, 0  ;;  %6130 = vpow2.f32 %v690_v24 }
 0x4c3   :  { %5560 = vmatpush3.bf16.msra.mxu1 %v749_v12 }
 0x4c4   :  { %5571 = vmatprep.subr.bf16.mxu1 %v6386_v17 }
 0x4c6   :  { %v6682_v19 = vpop.eup %6126 }
 0x4c7   :  { %v709_v20 = vsel %vm235_vm6, %v6682_v19, 0.0  ;;  %v6690_v30 = vpop.eup %6128 }
 0x4c8   :  { %v706_v35 = vsel %vm235_vm6, %v6690_v30, 0.0 }
 0x4cc   :  { %v6694_v41 = vpop.eup %6130 }
 0x4cd   :  { %704 = vadd.xlane.f32.xlu1 %v703_v14  ;;  %v712_v15 = vsel %vm235_vm6, %v6694_v41, 0.0 }
 0x4d1   :  { %710 = vadd.xlane.f32.xlu1 %v709_v20 }
 0x4d4   :  { %935 = vrot.lane.b32.xlu0 %v6556_v63, %s6383_s20 }
 0x4f0   :  { %v669_v31 = vpop.xlane.xlu1 %668 }
 0x4f1   :  { %v677_v33 = vsub.f32 %v645_v48, %v669_v31 }
 0x4f2   :  { %v696_v34 = vpop.xlane.xlu0 %695 }
 0x4f3   :  { %v692_v63 = vmul.f32 1.442695, %v677_v33  ;;  %6132 = vrcp.f32 %v696_v34  ;;  %707 = vadd.xlane.f32.xlu0 %v706_v35 }
 0x4f4   :  { %v888_v47 = vpop.permute.xlu1 %887 }
 0x4f5   :  { %6134 = vpow2.f32 %v692_v63  ;;  %v893_v52 = vsel %vm747_vm8, %v888_v47, 0 }
 0x4f7   :  { %713 = vadd.xlane.f32.xlu0 %v712_v15 }
 0x4fd   :  { %v6133_v39 = vpop.eup %6132 }
 0x4fe   :  { %v726_v25 = vmul.f32 %v6133_v39, %v6655_v49 }
 0x4ff   :  { %v6699_v42 = vpop.eup %6134 }
 0x500   :  { %v715_v43 = vsel %vm235_vm6, %v6699_v42, 0.0  ;;  %v734_v44 = vpack.c.bf16 %v726_v25, %v726_v25 }
 0x501   :  { %716 = vadd.xlane.f32.xlu1 %v715_v43 }
 0x502   :  { %5562 = vmatmul.mubr.msk.bf16.vlgmr.msra.gmra.mrb[20].mxu1 %vm235_vm6, %v734_v44 }
 0x503   :  { %5572 = vmatpush3.bf16.msra.mxu1 %v845_v46  ;;  %5573 = vmatprep.mubr.msk.bf16.mxu1 %vm6387_vm1, %v6386_v17 }
 0x504   :  { %5583 = vmatprep.subr.bf16.mxu1 %v6386_v17 }
 0x50d   :  { %1031 = vrot.lane.b32.xlu0 %v6561_v5, %s6383_s20 }
 0x511   :  { %1160 = vrot.lane.b32.xlu0 %v6492_v16, %s6393_s23 }
 0x512   :  { %1079 = vrot.lane.b32.xlu1 %v6570_v8, %s6383_s20 }
 0x525   :  { %v699_v48 = vpop.xlane.xlu1 %698 }
 0x526   :  { %6136 = vrcp.f32 %v699_v48 }
 0x529   :  { %v984_v58 = vpop.permute.xlu1 %983 }
 0x52a   :  { %v989_v3 = vsel %vm747_vm8, %v984_v58, 0 }
 0x530   :  { %v6137_v49 = vpop.eup %6136 }
 0x531   :  { %v727_v50 = vmul.f32 %v6137_v49, %v6663_v51 }
 0x533   :  { %v735_v55 = vpack.c.bf16 %v727_v50, %v727_v50 }
 0x535   :  { %5568 = vmatmul.mubr.msk.bf16.vlgmr.msra.gmra.mrb[16].mxu0 %vm235_vm6, %v735_v55 }
 0x536   :  { %5578 = vmatpush3.bf16.msra.mxu0 %v893_v52  ;;  %5579 = vmatprep.mubr.msk.bf16.mxu0 %vm6387_vm1, %v6386_v17 }
 0x537   :  { %5589 = vmatprep.subr.bf16.mxu0 %v6386_v17 }
 0x54b   :  { %v702_v5 = vpop.xlane.xlu0 %701 }
 0x54c   :  { %6138 = vrcp.f32 %v702_v5 }
 0x54f   :  { %v936_v53 = vpop.permute.xlu0 %935 }
 0x550   :  { %v941_v56 = vsel %vm747_vm8, %v936_v53, 0 }
 0x556   :  { %v6139_v8 = vpop.eup %6138 }
 0x557   :  { %v728_v36 = vmul.f32 %v6139_v8, %v6670_v9 }
 0x559   :  { %v736_v54 = vpack.c.bf16 %v728_v36, %v728_v36 }
 0x55a   :  { %v705_v51 = vpop.xlane.xlu1 %704 }
 0x55b   :  { %6140 = vrcp.f32 %v705_v51  ;;  %5574 = vmatmul.mubr.msk.bf16.vlgmr.msra.gmra.mrb[24].mxu1 %vm235_vm6, %v736_v54 }
 0x55c   :  { %5584 = vmatpush3.bf16.msra.mxu1 %v941_v56  ;;  %5585 = vmatprep.mubr.msk.bf16.mxu1 %vm6387_vm1, %v6386_v17 }
 0x55d   :  { %5595 = vmatprep.subr.bf16.mxu1 %v6386_v17 }
 0x55e   :  { %v711_v59 = vpop.xlane.xlu1 %710 }
 0x55f   :  { %6142 = vrcp.f32 %v711_v59 }
 0x565   :  { %v6141_v61 = vpop.eup %6140 }
 0x566   :  { %v729_v60 = vmul.f32 %v6141_v61, %v6678_v13 }
 0x568   :  { %v737_v62 = vpack.c.bf16 %v729_v60, %v729_v60 }
 0x569   :  { %v6143_v45 = vpop.eup %6142 }
 0x56a   :  { %5580 = vmatmul.mubr.msk.bf16.vlgmr.msra.gmra.mrb[20].mxu0 %vm235_vm6, %v737_v62  ;;  %v731_v4 = vmul.f32 %v6143_v45, %v6682_v19 }
 0x56b   :  { %5590 = vmatpush3.bf16.msra.mxu0 %v989_v3  ;;  %5591 = vmatprep.mubr.msk.bf16.mxu0 %vm6387_vm1, %v6386_v17 }
 0x56c   :  { %5601 = vmatprep.subr.bf16.mxu0 %v6386_v17  ;;  %v739_v7 = vpack.c.bf16 %v731_v4, %v731_v4 }
 0x572   :  { %5592 = vmatmul.mubr.msk.bf16.vlgmr.msra.gmra.mrb[24].mxu0 %vm235_vm6, %v739_v7 }
 0x573   :  { %5603 = vmatprep.mubr.msk.bf16.mxu0 %vm6387_vm1, %v6386_v17 }
 0x580   :  { %v708_v9 = vpop.xlane.xlu0 %707 }
 0x581   :  { %6144 = vrcp.f32 %v708_v9 }
 0x584   :  { %v714_v10 = vpop.xlane.xlu0 %713 }
 0x585   :  { %6146 = vrcp.f32 %v714_v10 }
 0x588   :  { %v1032_v57 = vpop.permute.xlu0 %1031 }
 0x589   :  { %v1037_v14 = vsel %vm747_vm8, %v1032_v57, 0 }
 0x58b   :  { %v6145_v11 = vpop.eup %6144 }
 0x58c   :  { %v730_v6 = vmul.f32 %v6145_v11, %v6690_v30  ;;  %v6750_v30 = vld [vmem:[%s7743_s3 + $0x4] ss:$12 sps:$4 sm:$0xff]   ;;  %v1161_v46 = vpop.permute.xlu0 %1160 }
 0x58e   :  { %v717_v2 = vpop.xlane.xlu1 %716  ;;  %v738_v12 = vpack.c.bf16 %v730_v6, %v730_v6 }
 0x58f   :  { %v6147_v13 = vpop.eup %6146  ;;  %6148 = vrcp.f32 %v717_v2 }
 0x590   :  { %5586 = vmatmul.mubr.msk.bf16.vlgmr.msra.gmra.mrb[28].mxu1 %vm235_vm6, %v738_v12  ;;  %v732_v20 = vmul.f32 %v6147_v13, %v6694_v41 }
 0x591   :  { %5596 = vmatpush3.bf16.msra.mxu1 %v1037_v14  ;;  %5597 = vmatprep.mubr.msk.bf16.mxu1 %vm6387_vm1, %v6386_v17 }
 0x592   :  { %v1080_v19 = vpop.permute.xlu1 %1079  ;;  %5607 = vmatprep.subr.bf16.mxu1 %v6386_v17  ;;  %v740_v22 = vpack.c.bf16 %v732_v20, %v732_v20 }
 0x593   :  { %v1085_v21 = vsel %vm747_vm8, %v1080_v19, 0 }
 0x594   :  { %5602 = vmatpush3.bf16.msra.mxu0 %v1085_v21 }
 0x595   :  { %5615 = vmatprep.subr.bf16.mxu0 %v6386_v17 }
 0x598   :  { %5598 = vmatmul.mubr.msk.bf16.vlgmr.msra.gmra.mrb[32].mxu1 %vm235_vm6, %v740_v22 }
 0x599   :  { %v6149_v23 = vpop.eup %6148  ;;  %5611 = vmatprep.mubr.msk.bf16.mxu1 %vm6387_vm1, %v6386_v17  ;;  %5608 = vmatpush3.bf16.msra.mxu1 %v1161_v46 }
 0x59a   :  { %v733_v24 = vmul.f32 %v6149_v23, %v6699_v42  ;;  %5609 = vmatprep.subr.bf16.mxu1 %v6386_v17 }
 0x59c   :  { %v741_v26 = vpack.c.bf16 %v733_v24, %v733_v24 }
 0x59e   :  { %5604 = vmatmul.mubr.msk.bf16.vlgmr.msra.gmra.mrb[28].mxu0 %vm235_vm6, %v741_v26 }
 0x59f   :  { %5616 = vmatpush3.bf16.msra.mxu0 %v6750_v30  ;;  %5619 = vmatprep.mubr.msk.bf16.mxu0 %vm6387_vm1, %v6386_v17 }
 0x5a0   :  { %5617 = vmatprep.subr.bf16.mxu0 %v6386_v17 }
 0x5d5   :  { %v785_v31 = vpop.f32.mrb[20].mxu1 }
 0x5d6   :  { %v5563_v33 = vpop.f32.mrb[21].mxu1 }
 0x5d7   :  { %v788_v34 = vpop.f32.mrb[22].mxu1 }
 0x5d8   :  { %v5564_v35 = vpop.f32.mrb[23].mxu1 }
 0x608   :  { %v833_v41 = vpop.f32.mrb[16].mxu0 }
 0x609   :  { %v5569_v63 = vpop.f32.mrb[17].mxu0 }
 0x60a   :  { %v836_v15 = vpop.f32.mrb[18].mxu0 }
 0x60b   :  { %v5570_v39 = vpop.f32.mrb[19].mxu0 }
 0x62e   :  { %v881_v25 = vpop.f32.mrb[24].mxu1 }
 0x62f   :  { %v5575_v42 = vpop.f32.mrb[25].mxu1 }
 0x630   :  { %v884_v43 = vpop.f32.mrb[26].mxu1 }
 0x631   :  { %v5576_v44 = vpop.f32.mrb[27].mxu1 }
 0x63d   :  { %v929_v47 = vpop.f32.mrb[20].mxu0 }
 0x63e   :  { %v6025_v48 = vpack.i.bf16 %v929_v47, %v881_v25  ;;  %v5581_v49 = vpop.f32.mrb[21].mxu0 }
 0x63f   :  { %v932_v16 = vpop.f32.mrb[22].mxu0 }
 0x640   :  { %v5582_v50 = vpop.f32.mrb[23].mxu0  ;;  %6026 = vrot.lane.b32.xlu1 %v6025_v48, %s6394_s24 }
 0x645   :  { %v1025_v55 = vpop.f32.mrb[24].mxu0 }
 0x646   :  { %v5593_v52 = vpop.f32.mrb[25].mxu0 }
 0x647   :  { %v1028_v5 = vpop.f32.mrb[26].mxu0 }
 0x648   :  { %v5594_v8 = vpop.f32.mrb[27].mxu0 }
 0x663   :  { %v977_v58 = vpop.f32.mrb[28].mxu1 }
 0x664   :  { %v6030_v36 = vpack.i.bf16 %v1025_v55, %v977_v58  ;;  %v5587_v53 = vpop.f32.mrb[29].mxu1 }
 0x665   :  { %v980_v54 = vpop.f32.mrb[30].mxu1 }
 0x666   :  { %6031 = vrot.lane.b32.xlu0 %v6030_v36, %s6395_s25  ;;  %v5588_v51 = vpop.f32.mrb[31].mxu1 }
 0x66a   :  { %1162 = vrot.lane.b32.xlu0 %v6501_v18, %s6393_s23 }
 0x66b   :  { %v1073_v56 = vpop.f32.mrb[32].mxu1 }
 0x66c   :  { %v5599_v59 = vpop.f32.mrb[33].mxu1 }
 0x66d   :  { %v1076_v61 = vpop.f32.mrb[34].mxu1 }
 0x66e   :  { %v5600_v60 = vpop.f32.mrb[35].mxu1 }
 0x671   :  { %v1121_v62 = vpop.f32.mrb[28].mxu0 }
 0x672   :  { %v6035_v45 = vpack.i.bf16 %v1121_v62, %v1073_v56  ;;  %v5605_v3 = vpop.f32.mrb[29].mxu0  ;;  %v6091_v56 = vld [vmem:[#allocation7] sm:$0xff]  }
 0x673   :  { %v1124_v4 = vpop.f32.mrb[30].mxu0 }
 0x674   :  { %v5606_v7 = vpop.f32.mrb[31].mxu0  ;;  %6036 = vrot.lane.b32.xlu1 %v6035_v45, %s6396_s26 }
 0x6b2   :  { %v6027_v11 = vpop.permute.xlu1 %6026 }
 0x6b3   :  { %v6029_v6 = vunpack.i.h.bf16 %v6027_v11  ;;  %v6028_v18 = vunpack.i.l.bf16 %v6027_v11 }
 0x6b5   :  { %v1152_v13 = vsel %vm235_vm6, %v833_v41, %v6029_v6  ;;  %v1151_v14 = vsel %vm235_vm6, %v785_v31, %v6028_v18  ;;  %v1252_v18 = vsub.s32 4, %v6510_v32 }
 0x6d8   :  { %v6032_v9 = vpop.permute.xlu0 %6031 }
 0x6d9   :  { %v6034_v57 = vunpack.i.h.bf16 %v6032_v9  ;;  %v6033_v2 = vunpack.i.l.bf16 %v6032_v9 }
 0x6db   :  { %v1155_v21 = vsel %vm1153_vm9, %v1152_v13, %v6034_v57  ;;  %v1154_v22 = vsel %vm1153_vm9, %v1151_v14, %v6033_v2  ;;  %v1253_v57 = vrot.slane %v6516_v38, %v1252_v18  ;;  %v1264_v2 = vsub.s32 5, %v6510_v32 }
 0x6dc   :  { %v1163_v10 = vpop.permute.xlu0 %1162 }
 0x6dd   :  { %5610 = vmatpush3.bf16.msra.mxu1 %v1163_v10 }
 0x6de   :  { %5623 = vmatprep.subr.bf16.mxu1 %v6386_v17 }
 0x6e6   :  { %v6037_v12 = vpop.permute.xlu1 %6036 }
 0x6e7   :  { %v6039_v19 = vunpack.i.h.bf16 %v6037_v12  ;;  %v6038_v20 = vunpack.i.l.bf16 %v6037_v12 }
 0x6e9   :  { %v1158_v23 = vsel %vm1156_vm10, %v1155_v21, %v6039_v19  ;;  %v1157_v24 = vsel %vm1156_vm10, %v1154_v22, %v6038_v20  ;;  %v1265_v20 = vrot.slane %v6516_v38, %v1264_v2 }
 0x6ea   :  { %v1159_v26 = vpack.c.bf16 %v1158_v23, %v1157_v24 }
 0x6ec   :  { %5612 = vmatmul.mubr.msk.bf16.vlgmr.msra.gmra.mrb[36].mxu1 %vm97_vm0, %v1159_v26 }
 0x6ed   :  { %5627 = vmatprep.mubr.msk.bf16.mxu1 %vm6387_vm1, %v6386_v17 }
 0x7bf   :  { %v1203_v33 = vpop.f32.mrb[36].mxu1 }
 0x7c0   :  { %v1210_v34 = vpack.c.bf16 %v1203_v33, %v1203_v33  ;;  %v5613_v35 = vpop.f32.mrb[37].mxu1 }
 0x7c1   :  { %v1206_v31 = vpop.f32.mrb[38].mxu1 }
 0x7c2   :  { %v6776_v41 = vadd.bf16 %v1210_v34, %v6479_v0  ;;  %v1211_v63 = vpack.c.bf16 %v1206_v31, %v1206_v31  ;;  %v5614_v15 = vpop.f32.mrb[39].mxu1  ;;  %v6790_v0 = vld [vmem:[%s7743_s3 + $0x1c] ss:$12 sps:$4 sm:$0xff]  }
 0x7c3   :  { %5618 = vmatpush3.bf16.msra.mxu0 %v6790_v0 }
 0x7c4   :  { %v6779_v39 = vadd.bf16 %v1211_v63, %v6481_v1  ;;  %v1214_v25 = vunpack.c.l.bf16 %v6776_v41  ;;  %5631 = vmatprep.subr.bf16.mxu0 %v6386_v17 }
 0x7c6   :  { %v1216_v42 = vsel %vm97_vm0, %v1214_v25, 0.0  ;;  %v1215_v43 = vunpack.c.l.bf16 %v6779_v39 }
 0x7c7   :  { %1217 = vadd.xlane.f32.xlu1 %v1216_v42 }
 0x7c8   :  { %v1219_v44 = vsel %vm97_vm0, %v1215_v43, 0.0 }
 0x7c9   :  { %1220 = vadd.xlane.f32.xlu0 %v1219_v44 }
 0x7d8   :  { %1338 = vrot.lane.b32.xlu1 %v6750_v30, %s6391_s0 }
 0x854   :  { %v1218_v1 = vpop.xlane.xlu1 %1217 }
 0x855   :  { %v1222_v46 = vmul.f32 0.03125, %v1218_v1 }
 0x856   :  { %v1221_v47 = vpop.xlane.xlu0 %1220 }
 0x857   :  { %v1224_v48 = vsub.f32 %v1214_v25, %v1222_v46  ;;  %v1223_v49 = vmul.f32 0.03125, %v1221_v47 }
 0x858   :  { %v1339_v8 = vpop.permute.xlu1 %1338 }
 0x859   :  { %v1225_v16 = vsub.f32 %v1215_v43, %v1223_v49  ;;  %v1226_v50 = vmul.f32 %v1224_v48, %v1224_v48  ;;  %5624 = vmatpush3.bf16.msra.mxu1 %v1339_v8  ;;  %v1254_v13 = vmul.f32 %v1253_v57, %v1224_v48 }
 0x85a   :  { %5625 = vmatprep.subr.bf16.mxu1 %v6386_v17 }
 0x85b   :  { %v1228_v55 = vsel %vm97_vm0, %v1226_v50, 0.0  ;;  %v1227_v52 = vmul.f32 %v1225_v16, %v1225_v16  ;;  %v1255_v14 = vmul.f32 %v1253_v57, %v1225_v16 }
 0x85c   :  { %1229 = vadd.xlane.f32.xlu0 %v1228_v55 }
 0x85d   :  { %v1231_v5 = vsel %vm97_vm0, %v1227_v52, 0.0 }
 0x860   :  { %1232 = vadd.xlane.f32.xlu0 %v1231_v5 }
 0x876   :  { %1340 = vrot.lane.b32.xlu0 %v6790_v0, %s6391_s0 }
 0x8e9   :  { %v1230_v58 = vpop.xlane.xlu0 %1229 }
 0x8ea   :  { %v1234_v36 = vmul.f32 0.032258064, %v1230_v58 }
 0x8ec   :  { %6150 = vrsqrt.f32 %v1234_v36  ;;  %vm1238_vm11 = vcmp.eq.f32.partialorder %v1234_v36, inf  ;;  %v1241_v60 = vand.u32 2147483648, %v1234_v36  ;;  %vm1240_vm12 = vcmp.eq.f32.partialorder %v1234_v36, 0.0 }
 0x8ed   :  { %v1233_v53 = vpop.xlane.xlu0 %1232 }
 0x8ee   :  { %v1235_v54 = vmul.f32 0.032258064, %v1233_v53 }
 0x8f0   :  { %6152 = vrsqrt.f32 %v1235_v54  ;;  %vm1245_vm13 = vcmp.eq.f32.partialorder %v1235_v54, inf  ;;  %v1248_v9 = vand.u32 2147483648, %v1235_v54  ;;  %vm1247_vm14 = vcmp.eq.f32.partialorder %v1235_v54, 0.0 }
 0x8f1   :  { %v1341_v51 = vpop.permute.xlu0 %1340 }
 0x8f2   :  { %5626 = vmatpush3.bf16.msra.mxu1 %v1341_v51 }
 0x8f3   :  { %5637 = vmatprep.subr.bf16.mxu1 %v6386_v17 }
 0x8f5   :  { %5628 = vmatmul.mubr.msk.bf16.vlgmr.msra.gmra.mrb[40].mxu1 %vm97_vm0, %v6091_v56 }
 0x8f6   :  { %v6151_v59 = vpop.eup %6150  ;;  %5639 = vmatprep.mubr.msk.bf16.mxu1 %vm6387_vm1, %v6386_v17 }
 0x8f7   :  { %v1237_v61 = vmul.f32 %v6151_v59, %v1234_v36 }
 0x8f9   :  { %v1239_v62 = vsel %vm1238_vm11, %v1234_v36, %v1237_v61  ;;  %vm2539_vm11 = vcmask 523264  }
 0x8fa   :  { %v6153_v45 = vpop.eup %6152  ;;  %v1242_v3 = vsel %vm1240_vm12, %v1241_v60, %v1239_v62 }
 0x8fb   :  { %v1256_v4 = vadd.f32 1e-06, %v1242_v3  ;;  %v1244_v7 = vmul.f32 %v6153_v45, %v1235_v54 }
 0x8fd   :  { %6154 = vrcp.f32 %v1256_v4  ;;  %v1246_v10 = vsel %vm1245_vm13, %v1235_v54, %v1244_v7  ;;  %v70_v4 = vstv %s69_s29  ;;  %v75_v7 = vstv %s5152_s30 }
 0x8fe   :  { %v1249_v11 = vsel %vm1247_vm14, %v1248_v9, %v1246_v10  ;;  %vm71_vm15 = vcmp.lt.s32.totalorder %v6615_v27, %v70_v4  ;;  %v6895_v9 = vsub.s32 0, %v6510_v32  ;;  %vm76_vm2 = vcmp.lt.s32.totalorder %v6615_v27, %v75_v7 }
 0x8ff   :  { %v1257_v6 = vadd.f32 1e-06, %v1249_v11  ;;  %v72_v10 = vsel %vm71_vm15, 0.0, %v6392_v28  ;;  %v77_v11 = vsel %vm76_vm2, 0.0, %v6392_v28 }
 0x901   :  { %6156 = vrcp.f32 %v1257_v6  ;;  %v6901_v6 = vrot.slane %v72_v10, %v6895_v9 }
 0x907   :  { %v6155_v12 = vpop.eup %6154 }
 0x908   :  { %v1260_v19 = vmul.f32 %v6155_v12, %v1254_v13 }
 0x90a   :  { %v1266_v23 = vadd.f32 %v1265_v20, %v1260_v19 }
 0x90b   :  { %v6157_v21 = vpop.eup %6156 }
 0x90c   :  { %v1261_v22 = vmul.f32 %v6157_v21, %v1255_v14  ;;  %v6904_v14 = vrot.slane %v77_v11, %v6895_v9 }
 0x90e   :  { %v1267_v24 = vadd.f32 %v1265_v20, %v1261_v22 }
 0x910   :  { %v5314_v26 = vpack.c.bf16 %v1267_v24, %v1266_v23 }
 0x912   :  { %5620 = vmatmul.mubr.msk.bf16.vlgmr.msra.gmra.mrb[32].mxu0 %vm97_vm0, %v5314_v26 }
 0x913   :  { %5633 = vmatprep.mubr.msk.bf16.mxu0 %vm6387_vm1, %v6386_v17 }
 0x9c8   :  { %v1381_v33 = vpop.f32.mrb[40].mxu1 }
 0x9c9   :  { %v5317_v34 = vpack.c.bf16 %v1381_v33, %v1381_v33  ;;  %v5629_v35 = vpop.f32.mrb[41].mxu1 }
 0x9ca   :  { %v1384_v31 = vpop.f32.mrb[42].mxu1 }
 0x9cb   :  { %1406 = vrot.lane.b32.xlu1 %v5317_v34, %s6388_s17  ;;  %v6815_v63 = vpack.c.bf16 %v1384_v31, %v1384_v31  ;;  %v5630_v15 = vpop.f32.mrb[43].mxu1  ;;  %v1422_v38 = vsel %vm235_vm6, %v5317_v34, 0 }
 0x9cc   :  { %5632 = vmatpush3.bf16.xpose.msra.mxu0 %v1422_v38 }
 0x9cd   :  { %1412 = vrot.lane.b32.xlu0 %v6815_v63, %s6390_s19  ;;  %v1468_v25 = vsel %vm235_vm6, %v6815_v63, 0  ;;  %5643 = vmatprep.subr.bf16.mxu0 %v6386_v17 }
 0x9ce   :  { %5638 = vmatpush3.bf16.xpose.msra.mxu1 %v1468_v25 }
 0x9cf   :  { %1408 = vrot.lane.b32.xlu1 %v6815_v63, %s6388_s17  ;;  %5649 = vmatprep.subr.bf16.mxu1 %v6386_v17 }
 0x9d3   :  { %1410 = vrot.lane.b32.xlu1 %v5317_v34, %s6390_s19 }
 0x9e5   :  { %v1320_v42 = vpop.f32.mrb[32].mxu0 }
 0x9e6   :  { %v5315_v43 = vpack.c.bf16 %v1320_v42, %v1320_v42  ;;  %v5621_v44 = vpop.f32.mrb[33].mxu0 }
 0x9e7   :  { %v1323_v1 = vpop.f32.mrb[34].mxu0 }
 0x9e8   :  { %v5316_v46 = vpack.c.bf16 %v1323_v1, %v1323_v1  ;;  %v5622_v47 = vpop.f32.mrb[35].mxu0  ;;  %5634 = vmatmul.mubr.msk.bf16.vlgmr.msra.gmra.mrb[36].mxu0 %vm235_vm6, %v5315_v43  ;;  %1394 = vrot.lane.b32.xlu1 %v5315_v43, %s6388_s17 }
 0x9e9   :  { %5645 = vmatprep.mubr.msk.bf16.mxu0 %vm6387_vm1, %v6386_v17 }
 0x9ea   :  { %1396 = vrot.lane.b32.xlu0 %v5316_v46, %s6388_s17  ;;  %5640 = vmatmul.mubr.msk.bf16.vlgmr.msra.gmra.mrb[44].mxu1 %vm235_vm6, %v5316_v46 }
 0x9eb   :  { %5651 = vmatprep.mubr.msk.bf16.mxu1 %vm6387_vm1, %v6386_v17 }
 0x9ec   :  { %1398 = vrot.lane.b32.xlu1 %v5315_v43, %s6390_s19 }
 0x9ee   :  { %1400 = vrot.lane.b32.xlu0 %v5316_v46, %s6390_s19 }
 0x9f0   :  { %1414 = vrot.lane.b32.xlu1 %v5317_v34, %s6389_s18 }
 0x9f2   :  { %1416 = vrot.lane.b32.xlu0 %v6815_v63, %s6389_s18 }
 0x9f4   :  { %1402 = vrot.lane.b32.xlu1 %v5315_v43, %s6389_s18 }
 0x9f6   :  { %1404 = vrot.lane.b32.xlu0 %v5316_v46, %s6389_s18 }
 0x9f8   :  { %1906 = vrot.lane.b32.xlu1 %v5317_v34, %s6391_s0 }
 0xa3d   :  { %v6843_v48 = vpop.permute.xlu1 %1406 }
 0xa3e   :  { %v1514_v49 = vsel %vm235_vm6, %v6843_v48, 0 }
 0xa3f   :  { %5644 = vmatpush3.bf16.xpose.msra.mxu0 %v1514_v49  ;;  %v6855_v52 = vpop.permute.xlu0 %1412 }
 0xa40   :  { %5655 = vmatprep.subr.bf16.mxu0 %v6386_v17  ;;  %v1652_v36 = vsel %vm235_vm6, %v6855_v52, 0 }
 0xa41   :  { %v6848_v16 = vpop.permute.xlu1 %1408 }
 0xa42   :  { %v1560_v50 = vsel %vm235_vm6, %v6848_v16, 0 }
 0xa43   :  { %5650 = vmatpush3.bf16.xpose.msra.mxu1 %v1560_v50 }
 0xa44   :  { %5661 = vmatprep.subr.bf16.mxu1 %v6386_v17 }
 0xa45   :  { %v6853_v55 = vpop.permute.xlu1 %1410 }
 0xa46   :  { %v1606_v8 = vsel %vm235_vm6, %v6853_v55, 0 }
 0xa5a   :  { %v1395_v5 = vpop.permute.xlu1 %1394 }
 0xa5b   :  { %5646 = vmatmul.mubr.msk.bf16.vlgmr.msra.gmra.mrb[40].mxu0 %vm235_vm6, %v1395_v5 }
 0xa5c   :  { %5656 = vmatpush3.bf16.xpose.msra.mxu0 %v1606_v8  ;;  %v1397_v58 = vpop.permute.xlu0 %1396  ;;  %5657 = vmatprep.mubr.msk.bf16.mxu0 %vm6387_vm1, %v6386_v17 }
 0xa5d   :  { %5652 = vmatmul.mubr.msk.bf16.vlgmr.msra.gmra.mrb[48].mxu1 %vm235_vm6, %v1397_v58  ;;  %5667 = vmatprep.subr.bf16.mxu0 %v6386_v17 }
 0xa5e   :  { %5662 = vmatpush3.bf16.xpose.msra.mxu1 %v1652_v36  ;;  %v1399_v53 = vpop.permute.xlu1 %1398  ;;  %5663 = vmatprep.mubr.msk.bf16.mxu1 %vm6387_vm1, %v6386_v17 }
 0xa5f   :  { %5673 = vmatprep.subr.bf16.mxu1 %v6386_v17 }
 0xa60   :  { %v1401_v54 = vpop.permute.xlu0 %1400 }
 0xa62   :  { %v6869_v51 = vpop.permute.xlu1 %1414 }
 0xa63   :  { %5658 = vmatmul.mubr.msk.bf16.vlgmr.msra.gmra.mrb[44].mxu0 %vm235_vm6, %v1399_v53  ;;  %v1698_v56 = vsel %vm235_vm6, %v6869_v51, 0 }
 0xa64   :  { %v6874_v59 = vpop.permute.xlu0 %1416  ;;  %5668 = vmatpush3.bf16.xpose.msra.mxu0 %v1698_v56  ;;  %5669 = vmatprep.mubr.msk.bf16.mxu0 %vm6387_vm1, %v6386_v17 }
 0xa65   :  { %5664 = vmatmul.mubr.msk.bf16.vlgmr.msra.gmra.mrb[52].mxu1 %vm235_vm6, %v1401_v54  ;;  %v1744_v61 = vsel %vm235_vm6, %v6874_v59, 0  ;;  %5679 = vmatprep.subr.bf16.mxu0 %v6386_v17 }
 0xa66   :  { %v1403_v60 = vpop.permute.xlu1 %1402  ;;  %5674 = vmatpush3.bf16.xpose.msra.mxu1 %v1744_v61  ;;  %5675 = vmatprep.mubr.msk.bf16.mxu1 %vm6387_vm1, %v6386_v17 }
 0xa67   :  { %5685 = vmatprep.subr.bf16.mxu1 %v6386_v17 }
 0xa68   :  { %v1405_v3 = vpop.permute.xlu0 %1404 }
 0xa6a   :  { %v1907_v62 = vpop.permute.xlu1 %1906 }
 0xa6b   :  { %v1912_v45 = vsel %vm747_vm8, %v1907_v62, 0  ;;  %5670 = vmatmul.mubr.msk.bf16.vlgmr.msra.gmra.mrb[48].mxu0 %vm235_vm6, %v1403_v60 }
 0xa6c   :  { %5680 = vmatpush3.bf16.msra.mxu0 %v1912_v45  ;;  %5681 = vmatprep.mubr.msk.bf16.mxu0 %vm6387_vm1, %v6386_v17 }
 0xa6d   :  { %5676 = vmatmul.mubr.msk.bf16.vlgmr.msra.gmra.mrb[56].mxu1 %vm235_vm6, %v1405_v3  ;;  %5691 = vmatprep.subr.bf16.mxu0 %v6386_v17 }
 0xa6e   :  { %5687 = vmatprep.mubr.msk.bf16.mxu1 %vm6387_vm1, %v6386_v17 }
 0xabb   :  { %v1458_v57 = vpop.f32.mrb[36].mxu0 }
 0xabc   :  { %v1786_v12 = vmul.f32 0.35355338, %v1458_v57  ;;  %v5635_v13 = vpop.f32.mrb[37].mxu0 }
 0xabd   :  { %v1461_v19 = vpop.f32.mrb[38].mxu0  ;;  %v1504_v20 = vpop.f32.mrb[44].mxu1 }
 0xabe   :  { %v1787_v21 = vmul.f32 0.35355338, %v1504_v20  ;;  %v5636_v22 = vpop.f32.mrb[39].mxu0  ;;  %v5641_v23 = vpop.f32.mrb[45].mxu1  ;;  %v6907_v27 = vadd.f32 %v6901_v6, %v1786_v12 }
 0xabf   :  { %v1507_v24 = vpop.f32.mrb[46].mxu1 }
 0xac0   :  { %v5642_v26 = vpop.f32.mrb[47].mxu1  ;;  %v1810_v28 = vsel %vm235_vm6, %v6907_v27, -inf  ;;  %v1803_v33 = vadd.f32 %v6904_v14, %v1787_v21 }
 0xac1   :  { %1811 = vmax.xlane.f32.xlu1 %v1810_v28 }
 0xac2   :  { %v1813_v34 = vsel %vm235_vm6, %v1803_v33, -inf }
 0xac3   :  { %1814 = vmax.xlane.f32.xlu0 %v1813_v34 }
 0xb2e   :  { %v1550_v35 = vpop.f32.mrb[40].mxu0 }
 0xb2f   :  { %v1788_v31 = vmul.f32 0.35355338, %v1550_v35  ;;  %v5647_v15 = vpop.f32.mrb[41].mxu0 }
 0xb30   :  { %v1553_v38 = vpop.f32.mrb[42].mxu0  ;;  %v1596_v25 = vpop.f32.mrb[48].mxu1  ;;  %v5204_v15 = vcombine.low %v6848_v16, %v6848_v16 }
 0xb31   :  { %v1789_v42 = vmul.f32 0.35355338, %v1596_v25  ;;  %v5648_v43 = vpop.f32.mrb[43].mxu0  ;;  %v5653_v44 = vpop.f32.mrb[49].mxu1  ;;  %v6914_v1 = vadd.f32 %v6901_v6, %v1788_v31  ;;  %v5202_v31 = vcombine.low %v6843_v48, %v6843_v48 }
 0xb32   :  { %v1599_v46 = vpop.f32.mrb[50].mxu1 }
 0xb33   :  { %v5654_v47 = vpop.f32.mrb[51].mxu1  ;;  %v1816_v49 = vsel %vm235_vm6, %v6914_v1, -inf  ;;  %v6919_v50 = vadd.f32 %v6904_v14, %v1789_v42 }
 0xb34   :  { %1817 = vmax.xlane.f32.xlu0 %v1816_v49 }
 0xb35   :  { %v1819_v36 = vsel %vm235_vm6, %v6919_v50, -inf }
 0xb36   :  { %v1642_v5 = vpop.f32.mrb[44].mxu0 }
 0xb37   :  { %v1790_v8 = vmul.f32 0.35355338, %v1642_v5  ;;  %v5659_v58 = vpop.f32.mrb[45].mxu0 }
 0xb38   :  { %v1645_v53 = vpop.f32.mrb[46].mxu0  ;;  %1820 = vmax.xlane.f32.xlu0 %v1819_v36  ;;  %v1688_v54 = vpop.f32.mrb[52].mxu1 }
 0xb39   :  { %v1791_v56 = vmul.f32 0.35355338, %v1688_v54  ;;  %v5660_v61 = vpop.f32.mrb[47].mxu0  ;;  %v5665_v60 = vpop.f32.mrb[53].mxu1  ;;  %v1806_v62 = vadd.f32 %v6901_v6, %v1790_v8 }
 0xb3a   :  { %v1691_v45 = vpop.f32.mrb[54].mxu1 }
 0xb3b   :  { %v5666_v3 = vpop.f32.mrb[55].mxu1  ;;  %v1822_v4 = vsel %vm235_vm6, %v1806_v62, -inf  ;;  %v6926_v7 = vadd.f32 %v6904_v14, %v1791_v56 }
 0xb3c   :  { %1823 = vmax.xlane.f32.xlu1 %v1822_v4 }
 0xb3d   :  { %v1825_v10 = vsel %vm235_vm6, %v6926_v7, -inf }
 0xb3e   :  { %v1734_v11 = vpop.f32.mrb[48].mxu0  ;;  %1826 = vmax.xlane.f32.xlu0 %v1825_v10 }
 0xb3f   :  { %v1792_v57 = vmul.f32 0.35355338, %v1734_v11  ;;  %v5671_v12 = vpop.f32.mrb[49].mxu0 }
 0xb40   :  { %v1737_v13 = vpop.f32.mrb[50].mxu0  ;;  %v1780_v19 = vpop.f32.mrb[56].mxu1 }
 0xb41   :  { %v1793_v20 = vmul.f32 0.35355338, %v1780_v19  ;;  %v5672_v21 = vpop.f32.mrb[51].mxu0  ;;  %v5677_v22 = vpop.f32.mrb[57].mxu1  ;;  %v1808_v23 = vadd.f32 %v6901_v6, %v1792_v57 }
 0xb42   :  { %v1783_v24 = vpop.f32.mrb[58].mxu1  ;;  %v5210_v21 = vcombine.low %v6869_v51, %v6869_v51 }
 0xb43   :  { %v5678_v26 = vpop.f32.mrb[59].mxu1  ;;  %v1828_v28 = vsel %vm235_vm6, %v1808_v23, -inf  ;;  %v6933_v34 = vadd.f32 %v6904_v14, %v1793_v20  ;;  %v5208_v20 = vcombine.low %v6855_v52, %v6855_v52 }
 0xb44   :  { %1829 = vmax.xlane.f32.xlu1 %v1828_v28 }
 0xb45   :  { %v1831_v35 = vsel %vm235_vm6, %v6933_v34, -inf }
 0xb46   :  { %1832 = vmax.xlane.f32.xlu0 %v1831_v35 }
 0xb4e   :  { %v1812_v25 = vpop.xlane.xlu1 %1811 }
 0xb4f   :  { %v1834_v43 = vsub.f32 %v6907_v27, %v1812_v25 }
 0xb50   :  { %v1815_v38 = vpop.xlane.xlu0 %1814 }
 0xb51   :  { %v1835_v42 = vsub.f32 %v1803_v33, %v1815_v38  ;;  %v1842_v46 = vmul.f32 1.442695, %v1834_v43  ;;  %v5206_v33 = vcombine.low %v6853_v55, %v6853_v55 }
 0xb53   :  { %v1844_v44 = vmul.f32 1.442695, %v1835_v42 }
 0xb55   :  { %2004 = vrot.lane.b32.xlu1 %v5202_v31, %s6391_s0  ;;  %6158 = vpow2.f32 %v1844_v44 }
 0xb56   :  { %6160 = vpow2.f32 %v1842_v46 }
 0xb59   :  { %2054 = vrot.lane.b32.xlu1 %v5204_v15, %s6391_s0 }
 0xb5c   :  { %1954 = vrot.lane.b32.xlu0 %v6815_v63, %s6391_s0 }
 0xb5f   :  { %v6946_v48 = vpop.eup %6158 }
 0xb60   :  { %v6948_v47 = vpop.eup %6160  ;;  %v1861_v16 = vsel %vm235_vm6, %v6946_v48, 0.0 }
 0xb61   :  { %v1858_v63 = vsel %vm235_vm6, %v6948_v47, 0.0 }
 0xb7b   :  { %1862 = vadd.xlane.f32.xlu0 %v1861_v16 }
 0xb7d   :  { %1859 = vadd.xlane.f32.xlu1 %v1858_v63 }
 0xb8e   :  { %2104 = vrot.lane.b32.xlu1 %v5206_v33, %s6391_s0 }
 0xbc1   :  { %v1818_v27 = vpop.xlane.xlu0 %1817 }
 0xbc2   :  { %v1836_v49 = vsub.f32 %v6914_v1, %v1818_v27 }
 0xbc4   :  { %v1846_v5 = vmul.f32 1.442695, %v1836_v49 }
 0xbc5   :  { %v1821_v8 = vpop.xlane.xlu0 %1820 }
 0xbc6   :  { %6162 = vpow2.f32 %v1846_v5  ;;  %v1837_v58 = vsub.f32 %v6919_v50, %v1821_v8 }
 0xbc8   :  { %v1848_v36 = vmul.f32 1.442695, %v1837_v58 }
 0xbc9   :  { %v1824_v53 = vpop.xlane.xlu1 %1823 }
 0xbca   :  { %6164 = vpow2.f32 %v1848_v36  ;;  %v1838_v54 = vsub.f32 %v1806_v62, %v1824_v53 }
 0xbcb   :  { %v1827_v61 = vpop.xlane.xlu0 %1826 }
 0xbcc   :  { %v1850_v56 = vmul.f32 1.442695, %v1838_v54  ;;  %v1839_v22 = vsub.f32 %v6926_v7, %v1827_v61 }
 0xbce   :  { %6166 = vpow2.f32 %v1850_v56 }
 0xbd0   :  { %v6959_v60 = vpop.eup %6162 }
 0xbd1   :  { %v1830_v55 = vpop.xlane.xlu1 %1829  ;;  %v1864_v45 = vsel %vm235_vm6, %v6959_v60, 0.0 }
 0xbd2   :  { %v1840_v3 = vsub.f32 %v1808_v23, %v1830_v55  ;;  %1865 = vadd.xlane.f32.xlu1 %v1864_v45  ;;  %v1852_v23 = vmul.f32 1.442695, %v1839_v22 }
 0xbd3   :  { %v1833_v1 = vpop.xlane.xlu0 %1832 }
 0xbd4   :  { %v6963_v4 = vpop.eup %6164  ;;  %v1854_v10 = vmul.f32 1.442695, %v1840_v3  ;;  %v1841_v24 = vsub.f32 %v6933_v34, %v1833_v1 }
 0xbd5   :  { %v1867_v50 = vsel %vm235_vm6, %v6963_v4, 0.0  ;;  %v2005_v28 = vpop.permute.xlu1 %2004 }
 0xbd6   :  { %6168 = vpow2.f32 %v1854_v10  ;;  %1868 = vadd.xlane.f32.xlu0 %v1867_v50  ;;  %v1856_v26 = vmul.f32 1.442695, %v1841_v24  ;;  %v2010_v16 = vsel %vm747_vm8, %v2005_v28, 0 }
 0xbd7   :  { %v1955_v62 = vpop.permute.xlu0 %1954  ;;  %6170 = vpow2.f32 %v1852_v23 }
 0xbd8   :  { %v6967_v11 = vpop.eup %6166  ;;  %v1960_v57 = vsel %vm747_vm8, %v1955_v62, 0  ;;  %6172 = vpow2.f32 %v1856_v26 }
 0xbd9   :  { %5686 = vmatpush3.bf16.msra.mxu1 %v1960_v57  ;;  %v1870_v12 = vsel %vm235_vm6, %v6967_v11, 0.0  ;;  %v2055_v52 = vpop.permute.xlu1 %2054 }
 0xbda   :  { %1871 = vadd.xlane.f32.xlu1 %v1870_v12  ;;  %5697 = vmatprep.subr.bf16.mxu1 %v6386_v17  ;;  %v2060_v44 = vsel %vm747_vm8, %v2055_v52, 0 }
 0xbe0   :  { %v6973_v13 = vpop.eup %6168 }
 0xbe1   :  { %v1876_v19 = vsel %vm235_vm6, %v6973_v13, 0.0  ;;  %v6987_v35 = vpop.eup %6170 }
 0xbe2   :  { %1877 = vadd.xlane.f32.xlu1 %v1876_v19  ;;  %v1873_v15 = vsel %vm235_vm6, %v6987_v35, 0.0  ;;  %v6991_v7 = vpop.eup %6172 }
 0xbec   :  { %2154 = vrot.lane.b32.xlu0 %v5208_v20, %s6391_s0 }
 0xbf3   :  { %2204 = vrot.lane.b32.xlu1 %v5210_v21, %s6391_s0 }
 0xbf7   :  { %2333 = vrot.lane.b32.xlu1 %v6750_v30, %s6393_s23  ;;  %v1879_v30 = vsel %vm235_vm6, %v6991_v7, 0.0 }
 0xc08   :  { %v1863_v31 = vpop.xlane.xlu0 %1862 }
 0xc09   :  { %6174 = vrcp.f32 %v1863_v31 }
 0xc0a   :  { %v1860_v51 = vpop.xlane.xlu1 %1859 }
 0xc0b   :  { %6176 = vrcp.f32 %v1860_v51  ;;  %1874 = vadd.xlane.f32.xlu0 %v1873_v15 }
 0xc0f   :  { %1880 = vadd.xlane.f32.xlu0 %v1879_v30 }
 0xc13   :  { %v6175_v34 = vpop.eup %6174 }
 0xc14   :  { %v1891_v38 = vmul.f32 %v6175_v34, %v6946_v48  ;;  %v5212_v48 = vcombine.low %v6874_v59, %v6874_v59 }
 0xc15   :  { %v6177_v25 = vpop.eup %6176 }
 0xc16   :  { %v1899_v42 = vpack.c.bf16 %v1891_v38, %v1891_v38  ;;  %v1890_v43 = vmul.f32 %v6177_v25, %v6948_v47  ;;  %v2105_v47 = vpop.permute.xlu1 %2104 }
 0xc17   :  { %v2110_v36 = vsel %vm747_vm8, %v2105_v47, 0 }
 0xc18   :  { %5688 = vmatmul.mubr.msk.bf16.vlgmr.msra.gmra.mrb[60].mxu1 %vm235_vm6, %v1899_v42  ;;  %v1898_v46 = vpack.c.bf16 %v1890_v43, %v1890_v43 }
 0xc19   :  { %5698 = vmatpush3.bf16.msra.mxu1 %v2060_v44  ;;  %5699 = vmatprep.mubr.msk.bf16.mxu1 %vm6387_vm1, %v6386_v17 }
 0xc1a   :  { %5682 = vmatmul.mubr.msk.bf16.vlgmr.msra.gmra.mrb[52].mxu0 %vm235_vm6, %v1898_v46  ;;  %5709 = vmatprep.subr.bf16.mxu1 %v6386_v17 }
 0xc1b   :  { %5692 = vmatpush3.bf16.msra.mxu0 %v2010_v16  ;;  %5693 = vmatprep.mubr.msk.bf16.mxu0 %vm6387_vm1, %v6386_v17 }
 0xc1c   :  { %5703 = vmatprep.subr.bf16.mxu0 %v6386_v17 }
 0xc25   :  { %2254 = vrot.lane.b32.xlu0 %v5212_v48, %s6391_s0 }
 0xc5f   :  { %v1866_v63 = vpop.xlane.xlu1 %1865 }
 0xc60   :  { %6178 = vrcp.f32 %v1866_v63 }
 0xc63   :  { %v1869_v33 = vpop.xlane.xlu0 %1868 }
 0xc64   :  { %6180 = vrcp.f32 %v1869_v33 }
 0xc67   :  { %v1872_v27 = vpop.xlane.xlu1 %1871  ;;  %v2155_v54 = vpop.permute.xlu0 %2154 }
 0xc68   :  { %6182 = vrcp.f32 %v1872_v27 }
 0xc6a   :  { %v6179_v49 = vpop.eup %6178 }
 0xc6b   :  { %v1892_v5 = vmul.f32 %v6179_v49, %v6959_v60  ;;  %v2160_v60 = vsel %vm747_vm8, %v2155_v54, 0 }
 0xc6d   :  { %v1900_v8 = vpack.c.bf16 %v1892_v5, %v1892_v5 }
 0xc6e   :  { %v6181_v58 = vpop.eup %6180 }
 0xc6f   :  { %5694 = vmatmul.mubr.msk.bf16.vlgmr.msra.gmra.mrb[56].mxu0 %vm235_vm6, %v1900_v8  ;;  %v1878_v53 = vpop.xlane.xlu1 %1877  ;;  %v1893_v59 = vmul.f32 %v6181_v58, %v6963_v4 }
 0xc70   :  { %5704 = vmatpush3.bf16.msra.mxu0 %v2110_v36  ;;  %6184 = vrcp.f32 %v1878_v53  ;;  %5705 = vmatprep.mubr.msk.bf16.mxu0 %vm6387_vm1, %v6386_v17 }
 0xc71   :  { %v1901_v56 = vpack.c.bf16 %v1893_v59, %v1893_v59  ;;  %5715 = vmatprep.subr.bf16.mxu0 %v6386_v17 }
 0xc72   :  { %v6183_v61 = vpop.eup %6182 }
 0xc73   :  { %5700 = vmatmul.mubr.msk.bf16.vlgmr.msra.gmra.mrb[64].mxu1 %vm235_vm6, %v1901_v56  ;;  %v1894_v55 = vmul.f32 %v6183_v61, %v6967_v11  ;;  %v2205_v45 = vpop.permute.xlu1 %2204 }
 0xc74   :  { %5710 = vmatpush3.bf16.msra.mxu1 %v2160_v60  ;;  %5711 = vmatprep.mubr.msk.bf16.mxu1 %vm6387_vm1, %v6386_v17  ;;  %v2210_v1 = vsel %vm747_vm8, %v2205_v45, 0 }
 0xc75   :  { %v1902_v3 = vpack.c.bf16 %v1894_v55, %v1894_v55  ;;  %5721 = vmatprep.subr.bf16.mxu1 %v6386_v17 }
 0xc77   :  { %5706 = vmatmul.mubr.msk.bf16.vlgmr.msra.gmra.mrb[60].mxu0 %vm235_vm6, %v1902_v3  ;;  %v2334_v30 = vpop.permute.xlu1 %2333 }
 0xc78   :  { %5716 = vmatpush3.bf16.msra.mxu0 %v2210_v1  ;;  %5717 = vmatprep.mubr.msk.bf16.mxu0 %vm6387_vm1, %v6386_v17 }
 0xc79   :  { %5727 = vmatprep.subr.bf16.mxu0 %v6386_v17 }
 0xc7a   :  { %v6185_v4 = vpop.eup %6184 }
 0xc7b   :  { %v1896_v10 = vmul.f32 %v6185_v4, %v6973_v13 }
 0xc7d   :  { %v1904_v50 = vpack.c.bf16 %v1896_v10, %v1896_v10 }
 0xc7f   :  { %5718 = vmatmul.mubr.msk.bf16.vlgmr.msra.gmra.mrb[64].mxu0 %vm235_vm6, %v1904_v50 }
 0xc80   :  { %5731 = vmatprep.mubr.msk.bf16.mxu0 %vm6387_vm1, %v6386_v17  ;;  %5728 = vmatpush3.bf16.msra.mxu0 %v2334_v30 }
 0xc81   :  { %5729 = vmatprep.subr.bf16.mxu0 %v6386_v17 }
 0xc98   :  { %v1875_v62 = vpop.xlane.xlu0 %1874 }
 0xc99   :  { %6186 = vrcp.f32 %v1875_v62 }
 0xc9c   :  { %v1881_v11 = vpop.xlane.xlu0 %1880 }
 0xc9d   :  { %6188 = vrcp.f32 %v1881_v11 }
 0xca0   :  { %v2255_v19 = vpop.permute.xlu0 %2254 }
 0xca1   :  { %v2260_v22 = vsel %vm747_vm8, %v2255_v19, 0 }
 0xca3   :  { %v6187_v57 = vpop.eup %6186 }
 0xca4   :  { %v1895_v12 = vmul.f32 %v6187_v57, %v6987_v35 }
 0xca6   :  { %v1903_v20 = vpack.c.bf16 %v1895_v12, %v1895_v12 }
 0xca7   :  { %v6189_v21 = vpop.eup %6188 }
 0xca8   :  { %5712 = vmatmul.mubr.msk.bf16.vlgmr.msra.gmra.mrb[68].mxu1 %vm235_vm6, %v1903_v20  ;;  %v1897_v13 = vmul.f32 %v6189_v21, %v6991_v7 }
 0xca9   :  { %5722 = vmatpush3.bf16.msra.mxu1 %v2260_v22  ;;  %5723 = vmatprep.mubr.msk.bf16.mxu1 %vm6387_vm1, %v6386_v17 }
 0xcaa   :  { %5735 = vmatprep.subr.bf16.mxu1 %v6386_v17  ;;  %v1905_v23 = vpack.c.bf16 %v1897_v13, %v1897_v13 }
 0xcb0   :  { %5724 = vmatmul.mubr.msk.bf16.vlgmr.msra.gmra.mrb[72].mxu1 %vm235_vm6, %v1905_v23 }
 0xcb1   :  { %5739 = vmatprep.mubr.msk.bf16.mxu1 %vm6387_vm1, %v6386_v17 }
 0xceb   :  { %v1996_v24 = vpop.f32.mrb[60].mxu1 }
 0xcec   :  { %v5689_v26 = vpop.f32.mrb[61].mxu1 }
 0xced   :  { %v1948_v28 = vpop.f32.mrb[52].mxu0  ;;  %v1999_v52 = vpop.f32.mrb[62].mxu1 }
 0xcee   :  { %v5683_v35 = vpop.f32.mrb[53].mxu0  ;;  %v5690_v31 = vpop.f32.mrb[63].mxu1 }
 0xcef   :  { %v1951_v51 = vpop.f32.mrb[54].mxu0 }
 0xcf0   :  { %v5684_v15 = vpop.f32.mrb[55].mxu0 }
 0xd42   :  { %v2046_v7 = vpop.f32.mrb[56].mxu0 }
 0xd43   :  { %v5695_v34 = vpop.f32.mrb[57].mxu0 }
 0xd44   :  { %v2049_v38 = vpop.f32.mrb[58].mxu0 }
 0xd45   :  { %v5696_v25 = vpop.f32.mrb[59].mxu0 }
 0xd46   :  { %v2096_v42 = vpop.f32.mrb[64].mxu1 }
 0xd47   :  { %v6040_v43 = vpack.i.bf16 %v2096_v42, %v2046_v7  ;;  %v5701_v44 = vpop.f32.mrb[65].mxu1 }
 0xd48   :  { %v2099_v46 = vpop.f32.mrb[66].mxu1 }
 0xd49   :  { %6041 = vrot.lane.b32.xlu0 %v6040_v43, %s6394_s24  ;;  %v5702_v16 = vpop.f32.mrb[67].mxu1 }
 0xd4a   :  { %v2146_v48 = vpop.f32.mrb[60].mxu0 }
 0xd4b   :  { %v5707_v47 = vpop.f32.mrb[61].mxu0 }
 0xd4c   :  { %v2149_v63 = vpop.f32.mrb[62].mxu0 }
 0xd4d   :  { %v5708_v33 = vpop.f32.mrb[63].mxu0 }
 0xd4e   :  { %v6092_v33 = vld [vmem:[%s7743_s3 + $0x8] ss:$12 sps:$4 sm:$0xff]  }
 0xd4f   :  { %5736 = vmatpush3.bf16.msra.mxu1 %v6092_v33 }
 0xd50   :  { %5737 = vmatprep.subr.bf16.mxu1 %v6386_v17 }
 0xd52   :  { %v2246_v27 = vpop.f32.mrb[64].mxu0 }
 0xd53   :  { %v5719_v49 = vpop.f32.mrb[65].mxu0 }
 0xd54   :  { %v2249_v5 = vpop.f32.mrb[66].mxu0  ;;  %v6094_v49 = vld [vmem:[%s7744_s4] sm:$0xff]  }
 0xd55   :  { %v5720_v8 = vpop.f32.mrb[67].mxu0  ;;  %v6095_v5 = vld [vmem:[%s7744_s4 + $0x8] sm:$0xff]  }
 0xd7b   :  { %v2196_v58 = vpop.f32.mrb[68].mxu1 }
 0xd7c   :  { %v6045_v36 = vpack.i.bf16 %v2196_v58, %v2146_v48  ;;  %v5713_v53 = vpop.f32.mrb[69].mxu1 }
 0xd7d   :  { %v2199_v59 = vpop.f32.mrb[70].mxu1 }
 0xd7e   :  { %6046 = vrot.lane.b32.xlu1 %v6045_v36, %s6395_s25  ;;  %v5714_v54 = vpop.f32.mrb[71].mxu1 }
 0xd82   :  { %2335 = vrot.lane.b32.xlu1 %v6790_v0, %s6393_s23 }
 0xd83   :  { %v2296_v56 = vpop.f32.mrb[72].mxu1 }
 0xd84   :  { %v6050_v61 = vpack.i.bf16 %v2296_v56, %v2246_v27  ;;  %v5725_v60 = vpop.f32.mrb[73].mxu1  ;;  %v6093_v27 = vld [vmem:[%s7743_s3 + $0x20] ss:$12 sps:$4 sm:$0xff]  }
 0xd85   :  { %v2299_v55 = vpop.f32.mrb[74].mxu1  ;;  %5738 = vmatpush3.bf16.msra.mxu1 %v6093_v27 }
 0xd86   :  { %6051 = vrot.lane.b32.xlu0 %v6050_v61, %s6396_s26  ;;  %v5726_v45 = vpop.f32.mrb[75].mxu1  ;;  %5755 = vmatprep.subr.bf16.mxu1 %v6386_v17 }
 0xdbb   :  { %v6042_v1 = vpop.permute.xlu0 %6041 }
 0xdbc   :  { %v6044_v10 = vunpack.i.h.bf16 %v6042_v1  ;;  %v6043_v50 = vunpack.i.l.bf16 %v6042_v1 }
 0xdbe   :  { %v2327_v0 = vsel %vm235_vm6, %v1996_v24, %v6044_v10  ;;  %v2326_v12 = vsel %vm235_vm6, %v1948_v28, %v6043_v50 }
 0xdf0   :  { %v6047_v3 = vpop.permute.xlu1 %6046 }
 0xdf1   :  { %v6049_v62 = vunpack.i.h.bf16 %v6047_v3  ;;  %v6048_v11 = vunpack.i.l.bf16 %v6047_v3 }
 0xdf3   :  { %v2329_v21 = vsel %vm1153_vm9, %v2327_v0, %v6049_v62  ;;  %v2328_v22 = vsel %vm1153_vm9, %v2326_v12, %v6048_v11  ;;  %v2425_v62 = vsub.s32 6, %v6510_v32  ;;  %v6294_v11 = vld [vmem:[%s7745_s5] sm:$0xff]  ;;  %v2437_v0 = vsub.s32 7, %v6510_v32 }
 0xdf4   :  { %v2336_v4 = vpop.permute.xlu1 %2335 }
 0xdf5   :  { %5730 = vmatpush3.bf16.msra.mxu0 %v2336_v4 }
 0xdf6   :  { %5743 = vmatprep.subr.bf16.mxu0 %v6386_v17 }
 0xdf8   :  { %v6052_v57 = vpop.permute.xlu0 %6051 }
 0xdf9   :  { %v6054_v19 = vunpack.i.h.bf16 %v6052_v57  ;;  %v6053_v20 = vunpack.i.l.bf16 %v6052_v57  ;;  %v2426_v57 = vrot.slane %v6294_v11, %v2425_v62 }
 0xdfb   :  { %v2331_v13 = vsel %vm1156_vm10, %v2329_v21, %v6054_v19  ;;  %v2330_v23 = vsel %vm1156_vm10, %v2328_v22, %v6053_v20  ;;  %v2438_v22 = vrot.slane %v6294_v11, %v2437_v0 }
 0xdfc   :  { %v2332_v26 = vpack.c.bf16 %v2331_v13, %v2330_v23 }
 0xdfe   :  { %5732 = vmatmul.mubr.msk.bf16.vlgmr.msra.gmra.mrb[68].mxu0 %vm97_vm0, %v2332_v26 }
 0xdff   :  { %5751 = vmatprep.mubr.msk.bf16.mxu0 %vm6387_vm1, %v6386_v17  ;;  %5744 = vmatpush3.bf16.msra.mxu0 %v6094_v49 }
 0xe00   :  { %5745 = vmatprep.subr.bf16.mxu0 %v6386_v17 }
 0xe03   :  { %5746 = vmatpush3.bf16.msra.mxu0 %v6095_v5 }
 0xe04   :  { %5747 = vmatprep.subr.bf16.mxu0 %v6386_v17 }
 0xed1   :  { %v2376_v52 = vpop.f32.mrb[68].mxu0 }
 0xed2   :  { %v2383_v24 = vpack.c.bf16 %v2376_v52, %v2376_v52  ;;  %v5733_v35 = vpop.f32.mrb[69].mxu0 }
 0xed3   :  { %v2379_v28 = vpop.f32.mrb[70].mxu0  ;;  %v6096_v35 = vld [vmem:[%s7744_s4 + $0x10] sm:$0xff]  }
 0xed4   :  { %v7059_v31 = vadd.bf16 %v2383_v24, %v6776_v41  ;;  %v2384_v51 = vpack.c.bf16 %v2379_v28, %v2379_v28  ;;  %v5734_v15 = vpop.f32.mrb[71].mxu0  ;;  %5748 = vmatpush3.bf16.msra.mxu0 %v6096_v35  ;;  %v6097_v28 = vld [vmem:[%s7744_s4 + $0x18] sm:$0xff]  }
 0xed5   :  { %5749 = vmatprep.subr.bf16.mxu0 %v6386_v17 }
 0xed6   :  { %v7062_v30 = vadd.bf16 %v2384_v51, %v6779_v39  ;;  %v2387_v7 = vunpack.c.l.bf16 %v7059_v31  ;;  %v2446_v51 = vrot.slane %v6294_v11, %v6895_v9 }
 0xed8   :  { %v2389_v34 = vsel %vm97_vm0, %v2387_v7, 0.0  ;;  %v2388_v38 = vunpack.c.l.bf16 %v7062_v30  ;;  %5750 = vmatpush3.bf16.msra.mxu0 %v6097_v28 }
 0xed9   :  { %2390 = vadd.xlane.f32.xlu0 %v2389_v34  ;;  %5769 = vmatprep.subr.bf16.mxu0 %v6386_v17 }
 0xeda   :  { %v2392_v25 = vsel %vm97_vm0, %v2388_v38, 0.0 }
 0xedb   :  { %2393 = vadd.xlane.f32.xlu1 %v2392_v25 }
 0xf66   :  { %v2391_v42 = vpop.xlane.xlu0 %2390 }
 0xf67   :  { %v2395_v43 = vmul.f32 0.03125, %v2391_v42 }
 0xf68   :  { %v2394_v44 = vpop.xlane.xlu1 %2393 }
 0xf69   :  { %v2397_v41 = vsub.f32 %v2387_v7, %v2395_v43  ;;  %v2396_v46 = vmul.f32 0.03125, %v2394_v44 }
 0xf6b   :  { %v2398_v16 = vsub.f32 %v2388_v38, %v2396_v46  ;;  %v2399_v48 = vmul.f32 %v2397_v41, %v2397_v41  ;;  %v2427_v19 = vmul.f32 %v2426_v57, %v2397_v41  ;;  %v7111_v46 = vsub.s32 1, %v6510_v32 }
 0xf6d   :  { %v2401_v39 = vsel %vm97_vm0, %v2399_v48, 0.0  ;;  %v2400_v47 = vmul.f32 %v2398_v16, %v2398_v16  ;;  %v2428_v20 = vmul.f32 %v2426_v57, %v2398_v16  ;;  %v2514_v16 = vrot.slane %v6294_v11, %v7111_v46 }
 0xf6e   :  { %2402 = vadd.xlane.f32.xlu0 %v2401_v39 }
 0xf6f   :  { %v2404_v63 = vsel %vm97_vm0, %v2400_v47, 0.0 }
 0xf72   :  { %2405 = vadd.xlane.f32.xlu0 %v2404_v63 }
 0xffb   :  { %v2403_v8 = vpop.xlane.xlu0 %2402 }
 0xffc   :  { %v2407_v58 = vmul.f32 0.032258064, %v2403_v8 }
 0xffe   :  { %6190 = vrsqrt.f32 %v2407_v58  ;;  %vm2411_vm3 = vcmp.eq.f32.partialorder %v2407_v58, inf  ;;  %v2414_v56 = vand.u32 2147483648, %v2407_v58  ;;  %vm2413_vm4 = vcmp.eq.f32.partialorder %v2407_v58, 0.0 }
 0xfff   :  { %v2406_v36 = vpop.xlane.xlu0 %2405 }
0x1000   :  { %v2408_v53 = vmul.f32 0.032258064, %v2406_v36 }
0x1002   :  { %6192 = vrsqrt.f32 %v2408_v53  ;;  %vm2418_vm5 = vcmp.eq.f32.partialorder %v2408_v53, inf  ;;  %v2421_v1 = vand.u32 2147483648, %v2408_v53  ;;  %vm2420_vm7 = vcmp.eq.f32.partialorder %v2408_v53, 0.0 }
0x1008   :  { %v6191_v59 = vpop.eup %6190 }
0x1009   :  { %v2410_v54 = vmul.f32 %v6191_v59, %v2407_v58 }
0x100b   :  { %v2412_v61 = vsel %vm2411_vm3, %v2407_v58, %v2410_v54 }
0x100c   :  { %v6193_v60 = vpop.eup %6192  ;;  %v2415_v55 = vsel %vm2413_vm4, %v2414_v56, %v2412_v61 }
0x100d   :  { %v2429_v45 = vadd.f32 1e-06, %v2415_v55  ;;  %v2417_v3 = vmul.f32 %v6193_v60, %v2408_v53 }
0x100f   :  { %6194 = vrcp.f32 %v2429_v45  ;;  %v2419_v4 = vsel %vm2418_vm5, %v2408_v53, %v2417_v3 }
0x1010   :  { %v2422_v10 = vsel %vm2420_vm7, %v2421_v1, %v2419_v4 }
0x1011   :  { %v2430_v50 = vadd.f32 1e-06, %v2422_v10  ;;  %v7129_v10 = vld [vmem:[%s7743_s3 + $0x30] ss:$12 sps:$4 sm:$0xff]  }
0x1013   :  { %6196 = vrcp.f32 %v2430_v50  ;;  %v7135_v50 = vld [vmem:[%s7743_s3 + $0x48] ss:$12 sps:$4 sm:$0xff]  }
0x1019   :  { %v6195_v12 = vpop.eup %6194 }
0x101a   :  { %v2433_v21 = vmul.f32 %v6195_v12, %v2427_v19 }
0x101c   :  { %v2439_v26 = vadd.f32 %v2438_v22, %v2433_v21 }
0x101d   :  { %v6197_v13 = vpop.eup %6196 }
0x101e   :  { %v2434_v23 = vmul.f32 %v6197_v13, %v2428_v20 }
0x1020   :  { %v2440_v52 = vadd.f32 %v2438_v22, %v2434_v23 }
0x1022   :  { %v5319_v24 = vpack.c.bf16 %v2440_v52, %v2439_v26 }
0x1024   :  { %5740 = vmatmul.mubr.msk.bf16.vlgmr.msra.gmra.mrb[76].mxu1 %vm97_vm0, %v5319_v24 }
0x1025   :  { %5759 = vmatprep.mubr.msk.bf16.mxu1 %vm6387_vm1, %v6386_v17  ;;  %5756 = vmatpush3.bf16.msra.mxu1 %v7129_v10 }
0x1026   :  { %5757 = vmatprep.subr.bf16.mxu1 %v6386_v17 }
0x1029   :  { %5758 = vmatpush3.bf16.msra.mxu1 %v7135_v50 }
0x102a   :  { %5763 = vmatprep.subr.bf16.mxu1 %v6386_v17 }
0x10f7   :  { %v2501_v15 = vpop.f32.mrb[76].mxu1 }
0x10f8   :  { %v2502_v7 = vadd.f32 %v2501_v15, %v2446_v51  ;;  %v5741_v34 = vpop.f32.mrb[77].mxu1 }
0x10f9   :  { %v2504_v38 = vpop.f32.mrb[78].mxu1 }
0x10fa   :  { %v2505_v25 = vadd.f32 %v2504_v38, %v2446_v51  ;;  %v5742_v42 = vpop.f32.mrb[79].mxu1  ;;  %v2508_v43 = vmax.f32 %v2502_v7, 0.0  ;;  %v7143_v7 = vld [vmem:[%s7745_s5 + $0x8] sm:$0xff] }
0x10fb   :  { %v2647_v34 = vrot.slane %v7143_v7, %v136_v37  ;;  %v2659_v38 = vrot.slane %v7143_v7, %v148_v40 }
0x10fc   :  { %v2509_v44 = vmax.f32 %v2505_v25, 0.0 }
0x10fe   :  { %v2510_v41 = vpack.c.bf16 %v2509_v44, %v2508_v43 }
0x1100   :  { %5752 = vmatmul.mubr.msk.bf16.vlgmr.msra.gmra.mrb[72].mxu0 %vm2539_vm11, %v2510_v41 }
0x1101   :  { %5771 = vmatprep.mubr.msk.bf16.mxu0 %vm6387_vm1, %v6386_v17 }
0x11d3   :  { %v2577_v48 = vpop.f32.mrb[72].mxu0 }
0x11d4   :  { %v2578_v39 = vadd.f32 %v2577_v48, %v2514_v16  ;;  %v5753_v47 = vpop.f32.mrb[73].mxu0 }
0x11d5   :  { %v2580_v63 = vpop.f32.mrb[74].mxu0 }
0x11d6   :  { %v2584_v33 = vpack.c.bf16 %v2578_v39, %v2578_v39  ;;  %v2581_v27 = vadd.f32 %v2580_v63, %v2514_v16  ;;  %v5754_v49 = vpop.f32.mrb[75].mxu0 }
0x11d8   :  { %v7115_v5 = vadd.bf16 %v2584_v33, %v7059_v31  ;;  %v2585_v8 = vpack.c.bf16 %v2581_v27, %v2581_v27 }
0x11da   :  { %v7118_v58 = vadd.bf16 %v2585_v8, %v7062_v30  ;;  %v2608_v36 = vunpack.c.l.bf16 %v7115_v5 }
0x11dc   :  { %v2610_v53 = vsel %vm97_vm0, %v2608_v36, 0.0  ;;  %v2609_v59 = vunpack.c.l.bf16 %v7118_v58 }
0x11dd   :  { %2611 = vadd.xlane.f32.xlu0 %v2610_v53 }
0x11de   :  { %v2613_v54 = vsel %vm97_vm0, %v2609_v59, 0.0 }
0x11df   :  { %2614 = vadd.xlane.f32.xlu1 %v2613_v54 }
0x126a   :  { %v2612_v56 = vpop.xlane.xlu0 %2611 }
0x126b   :  { %v2616_v61 = vmul.f32 0.03125, %v2612_v56 }
0x126c   :  { %v2615_v60 = vpop.xlane.xlu1 %2614 }
0x126d   :  { %v2618_v55 = vsub.f32 %v2608_v36, %v2616_v61  ;;  %v2617_v31 = vmul.f32 0.03125, %v2615_v60 }
0x126f   :  { %v2619_v45 = vsub.f32 %v2609_v59, %v2617_v31  ;;  %v2620_v3 = vmul.f32 %v2618_v55, %v2618_v55  ;;  %v2648_v25 = vmul.f32 %v2647_v34, %v2618_v55 }
0x1271   :  { %v2622_v30 = vsel %vm97_vm0, %v2620_v3, 0.0  ;;  %v2621_v1 = vmul.f32 %v2619_v45, %v2619_v45  ;;  %v2649_v44 = vmul.f32 %v2647_v34, %v2619_v45 }
0x1272   :  { %2623 = vadd.xlane.f32.xlu0 %v2622_v30 }
0x1273   :  { %v2625_v4 = vsel %vm97_vm0, %v2621_v1, 0.0 }
0x1274   :  { %2626 = vadd.xlane.f32.xlu1 %v2625_v4 }
0x12ff   :  { %v2624_v11 = vpop.xlane.xlu0 %2623 }
0x1300   :  { %v2628_v57 = vmul.f32 0.032258064, %v2624_v11 }
0x1301   :  { %v2627_v12 = vpop.xlane.xlu1 %2626 }
0x1302   :  { %6198 = vrsqrt.f32 %v2628_v57  ;;  %v2629_v19 = vmul.f32 0.032258064, %v2627_v12  ;;  %vm2632_vm12 = vcmp.eq.f32.partialorder %v2628_v57, inf  ;;  %v2635_v22 = vand.u32 2147483648, %v2628_v57 }
0x1303   :  { %vm2634_vm13 = vcmp.eq.f32.partialorder %v2628_v57, 0.0 }
0x1304   :  { %6200 = vrsqrt.f32 %v2629_v19  ;;  %vm2639_vm14 = vcmp.eq.f32.partialorder %v2629_v19, inf  ;;  %v2642_v35 = vand.u32 2147483648, %v2629_v19  ;;  %vm2641_vm15 = vcmp.eq.f32.partialorder %v2629_v19, 0.0 }
0x130c   :  { %v6199_v20 = vpop.eup %6198 }
0x130d   :  { %v2631_v21 = vmul.f32 %v6199_v20, %v2628_v57 }
0x130e   :  { %v6201_v13 = vpop.eup %6200 }
0x130f   :  { %v2633_v23 = vsel %vm2632_vm12, %v2628_v57, %v2631_v21  ;;  %v2638_v52 = vmul.f32 %v6201_v13, %v2629_v19 }
0x1310   :  { %v2636_v26 = vsel %vm2634_vm13, %v2635_v22, %v2633_v23 }
0x1311   :  { %v2650_v24 = vadd.f32 1e-06, %v2636_v26  ;;  %v2640_v28 = vsel %vm2639_vm14, %v2629_v19, %v2638_v52 }
0x1312   :  { %v2643_v51 = vsel %vm2641_vm15, %v2642_v35, %v2640_v28 }
0x1313   :  { %6202 = vrcp.f32 %v2650_v24  ;;  %v2651_v15 = vadd.f32 1e-06, %v2643_v51 }
0x1315   :  { %6204 = vrcp.f32 %v2651_v15 }
0x131d   :  { %v6203_v42 = vpop.eup %6202 }
0x131e   :  { %v2654_v43 = vmul.f32 %v6203_v42, %v2648_v25 }
0x131f   :  { %v6205_v41 = vpop.eup %6204 }
0x1320   :  { %v2660_v16 = vadd.f32 %v2659_v38, %v2654_v43  ;;  %v2655_v48 = vmul.f32 %v6205_v41, %v2649_v44 }
0x1322   :  { %v2661_v39 = vadd.f32 %v2659_v38, %v2655_v48 }
0x1324   :  { %v5320_v47 = vpack.c.bf16 %v2661_v39, %v2660_v16 }
0x1326   :  { %5760 = vmatmul.mubr.msk.bf16.vlgmr.msra.gmra.mrb[80].mxu1 %vm97_vm0, %v5320_v47 }
0x1327   :  { %5765 = vmatprep.mubr.msk.bf16.mxu1 %vm6387_vm1, %v6386_v17 }
0x13f9   :  { %v2718_v63 = vpop.f32.mrb[80].mxu1 }
0x13fa   :  { %v7154_v37 = vpack.c.bf16 %v2718_v63, %v2718_v63  ;;  %v5761_v33 = vpop.f32.mrb[81].mxu1 }
0x13fb   :  { %v2721_v27 = vpop.f32.mrb[82].mxu1 }
0x13fc   :  { %v7156_v40 = vpack.c.bf16 %v2721_v27, %v2721_v27  ;;  %2731 = vrot.lane.b32.xlu0 %v7154_v37, %s6388_s17  ;;  %v5762_v49 = vpop.f32.mrb[83].mxu1 }
0x13fe   :  { %2733 = vrot.lane.b32.xlu1 %v7156_v40, %s6388_s17 }
0x1400   :  { %2739 = vrot.lane.b32.xlu0 %v7154_v37, %s6389_s18 }
0x1402   :  { %2735 = vrot.lane.b32.xlu1 %v7154_v37, %s6390_s19 }
0x1404   :  { %2743 = vrot.lane.b32.xlu0 %v7154_v37, %s6391_s0 }
0x1406   :  { %2737 = vrot.lane.b32.xlu1 %v7156_v40, %s6390_s19 }
0x140a   :  { %2741 = vrot.lane.b32.xlu1 %v7156_v40, %s6389_s18 }
0x140e   :  { %2791 = vrot.lane.b32.xlu1 %v7156_v40, %s6391_s0 }
0x146e   :  { %v2732_v8 = vpop.permute.xlu0 %2731 }
0x146f   :  { %v7174_v36 = vcombine.low %v2732_v8, %v2732_v8 }
0x1470   :  { %v2734_v53 = vpop.permute.xlu1 %2733 }
0x1471   :  { %v7176_v59 = vcombine.low %v2734_v53, %v2734_v53  ;;  %2841 = vrot.lane.b32.xlu0 %v7174_v36, %s6391_s0 }
0x1472   :  { %v2740_v54 = vpop.permute.xlu0 %2739 }
0x1473   :  { %2891 = vrot.lane.b32.xlu1 %v7176_v59, %s6391_s0  ;;  %v7187_v45 = vcombine.low %v2740_v54, %v2740_v54 }
0x1474   :  { %v2736_v56 = vpop.permute.xlu1 %2735 }
0x1475   :  { %v7182_v61 = vcombine.low %v2736_v56, %v2736_v56 }
0x1476   :  { %v2744_v60 = vpop.permute.xlu0 %2743 }
0x1477   :  { %v2749_v55 = vsel %vm235_vm6, %v2744_v60, 0  ;;  %2941 = vrot.lane.b32.xlu0 %v7182_v61, %s6391_s0 }
0x1478   :  { %5764 = vmatpush3.bf16.xpose.msra.mxu1 %v2749_v55  ;;  %v2738_v31 = vpop.permute.xlu1 %2737 }
0x1479   :  { %v7189_v3 = vcombine.low %v2738_v31, %v2738_v31  ;;  %5775 = vmatprep.subr.bf16.mxu1 %v6386_v17 }
0x147b   :  { %3041 = vrot.lane.b32.xlu0 %v7187_v45, %s6391_s0  ;;  %2991 = vrot.lane.b32.xlu1 %v7189_v3, %s6391_s0 }
0x147c   :  { %v2742_v30 = vpop.permute.xlu1 %2741 }
0x147d   :  { %v7196_v1 = vcombine.low %v2742_v30, %v2742_v30 }
0x147f   :  { %5766 = vmatmul.mubr.msk.bf16.vlgmr.msra.gmra.mrb[84].mxu1 %vm235_vm6, %v7154_v37  ;;  %3091 = vrot.lane.b32.xlu1 %v7196_v1, %s6391_s0 }
0x1480   :  { %v2792_v4 = vpop.permute.xlu1 %2791  ;;  %5777 = vmatprep.mubr.msk.bf16.mxu1 %vm6387_vm1, %v6386_v17 }
0x1481   :  { %v2797_v11 = vsel %vm235_vm6, %v2792_v4, 0 }
0x1482   :  { %5770 = vmatpush3.bf16.xpose.msra.mxu0 %v2797_v11 }
0x1483   :  { %5781 = vmatprep.subr.bf16.mxu0 %v6386_v17 }
0x1489   :  { %5772 = vmatmul.mubr.msk.bf16.vlgmr.msra.gmra.mrb[76].mxu0 %vm235_vm6, %v7156_v40 }
0x148a   :  { %5783 = vmatprep.mubr.msk.bf16.mxu0 %vm6387_vm1, %v6386_v17 }
0x14e3   :  { %v2842_v57 = vpop.permute.xlu0 %2841 }
0x14e4   :  { %v2847_v12 = vsel %vm235_vm6, %v2842_v57, 0 }
0x14e5   :  { %5776 = vmatpush3.bf16.xpose.msra.mxu1 %v2847_v12  ;;  %v2892_v19 = vpop.permute.xlu1 %2891 }
0x14e6   :  { %v2897_v20 = vsel %vm235_vm6, %v2892_v19, 0  ;;  %5787 = vmatprep.subr.bf16.mxu1 %v6386_v17 }
0x14e7   :  { %5782 = vmatpush3.bf16.xpose.msra.mxu0 %v2897_v20 }
0x14e8   :  { %5793 = vmatprep.subr.bf16.mxu0 %v6386_v17 }
0x14e9   :  { %v2942_v21 = vpop.permute.xlu0 %2941 }
0x14ea   :  { %v2947_v22 = vsel %vm235_vm6, %v2942_v21, 0 }
0x14ec   :  { %5778 = vmatmul.mubr.msk.bf16.vlgmr.msra.gmra.mrb[88].mxu1 %vm235_vm6, %v2732_v8 }
0x14ed   :  { %5788 = vmatpush3.bf16.xpose.msra.mxu1 %v2947_v22  ;;  %v2992_v13 = vpop.permute.xlu1 %2991  ;;  %5789 = vmatprep.mubr.msk.bf16.mxu1 %vm6387_vm1, %v6386_v17  ;;  %v3042_v26 = vpop.permute.xlu0 %3041 }
0x14ee   :  { %v2997_v23 = vsel %vm235_vm6, %v2992_v13, 0  ;;  %5784 = vmatmul.mubr.msk.bf16.vlgmr.msra.gmra.mrb[80].mxu0 %vm235_vm6, %v2734_v53  ;;  %5799 = vmatprep.subr.bf16.mxu1 %v6386_v17  ;;  %v3047_v24 = vsel %vm235_vm6, %v3042_v26, 0 }
0x14ef   :  { %5794 = vmatpush3.bf16.xpose.msra.mxu0 %v2997_v23  ;;  %5795 = vmatprep.mubr.msk.bf16.mxu0 %vm6387_vm1, %v6386_v17 }
0x14f0   :  { %5805 = vmatprep.subr.bf16.mxu0 %v6386_v17 }
0x14f1   :  { %v3092_v52 = vpop.permute.xlu1 %3091 }
0x14f2   :  { %v3097_v35 = vsel %vm235_vm6, %v3092_v52, 0 }
0x14f4   :  { %5790 = vmatmul.mubr.msk.bf16.vlgmr.msra.gmra.mrb[92].mxu1 %vm235_vm6, %v2736_v56 }
0x14f5   :  { %5800 = vmatpush3.bf16.xpose.msra.mxu1 %v3047_v24  ;;  %5801 = vmatprep.mubr.msk.bf16.mxu1 %vm6387_vm1, %v6386_v17 }
0x14f6   :  { %5796 = vmatmul.mubr.msk.bf16.vlgmr.msra.gmra.mrb[84].mxu0 %vm235_vm6, %v2738_v31  ;;  %5811 = vmatprep.subr.bf16.mxu1 %v6386_v17 }
0x14f7   :  { %5806 = vmatpush3.bf16.xpose.msra.mxu0 %v3097_v35  ;;  %5807 = vmatprep.mubr.msk.bf16.mxu0 %vm6387_vm1, %v6386_v17 }
0x14f8   :  { %5817 = vmatprep.subr.bf16.mxu0 %v6386_v17 }
0x14fc   :  { %5802 = vmatmul.mubr.msk.bf16.vlgmr.msra.gmra.mrb[96].mxu1 %vm235_vm6, %v2740_v54 }
0x14fd   :  { %5813 = vmatprep.mubr.msk.bf16.mxu1 %vm6387_vm1, %v6386_v17 }
0x14fe   :  { %5808 = vmatmul.mubr.msk.bf16.vlgmr.msra.gmra.mrb[88].mxu0 %vm235_vm6, %v2742_v30 }
0x14ff   :  { %5819 = vmatprep.mubr.msk.bf16.mxu0 %vm6387_vm1, %v6386_v17 }
0x1552   :  { %v2785_v28 = vpop.f32.mrb[84].mxu1 }
0x1553   :  { %v3139_v51 = vmul.f32 0.35355338, %v2785_v28  ;;  %v5767_v15 = vpop.f32.mrb[85].mxu1 }
0x1554   :  { %v2788_v34 = vpop.f32.mrb[86].mxu1 }
0x1555   :  { %v3147_v38 = vadd.f32 %v3139_v51, %v6620_v29  ;;  %v5768_v25 = vpop.f32.mrb[87].mxu1 }
0x1557   :  { %v3155_v42 = vsel %vm235_vm6, %v3147_v38, -inf }
0x1558   :  { %3156 = vmax.xlane.f32.xlu0 %v3155_v42 }
0x155c   :  { %v2833_v43 = vpop.f32.mrb[76].mxu0 }
0x155d   :  { %v3140_v44 = vmul.f32 0.35355338, %v2833_v43  ;;  %v5773_v41 = vpop.f32.mrb[77].mxu0 }
0x155e   :  { %v2836_v16 = vpop.f32.mrb[78].mxu0 }
0x155f   :  { %v7243_v48 = vadd.f32 %v3140_v44, %v6620_v29  ;;  %v5774_v39 = vpop.f32.mrb[79].mxu0 }
0x1561   :  { %v3158_v47 = vsel %vm235_vm6, %v7243_v48, -inf }
0x1562   :  { %3159 = vmax.xlane.f32.xlu1 %v3158_v47 }
0x15bf   :  { %v2883_v63 = vpop.f32.mrb[88].mxu1 }
0x15c0   :  { %v3141_v33 = vmul.f32 0.35355338, %v2883_v63  ;;  %v5779_v27 = vpop.f32.mrb[89].mxu1 }
0x15c1   :  { %v2886_v49 = vpop.f32.mrb[90].mxu1  ;;  %v2933_v8 = vpop.f32.mrb[80].mxu0 }
0x15c2   :  { %v7248_v53 = vadd.f32 %v3141_v33, %v6620_v29  ;;  %v3142_v54 = vmul.f32 0.35355338, %v2933_v8  ;;  %v5780_v56 = vpop.f32.mrb[91].mxu1  ;;  %v5785_v60 = vpop.f32.mrb[81].mxu0 }
0x15c3   :  { %v2936_v55 = vpop.f32.mrb[82].mxu0 }
0x15c4   :  { %v7251_v31 = vadd.f32 %v3142_v54, %v6620_v29  ;;  %v5786_v30 = vpop.f32.mrb[83].mxu0  ;;  %v3161_v4 = vsel %vm235_vm6, %v7248_v53, -inf }
0x15c5   :  { %3162 = vmax.xlane.f32.xlu0 %v3161_v4 }
0x15c6   :  { %v3164_v19 = vsel %vm235_vm6, %v7251_v31, -inf }
0x15c7   :  { %v2983_v11 = vpop.f32.mrb[92].mxu1 }
0x15c8   :  { %v3143_v57 = vmul.f32 0.35355338, %v2983_v11  ;;  %v5791_v12 = vpop.f32.mrb[93].mxu1 }
0x15c9   :  { %v3033_v20 = vpop.f32.mrb[84].mxu0  ;;  %3165 = vmax.xlane.f32.xlu0 %v3164_v19  ;;  %v2986_v21 = vpop.f32.mrb[94].mxu1 }
0x15ca   :  { %v7258_v22 = vadd.f32 %v3143_v57, %v6620_v29  ;;  %v3144_v13 = vmul.f32 0.35355338, %v3033_v20  ;;  %v5792_v23 = vpop.f32.mrb[95].mxu1  ;;  %v5797_v26 = vpop.f32.mrb[85].mxu0 }
0x15cb   :  { %v3036_v52 = vpop.f32.mrb[86].mxu0 }
0x15cc   :  { %v3152_v24 = vadd.f32 %v3144_v13, %v6620_v29  ;;  %v5798_v35 = vpop.f32.mrb[87].mxu0  ;;  %v3167_v28 = vsel %vm235_vm6, %v7258_v22, -inf }
0x15cd   :  { %3168 = vmax.xlane.f32.xlu0 %v3167_v28 }
0x15ce   :  { %v3170_v51 = vsel %vm235_vm6, %v3152_v24, -inf }
0x15cf   :  { %3171 = vmax.xlane.f32.xlu1 %v3170_v51  ;;  %v3083_v15 = vpop.f32.mrb[96].mxu1 }
0x15d0   :  { %v3145_v34 = vmul.f32 0.35355338, %v3083_v15  ;;  %v5803_v25 = vpop.f32.mrb[97].mxu1 }
0x15d1   :  { %v3086_v42 = vpop.f32.mrb[98].mxu1  ;;  %v3133_v43 = vpop.f32.mrb[88].mxu0 }
0x15d2   :  { %v7265_v44 = vadd.f32 %v3145_v34, %v6620_v29  ;;  %v5804_v41 = vpop.f32.mrb[99].mxu1  ;;  %v5809_v16 = vpop.f32.mrb[89].mxu0  ;;  %v3146_v8 = vmul.f32 0.35355338, %v3133_v43 }
0x15d3   :  { %v3136_v39 = vpop.f32.mrb[90].mxu0 }
0x15d4   :  { %v5810_v47 = vpop.f32.mrb[91].mxu0  ;;  %v3173_v63 = vsel %vm235_vm6, %v7265_v44, -inf  ;;  %v3154_v54 = vadd.f32 %v3146_v8, %v6620_v29 }
0x15d5   :  { %3174 = vmax.xlane.f32.xlu0 %v3173_v63 }
0x15d6   :  { %v3176_v60 = vsel %vm235_vm6, %v3154_v54, -inf }
0x15e0   :  { %3299 = vrot.lane.b32.xlu1 %v7156_v40, %s6383_s20 }
0x15e4   :  { %3347 = vrot.lane.b32.xlu1 %v7174_v36, %s6383_s20 }
0x15e5   :  { %v3157_v33 = vpop.xlane.xlu0 %3156 }
0x15e6   :  { %v3179_v27 = vsub.f32 %v3147_v38, %v3157_v33 }
0x15e8   :  { %v3187_v49 = vmul.f32 1.442695, %v3179_v27 }
0x15ea   :  { %6206 = vpow2.f32 %v3187_v49 }
0x15eb   :  { %3251 = vrot.lane.b32.xlu0 %v7154_v37, %s6383_s20 }
0x15ef   :  { %v3160_v37 = vpop.xlane.xlu1 %3159 }
0x15f0   :  { %v3180_v36 = vsub.f32 %v7243_v48, %v3160_v37 }
0x15f2   :  { %v3189_v38 = vmul.f32 1.442695, %v3180_v36 }
0x15f4   :  { %v7276_v56 = vpop.eup %6206  ;;  %6208 = vpow2.f32 %v3189_v38 }
0x15f5   :  { %v3203_v40 = vsel %vm235_vm6, %v7276_v56, 0.0 }
0x15fe   :  { %v7284_v55 = vpop.eup %6208 }
0x15ff   :  { %v3206_v29 = vsel %vm235_vm6, %v7284_v55, 0.0 }
0x1608   :  { %3177 = vmax.xlane.f32.xlu1 %v3176_v60 }
0x160a   :  { %3204 = vadd.xlane.f32.xlu0 %v3203_v40 }
0x1619   :  { %3395 = vrot.lane.b32.xlu1 %v7176_v59, %s6383_s20 }
0x163d   :  { %3207 = vadd.xlane.f32.xlu1 %v3206_v29 }
0x164e   :  { %3491 = vrot.lane.b32.xlu1 %v7189_v3, %s6383_s20 }
0x1652   :  { %v3163_v30 = vpop.xlane.xlu0 %3162 }
0x1653   :  { %v3181_v4 = vsub.f32 %v7248_v53, %v3163_v30 }
0x1655   :  { %v3191_v11 = vmul.f32 1.442695, %v3181_v4 }
0x1656   :  { %v3166_v59 = vpop.xlane.xlu0 %3165 }
0x1657   :  { %6210 = vpow2.f32 %v3191_v11  ;;  %v3182_v57 = vsub.f32 %v7251_v31, %v3166_v59 }
0x1659   :  { %v3193_v19 = vmul.f32 1.442695, %v3182_v57 }
0x165a   :  { %v3169_v12 = vpop.xlane.xlu0 %3168 }
0x165b   :  { %6212 = vpow2.f32 %v3193_v19  ;;  %v3183_v15 = vsub.f32 %v7258_v22, %v3169_v12 }
0x165c   :  { %v3172_v48 = vpop.xlane.xlu1 %3171 }
0x165d   :  { %v3184_v20 = vsub.f32 %v3152_v24, %v3172_v48  ;;  %v3195_v34 = vmul.f32 1.442695, %v3183_v15 }
0x165f   :  { %v3197_v53 = vmul.f32 1.442695, %v3184_v20 }
0x1660   :  { %v3300_v21 = vpop.permute.xlu1 %3299 }
0x1661   :  { %v7292_v13 = vpop.eup %6210  ;;  %v3305_v23 = vsel %vm747_vm8, %v3300_v21, 0  ;;  %6214 = vpow2.f32 %v3197_v53 }
0x1662   :  { %5818 = vmatpush3.bf16.msra.mxu0 %v3305_v23  ;;  %v3175_v26 = vpop.xlane.xlu0 %3174  ;;  %v3209_v3 = vsel %vm235_vm6, %v7292_v13, 0.0  ;;  %6216 = vpow2.f32 %v3195_v34 }
0x1663   :  { %3210 = vadd.xlane.f32.xlu0 %v3209_v3  ;;  %5829 = vmatprep.subr.bf16.mxu0 %v6386_v17  ;;  %v3185_v25 = vsub.f32 %v7265_v44, %v3175_v26 }
0x1664   :  { %v3348_v43 = vpop.permute.xlu1 %3347 }
0x1665   :  { %v7300_v24 = vpop.eup %6212  ;;  %v3199_v42 = vmul.f32 1.442695, %v3185_v25  ;;  %v3353_v60 = vsel %vm747_vm8, %v3348_v43, 0 }
0x1666   :  { %v3252_v31 = vpop.permute.xlu0 %3251  ;;  %v3212_v35 = vsel %vm235_vm6, %v7300_v24, 0.0 }
0x1667   :  { %v3257_v52 = vsel %vm747_vm8, %v3252_v31, 0  ;;  %6218 = vpow2.f32 %v3199_v42 }
0x1668   :  { %5812 = vmatpush3.bf16.msra.mxu1 %v3257_v52 }
0x1669   :  { %5823 = vmatprep.subr.bf16.mxu1 %v6386_v17 }
0x166b   :  { %v7304_v28 = vpop.eup %6214 }
0x166c   :  { %v3218_v51 = vsel %vm235_vm6, %v7304_v28, 0.0  ;;  %v7312_v41 = vpop.eup %6216 }
0x166d   :  { %v3215_v63 = vsel %vm235_vm6, %v7312_v41, 0.0 }
0x1671   :  { %v7316_v33 = vpop.eup %6218 }
0x1672   :  { %3213 = vadd.xlane.f32.xlu1 %v3212_v35  ;;  %v3221_v22 = vsel %vm235_vm6, %v7316_v33, 0.0 }
0x1676   :  { %3219 = vadd.xlane.f32.xlu1 %v3218_v51 }
0x1679   :  { %3443 = vrot.lane.b32.xlu0 %v7182_v61, %s6383_s20 }
0x1695   :  { %v3178_v16 = vpop.xlane.xlu1 %3177 }
0x1696   :  { %v3186_v39 = vsub.f32 %v3154_v54, %v3178_v16 }
0x1697   :  { %v3205_v47 = vpop.xlane.xlu0 %3204 }
0x1698   :  { %v3201_v61 = vmul.f32 1.442695, %v3186_v39  ;;  %6220 = vrcp.f32 %v3205_v47  ;;  %3216 = vadd.xlane.f32.xlu0 %v3215_v63 }
0x169a   :  { %6222 = vpow2.f32 %v3201_v61 }
0x169c   :  { %3222 = vadd.xlane.f32.xlu0 %v3221_v22 }
0x16a2   :  { %v6221_v44 = vpop.eup %6220 }
0x16a3   :  { %v3235_v27 = vmul.f32 %v6221_v44, %v7276_v56  ;;  %v3396_v56 = vpop.permute.xlu1 %3395 }
0x16a4   :  { %v7321_v49 = vpop.eup %6222  ;;  %v3401_v29 = vsel %vm747_vm8, %v3396_v56, 0 }
0x16a5   :  { %v3224_v8 = vsel %vm235_vm6, %v7321_v49, 0.0  ;;  %v3243_v54 = vpack.c.bf16 %v3235_v27, %v3235_v27 }
0x16a6   :  { %3225 = vadd.xlane.f32.xlu1 %v3224_v8 }
0x16a7   :  { %5814 = vmatmul.mubr.msk.bf16.vlgmr.msra.gmra.mrb[100].mxu1 %vm235_vm6, %v3243_v54 }
0x16a8   :  { %5824 = vmatpush3.bf16.msra.mxu1 %v3353_v60  ;;  %5825 = vmatprep.mubr.msk.bf16.mxu1 %vm6387_vm1, %v6386_v17 }
0x16a9   :  { %5835 = vmatprep.subr.bf16.mxu1 %v6386_v17 }
0x16b2   :  { %3539 = vrot.lane.b32.xlu0 %v7187_v45, %s6383_s20 }
0x16b6   :  { %3666 = vrot.lane.b32.xlu0 %v7129_v10, %s6393_s23 }
0x16b7   :  { %3587 = vrot.lane.b32.xlu1 %v7196_v1, %s6383_s20 }
0x16ca   :  { %v3208_v40 = vpop.xlane.xlu1 %3207 }
0x16cb   :  { %6224 = vrcp.f32 %v3208_v40 }
0x16ce   :  { %v3492_v1 = vpop.permute.xlu1 %3491 }
0x16cf   :  { %v3497_v21 = vsel %vm747_vm8, %v3492_v1, 0 }
0x16d5   :  { %v6225_v37 = vpop.eup %6224 }
0x16d6   :  { %v3236_v36 = vmul.f32 %v6225_v37, %v7284_v55 }
0x16d8   :  { %v3244_v38 = vpack.c.bf16 %v3236_v36, %v3236_v36 }
0x16da   :  { %5820 = vmatmul.mubr.msk.bf16.vlgmr.msra.gmra.mrb[92].mxu0 %vm235_vm6, %v3244_v38 }
0x16db   :  { %5830 = vmatpush3.bf16.msra.mxu0 %v3401_v29  ;;  %5831 = vmatprep.mubr.msk.bf16.mxu0 %vm6387_vm1, %v6386_v17 }
0x16dc   :  { %5841 = vmatprep.subr.bf16.mxu0 %v6386_v17 }
0x16f0   :  { %v3211_v10 = vpop.xlane.xlu0 %3210 }
0x16f1   :  { %6226 = vrcp.f32 %v3211_v10 }
0x16f4   :  { %v3444_v4 = vpop.permute.xlu0 %3443 }
0x16f5   :  { %v3449_v59 = vsel %vm747_vm8, %v3444_v4, 0 }
0x16fb   :  { %v6227_v45 = vpop.eup %6226 }
0x16fc   :  { %v3237_v30 = vmul.f32 %v6227_v45, %v7292_v13 }
0x16fe   :  { %v3245_v11 = vpack.c.bf16 %v3237_v30, %v3237_v30 }
0x16ff   :  { %v3214_v55 = vpop.xlane.xlu1 %3213 }
0x1700   :  { %6228 = vrcp.f32 %v3214_v55  ;;  %5826 = vmatmul.mubr.msk.bf16.vlgmr.msra.gmra.mrb[104].mxu1 %vm235_vm6, %v3245_v11 }
0x1701   :  { %5836 = vmatpush3.bf16.msra.mxu1 %v3449_v59  ;;  %5837 = vmatprep.mubr.msk.bf16.mxu1 %vm6387_vm1, %v6386_v17 }
0x1702   :  { %5847 = vmatprep.subr.bf16.mxu1 %v6386_v17 }
0x1703   :  { %v3220_v57 = vpop.xlane.xlu1 %3219 }
0x1704   :  { %6230 = vrcp.f32 %v3220_v57 }
0x170a   :  { %v6229_v48 = vpop.eup %6228 }
0x170b   :  { %v3238_v12 = vmul.f32 %v6229_v48, %v7300_v24 }
0x170d   :  { %v3246_v19 = vpack.c.bf16 %v3238_v12, %v3238_v12 }
0x170e   :  { %v6231_v20 = vpop.eup %6230 }
0x170f   :  { %5832 = vmatmul.mubr.msk.bf16.vlgmr.msra.gmra.mrb[96].mxu0 %vm235_vm6, %v3246_v19  ;;  %v3240_v13 = vmul.f32 %v6231_v20, %v7304_v28 }
0x1710   :  { %5842 = vmatpush3.bf16.msra.mxu0 %v3497_v21  ;;  %5843 = vmatprep.mubr.msk.bf16.mxu0 %vm6387_vm1, %v6386_v17 }
0x1711   :  { %5853 = vmatprep.subr.bf16.mxu0 %v6386_v17  ;;  %v3248_v23 = vpack.c.bf16 %v3240_v13, %v3240_v13 }
0x1717   :  { %5844 = vmatmul.mubr.msk.bf16.vlgmr.msra.gmra.mrb[100].mxu0 %vm235_vm6, %v3248_v23 }
0x1718   :  { %5855 = vmatprep.mubr.msk.bf16.mxu0 %vm6387_vm1, %v6386_v17 }
0x1725   :  { %v3217_v26 = vpop.xlane.xlu0 %3216 }
0x1726   :  { %6232 = vrcp.f32 %v3217_v26 }
0x1729   :  { %v3223_v3 = vpop.xlane.xlu0 %3222 }
0x172a   :  { %6234 = vrcp.f32 %v3223_v3 }
0x172d   :  { %v3540_v52 = vpop.permute.xlu0 %3539 }
0x172e   :  { %v3545_v28 = vsel %vm747_vm8, %v3540_v52, 0 }
0x1730   :  { %v6233_v53 = vpop.eup %6232 }
0x1731   :  { %v3239_v31 = vmul.f32 %v6233_v53, %v7312_v41  ;;  %v3667_v40 = vpop.permute.xlu0 %3666 }
0x1733   :  { %v3226_v24 = vpop.xlane.xlu1 %3225  ;;  %v3247_v35 = vpack.c.bf16 %v3239_v31, %v3239_v31 }
0x1734   :  { %v6235_v51 = vpop.eup %6234  ;;  %6236 = vrcp.f32 %v3226_v24 }
0x1735   :  { %5838 = vmatmul.mubr.msk.bf16.vlgmr.msra.gmra.mrb[108].mxu1 %vm235_vm6, %v3247_v35  ;;  %v3241_v15 = vmul.f32 %v6235_v51, %v7316_v33 }
0x1736   :  { %5848 = vmatpush3.bf16.msra.mxu1 %v3545_v28  ;;  %5849 = vmatprep.mubr.msk.bf16.mxu1 %vm6387_vm1, %v6386_v17 }
0x1737   :  { %v3588_v34 = vpop.permute.xlu1 %3587  ;;  %5859 = vmatprep.subr.bf16.mxu1 %v6386_v17  ;;  %v3249_v42 = vpack.c.bf16 %v3241_v15, %v3241_v15 }
0x1738   :  { %v3593_v25 = vsel %vm747_vm8, %v3588_v34, 0 }
0x1739   :  { %5854 = vmatpush3.bf16.msra.mxu0 %v3593_v25 }
0x173a   :  { %5867 = vmatprep.subr.bf16.mxu0 %v6386_v17 }
0x173d   :  { %5850 = vmatmul.mubr.msk.bf16.vlgmr.msra.gmra.mrb[112].mxu1 %vm235_vm6, %v3249_v42 }
0x173e   :  { %v6237_v43 = vpop.eup %6236  ;;  %5863 = vmatprep.mubr.msk.bf16.mxu1 %vm6387_vm1, %v6386_v17  ;;  %5860 = vmatpush3.bf16.msra.mxu1 %v3667_v40 }
0x173f   :  { %v3242_v41 = vmul.f32 %v6237_v43, %v7321_v49  ;;  %5861 = vmatprep.subr.bf16.mxu1 %v6386_v17 }
0x1741   :  { %v3250_v16 = vpack.c.bf16 %v3242_v41, %v3242_v41 }
0x1743   :  { %5856 = vmatmul.mubr.msk.bf16.vlgmr.msra.gmra.mrb[104].mxu0 %vm235_vm6, %v3250_v16 }
0x1744   :  { %5871 = vmatprep.mubr.msk.bf16.mxu0 %vm6387_vm1, %v6386_v17 }
0x177a   :  { %v3293_v39 = vpop.f32.mrb[100].mxu1 }
0x177b   :  { %v5815_v47 = vpop.f32.mrb[101].mxu1 }
0x177c   :  { %v3296_v63 = vpop.f32.mrb[102].mxu1 }
0x177d   :  { %v5816_v33 = vpop.f32.mrb[103].mxu1 }
0x17ad   :  { %v3341_v61 = vpop.f32.mrb[92].mxu0 }
0x17ae   :  { %v5821_v22 = vpop.f32.mrb[93].mxu0 }
0x17af   :  { %v3344_v44 = vpop.f32.mrb[94].mxu0 }
0x17b0   :  { %v5822_v27 = vpop.f32.mrb[95].mxu0 }
0x17d3   :  { %v3389_v8 = vpop.f32.mrb[104].mxu1 }
0x17d4   :  { %v5827_v54 = vpop.f32.mrb[105].mxu1 }
0x17d5   :  { %v3392_v60 = vpop.f32.mrb[106].mxu1 }
0x17d6   :  { %v5828_v56 = vpop.f32.mrb[107].mxu1 }
0x17e2   :  { %v3437_v49 = vpop.f32.mrb[96].mxu0 }
0x17e3   :  { %v6055_v37 = vpack.i.bf16 %v3437_v49, %v3389_v8  ;;  %v5833_v36 = vpop.f32.mrb[97].mxu0 }
0x17e4   :  { %v3440_v38 = vpop.f32.mrb[98].mxu0 }
0x17e5   :  { %v5834_v29 = vpop.f32.mrb[99].mxu0  ;;  %6056 = vrot.lane.b32.xlu1 %v6055_v37, %s6394_s24 }
0x17ea   :  { %v3533_v10 = vpop.f32.mrb[100].mxu0 }
0x17eb   :  { %v5845_v45 = vpop.f32.mrb[101].mxu0 }
0x17ec   :  { %v3536_v1 = vpop.f32.mrb[102].mxu0 }
0x17ed   :  { %v5846_v30 = vpop.f32.mrb[103].mxu0 }
0x1808   :  { %v3485_v4 = vpop.f32.mrb[108].mxu1 }
0x1809   :  { %v6060_v11 = vpack.i.bf16 %v3533_v10, %v3485_v4  ;;  %v5839_v55 = vpop.f32.mrb[109].mxu1 }
0x180a   :  { %v3488_v59 = vpop.f32.mrb[110].mxu1 }
0x180b   :  { %6061 = vrot.lane.b32.xlu0 %v6060_v11, %s6395_s25  ;;  %v5840_v57 = vpop.f32.mrb[111].mxu1 }
0x180f   :  { %3668 = vrot.lane.b32.xlu0 %v7135_v50, %s6393_s23 }
0x1810   :  { %v3581_v48 = vpop.f32.mrb[112].mxu1 }
0x1811   :  { %v5851_v12 = vpop.f32.mrb[113].mxu1 }
0x1812   :  { %v3584_v19 = vpop.f32.mrb[114].mxu1 }
0x1813   :  { %v5852_v20 = vpop.f32.mrb[115].mxu1 }
0x1814   :  { %v6295_v20 = vld [vmem:[#allocation7] sm:$0xff]  }
0x1816   :  { %v3629_v21 = vpop.f32.mrb[104].mxu0 }
0x1817   :  { %v6065_v13 = vpack.i.bf16 %v3629_v21, %v3581_v48  ;;  %v5857_v23 = vpop.f32.mrb[105].mxu0 }
0x1818   :  { %v3632_v26 = vpop.f32.mrb[106].mxu0 }
0x1819   :  { %v5858_v3 = vpop.f32.mrb[107].mxu0  ;;  %6066 = vrot.lane.b32.xlu1 %v6065_v13, %s6396_s26 }
0x1857   :  { %v6057_v52 = vpop.permute.xlu1 %6056 }
0x1858   :  { %v6059_v24 = vunpack.i.h.bf16 %v6057_v52  ;;  %v6058_v35 = vunpack.i.l.bf16 %v6057_v52 }
0x185a   :  { %v3660_v15 = vsel %vm235_vm6, %v3341_v61, %v6059_v24  ;;  %v3659_v34 = vsel %vm235_vm6, %v3293_v39, %v6058_v35 }
0x187d   :  { %v6062_v53 = vpop.permute.xlu0 %6061 }
0x187e   :  { %v6064_v50 = vunpack.i.h.bf16 %v6062_v53  ;;  %v6063_v51 = vunpack.i.l.bf16 %v6062_v53 }
0x1880   :  { %v3662_v43 = vsel %vm1153_vm9, %v3660_v15, %v6064_v50  ;;  %v3661_v41 = vsel %vm1153_vm9, %v3659_v34, %v6063_v51 }
0x1881   :  { %v3669_v31 = vpop.permute.xlu0 %3668 }
0x1882   :  { %5862 = vmatpush3.bf16.msra.mxu1 %v3669_v31 }
0x1883   :  { %5875 = vmatprep.subr.bf16.mxu1 %v6386_v17 }
0x188b   :  { %v6067_v28 = vpop.permute.xlu1 %6066 }
0x188c   :  { %v6069_v25 = vunpack.i.h.bf16 %v6067_v28  ;;  %v6068_v42 = vunpack.i.l.bf16 %v6067_v28  ;;  %v3759_v28 = vrot.slane %v7143_v7, %v1252_v18 }
0x188e   :  { %v3664_v16 = vsel %vm1156_vm10, %v3662_v43, %v6069_v25  ;;  %v3663_v47 = vsel %vm1156_vm10, %v3661_v41, %v6068_v42  ;;  %v3771_v43 = vrot.slane %v7143_v7, %v1264_v2 }
0x188f   :  { %v3665_v63 = vpack.c.bf16 %v3664_v16, %v3663_v47 }
0x1891   :  { %5864 = vmatmul.mubr.msk.bf16.vlgmr.msra.gmra.mrb[116].mxu1 %vm97_vm0, %v3665_v63 }
0x1892   :  { %5879 = vmatprep.mubr.msk.bf16.mxu1 %vm6387_vm1, %v6386_v17 }
0x1964   :  { %v3709_v33 = vpop.f32.mrb[116].mxu1 }
0x1965   :  { %v3716_v61 = vpack.c.bf16 %v3709_v33, %v3709_v33  ;;  %v5865_v22 = vpop.f32.mrb[117].mxu1 }
0x1966   :  { %v3712_v39 = vpop.f32.mrb[118].mxu1 }
0x1967   :  { %v7391_v44 = vadd.bf16 %v3716_v61, %v7115_v5  ;;  %v3717_v27 = vpack.c.bf16 %v3712_v39, %v3712_v39  ;;  %v5866_v8 = vpop.f32.mrb[119].mxu1  ;;  %v7403_v5 = vld [vmem:[%s7743_s3 + $0x34] ss:$12 sps:$4 sm:$0xff]  }
0x1968   :  { %5868 = vmatpush3.bf16.msra.mxu0 %v7403_v5 }
0x1969   :  { %v7394_v54 = vadd.bf16 %v3717_v27, %v7118_v58  ;;  %v3720_v60 = vunpack.c.l.bf16 %v7391_v44  ;;  %5869 = vmatprep.subr.bf16.mxu0 %v6386_v17  ;;  %v7412_v58 = vld [vmem:[%s7743_s3 + $0x4c] ss:$12 sps:$4 sm:$0xff]  }
0x196b   :  { %v3722_v56 = vsel %vm97_vm0, %v3720_v60, 0.0  ;;  %v3721_v40 = vunpack.c.l.bf16 %v7394_v54 }
0x196c   :  { %3723 = vadd.xlane.f32.xlu1 %v3722_v56  ;;  %5870 = vmatpush3.bf16.msra.mxu0 %v7412_v58 }
0x196d   :  { %v3725_v49 = vsel %vm97_vm0, %v3721_v40, 0.0  ;;  %5883 = vmatprep.subr.bf16.mxu0 %v6386_v17 }
0x196e   :  { %3726 = vadd.xlane.f32.xlu0 %v3725_v49 }
0x197d   :  { %3839 = vrot.lane.b32.xlu1 %v7403_v5, %s6391_s0 }
0x19f9   :  { %v3724_v37 = vpop.xlane.xlu1 %3723 }
0x19fa   :  { %v3728_v36 = vmul.f32 0.03125, %v3724_v37 }
0x19fb   :  { %v3727_v38 = vpop.xlane.xlu0 %3726 }
0x19fc   :  { %v3730_v29 = vsub.f32 %v3720_v60, %v3728_v36  ;;  %v3729_v10 = vmul.f32 0.03125, %v3727_v38 }
0x19fd   :  { %v3840_v55 = vpop.permute.xlu1 %3839 }
0x19fe   :  { %v3731_v45 = vsub.f32 %v3721_v40, %v3729_v10  ;;  %v3732_v1 = vmul.f32 %v3730_v29, %v3730_v29  ;;  %5876 = vmatpush3.bf16.msra.mxu1 %v3840_v55  ;;  %v3760_v34 = vmul.f32 %v3759_v28, %v3730_v29 }
0x19ff   :  { %5877 = vmatprep.subr.bf16.mxu1 %v6386_v17 }
0x1a00   :  { %v3734_v30 = vsel %vm97_vm0, %v3732_v1, 0.0  ;;  %v3733_v4 = vmul.f32 %v3731_v45, %v3731_v45  ;;  %v3761_v25 = vmul.f32 %v3759_v28, %v3731_v45 }
0x1a01   :  { %3735 = vadd.xlane.f32.xlu0 %v3734_v30 }
0x1a02   :  { %v3737_v11 = vsel %vm97_vm0, %v3733_v4, 0.0 }
0x1a05   :  { %3738 = vadd.xlane.f32.xlu0 %v3737_v11 }
0x1a1b   :  { %3841 = vrot.lane.b32.xlu0 %v7412_v58, %s6391_s0 }
0x1a8e   :  { %v3736_v59 = vpop.xlane.xlu0 %3735 }
0x1a8f   :  { %v3740_v57 = vmul.f32 0.032258064, %v3736_v59 }
0x1a91   :  { %6238 = vrsqrt.f32 %v3740_v57  ;;  %vm3744_vm2 = vcmp.eq.f32.partialorder %v3740_v57, inf  ;;  %v3747_v23 = vand.u32 2147483648, %v3740_v57  ;;  %vm3746_vm3 = vcmp.eq.f32.partialorder %v3740_v57, 0.0 }
0x1a92   :  { %v3739_v48 = vpop.xlane.xlu0 %3738 }
0x1a93   :  { %v3741_v12 = vmul.f32 0.032258064, %v3739_v48 }
0x1a95   :  { %6240 = vrsqrt.f32 %v3741_v12  ;;  %vm3751_vm4 = vcmp.eq.f32.partialorder %v3741_v12, inf  ;;  %v3754_v24 = vand.u32 2147483648, %v3741_v12  ;;  %vm3753_vm5 = vcmp.eq.f32.partialorder %v3741_v12, 0.0 }
0x1a96   :  { %v3842_v19 = vpop.permute.xlu0 %3841 }
0x1a97   :  { %5878 = vmatpush3.bf16.msra.mxu1 %v3842_v19 }
0x1a98   :  { %5889 = vmatprep.subr.bf16.mxu1 %v6386_v17 }
0x1a9a   :  { %5880 = vmatmul.mubr.msk.bf16.vlgmr.msra.gmra.mrb[120].mxu1 %vm97_vm0, %v6295_v20 }
0x1a9b   :  { %v6239_v21 = vpop.eup %6238  ;;  %5891 = vmatprep.mubr.msk.bf16.mxu1 %vm6387_vm1, %v6386_v17 }
0x1a9c   :  { %v3743_v13 = vmul.f32 %v6239_v21, %v3740_v57 }
0x1a9e   :  { %v3745_v26 = vsel %vm3744_vm2, %v3740_v57, %v3743_v13 }
0x1a9f   :  { %v6241_v3 = vpop.eup %6240  ;;  %v3748_v53 = vsel %vm3746_vm3, %v3747_v23, %v3745_v26 }
0x1aa0   :  { %v3762_v31 = vadd.f32 1e-06, %v3748_v53  ;;  %v3750_v52 = vmul.f32 %v6241_v3, %v3741_v12 }
0x1aa2   :  { %6242 = vrcp.f32 %v3762_v31  ;;  %v3752_v35 = vsel %vm3751_vm4, %v3741_v12, %v3750_v52 }
0x1aa3   :  { %v3755_v50 = vsel %vm3753_vm5, %v3754_v24, %v3752_v35 }
0x1aa4   :  { %v3763_v51 = vadd.f32 1e-06, %v3755_v50 }
0x1aa6   :  { %6244 = vrcp.f32 %v3763_v51 }
0x1aac   :  { %v6243_v15 = vpop.eup %6242 }
0x1aad   :  { %v3766_v42 = vmul.f32 %v6243_v15, %v3760_v34 }
0x1aaf   :  { %v3772_v47 = vadd.f32 %v3771_v43, %v3766_v42 }
0x1ab0   :  { %v6245_v41 = vpop.eup %6244 }
0x1ab1   :  { %v3767_v16 = vmul.f32 %v6245_v41, %v3761_v25 }
0x1ab3   :  { %v3773_v63 = vadd.f32 %v3771_v43, %v3767_v16 }
0x1ab5   :  { %v5323_v33 = vpack.c.bf16 %v3773_v63, %v3772_v47 }
0x1ab7   :  { %5872 = vmatmul.mubr.msk.bf16.vlgmr.msra.gmra.mrb[108].mxu0 %vm97_vm0, %v5323_v33 }
0x1ab8   :  { %5885 = vmatprep.mubr.msk.bf16.mxu0 %vm6387_vm1, %v6386_v17 }
0x1b6d   :  { %v3879_v61 = vpop.f32.mrb[120].mxu1 }
0x1b6e   :  { %v5326_v18 = vpack.c.bf16 %v3879_v61, %v3879_v61  ;;  %v5881_v22 = vpop.f32.mrb[121].mxu1 }
0x1b6f   :  { %v3882_v39 = vpop.f32.mrb[122].mxu1 }
0x1b70   :  { %3904 = vrot.lane.b32.xlu1 %v5326_v18, %s6388_s17  ;;  %v7435_v27 = vpack.c.bf16 %v3882_v39, %v3882_v39  ;;  %v5882_v8 = vpop.f32.mrb[123].mxu1  ;;  %v3920_v2 = vsel %vm235_vm6, %v5326_v18, 0 }
0x1b71   :  { %5884 = vmatpush3.bf16.xpose.msra.mxu0 %v3920_v2 }
0x1b72   :  { %3910 = vrot.lane.b32.xlu0 %v7435_v27, %s6390_s19  ;;  %v3966_v7 = vsel %vm235_vm6, %v7435_v27, 0  ;;  %5895 = vmatprep.subr.bf16.mxu0 %v6386_v17 }
0x1b73   :  { %5890 = vmatpush3.bf16.xpose.msra.mxu1 %v3966_v7 }
0x1b74   :  { %3906 = vrot.lane.b32.xlu1 %v7435_v27, %s6388_s17  ;;  %5901 = vmatprep.subr.bf16.mxu1 %v6386_v17 }
0x1b78   :  { %3908 = vrot.lane.b32.xlu1 %v5326_v18, %s6390_s19 }
0x1b8a   :  { %v3826_v60 = vpop.f32.mrb[108].mxu0 }
0x1b8b   :  { %v5324_v56 = vpack.c.bf16 %v3826_v60, %v3826_v60  ;;  %v5873_v40 = vpop.f32.mrb[109].mxu0 }
0x1b8c   :  { %v3829_v49 = vpop.f32.mrb[110].mxu0 }
0x1b8d   :  { %v5325_v37 = vpack.c.bf16 %v3829_v49, %v3829_v49  ;;  %v5874_v36 = vpop.f32.mrb[111].mxu0  ;;  %5886 = vmatmul.mubr.msk.bf16.vlgmr.msra.gmra.mrb[112].mxu0 %vm235_vm6, %v5324_v56  ;;  %3892 = vrot.lane.b32.xlu1 %v5324_v56, %s6388_s17 }
0x1b8e   :  { %5897 = vmatprep.mubr.msk.bf16.mxu0 %vm6387_vm1, %v6386_v17 }
0x1b8f   :  { %3894 = vrot.lane.b32.xlu0 %v5325_v37, %s6388_s17  ;;  %5892 = vmatmul.mubr.msk.bf16.vlgmr.msra.gmra.mrb[124].mxu1 %vm235_vm6, %v5325_v37 }
0x1b90   :  { %5903 = vmatprep.mubr.msk.bf16.mxu1 %vm6387_vm1, %v6386_v17 }
0x1b91   :  { %3896 = vrot.lane.b32.xlu1 %v5324_v56, %s6390_s19 }
0x1b93   :  { %3898 = vrot.lane.b32.xlu0 %v5325_v37, %s6390_s19 }
0x1b95   :  { %3912 = vrot.lane.b32.xlu1 %v5326_v18, %s6389_s18 }
0x1b97   :  { %3914 = vrot.lane.b32.xlu0 %v7435_v27, %s6389_s18 }
0x1b99   :  { %3900 = vrot.lane.b32.xlu1 %v5324_v56, %s6389_s18 }
0x1b9b   :  { %3902 = vrot.lane.b32.xlu0 %v5325_v37, %s6389_s18 }
0x1b9d   :  { %4396 = vrot.lane.b32.xlu1 %v5326_v18, %s6391_s0 }
0x1be2   :  { %v7463_v38 = vpop.permute.xlu1 %3904 }
0x1be3   :  { %v4012_v29 = vsel %vm235_vm6, %v7463_v38, 0 }
0x1be4   :  { %5896 = vmatpush3.bf16.xpose.msra.mxu0 %v4012_v29  ;;  %v7475_v30 = vpop.permute.xlu0 %3910 }
0x1be5   :  { %5907 = vmatprep.subr.bf16.mxu0 %v6386_v17  ;;  %v4150_v59 = vsel %vm235_vm6, %v7475_v30, 0 }
0x1be6   :  { %v7468_v10 = vpop.permute.xlu1 %3906 }
0x1be7   :  { %v4058_v45 = vsel %vm235_vm6, %v7468_v10, 0 }
0x1be8   :  { %5902 = vmatpush3.bf16.xpose.msra.mxu1 %v4058_v45 }
0x1be9   :  { %5913 = vmatprep.subr.bf16.mxu1 %v6386_v17 }
0x1bea   :  { %v7473_v1 = vpop.permute.xlu1 %3908 }
0x1beb   :  { %v4104_v11 = vsel %vm235_vm6, %v7473_v1, 0 }
0x1bff   :  { %v3893_v4 = vpop.permute.xlu1 %3892 }
0x1c00   :  { %5898 = vmatmul.mubr.msk.bf16.vlgmr.msra.gmra.mrb[116].mxu0 %vm235_vm6, %v3893_v4 }
0x1c01   :  { %5908 = vmatpush3.bf16.xpose.msra.mxu0 %v4104_v11  ;;  %v3895_v55 = vpop.permute.xlu0 %3894  ;;  %5909 = vmatprep.mubr.msk.bf16.mxu0 %vm6387_vm1, %v6386_v17 }
0x1c02   :  { %5904 = vmatmul.mubr.msk.bf16.vlgmr.msra.gmra.mrb[128].mxu1 %vm235_vm6, %v3895_v55  ;;  %5919 = vmatprep.subr.bf16.mxu0 %v6386_v17 }
0x1c03   :  { %5914 = vmatpush3.bf16.xpose.msra.mxu1 %v4150_v59  ;;  %v3897_v57 = vpop.permute.xlu1 %3896  ;;  %5915 = vmatprep.mubr.msk.bf16.mxu1 %vm6387_vm1, %v6386_v17 }
0x1c04   :  { %5925 = vmatprep.subr.bf16.mxu1 %v6386_v17 }
0x1c05   :  { %v3899_v48 = vpop.permute.xlu0 %3898 }
0x1c07   :  { %v7489_v12 = vpop.permute.xlu1 %3912 }
0x1c08   :  { %v4196_v19 = vsel %vm235_vm6, %v7489_v12, 0  ;;  %5910 = vmatmul.mubr.msk.bf16.vlgmr.msra.gmra.mrb[120].mxu0 %vm235_vm6, %v3897_v57 }
0x1c09   :  { %v7494_v20 = vpop.permute.xlu0 %3914  ;;  %5920 = vmatpush3.bf16.xpose.msra.mxu0 %v4196_v19  ;;  %5921 = vmatprep.mubr.msk.bf16.mxu0 %vm6387_vm1, %v6386_v17 }
0x1c0a   :  { %v4242_v21 = vsel %vm235_vm6, %v7494_v20, 0  ;;  %5916 = vmatmul.mubr.msk.bf16.vlgmr.msra.gmra.mrb[132].mxu1 %vm235_vm6, %v3899_v48  ;;  %5931 = vmatprep.subr.bf16.mxu0 %v6386_v17 }
0x1c0b   :  { %v3901_v13 = vpop.permute.xlu1 %3900  ;;  %5926 = vmatpush3.bf16.xpose.msra.mxu1 %v4242_v21  ;;  %5927 = vmatprep.mubr.msk.bf16.mxu1 %vm6387_vm1, %v6386_v17 }
0x1c0c   :  { %5937 = vmatprep.subr.bf16.mxu1 %v6386_v17 }
0x1c0d   :  { %v3903_v3 = vpop.permute.xlu0 %3902 }
0x1c0f   :  { %v4397_v23 = vpop.permute.xlu1 %4396 }
0x1c10   :  { %v4402_v26 = vsel %vm747_vm8, %v4397_v23, 0  ;;  %5922 = vmatmul.mubr.msk.bf16.vlgmr.msra.gmra.mrb[124].mxu0 %vm235_vm6, %v3901_v13 }
0x1c11   :  { %5932 = vmatpush3.bf16.msra.mxu0 %v4402_v26  ;;  %5933 = vmatprep.mubr.msk.bf16.mxu0 %vm6387_vm1, %v6386_v17 }
0x1c12   :  { %5928 = vmatmul.mubr.msk.bf16.vlgmr.msra.gmra.mrb[136].mxu1 %vm235_vm6, %v3903_v3  ;;  %5943 = vmatprep.subr.bf16.mxu0 %v6386_v17 }
0x1c13   :  { %5939 = vmatprep.mubr.msk.bf16.mxu1 %vm6387_vm1, %v6386_v17 }
0x1c60   :  { %v3956_v53 = vpop.f32.mrb[112].mxu0 }
0x1c61   :  { %v4284_v31 = vmul.f32 0.35355338, %v3956_v53  ;;  %v5887_v52 = vpop.f32.mrb[113].mxu0 }
0x1c62   :  { %v3959_v24 = vpop.f32.mrb[114].mxu0  ;;  %v4002_v35 = vpop.f32.mrb[124].mxu1 }
0x1c63   :  { %v7514_v50 = vadd.f32 %v4284_v31, %v6901_v6  ;;  %v4285_v51 = vmul.f32 0.35355338, %v4002_v35  ;;  %v5888_v28 = vpop.f32.mrb[115].mxu0  ;;  %v5893_v15 = vpop.f32.mrb[125].mxu1 }
0x1c64   :  { %v4005_v34 = vpop.f32.mrb[126].mxu1 }
0x1c65   :  { %v7517_v25 = vadd.f32 %v4285_v51, %v6904_v14  ;;  %v5894_v42 = vpop.f32.mrb[127].mxu1  ;;  %v4300_v43 = vsel %vm235_vm6, %v7514_v50, -inf }
0x1c66   :  { %4301 = vmax.xlane.f32.xlu1 %v4300_v43 }
0x1c67   :  { %v4303_v41 = vsel %vm235_vm6, %v7517_v25, -inf }
0x1c68   :  { %4304 = vmax.xlane.f32.xlu0 %v4303_v41  ;;  %v5289_v41 = vcombine.low %v7463_v38, %v7463_v38 }
0x1cd3   :  { %v4048_v16 = vpop.f32.mrb[116].mxu0 }
0x1cd4   :  { %v4286_v47 = vmul.f32 0.35355338, %v4048_v16  ;;  %v5899_v63 = vpop.f32.mrb[117].mxu0 }
0x1cd5   :  { %v4051_v33 = vpop.f32.mrb[118].mxu0  ;;  %v4094_v61 = vpop.f32.mrb[128].mxu1 }
0x1cd6   :  { %v7524_v18 = vadd.f32 %v4286_v47, %v6901_v6  ;;  %v4287_v22 = vmul.f32 0.35355338, %v4094_v61  ;;  %v5900_v39 = vpop.f32.mrb[119].mxu0  ;;  %v5905_v8 = vpop.f32.mrb[129].mxu1 }
0x1cd7   :  { %v4097_v2 = vpop.f32.mrb[130].mxu1 }
0x1cd8   :  { %v7527_v7 = vadd.f32 %v4287_v22, %v6904_v14  ;;  %v5906_v60 = vpop.f32.mrb[131].mxu1  ;;  %v4306_v56 = vsel %vm235_vm6, %v7524_v18, -inf }
0x1cd9   :  { %4307 = vmax.xlane.f32.xlu0 %v4306_v56 }
0x1cda   :  { %v4309_v36 = vsel %vm235_vm6, %v7527_v7, -inf }
0x1cdb   :  { %v4140_v40 = vpop.f32.mrb[120].mxu0 }
0x1cdc   :  { %v4288_v49 = vmul.f32 0.35355338, %v4140_v40  ;;  %v5911_v37 = vpop.f32.mrb[121].mxu0 }
0x1cdd   :  { %v4143_v29 = vpop.f32.mrb[122].mxu0  ;;  %4310 = vmax.xlane.f32.xlu0 %v4309_v36  ;;  %v4186_v45 = vpop.f32.mrb[132].mxu1 }
0x1cde   :  { %v4296_v4 = vadd.f32 %v4288_v49, %v6901_v6  ;;  %v4289_v11 = vmul.f32 0.35355338, %v4186_v45  ;;  %v5912_v55 = vpop.f32.mrb[123].mxu0  ;;  %v5917_v59 = vpop.f32.mrb[133].mxu1 }
0x1cdf   :  { %v4189_v57 = vpop.f32.mrb[134].mxu1 }
0x1ce0   :  { %v7535_v48 = vadd.f32 %v4289_v11, %v6904_v14  ;;  %v5918_v19 = vpop.f32.mrb[135].mxu1  ;;  %v4312_v21 = vsel %vm235_vm6, %v4296_v4, -inf }
0x1ce1   :  { %4313 = vmax.xlane.f32.xlu1 %v4312_v21 }
0x1ce2   :  { %v4315_v13 = vsel %vm235_vm6, %v7535_v48, -inf }
0x1ce3   :  { %v4232_v23 = vpop.f32.mrb[124].mxu0  ;;  %4316 = vmax.xlane.f32.xlu0 %v4315_v13 }
0x1ce4   :  { %v4290_v26 = vmul.f32 0.35355338, %v4232_v23  ;;  %v5923_v3 = vpop.f32.mrb[125].mxu0 }
0x1ce5   :  { %v4235_v53 = vpop.f32.mrb[126].mxu0  ;;  %v4278_v31 = vpop.f32.mrb[136].mxu1  ;;  %v5297_v3 = vcombine.low %v7489_v12, %v7489_v12 }
0x1ce6   :  { %v4298_v52 = vadd.f32 %v4290_v26, %v6901_v6  ;;  %v4291_v24 = vmul.f32 0.35355338, %v4278_v31  ;;  %v5924_v35 = vpop.f32.mrb[127].mxu0  ;;  %v5929_v51 = vpop.f32.mrb[137].mxu1  ;;  %v5291_v6 = vcombine.low %v7468_v10, %v7468_v10  ;;  %v5295_v26 = vcombine.low %v7475_v30, %v7475_v30 }
0x1ce7   :  { %v4281_v28 = vpop.f32.mrb[138].mxu1 }
0x1ce8   :  { %v7542_v15 = vadd.f32 %v4291_v24, %v6904_v14  ;;  %v5930_v34 = vpop.f32.mrb[139].mxu1  ;;  %v4318_v42 = vsel %vm235_vm6, %v4298_v52, -inf }
0x1ce9   :  { %4319 = vmax.xlane.f32.xlu1 %v4318_v42 }
0x1cea   :  { %v4321_v43 = vsel %vm235_vm6, %v7542_v15, -inf }
0x1ceb   :  { %4322 = vmax.xlane.f32.xlu0 %v4321_v43 }
0x1cf3   :  { %v4302_v16 = vpop.xlane.xlu1 %4301 }
0x1cf4   :  { %v4324_v63 = vsub.f32 %v7514_v50, %v4302_v16 }
0x1cf5   :  { %v4305_v14 = vpop.xlane.xlu0 %4304 }
0x1cf6   :  { %v4325_v47 = vsub.f32 %v7517_v25, %v4305_v14  ;;  %v4332_v61 = vmul.f32 1.442695, %v4324_v63  ;;  %v5293_v25 = vcombine.low %v7473_v1, %v7473_v1  ;;  %v5299_v63 = vcombine.low %v7494_v20, %v7494_v20 }
0x1cf8   :  { %v4334_v33 = vmul.f32 1.442695, %v4325_v47 }
0x1cfa   :  { %4494 = vrot.lane.b32.xlu1 %v5289_v41, %s6391_s0  ;;  %6246 = vpow2.f32 %v4334_v33 }
0x1cfb   :  { %6248 = vpow2.f32 %v4332_v61 }
0x1cfe   :  { %4544 = vrot.lane.b32.xlu1 %v5291_v6, %s6391_s0 }
0x1d01   :  { %4444 = vrot.lane.b32.xlu0 %v7435_v27, %s6391_s0 }
0x1d04   :  { %v7557_v38 = vpop.eup %6246 }
0x1d05   :  { %v7559_v22 = vpop.eup %6248  ;;  %v4351_v10 = vsel %vm235_vm6, %v7557_v38, 0.0 }
0x1d06   :  { %v4348_v27 = vsel %vm235_vm6, %v7559_v22, 0.0 }
0x1d20   :  { %4352 = vadd.xlane.f32.xlu0 %v4351_v10 }
0x1d22   :  { %4349 = vadd.xlane.f32.xlu1 %v4348_v27 }
0x1d33   :  { %4594 = vrot.lane.b32.xlu1 %v5293_v25, %s6391_s0 }
0x1d66   :  { %v4308_v50 = vpop.xlane.xlu0 %4307 }
0x1d67   :  { %v4326_v39 = vsub.f32 %v7524_v18, %v4308_v50 }
0x1d69   :  { %v4336_v8 = vmul.f32 1.442695, %v4326_v39 }
0x1d6a   :  { %v4311_v2 = vpop.xlane.xlu0 %4310 }
0x1d6b   :  { %6250 = vpow2.f32 %v4336_v8  ;;  %v4327_v60 = vsub.f32 %v7527_v7, %v4311_v2 }
0x1d6d   :  { %v4338_v56 = vmul.f32 1.442695, %v4327_v60 }
0x1d6e   :  { %v4314_v40 = vpop.xlane.xlu1 %4313 }
0x1d6f   :  { %6252 = vpow2.f32 %v4338_v56  ;;  %v4328_v49 = vsub.f32 %v4296_v4, %v4314_v40 }
0x1d70   :  { %v4317_v36 = vpop.xlane.xlu0 %4316 }
0x1d71   :  { %v4340_v37 = vmul.f32 1.442695, %v4328_v49  ;;  %v4329_v53 = vsub.f32 %v7535_v48, %v4317_v36 }
0x1d73   :  { %6254 = vpow2.f32 %v4340_v37  ;;  %v4342_v31 = vmul.f32 1.442695, %v4329_v53 }
0x1d75   :  { %v7570_v29 = vpop.eup %6250 }
0x1d76   :  { %v4320_v1 = vpop.xlane.xlu1 %4319  ;;  %v4354_v45 = vsel %vm235_vm6, %v7570_v29, 0.0 }
0x1d77   :  { %v4330_v11 = vsub.f32 %v4298_v52, %v4320_v1  ;;  %4355 = vadd.xlane.f32.xlu1 %v4354_v45 }
0x1d78   :  { %v4323_v18 = vpop.xlane.xlu0 %4322 }
0x1d79   :  { %v7574_v55 = vpop.eup %6252  ;;  %v4344_v59 = vmul.f32 1.442695, %v4330_v11  ;;  %v4331_v52 = vsub.f32 %v7542_v15, %v4323_v18 }
0x1d7a   :  { %v4357_v7 = vsel %vm235_vm6, %v7574_v55, 0.0  ;;  %v4495_v35 = vpop.permute.xlu1 %4494 }
0x1d7b   :  { %6256 = vpow2.f32 %v4344_v59  ;;  %4358 = vadd.xlane.f32.xlu0 %v4357_v7  ;;  %v4346_v24 = vmul.f32 1.442695, %v4331_v52  ;;  %v4500_v47 = vsel %vm747_vm8, %v4495_v35, 0 }
0x1d7c   :  { %v4445_v4 = vpop.permute.xlu0 %4444  ;;  %6258 = vpow2.f32 %v4342_v31 }
0x1d7d   :  { %v7578_v57 = vpop.eup %6254  ;;  %v4450_v19 = vsel %vm747_vm8, %v4445_v4, 0  ;;  %6260 = vpow2.f32 %v4346_v24 }
0x1d7e   :  { %5938 = vmatpush3.bf16.msra.mxu1 %v4450_v19  ;;  %v4360_v21 = vsel %vm235_vm6, %v7578_v57, 0.0  ;;  %v4545_v30 = vpop.permute.xlu1 %4544 }
0x1d7f   :  { %4361 = vadd.xlane.f32.xlu1 %v4360_v21  ;;  %5949 = vmatprep.subr.bf16.mxu1 %v6386_v17  ;;  %v4550_v14 = vsel %vm747_vm8, %v4545_v30, 0 }
0x1d85   :  { %v7584_v13 = vpop.eup %6256 }
0x1d86   :  { %v4366_v23 = vsel %vm235_vm6, %v7584_v13, 0.0  ;;  %v7598_v51 = vpop.eup %6258 }
0x1d87   :  { %4367 = vadd.xlane.f32.xlu1 %v4366_v23  ;;  %v4363_v34 = vsel %vm235_vm6, %v7598_v51, 0.0  ;;  %v7602_v48 = vpop.eup %6260 }
0x1d91   :  { %4644 = vrot.lane.b32.xlu0 %v5295_v26, %s6391_s0 }
0x1d98   :  { %4694 = vrot.lane.b32.xlu1 %v5297_v3, %s6391_s0 }
0x1d9c   :  { %4823 = vrot.lane.b32.xlu1 %v7403_v5, %s6393_s23  ;;  %v4369_v5 = vsel %vm235_vm6, %v7602_v48, 0.0 }
0x1dad   :  { %v4353_v28 = vpop.xlane.xlu0 %4352 }
0x1dae   :  { %6262 = vrcp.f32 %v4353_v28 }
0x1daf   :  { %v4350_v12 = vpop.xlane.xlu1 %4349 }
0x1db0   :  { %6264 = vrcp.f32 %v4350_v12  ;;  %4364 = vadd.xlane.f32.xlu0 %v4363_v34 }
0x1db3   :  { %v4595_v33 = vpop.permute.xlu1 %4594 }
0x1db4   :  { %4370 = vadd.xlane.f32.xlu0 %v4369_v5  ;;  %v4600_v39 = vsel %vm747_vm8, %v4595_v33, 0 }
0x1db8   :  { %v6263_v15 = vpop.eup %6262 }
0x1db9   :  { %v4381_v42 = vmul.f32 %v6263_v15, %v7557_v38 }
0x1dba   :  { %v6265_v43 = vpop.eup %6264 }
0x1dbb   :  { %v4380_v41 = vmul.f32 %v6265_v43, %v7559_v22  ;;  %v4389_v6 = vpack.c.bf16 %v4381_v42, %v4381_v42 }
0x1dbd   :  { %5940 = vmatmul.mubr.msk.bf16.vlgmr.msra.gmra.mrb[140].mxu1 %vm235_vm6, %v4389_v6  ;;  %v4388_v16 = vpack.c.bf16 %v4380_v41, %v4380_v41 }
0x1dbe   :  { %5950 = vmatpush3.bf16.msra.mxu1 %v4550_v14  ;;  %5951 = vmatprep.mubr.msk.bf16.mxu1 %vm6387_vm1, %v6386_v17 }
0x1dbf   :  { %5934 = vmatmul.mubr.msk.bf16.vlgmr.msra.gmra.mrb[128].mxu0 %vm235_vm6, %v4388_v16  ;;  %5961 = vmatprep.subr.bf16.mxu1 %v6386_v17 }
0x1dc0   :  { %5944 = vmatpush3.bf16.msra.mxu0 %v4500_v47  ;;  %5945 = vmatprep.mubr.msk.bf16.mxu0 %vm6387_vm1, %v6386_v17 }
0x1dc1   :  { %5955 = vmatprep.subr.bf16.mxu0 %v6386_v17 }
0x1dca   :  { %4744 = vrot.lane.b32.xlu0 %v5299_v63, %s6391_s0 }
0x1e04   :  { %v4356_v61 = vpop.xlane.xlu1 %4355 }
0x1e05   :  { %6266 = vrcp.f32 %v4356_v61 }
0x1e08   :  { %v4359_v38 = vpop.xlane.xlu0 %4358 }
0x1e09   :  { %6268 = vrcp.f32 %v4359_v38 }
0x1e0c   :  { %v4362_v22 = vpop.xlane.xlu1 %4361  ;;  %v4645_v2 = vpop.permute.xlu0 %4644 }
0x1e0d   :  { %6270 = vrcp.f32 %v4362_v22  ;;  %v4650_v49 = vsel %vm747_vm8, %v4645_v2, 0 }
0x1e0f   :  { %v6267_v10 = vpop.eup %6266 }
0x1e10   :  { %v4382_v27 = vmul.f32 %v6267_v10, %v7570_v29 }
0x1e12   :  { %v4390_v25 = vpack.c.bf16 %v4382_v27, %v4382_v27 }
0x1e13   :  { %v6269_v50 = vpop.eup %6268 }
0x1e14   :  { %v4383_v8 = vmul.f32 %v6269_v50, %v7574_v55  ;;  %5946 = vmatmul.mubr.msk.bf16.vlgmr.msra.gmra.mrb[132].mxu0 %vm235_vm6, %v4390_v25  ;;  %v4368_v20 = vpop.xlane.xlu1 %4367 }
0x1e15   :  { %5956 = vmatpush3.bf16.msra.mxu0 %v4600_v39  ;;  %6272 = vrcp.f32 %v4368_v20  ;;  %5957 = vmatprep.mubr.msk.bf16.mxu0 %vm6387_vm1, %v6386_v17 }
0x1e16   :  { %v4391_v60 = vpack.c.bf16 %v4383_v8, %v4383_v8  ;;  %5967 = vmatprep.subr.bf16.mxu0 %v6386_v17 }
0x1e17   :  { %v6271_v56 = vpop.eup %6270 }
0x1e18   :  { %v4384_v40 = vmul.f32 %v6271_v56, %v7578_v57  ;;  %5952 = vmatmul.mubr.msk.bf16.vlgmr.msra.gmra.mrb[144].mxu1 %vm235_vm6, %v4391_v60  ;;  %v4695_v37 = vpop.permute.xlu1 %4694 }
0x1e19   :  { %5962 = vmatpush3.bf16.msra.mxu1 %v4650_v49  ;;  %5963 = vmatprep.mubr.msk.bf16.mxu1 %vm6387_vm1, %v6386_v17  ;;  %v4700_v29 = vsel %vm747_vm8, %v4695_v37, 0 }
0x1e1a   :  { %v4392_v36 = vpack.c.bf16 %v4384_v40, %v4384_v40  ;;  %5973 = vmatprep.subr.bf16.mxu1 %v6386_v17 }
0x1e1c   :  { %5958 = vmatmul.mubr.msk.bf16.vlgmr.msra.gmra.mrb[136].mxu0 %vm235_vm6, %v4392_v36 }
0x1e1d   :  { %5968 = vmatpush3.bf16.msra.mxu0 %v4700_v29  ;;  %5969 = vmatprep.mubr.msk.bf16.mxu0 %vm6387_vm1, %v6386_v17 }
0x1e1e   :  { %5979 = vmatprep.subr.bf16.mxu0 %v6386_v17 }
0x1e1f   :  { %v6273_v1 = vpop.eup %6272 }
0x1e20   :  { %v4386_v45 = vmul.f32 %v6273_v1, %v7584_v13 }
0x1e22   :  { %v4394_v11 = vpack.c.bf16 %v4386_v45, %v4386_v45 }
0x1e24   :  { %5970 = vmatmul.mubr.msk.bf16.vlgmr.msra.gmra.mrb[140].mxu0 %vm235_vm6, %v4394_v11 }
0x1e25   :  { %5983 = vmatprep.mubr.msk.bf16.mxu0 %vm6387_vm1, %v6386_v17 }
0x1e3d   :  { %v4365_v18 = vpop.xlane.xlu0 %4364 }
0x1e3e   :  { %6274 = vrcp.f32 %v4365_v18 }
0x1e41   :  { %v4371_v55 = vpop.xlane.xlu0 %4370 }
0x1e42   :  { %6276 = vrcp.f32 %v4371_v55 }
0x1e45   :  { %v4745_v4 = vpop.permute.xlu0 %4744 }
0x1e46   :  { %v4750_v21 = vsel %vm747_vm8, %v4745_v4, 0 }
0x1e48   :  { %v6275_v59 = vpop.eup %6274 }
0x1e49   :  { %v4385_v7 = vmul.f32 %v6275_v59, %v7598_v51  ;;  %v4824_v51 = vpop.permute.xlu1 %4823 }
0x1e4a   :  { %5980 = vmatpush3.bf16.msra.mxu0 %v4824_v51 }
0x1e4b   :  { %v4393_v57 = vpack.c.bf16 %v4385_v7, %v4385_v7  ;;  %5981 = vmatprep.subr.bf16.mxu0 %v6386_v17 }
0x1e4c   :  { %v6277_v19 = vpop.eup %6276 }
0x1e4d   :  { %5964 = vmatmul.mubr.msk.bf16.vlgmr.msra.gmra.mrb[148].mxu1 %vm235_vm6, %v4393_v57  ;;  %v4387_v13 = vmul.f32 %v6277_v19, %v7602_v48 }
0x1e4e   :  { %5974 = vmatpush3.bf16.msra.mxu1 %v4750_v21  ;;  %5975 = vmatprep.mubr.msk.bf16.mxu1 %vm6387_vm1, %v6386_v17 }
0x1e4f   :  { %5987 = vmatprep.subr.bf16.mxu1 %v6386_v17  ;;  %v4395_v23 = vpack.c.bf16 %v4387_v13, %v4387_v13 }
0x1e55   :  { %5976 = vmatmul.mubr.msk.bf16.vlgmr.msra.gmra.mrb[152].mxu1 %vm235_vm6, %v4395_v23 }
0x1e56   :  { %5991 = vmatprep.mubr.msk.bf16.mxu1 %vm6387_vm1, %v6386_v17 }
0x1e90   :  { %v4486_v26 = vpop.f32.mrb[140].mxu1 }
0x1e91   :  { %v5941_v3 = vpop.f32.mrb[141].mxu1 }
0x1e92   :  { %v4438_v53 = vpop.f32.mrb[128].mxu0  ;;  %v4489_v31 = vpop.f32.mrb[142].mxu1 }
0x1e93   :  { %v5935_v52 = vpop.f32.mrb[129].mxu0  ;;  %v5942_v24 = vpop.f32.mrb[143].mxu1 }
0x1e94   :  { %v4441_v35 = vpop.f32.mrb[130].mxu0 }
0x1e95   :  { %v5936_v30 = vpop.f32.mrb[131].mxu0 }
0x1ee7   :  { %v4536_v28 = vpop.f32.mrb[132].mxu0 }
0x1ee8   :  { %v5947_v12 = vpop.f32.mrb[133].mxu0 }
0x1ee9   :  { %v4539_v34 = vpop.f32.mrb[134].mxu0 }
0x1eea   :  { %v5948_v48 = vpop.f32.mrb[135].mxu0 }
0x1eeb   :  { %v4586_v5 = vpop.f32.mrb[144].mxu1 }
0x1eec   :  { %v6070_v15 = vpack.i.bf16 %v4586_v5, %v4536_v28  ;;  %v5953_v42 = vpop.f32.mrb[145].mxu1 }
0x1eed   :  { %v4589_v43 = vpop.f32.mrb[146].mxu1 }
0x1eee   :  { %6071 = vrot.lane.b32.xlu0 %v6070_v15, %s6394_s24  ;;  %v5954_v41 = vpop.f32.mrb[147].mxu1 }
0x1eef   :  { %v4636_v6 = vpop.f32.mrb[136].mxu0  ;;  %v6104_v41 = vld [vmem:[%s7743_s3 + $0x38] ss:$12 sps:$4 sm:$0xff]  }
0x1ef0   :  { %v5959_v14 = vpop.f32.mrb[137].mxu0  ;;  %5988 = vmatpush3.bf16.msra.mxu1 %v6104_v41 }
0x1ef1   :  { %v4639_v16 = vpop.f32.mrb[138].mxu0  ;;  %5989 = vmatprep.subr.bf16.mxu1 %v6386_v17  ;;  %v6106_v14 = vld [vmem:[%s7744_s4 + $0x20] sm:$0xff]  }
0x1ef2   :  { %v5960_v47 = vpop.f32.mrb[139].mxu0  ;;  %v6107_v16 = vld [vmem:[%s7744_s4 + $0x28] sm:$0xff]  }
0x1ef7   :  { %v4736_v63 = vpop.f32.mrb[140].mxu0 }
0x1ef8   :  { %v5971_v33 = vpop.f32.mrb[141].mxu0 }
0x1ef9   :  { %v4739_v61 = vpop.f32.mrb[142].mxu0 }
0x1efa   :  { %v5972_v38 = vpop.f32.mrb[143].mxu0 }
0x1f20   :  { %v4686_v22 = vpop.f32.mrb[148].mxu1 }
0x1f21   :  { %v6075_v10 = vpack.i.bf16 %v4686_v22, %v4636_v6  ;;  %v5965_v27 = vpop.f32.mrb[149].mxu1  ;;  %v6105_v6 = vld [vmem:[%s7743_s3 + $0x50] ss:$12 sps:$4 sm:$0xff]  }
0x1f22   :  { %v4689_v25 = vpop.f32.mrb[150].mxu1  ;;  %5990 = vmatpush3.bf16.msra.mxu1 %v6105_v6 }
0x1f23   :  { %6076 = vrot.lane.b32.xlu1 %v6075_v10, %s6395_s25  ;;  %v5966_v50 = vpop.f32.mrb[151].mxu1 }
0x1f27   :  { %4825 = vrot.lane.b32.xlu1 %v7412_v58, %s6393_s23 }
0x1f28   :  { %v4786_v39 = vpop.f32.mrb[152].mxu1 }
0x1f29   :  { %v6080_v8 = vpack.i.bf16 %v4786_v39, %v4736_v63  ;;  %v5977_v20 = vpop.f32.mrb[153].mxu1 }
0x1f2a   :  { %v4789_v2 = vpop.f32.mrb[154].mxu1 }
0x1f2b   :  { %6081 = vrot.lane.b32.xlu0 %v6080_v8, %s6396_s26  ;;  %v5978_v60 = vpop.f32.mrb[155].mxu1 }
0x1f60   :  { %v6072_v40 = vpop.permute.xlu0 %6071 }
0x1f61   :  { %v6074_v37 = vunpack.i.h.bf16 %v6072_v40  ;;  %v6073_v36 = vunpack.i.l.bf16 %v6072_v40  ;;  %v6296_v40 = vld [vmem:[%s7745_s5 + $0x8] sm:$0xff] }
0x1f62   :  { %v4936_v32 = vrot.slane %v6296_v40, %v6895_v9 }
0x1f63   :  { %v4817_v58 = vsel %vm235_vm6, %v4486_v26, %v6074_v37  ;;  %v4816_v11 = vsel %vm235_vm6, %v4438_v53, %v6073_v36 }
0x1f95   :  { %v6077_v56 = vpop.permute.xlu1 %6076 }
0x1f96   :  { %v6079_v29 = vunpack.i.h.bf16 %v6077_v56  ;;  %v6078_v1 = vunpack.i.l.bf16 %v6077_v56 }
0x1f98   :  { %v4819_v59 = vsel %vm1153_vm9, %v4817_v58, %v6079_v29  ;;  %v4818_v7 = vsel %vm1153_vm9, %v4816_v11, %v6078_v1 }
0x1f99   :  { %v4826_v49 = vpop.permute.xlu1 %4825 }
0x1f9a   :  { %5982 = vmatpush3.bf16.msra.mxu0 %v4826_v49  ;;  %v4916_v49 = vrot.slane %v6296_v40, %v2425_v62  ;;  %v6109_v62 = vld [vmem:[%s7744_s4 + $0x38] sm:$0xff]  }
0x1f9b   :  { %5995 = vmatprep.subr.bf16.mxu0 %v6386_v17 }
0x1f9d   :  { %v6082_v45 = vpop.permute.xlu0 %6081 }
0x1f9e   :  { %v6084_v18 = vunpack.i.h.bf16 %v6082_v45  ;;  %v6083_v55 = vunpack.i.l.bf16 %v6082_v45  ;;  %v4928_v45 = vrot.slane %v6296_v40, %v2437_v0 }
0x1fa0   :  { %v4821_v4 = vsel %vm1156_vm10, %v4819_v59, %v6084_v18  ;;  %v4820_v57 = vsel %vm1156_vm10, %v4818_v7, %v6083_v55  ;;  %v6108_v7 = vld [vmem:[%s7744_s4 + $0x30] sm:$0xff]  }
0x1fa1   :  { %v4822_v19 = vpack.c.bf16 %v4821_v4, %v4820_v57 }
0x1fa3   :  { %5984 = vmatmul.mubr.msk.bf16.vlgmr.msra.gmra.mrb[144].mxu0 %vm97_vm0, %v4822_v19 }
0x1fa4   :  { %6003 = vmatprep.mubr.msk.bf16.mxu0 %vm6387_vm1, %v6386_v17  ;;  %5996 = vmatpush3.bf16.msra.mxu0 %v6106_v14 }
0x1fa5   :  { %5997 = vmatprep.subr.bf16.mxu0 %v6386_v17 }
0x1fa8   :  { %5998 = vmatpush3.bf16.msra.mxu0 %v6107_v16 }
0x1fa9   :  { %5999 = vmatprep.subr.bf16.mxu0 %v6386_v17 }
0x1fac   :  { %6000 = vmatpush3.bf16.msra.mxu0 %v6108_v7 }
0x1fad   :  { %6001 = vmatprep.subr.bf16.mxu0 %v6386_v17  ;;  %v5004_v17 = vrot.slane %v6296_v40, %v7111_v46 }
0x1fb0   :  { %6002 = vmatpush3.bf16.msra.mxu0 %v6109_v62 }
0x2076   :  { %v4866_v21 = vpop.f32.mrb[144].mxu0 }
0x2077   :  { %v4873_v13 = vpack.c.bf16 %v4866_v21, %v4866_v21  ;;  %v5985_v23 = vpop.f32.mrb[145].mxu0 }
0x2078   :  { %v4869_v26 = vpop.f32.mrb[146].mxu0 }
0x2079   :  { %v7670_v3 = vadd.bf16 %v4873_v13, %v7391_v44  ;;  %v4874_v53 = vpack.c.bf16 %v4869_v26, %v4869_v26  ;;  %v5986_v31 = vpop.f32.mrb[147].mxu0 }
0x207b   :  { %v7673_v52 = vadd.bf16 %v4874_v53, %v7394_v54  ;;  %v4877_v24 = vunpack.c.l.bf16 %v7670_v3 }
0x207d   :  { %v4879_v35 = vsel %vm97_vm0, %v4877_v24, 0.0  ;;  %v4878_v30 = vunpack.c.l.bf16 %v7673_v52 }
0x207e   :  { %4880 = vadd.xlane.f32.xlu0 %v4879_v35 }
0x207f   :  { %v4882_v51 = vsel %vm97_vm0, %v4878_v30, 0.0 }
0x2080   :  { %4883 = vadd.xlane.f32.xlu1 %v4882_v51 }
0x210b   :  { %v4881_v28 = vpop.xlane.xlu0 %4880 }
0x210c   :  { %v4885_v12 = vmul.f32 0.03125, %v4881_v28 }
0x210d   :  { %v4884_v34 = vpop.xlane.xlu1 %4883 }
0x210e   :  { %v4887_v44 = vsub.f32 %v4877_v24, %v4885_v12  ;;  %v4886_v48 = vmul.f32 0.03125, %v4884_v34 }
0x2110   :  { %v4888_v5 = vsub.f32 %v4878_v30, %v4886_v48  ;;  %v4889_v15 = vmul.f32 %v4887_v44, %v4887_v44  ;;  %v4917_v36 = vmul.f32 %v4916_v49, %v4887_v44 }
0x2112   :  { %v4891_v54 = vsel %vm97_vm0, %v4889_v15, 0.0  ;;  %v4890_v42 = vmul.f32 %v4888_v5, %v4888_v5  ;;  %v4918_v29 = vmul.f32 %v4916_v49, %v4888_v5 }
0x2113   :  { %4892 = vadd.xlane.f32.xlu0 %v4891_v54 }
0x2114   :  { %v4894_v43 = vsel %vm97_vm0, %v4890_v42, 0.0 }
0x2117   :  { %4895 = vadd.xlane.f32.xlu0 %v4894_v43 }
0x21a0   :  { %v4893_v47 = vpop.xlane.xlu0 %4892 }
0x21a1   :  { %v4897_v63 = vmul.f32 0.032258064, %v4893_v47 }
0x21a3   :  { %6278 = vrsqrt.f32 %v4897_v63  ;;  %vm4901_vm1 = vcmp.eq.f32.partialorder %v4897_v63, inf  ;;  %v4904_v10 = vand.u32 2147483648, %v4897_v63  ;;  %vm4903_vm6 = vcmp.eq.f32.partialorder %v4897_v63, 0.0 }
0x21a4   :  { %v4896_v33 = vpop.xlane.xlu0 %4895 }
0x21a5   :  { %v4898_v61 = vmul.f32 0.032258064, %v4896_v33 }
0x21a7   :  { %6280 = vrsqrt.f32 %v4898_v61  ;;  %vm4908_vm8 = vcmp.eq.f32.partialorder %v4898_v61, inf  ;;  %v4911_v20 = vand.u32 2147483648, %v4898_v61  ;;  %vm4910_vm9 = vcmp.eq.f32.partialorder %v4898_v61, 0.0 }
0x21ad   :  { %v6279_v38 = vpop.eup %6278 }
0x21ae   :  { %v4900_v22 = vmul.f32 %v6279_v38, %v4897_v63 }
0x21b0   :  { %v4902_v27 = vsel %vm4901_vm1, %v4897_v63, %v4900_v22 }
0x21b1   :  { %v6281_v25 = vpop.eup %6280  ;;  %v4905_v50 = vsel %vm4903_vm6, %v4904_v10, %v4902_v27 }
0x21b2   :  { %v4919_v39 = vadd.f32 1e-06, %v4905_v50  ;;  %v4907_v8 = vmul.f32 %v6281_v25, %v4898_v61 }
0x21b4   :  { %6282 = vrcp.f32 %v4919_v39  ;;  %v4909_v2 = vsel %vm4908_vm8, %v4898_v61, %v4907_v8 }
0x21b5   :  { %v4912_v60 = vsel %vm4910_vm9, %v4911_v20, %v4909_v2 }
0x21b6   :  { %v4920_v56 = vadd.f32 1e-06, %v4912_v60 }
0x21b8   :  { %6284 = vrcp.f32 %v4920_v56 }
0x21be   :  { %v6283_v37 = vpop.eup %6282 }
0x21bf   :  { %v4923_v1 = vmul.f32 %v6283_v37, %v4917_v36  ;;  %v5077_v36 = vld [vmem:[%s7746_s6] sm:$0x3]  ;;  %s6351_s6 = scalar_lea.vmem %s5140_s27, 256 }
0x21c0   :  { %p6352_p5 = scmp.ne.s32.totalorder %s5140_s27, %s6351_s6  ;;  %p6357_p7 = scmp.lt.s32.totalorder %s6351_s6, %s6351_s6 }
0x21c1   :  { %v4929_v18 = vadd.f32 %v4928_v45, %v4923_v1  ;;  %v5129_v1 = vrot.slane %v5077_v36, %v7111_v46 }
0x21c2   :  { %v6285_v58 = vpop.eup %6284  ;;  %p6358_p8 = por %p6357_p7, %p6356_p6 }
0x21c3   :  { %v4924_v11 = vmul.f32 %v6285_v58, %v4918_v29  ;;  %v5117_v29 = vrot.slane %v5077_v36, %v6895_v9 }
0x21c4   :  { %p6359_p9 = pnand %p6358_p8, %p6352_p5 }
0x21c5   :  { %v4930_v55 = vadd.f32 %v4928_v45, %v4924_v11 }
0x21c7   :  { %v5328_v59 = vpack.c.bf16 %v4930_v55, %v4929_v18 }
0x21c9   :  { %5992 = vmatmul.mubr.msk.bf16.vlgmr.msra.gmra.mrb[156].mxu1 %vm97_vm0, %v5328_v59 }
0x229c   :  { %v4991_v0 = vpop.f32.mrb[156].mxu1 }
0x229d   :  { %v4992_v4 = vadd.f32 %v4991_v0, %v4936_v32  ;;  %v5993_v57 = vpop.f32.mrb[157].mxu1 }
0x229e   :  { %v4994_v19 = vpop.f32.mrb[158].mxu1 }
0x229f   :  { %v4995_v21 = vadd.f32 %v4994_v19, %v4936_v32  ;;  %v5994_v13 = vpop.f32.mrb[159].mxu1  ;;  %v4998_v23 = vmax.f32 %v4992_v4, 0.0 }
0x22a1   :  { %v4999_v26 = vmax.f32 %v4995_v21, 0.0 }
0x22a3   :  { %v5000_v53 = vpack.c.bf16 %v4999_v26, %v4998_v23 }
0x22a5   :  { %6004 = vmatmul.mubr.msk.bf16.vlgmr.msra.gmra.mrb[148].mxu0 %vm2539_vm11, %v5000_v53 }
0x2378   :  { %v5066_v31 = vpop.f32.mrb[148].mxu0 }
0x2379   :  { %v5067_v24 = vadd.f32 %v5066_v31, %v5004_v17  ;;  %v6005_v35 = vpop.f32.mrb[149].mxu0 }
0x237a   :  { %v5069_v30 = vpop.f32.mrb[150].mxu0 }
0x237b   :  { %v5073_v51 = vpack.c.bf16 %v5067_v24, %v5067_v24  ;;  %v5070_v28 = vadd.f32 %v5069_v30, %v5004_v17  ;;  %v6006_v12 = vpop.f32.mrb[151].mxu0 }
0x237d   :  { %v5075_v34 = vadd.bf16 %v5073_v51, %v7670_v3  ;;  %v5074_v44 = vpack.c.bf16 %v5070_v28, %v5070_v28 }
0x237f   :  { %v5078_v48 = vunpack.c.l.bf16 %v5075_v34  ;;  %v5076_v5 = vadd.bf16 %v5074_v44, %v7673_v52 }
0x2381   :  { %v5079_v15 = vunpack.c.l.bf16 %v5076_v5  ;;  %v5080_v54 = vsel %vm97_vm0, %v5078_v48, 0.0 }
0x2382   :  { %5081 = vadd.xlane.f32.xlu0 %v5080_v54 }
0x2383   :  { %v5083_v42 = vsel %vm97_vm0, %v5079_v15, 0.0 }
0x2384   :  { %5084 = vadd.xlane.f32.xlu1 %v5083_v42 }
0x240f   :  { %v5082_v43 = vpop.xlane.xlu0 %5081 }
0x2410   :  { %v5086_v41 = vmul.f32 0.03125, %v5082_v43 }
0x2411   :  { %v5085_v6 = vpop.xlane.xlu1 %5084 }
0x2412   :  { %v5088_v14 = vsub.f32 %v5078_v48, %v5086_v41  ;;  %v5087_v16 = vmul.f32 0.03125, %v5085_v6 }
0x2414   :  { %v5089_v47 = vsub.f32 %v5079_v15, %v5087_v16  ;;  %v5090_v63 = vmul.f32 %v5088_v14, %v5088_v14  ;;  %v5118_v45 = vmul.f32 %v5117_v29, %v5088_v14 }
0x2416   :  { %v5092_v3 = vsel %vm97_vm0, %v5090_v63, 0.0  ;;  %v5091_v33 = vmul.f32 %v5089_v47, %v5089_v47  ;;  %v5119_v18 = vmul.f32 %v5117_v29, %v5089_v47 }
0x2417   :  { %5093 = vadd.xlane.f32.xlu0 %v5092_v3 }
0x2418   :  { %v5095_v52 = vsel %vm97_vm0, %v5091_v33, 0.0 }
0x2419   :  { %5096 = vadd.xlane.f32.xlu1 %v5095_v52 }
0x24a4   :  { %v5094_v61 = vpop.xlane.xlu0 %5093 }
0x24a5   :  { %v5098_v38 = vmul.f32 0.032258064, %v5094_v61 }
0x24a6   :  { %v5097_v22 = vpop.xlane.xlu1 %5096 }
0x24a7   :  { %6286 = vrsqrt.f32 %v5098_v38  ;;  %v5099_v10 = vmul.f32 0.032258064, %v5097_v22  ;;  %vm5102_vm10 = vcmp.eq.f32.partialorder %v5098_v38, inf  ;;  %v5105_v50 = vand.u32 2147483648, %v5098_v38 }
0x24a8   :  { %vm5104_vm7 = vcmp.eq.f32.partialorder %v5098_v38, 0.0 }
0x24a9   :  { %6288 = vrsqrt.f32 %v5099_v10  ;;  %vm5109_vm11 = vcmp.eq.f32.partialorder %v5099_v10, inf  ;;  %v5112_v56 = vand.u32 2147483648, %v5099_v10  ;;  %vm5111_vm12 = vcmp.eq.f32.partialorder %v5099_v10, 0.0 }
0x24b1   :  { %v6287_v27 = vpop.eup %6286 }
0x24b2   :  { %v5101_v25 = vmul.f32 %v6287_v27, %v5098_v38 }
0x24b3   :  { %v6289_v39 = vpop.eup %6288 }
0x24b4   :  { %v5103_v8 = vsel %vm5102_vm10, %v5098_v38, %v5101_v25  ;;  %v5108_v2 = vmul.f32 %v6289_v39, %v5099_v10 }
0x24b5   :  { %v5106_v20 = vsel %vm5104_vm7, %v5105_v50, %v5103_v8 }
0x24b6   :  { %v5120_v60 = vadd.f32 1e-06, %v5106_v20  ;;  %v5110_v40 = vsel %vm5109_vm11, %v5099_v10, %v5108_v2 }
0x24b7   :  { %v5113_v49 = vsel %vm5111_vm12, %v5112_v56, %v5110_v40 }
0x24b8   :  { %6290 = vrcp.f32 %v5120_v60  ;;  %v5121_v37 = vadd.f32 1e-06, %v5113_v49 }
0x24ba   :  { %6292 = vrcp.f32 %v5121_v37 }
0x24c2   :  { %v6291_v58 = vpop.eup %6290 }
0x24c3   :  { %v5124_v11 = vmul.f32 %v6291_v58, %v5118_v45 }
0x24c4   :  { %v6293_v55 = vpop.eup %6292 }
0x24c5   :  { %v5130_v59 = vadd.f32 %v5129_v1, %v5124_v11  ;;  %v5125_v7 = vmul.f32 %v6293_v55, %v5119_v18 }
0x24c7   :  { %5132 = vst.msk [vmem:[#allocation9] sm:$0xff] %vm97_vm0, %v5130_v59  ;;  %v5131_v62 = vadd.f32 %v5129_v1, %v5125_v7 }
0x24c9   :  { %5133 = vst.msk [vmem:[#allocation9 + $0x8] sm:$0xff] %vm97_vm0, %v5131_v62 }
0x24ca   :  { %6362 = shalt.err (!%p6359_p9)
}
0x24cb   :  { %s6363_s30 = scalar_lea.hbm %s7747_s7, 256 }
0x24cc   :  { %p6364_p10 = scmp.ne.s32.totalorder %s7747_s7, %s6363_s30  ;;  %p6367_p11 = scmp.lt.u32.totalorder %s6363_s30, %s7747_s7 }
0x24ce   :  { %p6369_p12 = pnand %p6367_p11, %p6364_p10 }
0x24d0   :  { %6372 = shalt.err (!%p6369_p12)
}
0x24d1   :  { %s6398_s1 = smov 128  }
0x24d2   :  { %5145 = dma.vmem_to_hbm [thread:$0]  %s5140_s27, 256, %s7747_s7, [#allocation6], %s6398_s1, %s6398_s1, %s6394_s24  }
0x24d3   :  { %6379 = dma.done.wait [#allocation6], 256  }
0x24d4   :  { %6380 = vsyncadd [#allocation6], 4294967040 }
0x24d5   :  { %5149 = vsyncpa [#allocation5], 1 }
0x24d6   :  { %5150 = vsyncpa [#allocation8], 1 }
0x24d7   :  { %5151 = vsyncpa [#allocation6], 1 }

// kernel: tpu_custom_call.1
= control target key start
LH: loop header
LB: loop body
LE: loop exit
PB: predicated region body
PF: predicated region fallthrough
CT: control target
= control target key end

     0   :  { %s7740_s0 = inlined_call_operand.hbm [shape: s32[2], index: 0, kind: input, shape index: {}]   ;;  %s7741_s1 = inlined_call_operand.hbm [shape: bf16[2,8,32], index: 1, kind: input, shape index: {}]   ;;  %s7742_s2 = inlined_call_operand.hbm [shape: bf16[2,8,32], index: 2, kind: input, shape index: {}]   ;;  %s7743_s3 = inlined_call_operand.vmem [shape: bf16[2,32,320], index: 3, kind: input, shape index: {}]   ;;  %s7744_s4 = inlined_call_operand.vmem [shape: bf16[2,64,32], index: 4, kind: input, shape index: {}]   ;;  %s7745_s5 = inlined_call_operand.vmem [shape: f32[2,8,64], index: 5, kind: input, shape index: {}]   ;;  %s7746_s6 = inlined_call_operand.vmem [shape: f32[2,32], index: 6, kind: input, shape index: {}]   ;;  %s7747_s7 = inlined_call_operand.hbm [shape: f32[2,8,32], index: 7, kind: output, shape index: {}]  }
   0x1   :  { %s6297_s26 = scalar_lea.hbm %s7740_s0, 16 }
   0x2   :  { %p6298_p0 = scmp.ne.s32.totalorder %s7740_s0, %s6297_s26  ;;  %p6301_p1 = scmp.lt.u32.totalorder %s6297_s26, %s7740_s0 }
   0x4   :  { %p6303_p2 = pnand %p6301_p1, %p6298_p0 }
   0x6   :  { %6306 = shalt.err (!%p6303_p2)  }
   0x7   :  { %s6381_s8 = smov [#allocation3]  }
   0x8   :  { %13 = dma.hbm_to_smem %s7740_s0, 16, %s6381_s8, [#allocation2] }
   0x9   :  { %6373 = dma.done.wait [#allocation2], 16 }
   0xa   :  { %6374 = vsyncadd [#allocation2], 4294967280 }
   0xb   :  { %15 = sfence }
   0xc   :  { %16 = vsyncpa [#allocation5], 0 }
   0xd   :  { %17 = vsyncpa [#allocation8], 0 }
   0xe   :  { %18 = vsyncpa [#allocation6], 0  ;;  %s6382_s11 = smov [#allocation4]   ;;  %s6307_s15 = scalar_lea.hbm %s7741_s1, 128 }
   0xf   :  { %s24_s12 = sshll.u32 %s6382_s11, 4  ;;  %p6308_p3 = scmp.ne.s32.totalorder %s7741_s1, %s6307_s15  ;;  %s25_s12 = int_to_ptr.vmem [resolvable:$true] %s24_s12 }
  0x10   :  { %p6311_p4 = scmp.lt.u32.totalorder %s6307_s15, %s7741_s1 }
  0x12   :  { %p6313_p5 = pnand %p6311_p4, %p6308_p3 }
  0x14   :  { %6316 = shalt.err (!%p6313_p5)
}
  0x15   :  { %s6317_s0 = scalar_lea.vmem %s25_s12, 128  ;;  %p6322_p7 = scmp.lt.s32.totalorder %s25_s12, %s25_s12 }
  0x16   :  { %p6318_p6 = scmp.ne.s32.totalorder %s25_s12, %s6317_s0  ;;  %p6323_p8 = scmp.lt.s32.totalorder %s6317_s0, %s6317_s0 }
  0x18   :  { %p6324_p9 = por %p6323_p8, %p6322_p7 }
  0x1a   :  { %p6325_p10 = pnand %p6324_p9, %p6318_p6 }
  0x1c   :  { %6328 = shalt.err (!%p6325_p10)
}
  0x1d   :  { %s6383_s20 = smov 64   ;;  %s6384_s21 = smov 4  }
  0x1e   :  { %30 = dma.hbm_to_vmem [thread:$0]  %s7741_s1, 128, %s25_s12, [#allocation5], %s6383_s20, %s6383_s20, %s6384_s21  }
  0x1f   :  { %s6385_s24 = smov [#allocation7]   ;;  %s6329_s28 = scalar_lea.hbm %s7742_s2, 128 }
  0x20   :  { %s36_s25 = sshll.u32 %s6385_s24, 4  ;;  %p6330_p11 = scmp.ne.s32.totalorder %s7742_s2, %s6329_s28  ;;  %s37_s25 = int_to_ptr.vmem [resolvable:$true] %s36_s25 }
  0x21   :  { %p6333_p12 = scmp.lt.u32.totalorder %s6329_s28, %s7742_s2 }
  0x23   :  { %p6335_p13 = pnand %p6333_p12, %p6330_p11 }
  0x25   :  { %6338 = shalt.err (!%p6335_p13)
}
  0x26   :  { %s6339_s10 = scalar_lea.vmem %s37_s25, 128  ;;  %p6344_p1 = scmp.lt.s32.totalorder %s37_s25, %s37_s25 }
  0x27   :  { %p6340_p0 = scmp.ne.s32.totalorder %s37_s25, %s6339_s10  ;;  %p6345_p2 = scmp.lt.s32.totalorder %s6339_s10, %s6339_s10 }
  0x29   :  { %p6346_p3 = por %p6345_p2, %p6344_p1 }
  0x2b   :  { %p6347_p4 = pnand %p6346_p3, %p6340_p0 }
  0x2d   :  { %6350 = shalt.err (!%p6347_p4)
}
  0x2e   :  { %42 = dma.hbm_to_vmem [thread:$0]  %s7742_s2, 128, %s37_s25, [#allocation8], %s6383_s20, %s6383_s20, %s6384_s21  }
  0x2f   :  { %6375 = dma.done.wait [#allocation5], 128  }
  0x30   :  { %6376 = vsyncadd [#allocation5], 4294967168 }
  0x31   :  { %6377 = dma.done.wait [#allocation8], 128  }
  0x32   :  { %6378 = vsyncadd [#allocation8], 4294967168  ;;  %v6479_v0 = vld [vmem:[#allocation4] sm:$0xf]  ;;  %vm97_vm0 = vcmask 261120   ;;  %v6386_v17 = vmov 0.0   ;;  %v62_v25 = vlaneseq }
  0x33   :  { %v6481_v1 = vld [vmem:[#allocation4 + $0x4] sm:$0xf]  ;;  %v95_v2 = vunpack.c.l.bf16 %v6479_v0  ;;  %v6492_v16 = vld [vmem:[%s7743_s3] ss:$12 sps:$4 sm:$0xff]   ;;  %5503 = vmatprep.subr.bf16.mxu1 %v6386_v17  ;;  %vm6387_vm1 = vmmov 0   ;;  %5517 = vmatprep.subr.bf16.mxu0 %v6386_v17  ;;  %s6388_s17 = smov 120  }
  0x34   :  { %v96_v3 = vunpack.c.l.bf16 %v6481_v1  ;;  %5507 = vmatprep.mubr.msk.bf16.mxu1 %vm6387_vm1, %v6386_v17  ;;  %5504 = vmatpush3.bf16.msra.mxu1 %v6492_v16  ;;  %v6501_v18 = vld [vmem:[%s7743_s3 + $0x18] ss:$12 sps:$4 sm:$0xff]   ;;  %v6510_v32 = vshrl.u32 %v62_v25, 7  ;;  %s6389_s18 = smov 104   ;;  %s6390_s19 = smov 112   ;;  %vm235_vm6 = vcmask 64512  }
  0x35   :  { %v98_v4 = vsel %vm97_vm0, %v95_v2, 0.0  ;;  %5505 = vmatprep.subr.bf16.mxu1 %v6386_v17  ;;  %5519 = vmatprep.mubr.msk.bf16.mxu0 %vm6387_vm1, %v6386_v17  ;;  %v6516_v38 = vld [vmem:[%s7745_s5] sm:$0xff]  ;;  %s6391_s0 = smov 96   ;;  %vm747_vm8 = vcmask 1043456   ;;  %s6393_s23 = smov 32   ;;  %vm1153_vm9 = vcmask 130048  }
  0x36   :  { %v101_v5 = vsel %vm97_vm0, %v96_v3, 0.0  ;;  %99 = vadd.xlane.f32.xlu0 %v98_v4  ;;  %v136_v37 = vsub.s32 2, %v6510_v32  ;;  %v148_v40 = vsub.s32 3, %v6510_v32  ;;  %s6394_s24 = smov 8   ;;  %s6395_s25 = smov 16   ;;  %vm1156_vm10 = vcmask 195584  }
  0x37   :  { %s6396_s26 = smov 24   ;;  %s69_s29 = sld [smem:[#allocation3]] }
  0x38   :  { %5506 = vmatpush3.bf16.msra.mxu1 %v6501_v18  ;;  %v137_v39 = vrot.slane %v6516_v38, %v136_v37  ;;  %v149_v45 = vrot.slane %v6516_v38, %v148_v40  ;;  %s5152_s30 = sld [smem:[#allocation3 + $0x1]]  ;;  %s6397_s22 = smov [#allocation9]  }
  0x39   :  { %5511 = vmatprep.subr.bf16.mxu1 %v6386_v17  ;;  %s5139_s27 = sshll.u32 %s6397_s22, 4  ;;  %s5140_s27 = int_to_ptr.vmem [resolvable:$true] %s5139_s27 }
  0x3a   :  { %102 = vadd.xlane.f32.xlu0 %v101_v5  ;;  %p6356_p6 = scmp.lt.s32.totalorder %s5140_s27, %s5140_s27 }
  0xc3   :  { %v100_v6 = vpop.xlane.xlu0 %99 }
  0xc4   :  { %v105_v7 = vmul.f32 0.03125, %v100_v6 }
  0xc6   :  { %v107_v8 = vsub.f32 %v95_v2, %v105_v7 }
  0xc7   :  { %v103_v9 = vpop.xlane.xlu0 %102 }
  0xc8   :  { %v106_v10 = vmul.f32 0.03125, %v103_v9  ;;  %v109_v11 = vmul.f32 %v107_v8, %v107_v8  ;;  %v138_v42 = vmul.f32 %v137_v39, %v107_v8 }
  0xca   :  { %v108_v12 = vsub.f32 %v96_v3, %v106_v10  ;;  %v111_v13 = vsel %vm97_vm0, %v109_v11, 0.0 }
  0xcb   :  { %112 = vadd.xlane.f32.xlu1 %v111_v13 }
  0xcc   :  { %v110_v14 = vmul.f32 %v108_v12, %v108_v12  ;;  %v139_v43 = vmul.f32 %v137_v39, %v108_v12 }
  0xce   :  { %v114_v15 = vsel %vm97_vm0, %v110_v14, 0.0 }
  0xcf   :  { %115 = vadd.xlane.f32.xlu1 %v114_v15 }
 0x158   :  { %v113_v19 = vpop.xlane.xlu1 %112 }
 0x159   :  { %v118_v20 = vmul.f32 0.032258064, %v113_v19 }
 0x15b   :  { %6110 = vrsqrt.f32 %v118_v20  ;;  %vm122_vm2 = vcmp.eq.f32.partialorder %v118_v20, inf  ;;  %v125_v26 = vand.u32 2147483648, %v118_v20  ;;  %vm124_vm3 = vcmp.eq.f32.partialorder %v118_v20, 0.0 }
 0x15c   :  { %v116_v21 = vpop.xlane.xlu1 %115 }
 0x15d   :  { %v119_v22 = vmul.f32 0.032258064, %v116_v21 }
 0x15f   :  { %6112 = vrsqrt.f32 %v119_v22  ;;  %vm129_vm4 = vcmp.eq.f32.partialorder %v119_v22, inf  ;;  %v132_v33 = vand.u32 2147483648, %v119_v22  ;;  %vm131_vm5 = vcmp.eq.f32.partialorder %v119_v22, 0.0 }
 0x165   :  { %v6111_v23 = vpop.eup %6110 }
 0x166   :  { %v121_v24 = vmul.f32 %v6111_v23, %v118_v20 }
 0x168   :  { %v123_v27 = vsel %vm122_vm2, %v118_v20, %v121_v24 }
 0x169   :  { %v6113_v28 = vpop.eup %6112  ;;  %v126_v29 = vsel %vm124_vm3, %v125_v26, %v123_v27  ;;  %v6615_v27 = vand.u32 127, %v62_v25 }
 0x16a   :  { %v140_v30 = vadd.f32 1e-06, %v126_v29  ;;  %v128_v31 = vmul.f32 %v6113_v28, %v119_v22  ;;  %v6392_v28 = vmov -1e+09  }
 0x16b   :  { %vm66_vm7 = vcmp.ge.s32.totalorder %v6510_v32, %v6615_v27 }
 0x16c   :  { %v130_v34 = vsel %vm129_vm4, %v119_v22, %v128_v31  ;;  %6114 = vrcp.f32 %v140_v30  ;;  %v6620_v29 = vsel %vm66_vm7, 0.0, %v6392_v28 }
 0x16d   :  { %v133_v35 = vsel %vm131_vm5, %v132_v33, %v130_v34 }
 0x16e   :  { %v141_v36 = vadd.f32 1e-06, %v133_v35 }
 0x170   :  { %6116 = vrcp.f32 %v141_v36 }
 0x176   :  { %v6115_v41 = vpop.eup %6114 }
 0x177   :  { %v144_v44 = vmul.f32 %v6115_v41, %v138_v42 }
 0x179   :  { %v150_v48 = vadd.f32 %v149_v45, %v144_v44 }
 0x17a   :  { %v6117_v46 = vpop.eup %6116 }
 0x17b   :  { %v145_v47 = vmul.f32 %v6117_v46, %v139_v43 }
 0x17d   :  { %v151_v49 = vadd.f32 %v149_v45, %v145_v47 }
 0x17f   :  { %v5311_v50 = vpack.c.bf16 %v151_v49, %v150_v48 }
 0x181   :  { %5508 = vmatmul.mubr.msk.bf16.vlgmr.msra.gmra.mrb[0].mxu1 %vm97_vm0, %v5311_v50 }
 0x182   :  { %5513 = vmatprep.mubr.msk.bf16.mxu1 %vm6387_vm1, %v6386_v17 }
 0x254   :  { %v208_v51 = vpop.f32.mrb[0].mxu1 }
 0x255   :  { %v6528_v52 = vpack.c.bf16 %v208_v51, %v208_v51  ;;  %v5509_v53 = vpop.f32.mrb[1].mxu1 }
 0x256   :  { %v211_v54 = vpop.f32.mrb[2].mxu1 }
 0x257   :  { %v6530_v55 = vpack.c.bf16 %v211_v54, %v211_v54  ;;  %221 = vrot.lane.b32.xlu0 %v6528_v52, %s6388_s17  ;;  %v5510_v56 = vpop.f32.mrb[3].mxu1 }
 0x259   :  { %223 = vrot.lane.b32.xlu1 %v6530_v55, %s6388_s17 }
 0x25b   :  { %229 = vrot.lane.b32.xlu0 %v6528_v52, %s6389_s18 }
 0x25d   :  { %225 = vrot.lane.b32.xlu1 %v6528_v52, %s6390_s19 }
 0x25f   :  { %233 = vrot.lane.b32.xlu0 %v6528_v52, %s6391_s0 }
 0x261   :  { %227 = vrot.lane.b32.xlu1 %v6530_v55, %s6390_s19 }
 0x265   :  { %231 = vrot.lane.b32.xlu1 %v6530_v55, %s6389_s18 }
 0x269   :  { %282 = vrot.lane.b32.xlu1 %v6530_v55, %s6391_s0 }
 0x2c9   :  { %v222_v57 = vpop.permute.xlu0 %221 }
 0x2ca   :  { %v6548_v58 = vcombine.low %v222_v57, %v222_v57 }
 0x2cb   :  { %v224_v59 = vpop.permute.xlu1 %223 }
 0x2cc   :  { %v6550_v60 = vcombine.low %v224_v59, %v224_v59  ;;  %332 = vrot.lane.b32.xlu0 %v6548_v58, %s6391_s0 }
 0x2cd   :  { %v230_v61 = vpop.permute.xlu0 %229 }
 0x2ce   :  { %382 = vrot.lane.b32.xlu1 %v6550_v60, %s6391_s0  ;;  %v6561_v5 = vcombine.low %v230_v61, %v230_v61 }
 0x2cf   :  { %v226_v62 = vpop.permute.xlu1 %225 }
 0x2d0   :  { %v6556_v63 = vcombine.low %v226_v62, %v226_v62 }
 0x2d1   :  { %v234_v2 = vpop.permute.xlu0 %233 }
 0x2d2   :  { %v240_v3 = vsel %vm235_vm6, %v234_v2, 0  ;;  %432 = vrot.lane.b32.xlu0 %v6556_v63, %s6391_s0 }
 0x2d3   :  { %5512 = vmatpush3.bf16.xpose.msra.mxu1 %v240_v3  ;;  %v228_v4 = vpop.permute.xlu1 %227 }
 0x2d4   :  { %v6563_v6 = vcombine.low %v228_v4, %v228_v4  ;;  %5523 = vmatprep.subr.bf16.mxu1 %v6386_v17 }
 0x2d6   :  { %532 = vrot.lane.b32.xlu0 %v6561_v5, %s6391_s0  ;;  %482 = vrot.lane.b32.xlu1 %v6563_v6, %s6391_s0 }
 0x2d7   :  { %v232_v7 = vpop.permute.xlu1 %231 }
 0x2d8   :  { %v6570_v8 = vcombine.low %v232_v7, %v232_v7 }
 0x2da   :  { %5514 = vmatmul.mubr.msk.bf16.vlgmr.msra.gmra.mrb[4].mxu1 %vm235_vm6, %v6528_v52  ;;  %582 = vrot.lane.b32.xlu1 %v6570_v8, %s6391_s0 }
 0x2db   :  { %v283_v9 = vpop.permute.xlu1 %282  ;;  %5525 = vmatprep.mubr.msk.bf16.mxu1 %vm6387_vm1, %v6386_v17 }
 0x2dc   :  { %v288_v10 = vsel %vm235_vm6, %v283_v9, 0 }
 0x2dd   :  { %5518 = vmatpush3.bf16.xpose.msra.mxu0 %v288_v10 }
 0x2de   :  { %5529 = vmatprep.subr.bf16.mxu0 %v6386_v17 }
 0x2e4   :  { %5520 = vmatmul.mubr.msk.bf16.vlgmr.msra.gmra.mrb[0].mxu0 %vm235_vm6, %v6530_v55 }
 0x2e5   :  { %5531 = vmatprep.mubr.msk.bf16.mxu0 %vm6387_vm1, %v6386_v17 }
 0x33e   :  { %v333_v11 = vpop.permute.xlu0 %332 }
 0x33f   :  { %v338_v12 = vsel %vm235_vm6, %v333_v11, 0 }
 0x340   :  { %5524 = vmatpush3.bf16.xpose.msra.mxu1 %v338_v12  ;;  %v383_v13 = vpop.permute.xlu1 %382 }
 0x341   :  { %v388_v14 = vsel %vm235_vm6, %v383_v13, 0  ;;  %5535 = vmatprep.subr.bf16.mxu1 %v6386_v17 }
 0x342   :  { %5530 = vmatpush3.bf16.xpose.msra.mxu0 %v388_v14 }
 0x343   :  { %5541 = vmatprep.subr.bf16.mxu0 %v6386_v17 }
 0x344   :  { %v433_v15 = vpop.permute.xlu0 %432 }
 0x345   :  { %v438_v19 = vsel %vm235_vm6, %v433_v15, 0 }
 0x347   :  { %5526 = vmatmul.mubr.msk.bf16.vlgmr.msra.gmra.mrb[8].mxu1 %vm235_vm6, %v222_v57 }
 0x348   :  { %5536 = vmatpush3.bf16.xpose.msra.mxu1 %v438_v19  ;;  %v483_v20 = vpop.permute.xlu1 %482  ;;  %5537 = vmatprep.mubr.msk.bf16.mxu1 %vm6387_vm1, %v6386_v17  ;;  %v533_v22 = vpop.permute.xlu0 %532 }
 0x349   :  { %v488_v21 = vsel %vm235_vm6, %v483_v20, 0  ;;  %5532 = vmatmul.mubr.msk.bf16.vlgmr.msra.gmra.mrb[4].mxu0 %vm235_vm6, %v224_v59  ;;  %5547 = vmatprep.subr.bf16.mxu1 %v6386_v17  ;;  %v538_v24 = vsel %vm235_vm6, %v533_v22, 0 }
 0x34a   :  { %5542 = vmatpush3.bf16.xpose.msra.mxu0 %v488_v21  ;;  %5543 = vmatprep.mubr.msk.bf16.mxu0 %vm6387_vm1, %v6386_v17 }
 0x34b   :  { %5553 = vmatprep.subr.bf16.mxu0 %v6386_v17 }
 0x34c   :  { %v583_v23 = vpop.permute.xlu1 %582 }
 0x34d   :  { %v588_v26 = vsel %vm235_vm6, %v583_v23, 0 }
 0x34f   :  { %5538 = vmatmul.mubr.msk.bf16.vlgmr.msra.gmra.mrb[12].mxu1 %vm235_vm6, %v226_v62 }
 0x350   :  { %5548 = vmatpush3.bf16.xpose.msra.mxu1 %v538_v24  ;;  %5549 = vmatprep.mubr.msk.bf16.mxu1 %vm6387_vm1, %v6386_v17 }
 0x351   :  { %5544 = vmatmul.mubr.msk.bf16.vlgmr.msra.gmra.mrb[8].mxu0 %vm235_vm6, %v228_v4  ;;  %5559 = vmatprep.subr.bf16.mxu1 %v6386_v17 }
 0x352   :  { %5554 = vmatpush3.bf16.xpose.msra.mxu0 %v588_v26  ;;  %5555 = vmatprep.mubr.msk.bf16.mxu0 %vm6387_vm1, %v6386_v17 }
 0x353   :  { %5565 = vmatprep.subr.bf16.mxu0 %v6386_v17 }
 0x357   :  { %5550 = vmatmul.mubr.msk.bf16.vlgmr.msra.gmra.mrb[16].mxu1 %vm235_vm6, %v230_v61 }
 0x358   :  { %5561 = vmatprep.mubr.msk.bf16.mxu1 %vm6387_vm1, %v6386_v17 }
 0x359   :  { %5556 = vmatmul.mubr.msk.bf16.vlgmr.msra.gmra.mrb[12].mxu0 %vm235_vm6, %v232_v7 }
 0x35a   :  { %5567 = vmatprep.mubr.msk.bf16.mxu0 %vm6387_vm1, %v6386_v17 }
 0x3ad   :  { %v276_v30 = vpop.f32.mrb[4].mxu1 }
 0x3ae   :  { %v630_v31 = vmul.f32 0.35355338, %v276_v30  ;;  %v5515_v33 = vpop.f32.mrb[5].mxu1 }
 0x3af   :  { %v279_v34 = vpop.f32.mrb[6].mxu1 }
 0x3b0   :  { %v5516_v35 = vpop.f32.mrb[7].mxu1  ;;  %v638_v36 = vadd.f32 %v630_v31, %v6620_v29 }
 0x3b2   :  { %v646_v39 = vsel %vm235_vm6, %v638_v36, -inf }
 0x3b3   :  { %647 = vmax.xlane.f32.xlu0 %v646_v39 }
 0x3b7   :  { %v324_v41 = vpop.f32.mrb[0].mxu0 }
 0x3b8   :  { %v631_v25 = vmul.f32 0.35355338, %v324_v41  ;;  %v5521_v42 = vpop.f32.mrb[1].mxu0 }
 0x3b9   :  { %v327_v43 = vpop.f32.mrb[2].mxu0 }
 0x3ba   :  { %v5522_v44 = vpop.f32.mrb[3].mxu0  ;;  %v6625_v45 = vadd.f32 %v631_v25, %v6620_v29 }
 0x3bc   :  { %v649_v46 = vsel %vm235_vm6, %v6625_v45, -inf }
 0x3bd   :  { %650 = vmax.xlane.f32.xlu1 %v649_v46 }
 0x41a   :  { %v374_v47 = vpop.f32.mrb[8].mxu1 }
 0x41b   :  { %v632_v48 = vmul.f32 0.35355338, %v374_v47  ;;  %v5527_v49 = vpop.f32.mrb[9].mxu1 }
 0x41c   :  { %v377_v50 = vpop.f32.mrb[10].mxu1  ;;  %v424_v51 = vpop.f32.mrb[4].mxu0 }
 0x41d   :  { %v633_v53 = vmul.f32 0.35355338, %v424_v51  ;;  %v5528_v54 = vpop.f32.mrb[11].mxu1  ;;  %v5533_v56 = vpop.f32.mrb[5].mxu0  ;;  %v640_v57 = vadd.f32 %v632_v48, %v6620_v29 }
 0x41e   :  { %v427_v59 = vpop.f32.mrb[6].mxu0 }
 0x41f   :  { %v5534_v61 = vpop.f32.mrb[7].mxu0  ;;  %v652_v62 = vsel %vm235_vm6, %v640_v57, -inf  ;;  %v6632_v2 = vadd.f32 %v633_v53, %v6620_v29 }
 0x420   :  { %653 = vmax.xlane.f32.xlu0 %v652_v62 }
 0x421   :  { %v655_v9 = vsel %vm235_vm6, %v6632_v2, -inf }
 0x422   :  { %v474_v3 = vpop.f32.mrb[12].mxu1 }
 0x423   :  { %v634_v4 = vmul.f32 0.35355338, %v474_v3  ;;  %v5539_v7 = vpop.f32.mrb[13].mxu1 }
 0x424   :  { %v524_v10 = vpop.f32.mrb[8].mxu0  ;;  %656 = vmax.xlane.f32.xlu0 %v655_v9  ;;  %v477_v11 = vpop.f32.mrb[14].mxu1 }
 0x425   :  { %v635_v12 = vmul.f32 0.35355338, %v524_v10  ;;  %v5540_v13 = vpop.f32.mrb[15].mxu1  ;;  %v5545_v14 = vpop.f32.mrb[9].mxu0  ;;  %v6637_v15 = vadd.f32 %v634_v4, %v6620_v29 }
 0x426   :  { %v527_v19 = vpop.f32.mrb[10].mxu0 }
 0x427   :  { %v5546_v20 = vpop.f32.mrb[11].mxu0  ;;  %v658_v21 = vsel %vm235_vm6, %v6637_v15, -inf  ;;  %v643_v22 = vadd.f32 %v635_v12, %v6620_v29 }
 0x428   :  { %659 = vmax.xlane.f32.xlu0 %v658_v21 }
 0x429   :  { %v661_v23 = vsel %vm235_vm6, %v643_v22, -inf }
 0x42a   :  { %662 = vmax.xlane.f32.xlu1 %v661_v23  ;;  %v574_v24 = vpop.f32.mrb[16].mxu1 }
 0x42b   :  { %v636_v26 = vmul.f32 0.35355338, %v574_v24  ;;  %v5551_v30 = vpop.f32.mrb[17].mxu1 }
 0x42c   :  { %v577_v31 = vpop.f32.mrb[18].mxu1  ;;  %v624_v33 = vpop.f32.mrb[12].mxu0 }
 0x42d   :  { %v5552_v34 = vpop.f32.mrb[19].mxu1  ;;  %v5557_v35 = vpop.f32.mrb[13].mxu0  ;;  %v6644_v39 = vadd.f32 %v636_v26, %v6620_v29  ;;  %v637_v47 = vmul.f32 0.35355338, %v624_v33 }
 0x42e   :  { %v627_v41 = vpop.f32.mrb[14].mxu0 }
 0x42f   :  { %v5558_v25 = vpop.f32.mrb[15].mxu0  ;;  %v664_v42 = vsel %vm235_vm6, %v6644_v39, -inf  ;;  %v645_v48 = vadd.f32 %v637_v47, %v6620_v29 }
 0x430   :  { %665 = vmax.xlane.f32.xlu0 %v664_v42 }
 0x431   :  { %v667_v50 = vsel %vm235_vm6, %v645_v48, -inf }
 0x43b   :  { %791 = vrot.lane.b32.xlu1 %v6530_v55, %s6383_s20 }
 0x43f   :  { %839 = vrot.lane.b32.xlu1 %v6548_v58, %s6383_s20 }
 0x440   :  { %v648_v43 = vpop.xlane.xlu0 %647 }
 0x441   :  { %v670_v44 = vsub.f32 %v638_v36, %v648_v43 }
 0x443   :  { %v678_v46 = vmul.f32 1.442695, %v670_v44 }
 0x445   :  { %6118 = vpow2.f32 %v678_v46 }
 0x446   :  { %742 = vrot.lane.b32.xlu0 %v6528_v52, %s6383_s20 }
 0x44a   :  { %v651_v52 = vpop.xlane.xlu1 %650 }
 0x44b   :  { %v671_v58 = vsub.f32 %v6625_v45, %v651_v52 }
 0x44d   :  { %v680_v36 = vmul.f32 1.442695, %v671_v58 }
 0x44f   :  { %v6655_v49 = vpop.eup %6118  ;;  %6120 = vpow2.f32 %v680_v36 }
 0x450   :  { %v694_v55 = vsel %vm235_vm6, %v6655_v49, 0.0 }
 0x459   :  { %v6663_v51 = vpop.eup %6120 }
 0x45a   :  { %v697_v53 = vsel %vm235_vm6, %v6663_v51, 0.0 }
 0x463   :  { %668 = vmax.xlane.f32.xlu1 %v667_v50 }
 0x465   :  { %695 = vadd.xlane.f32.xlu0 %v694_v55 }
 0x474   :  { %887 = vrot.lane.b32.xlu1 %v6550_v60, %s6383_s20 }
 0x498   :  { %698 = vadd.xlane.f32.xlu1 %v697_v53 }
 0x4a9   :  { %983 = vrot.lane.b32.xlu1 %v6563_v6, %s6383_s20 }
 0x4ad   :  { %v654_v54 = vpop.xlane.xlu0 %653 }
 0x4ae   :  { %v672_v56 = vsub.f32 %v640_v57, %v654_v54 }
 0x4b0   :  { %v682_v59 = vmul.f32 1.442695, %v672_v56 }
 0x4b1   :  { %v657_v61 = vpop.xlane.xlu0 %656 }
 0x4b2   :  { %6122 = vpow2.f32 %v682_v59  ;;  %v673_v60 = vsub.f32 %v6632_v2, %v657_v61 }
 0x4b4   :  { %v684_v3 = vmul.f32 1.442695, %v673_v60 }
 0x4b5   :  { %v660_v45 = vpop.xlane.xlu0 %659 }
 0x4b6   :  { %6124 = vpow2.f32 %v684_v3  ;;  %v674_v21 = vsub.f32 %v6637_v15, %v660_v45 }
 0x4b7   :  { %v663_v62 = vpop.xlane.xlu1 %662 }
 0x4b8   :  { %v675_v4 = vsub.f32 %v643_v22, %v663_v62  ;;  %v686_v22 = vmul.f32 1.442695, %v674_v21 }
 0x4ba   :  { %v688_v57 = vmul.f32 1.442695, %v675_v4 }
 0x4bb   :  { %v792_v7 = vpop.permute.xlu1 %791 }
 0x4bc   :  { %v6670_v9 = vpop.eup %6122  ;;  %v797_v10 = vsel %vm747_vm8, %v792_v7, 0  ;;  %6126 = vpow2.f32 %v688_v57 }
 0x4bd   :  { %5566 = vmatpush3.bf16.msra.mxu0 %v797_v10  ;;  %v666_v11 = vpop.xlane.xlu0 %665  ;;  %v700_v6 = vsel %vm235_vm6, %v6670_v9, 0.0  ;;  %6128 = vpow2.f32 %v686_v22 }
 0x4be   :  { %701 = vadd.xlane.f32.xlu0 %v700_v6  ;;  %5577 = vmatprep.subr.bf16.mxu0 %v6386_v17  ;;  %v676_v23 = vsub.f32 %v6644_v39, %v666_v11 }
 0x4bf   :  { %v840_v26 = vpop.permute.xlu1 %839 }
 0x4c0   :  { %v6678_v13 = vpop.eup %6124  ;;  %v690_v24 = vmul.f32 1.442695, %v676_v23  ;;  %v845_v46 = vsel %vm747_vm8, %v840_v26, 0 }
 0x4c1   :  { %v743_v2 = vpop.permute.xlu0 %742  ;;  %v703_v14 = vsel %vm235_vm6, %v6678_v13, 0.0 }
 0x4c2   :  { %v749_v12 = vsel %vm747_vm8, %v743_v2, 0  ;;  %6130 = vpow2.f32 %v690_v24 }
 0x4c3   :  { %5560 = vmatpush3.bf16.msra.mxu1 %v749_v12 }
 0x4c4   :  { %5571 = vmatprep.subr.bf16.mxu1 %v6386_v17 }
 0x4c6   :  { %v6682_v19 = vpop.eup %6126 }
 0x4c7   :  { %v709_v20 = vsel %vm235_vm6, %v6682_v19, 0.0  ;;  %v6690_v30 = vpop.eup %6128 }
 0x4c8   :  { %v706_v35 = vsel %vm235_vm6, %v6690_v30, 0.0 }
 0x4cc   :  { %v6694_v41 = vpop.eup %6130 }
 0x4cd   :  { %704 = vadd.xlane.f32.xlu1 %v703_v14  ;;  %v712_v15 = vsel %vm235_vm6, %v6694_v41, 0.0 }
 0x4d1   :  { %710 = vadd.xlane.f32.xlu1 %v709_v20 }
 0x4d4   :  { %935 = vrot.lane.b32.xlu0 %v6556_v63, %s6383_s20 }
 0x4f0   :  { %v669_v31 = vpop.xlane.xlu1 %668 }
 0x4f1   :  { %v677_v33 = vsub.f32 %v645_v48, %v669_v31 }
 0x4f2   :  { %v696_v34 = vpop.xlane.xlu0 %695 }
 0x4f3   :  { %v692_v63 = vmul.f32 1.442695, %v677_v33  ;;  %6132 = vrcp.f32 %v696_v34  ;;  %707 = vadd.xlane.f32.xlu0 %v706_v35 }
 0x4f4   :  { %v888_v47 = vpop.permute.xlu1 %887 }
 0x4f5   :  { %6134 = vpow2.f32 %v692_v63  ;;  %v893_v52 = vsel %vm747_vm8, %v888_v47, 0 }
 0x4f7   :  { %713 = vadd.xlane.f32.xlu0 %v712_v15 }
 0x4fd   :  { %v6133_v39 = vpop.eup %6132 }
 0x4fe   :  { %v726_v25 = vmul.f32 %v6133_v39, %v6655_v49 }
 0x4ff   :  { %v6699_v42 = vpop.eup %6134 }
 0x500   :  { %v715_v43 = vsel %vm235_vm6, %v6699_v42, 0.0  ;;  %v734_v44 = vpack.c.bf16 %v726_v25, %v726_v25 }
 0x501   :  { %716 = vadd.xlane.f32.xlu1 %v715_v43 }
 0x502   :  { %5562 = vmatmul.mubr.msk.bf16.vlgmr.msra.gmra.mrb[20].mxu1 %vm235_vm6, %v734_v44 }
 0x503   :  { %5572 = vmatpush3.bf16.msra.mxu1 %v845_v46  ;;  %5573 = vmatprep.mubr.msk.bf16.mxu1 %vm6387_vm1, %v6386_v17 }
 0x504   :  { %5583 = vmatprep.subr.bf16.mxu1 %v6386_v17 }
 0x50d   :  { %1031 = vrot.lane.b32.xlu0 %v6561_v5, %s6383_s20 }
 0x511   :  { %1160 = vrot.lane.b32.xlu0 %v6492_v16, %s6393_s23 }
 0x512   :  { %1079 = vrot.lane.b32.xlu1 %v6570_v8, %s6383_s20 }
 0x525   :  { %v699_v48 = vpop.xlane.xlu1 %698 }
 0x526   :  { %6136 = vrcp.f32 %v699_v48 }
 0x529   :  { %v984_v58 = vpop.permute.xlu1 %983 }
 0x52a   :  { %v989_v3 = vsel %vm747_vm8, %v984_v58, 0 }
 0x530   :  { %v6137_v49 = vpop.eup %6136 }
 0x531   :  { %v727_v50 = vmul.f32 %v6137_v49, %v6663_v51 }
 0x533   :  { %v735_v55 = vpack.c.bf16 %v727_v50, %v727_v50 }
 0x535   :  { %5568 = vmatmul.mubr.msk.bf16.vlgmr.msra.gmra.mrb[16].mxu0 %vm235_vm6, %v735_v55 }
 0x536   :  { %5578 = vmatpush3.bf16.msra.mxu0 %v893_v52  ;;  %5579 = vmatprep.mubr.msk.bf16.mxu0 %vm6387_vm1, %v6386_v17 }
 0x537   :  { %5589 = vmatprep.subr.bf16.mxu0 %v6386_v17 }
 0x54b   :  { %v702_v5 = vpop.xlane.xlu0 %701 }
 0x54c   :  { %6138 = vrcp.f32 %v702_v5 }
 0x54f   :  { %v936_v53 = vpop.permute.xlu0 %935 }
 0x550   :  { %v941_v56 = vsel %vm747_vm8, %v936_v53, 0 }
 0x556   :  { %v6139_v8 = vpop.eup %6138 }
 0x557   :  { %v728_v36 = vmul.f32 %v6139_v8, %v6670_v9 }
 0x559   :  { %v736_v54 = vpack.c.bf16 %v728_v36, %v728_v36 }
 0x55a   :  { %v705_v51 = vpop.xlane.xlu1 %704 }
 0x55b   :  { %6140 = vrcp.f32 %v705_v51  ;;  %5574 = vmatmul.mubr.msk.bf16.vlgmr.msra.gmra.mrb[24].mxu1 %vm235_vm6, %v736_v54 }
 0x55c   :  { %5584 = vmatpush3.bf16.msra.mxu1 %v941_v56  ;;  %5585 = vmatprep.mubr.msk.bf16.mxu1 %vm6387_vm1, %v6386_v17 }
 0x55d   :  { %5595 = vmatprep.subr.bf16.mxu1 %v6386_v17 }
 0x55e   :  { %v711_v59 = vpop.xlane.xlu1 %710 }
 0x55f   :  { %6142 = vrcp.f32 %v711_v59 }
 0x565   :  { %v6141_v61 = vpop.eup %6140 }
 0x566   :  { %v729_v60 = vmul.f32 %v6141_v61, %v6678_v13 }
 0x568   :  { %v737_v62 = vpack.c.bf16 %v729_v60, %v729_v60 }
 0x569   :  { %v6143_v45 = vpop.eup %6142 }
 0x56a   :  { %5580 = vmatmul.mubr.msk.bf16.vlgmr.msra.gmra.mrb[20].mxu0 %vm235_vm6, %v737_v62  ;;  %v731_v4 = vmul.f32 %v6143_v45, %v6682_v19 }
 0x56b   :  { %5590 = vmatpush3.bf16.msra.mxu0 %v989_v3  ;;  %5591 = vmatprep.mubr.msk.bf16.mxu0 %vm6387_vm1, %v6386_v17 }
 0x56c   :  { %5601 = vmatprep.subr.bf16.mxu0 %v6386_v17  ;;  %v739_v7 = vpack.c.bf16 %v731_v4, %v731_v4 }
 0x572   :  { %5592 = vmatmul.mubr.msk.bf16.vlgmr.msra.gmra.mrb[24].mxu0 %vm235_vm6, %v739_v7 }
 0x573   :  { %5603 = vmatprep.mubr.msk.bf16.mxu0 %vm6387_vm1, %v6386_v17 }
 0x580   :  { %v708_v9 = vpop.xlane.xlu0 %707 }
 0x581   :  { %6144 = vrcp.f32 %v708_v9 }
 0x584   :  { %v714_v10 = vpop.xlane.xlu0 %713 }
 0x585   :  { %6146 = vrcp.f32 %v714_v10 }
 0x588   :  { %v1032_v57 = vpop.permute.xlu0 %1031 }
 0x589   :  { %v1037_v14 = vsel %vm747_vm8, %v1032_v57, 0 }
 0x58b   :  { %v6145_v11 = vpop.eup %6144 }
 0x58c   :  { %v730_v6 = vmul.f32 %v6145_v11, %v6690_v30  ;;  %v6750_v30 = vld [vmem:[%s7743_s3 + $0x4] ss:$12 sps:$4 sm:$0xff]   ;;  %v1161_v46 = vpop.permute.xlu0 %1160 }
 0x58e   :  { %v717_v2 = vpop.xlane.xlu1 %716  ;;  %v738_v12 = vpack.c.bf16 %v730_v6, %v730_v6 }
 0x58f   :  { %v6147_v13 = vpop.eup %6146  ;;  %6148 = vrcp.f32 %v717_v2 }
 0x590   :  { %5586 = vmatmul.mubr.msk.bf16.vlgmr.msra.gmra.mrb[28].mxu1 %vm235_vm6, %v738_v12  ;;  %v732_v20 = vmul.f32 %v6147_v13, %v6694_v41 }
 0x591   :  { %5596 = vmatpush3.bf16.msra.mxu1 %v1037_v14  ;;  %5597 = vmatprep.mubr.msk.bf16.mxu1 %vm6387_vm1, %v6386_v17 }
 0x592   :  { %v1080_v19 = vpop.permute.xlu1 %1079  ;;  %5607 = vmatprep.subr.bf16.mxu1 %v6386_v17  ;;  %v740_v22 = vpack.c.bf16 %v732_v20, %v732_v20 }
 0x593   :  { %v1085_v21 = vsel %vm747_vm8, %v1080_v19, 0 }
 0x594   :  { %5602 = vmatpush3.bf16.msra.mxu0 %v1085_v21 }
 0x595   :  { %5615 = vmatprep.subr.bf16.mxu0 %v6386_v17 }
 0x598   :  { %5598 = vmatmul.mubr.msk.bf16.vlgmr.msra.gmra.mrb[32].mxu1 %vm235_vm6, %v740_v22 }
 0x599   :  { %v6149_v23 = vpop.eup %6148  ;;  %5611 = vmatprep.mubr.msk.bf16.mxu1 %vm6387_vm1, %v6386_v17  ;;  %5608 = vmatpush3.bf16.msra.mxu1 %v1161_v46 }
 0x59a   :  { %v733_v24 = vmul.f32 %v6149_v23, %v6699_v42  ;;  %5609 = vmatprep.subr.bf16.mxu1 %v6386_v17 }
 0x59c   :  { %v741_v26 = vpack.c.bf16 %v733_v24, %v733_v24 }
 0x59e   :  { %5604 = vmatmul.mubr.msk.bf16.vlgmr.msra.gmra.mrb[28].mxu0 %vm235_vm6, %v741_v26 }
 0x59f   :  { %5616 = vmatpush3.bf16.msra.mxu0 %v6750_v30  ;;  %5619 = vmatprep.mubr.msk.bf16.mxu0 %vm6387_vm1, %v6386_v17 }
 0x5a0   :  { %5617 = vmatprep.subr.bf16.mxu0 %v6386_v17 }
 0x5d5   :  { %v785_v31 = vpop.f32.mrb[20].mxu1 }
 0x5d6   :  { %v5563_v33 = vpop.f32.mrb[21].mxu1 }
 0x5d7   :  { %v788_v34 = vpop.f32.mrb[22].mxu1 }
 0x5d8   :  { %v5564_v35 = vpop.f32.mrb[23].mxu1 }
 0x608   :  { %v833_v41 = vpop.f32.mrb[16].mxu0 }
 0x609   :  { %v5569_v63 = vpop.f32.mrb[17].mxu0 }
 0x60a   :  { %v836_v15 = vpop.f32.mrb[18].mxu0 }
 0x60b   :  { %v5570_v39 = vpop.f32.mrb[19].mxu0 }
 0x62e   :  { %v881_v25 = vpop.f32.mrb[24].mxu1 }
 0x62f   :  { %v5575_v42 = vpop.f32.mrb[25].mxu1 }
 0x630   :  { %v884_v43 = vpop.f32.mrb[26].mxu1 }
 0x631   :  { %v5576_v44 = vpop.f32.mrb[27].mxu1 }
 0x63d   :  { %v929_v47 = vpop.f32.mrb[20].mxu0 }
 0x63e   :  { %v6025_v48 = vpack.i.bf16 %v929_v47, %v881_v25  ;;  %v5581_v49 = vpop.f32.mrb[21].mxu0 }
 0x63f   :  { %v932_v16 = vpop.f32.mrb[22].mxu0 }
 0x640   :  { %v5582_v50 = vpop.f32.mrb[23].mxu0  ;;  %6026 = vrot.lane.b32.xlu1 %v6025_v48, %s6394_s24 }
 0x645   :  { %v1025_v55 = vpop.f32.mrb[24].mxu0 }
 0x646   :  { %v5593_v52 = vpop.f32.mrb[25].mxu0 }
 0x647   :  { %v1028_v5 = vpop.f32.mrb[26].mxu0 }
 0x648   :  { %v5594_v8 = vpop.f32.mrb[27].mxu0 }
 0x663   :  { %v977_v58 = vpop.f32.mrb[28].mxu1 }
 0x664   :  { %v6030_v36 = vpack.i.bf16 %v1025_v55, %v977_v58  ;;  %v5587_v53 = vpop.f32.mrb[29].mxu1 }
 0x665   :  { %v980_v54 = vpop.f32.mrb[30].mxu1 }
 0x666   :  { %6031 = vrot.lane.b32.xlu0 %v6030_v36, %s6395_s25  ;;  %v5588_v51 = vpop.f32.mrb[31].mxu1 }
 0x66a   :  { %1162 = vrot.lane.b32.xlu0 %v6501_v18, %s6393_s23 }
 0x66b   :  { %v1073_v56 = vpop.f32.mrb[32].mxu1 }
 0x66c   :  { %v5599_v59 = vpop.f32.mrb[33].mxu1 }
 0x66d   :  { %v1076_v61 = vpop.f32.mrb[34].mxu1 }
 0x66e   :  { %v5600_v60 = vpop.f32.mrb[35].mxu1 }
 0x671   :  { %v1121_v62 = vpop.f32.mrb[28].mxu0 }
 0x672   :  { %v6035_v45 = vpack.i.bf16 %v1121_v62, %v1073_v56  ;;  %v5605_v3 = vpop.f32.mrb[29].mxu0  ;;  %v6091_v56 = vld [vmem:[#allocation7] sm:$0xff]  }
 0x673   :  { %v1124_v4 = vpop.f32.mrb[30].mxu0 }
 0x674   :  { %v5606_v7 = vpop.f32.mrb[31].mxu0  ;;  %6036 = vrot.lane.b32.xlu1 %v6035_v45, %s6396_s26 }
 0x6b2   :  { %v6027_v11 = vpop.permute.xlu1 %6026 }
 0x6b3   :  { %v6029_v6 = vunpack.i.h.bf16 %v6027_v11  ;;  %v6028_v18 = vunpack.i.l.bf16 %v6027_v11 }
 0x6b5   :  { %v1152_v13 = vsel %vm235_vm6, %v833_v41, %v6029_v6  ;;  %v1151_v14 = vsel %vm235_vm6, %v785_v31, %v6028_v18  ;;  %v1252_v18 = vsub.s32 4, %v6510_v32 }
 0x6d8   :  { %v6032_v9 = vpop.permute.xlu0 %6031 }
 0x6d9   :  { %v6034_v57 = vunpack.i.h.bf16 %v6032_v9  ;;  %v6033_v2 = vunpack.i.l.bf16 %v6032_v9 }
 0x6db   :  { %v1155_v21 = vsel %vm1153_vm9, %v1152_v13, %v6034_v57  ;;  %v1154_v22 = vsel %vm1153_vm9, %v1151_v14, %v6033_v2  ;;  %v1253_v57 = vrot.slane %v6516_v38, %v1252_v18  ;;  %v1264_v2 = vsub.s32 5, %v6510_v32 }
 0x6dc   :  { %v1163_v10 = vpop.permute.xlu0 %1162 }
 0x6dd   :  { %5610 = vmatpush3.bf16.msra.mxu1 %v1163_v10 }
 0x6de   :  { %5623 = vmatprep.subr.bf16.mxu1 %v6386_v17 }
 0x6e6   :  { %v6037_v12 = vpop.permute.xlu1 %6036 }
 0x6e7   :  { %v6039_v19 = vunpack.i.h.bf16 %v6037_v12  ;;  %v6038_v20 = vunpack.i.l.bf16 %v6037_v12 }
 0x6e9   :  { %v1158_v23 = vsel %vm1156_vm10, %v1155_v21, %v6039_v19  ;;  %v1157_v24 = vsel %vm1156_vm10, %v1154_v22, %v6038_v20  ;;  %v1265_v20 = vrot.slane %v6516_v38, %v1264_v2 }
 0x6ea   :  { %v1159_v26 = vpack.c.bf16 %v1158_v23, %v1157_v24 }
 0x6ec   :  { %5612 = vmatmul.mubr.msk.bf16.vlgmr.msra.gmra.mrb[36].mxu1 %vm97_vm0, %v1159_v26 }
 0x6ed   :  { %5627 = vmatprep.mubr.msk.bf16.mxu1 %vm6387_vm1, %v6386_v17 }
 0x7bf   :  { %v1203_v33 = vpop.f32.mrb[36].mxu1 }
 0x7c0   :  { %v1210_v34 = vpack.c.bf16 %v1203_v33, %v1203_v33  ;;  %v5613_v35 = vpop.f32.mrb[37].mxu1 }
 0x7c1   :  { %v1206_v31 = vpop.f32.mrb[38].mxu1 }
 0x7c2   :  { %v6776_v41 = vadd.bf16 %v1210_v34, %v6479_v0  ;;  %v1211_v63 = vpack.c.bf16 %v1206_v31, %v1206_v31  ;;  %v5614_v15 = vpop.f32.mrb[39].mxu1  ;;  %v6790_v0 = vld [vmem:[%s7743_s3 + $0x1c] ss:$12 sps:$4 sm:$0xff]  }
 0x7c3   :  { %5618 = vmatpush3.bf16.msra.mxu0 %v6790_v0 }
 0x7c4   :  { %v6779_v39 = vadd.bf16 %v1211_v63, %v6481_v1  ;;  %v1214_v25 = vunpack.c.l.bf16 %v6776_v41  ;;  %5631 = vmatprep.subr.bf16.mxu0 %v6386_v17 }
 0x7c6   :  { %v1216_v42 = vsel %vm97_vm0, %v1214_v25, 0.0  ;;  %v1215_v43 = vunpack.c.l.bf16 %v6779_v39 }
 0x7c7   :  { %1217 = vadd.xlane.f32.xlu1 %v1216_v42 }
 0x7c8   :  { %v1219_v44 = vsel %vm97_vm0, %v1215_v43, 0.0 }
 0x7c9   :  { %1220 = vadd.xlane.f32.xlu0 %v1219_v44 }
 0x7d8   :  { %1338 = vrot.lane.b32.xlu1 %v6750_v30, %s6391_s0 }
 0x854   :  { %v1218_v1 = vpop.xlane.xlu1 %1217 }
 0x855   :  { %v1222_v46 = vmul.f32 0.03125, %v1218_v1 }
 0x856   :  { %v1221_v47 = vpop.xlane.xlu0 %1220 }
 0x857   :  { %v1224_v48 = vsub.f32 %v1214_v25, %v1222_v46  ;;  %v1223_v49 = vmul.f32 0.03125, %v1221_v47 }
 0x858   :  { %v1339_v8 = vpop.permute.xlu1 %1338 }
 0x859   :  { %v1225_v16 = vsub.f32 %v1215_v43, %v1223_v49  ;;  %v1226_v50 = vmul.f32 %v1224_v48, %v1224_v48  ;;  %5624 = vmatpush3.bf16.msra.mxu1 %v1339_v8  ;;  %v1254_v13 = vmul.f32 %v1253_v57, %v1224_v48 }
 0x85a   :  { %5625 = vmatprep.subr.bf16.mxu1 %v6386_v17 }
 0x85b   :  { %v1228_v55 = vsel %vm97_vm0, %v1226_v50, 0.0  ;;  %v1227_v52 = vmul.f32 %v1225_v16, %v1225_v16  ;;  %v1255_v14 = vmul.f32 %v1253_v57, %v1225_v16 }
 0x85c   :  { %1229 = vadd.xlane.f32.xlu0 %v1228_v55 }
 0x85d   :  { %v1231_v5 = vsel %vm97_vm0, %v1227_v52, 0.0 }
 0x860   :  { %1232 = vadd.xlane.f32.xlu0 %v1231_v5 }
 0x876   :  { %1340 = vrot.lane.b32.xlu0 %v6790_v0, %s6391_s0 }
 0x8e9   :  { %v1230_v58 = vpop.xlane.xlu0 %1229 }
 0x8ea   :  { %v1234_v36 = vmul.f32 0.032258064, %v1230_v58 }
 0x8ec   :  { %6150 = vrsqrt.f32 %v1234_v36  ;;  %vm1238_vm11 = vcmp.eq.f32.partialorder %v1234_v36, inf  ;;  %v1241_v60 = vand.u32 2147483648, %v1234_v36  ;;  %vm1240_vm12 = vcmp.eq.f32.partialorder %v1234_v36, 0.0 }
 0x8ed   :  { %v1233_v53 = vpop.xlane.xlu0 %1232 }
 0x8ee   :  { %v1235_v54 = vmul.f32 0.032258064, %v1233_v53 }
 0x8f0   :  { %6152 = vrsqrt.f32 %v1235_v54  ;;  %vm1245_vm13 = vcmp.eq.f32.partialorder %v1235_v54, inf  ;;  %v1248_v9 = vand.u32 2147483648, %v1235_v54  ;;  %vm1247_vm14 = vcmp.eq.f32.partialorder %v1235_v54, 0.0 }
 0x8f1   :  { %v1341_v51 = vpop.permute.xlu0 %1340 }
 0x8f2   :  { %5626 = vmatpush3.bf16.msra.mxu1 %v1341_v51 }
 0x8f3   :  { %5637 = vmatprep.subr.bf16.mxu1 %v6386_v17 }
 0x8f5   :  { %5628 = vmatmul.mubr.msk.bf16.vlgmr.msra.gmra.mrb[40].mxu1 %vm97_vm0, %v6091_v56 }
 0x8f6   :  { %v6151_v59 = vpop.eup %6150  ;;  %5639 = vmatprep.mubr.msk.bf16.mxu1 %vm6387_vm1, %v6386_v17 }
 0x8f7   :  { %v1237_v61 = vmul.f32 %v6151_v59, %v1234_v36 }
 0x8f9   :  { %v1239_v62 = vsel %vm1238_vm11, %v1234_v36, %v1237_v61  ;;  %vm2539_vm11 = vcmask 523264  }
 0x8fa   :  { %v6153_v45 = vpop.eup %6152  ;;  %v1242_v3 = vsel %vm1240_vm12, %v1241_v60, %v1239_v62 }
 0x8fb   :  { %v1256_v4 = vadd.f32 1e-06, %v1242_v3  ;;  %v1244_v7 = vmul.f32 %v6153_v45, %v1235_v54 }
 0x8fd   :  { %6154 = vrcp.f32 %v1256_v4  ;;  %v1246_v10 = vsel %vm1245_vm13, %v1235_v54, %v1244_v7  ;;  %v70_v4 = vstv %s69_s29  ;;  %v75_v7 = vstv %s5152_s30 }
 0x8fe   :  { %v1249_v11 = vsel %vm1247_vm14, %v1248_v9, %v1246_v10  ;;  %vm71_vm15 = vcmp.lt.s32.totalorder %v6615_v27, %v70_v4  ;;  %v6895_v9 = vsub.s32 0, %v6510_v32  ;;  %vm76_vm2 = vcmp.lt.s32.totalorder %v6615_v27, %v75_v7 }
 0x8ff   :  { %v1257_v6 = vadd.f32 1e-06, %v1249_v11  ;;  %v72_v10 = vsel %vm71_vm15, 0.0, %v6392_v28  ;;  %v77_v11 = vsel %vm76_vm2, 0.0, %v6392_v28 }
 0x901   :  { %6156 = vrcp.f32 %v1257_v6  ;;  %v6901_v6 = vrot.slane %v72_v10, %v6895_v9 }
 0x907   :  { %v6155_v12 = vpop.eup %6154 }
 0x908   :  { %v1260_v19 = vmul.f32 %v6155_v12, %v1254_v13 }
 0x90a   :  { %v1266_v23 = vadd.f32 %v1265_v20, %v1260_v19 }
 0x90b   :  { %v6157_v21 = vpop.eup %6156 }
 0x90c   :  { %v1261_v22 = vmul.f32 %v6157_v21, %v1255_v14  ;;  %v6904_v14 = vrot.slane %v77_v11, %v6895_v9 }
 0x90e   :  { %v1267_v24 = vadd.f32 %v1265_v20, %v1261_v22 }
 0x910   :  { %v5314_v26 = vpack.c.bf16 %v1267_v24, %v1266_v23 }
 0x912   :  { %5620 = vmatmul.mubr.msk.bf16.vlgmr.msra.gmra.mrb[32].mxu0 %vm97_vm0, %v5314_v26 }
 0x913   :  { %5633 = vmatprep.mubr.msk.bf16.mxu0 %vm6387_vm1, %v6386_v17 }
 0x9c8   :  { %v1381_v33 = vpop.f32.mrb[40].mxu1 }
 0x9c9   :  { %v5317_v34 = vpack.c.bf16 %v1381_v33, %v1381_v33  ;;  %v5629_v35 = vpop.f32.mrb[41].mxu1 }
 0x9ca   :  { %v1384_v31 = vpop.f32.mrb[42].mxu1 }
 0x9cb   :  { %1406 = vrot.lane.b32.xlu1 %v5317_v34, %s6388_s17  ;;  %v6815_v63 = vpack.c.bf16 %v1384_v31, %v1384_v31  ;;  %v5630_v15 = vpop.f32.mrb[43].mxu1  ;;  %v1422_v38 = vsel %vm235_vm6, %v5317_v34, 0 }
 0x9cc   :  { %5632 = vmatpush3.bf16.xpose.msra.mxu0 %v1422_v38 }
 0x9cd   :  { %1412 = vrot.lane.b32.xlu0 %v6815_v63, %s6390_s19  ;;  %v1468_v25 = vsel %vm235_vm6, %v6815_v63, 0  ;;  %5643 = vmatprep.subr.bf16.mxu0 %v6386_v17 }
 0x9ce   :  { %5638 = vmatpush3.bf16.xpose.msra.mxu1 %v1468_v25 }
 0x9cf   :  { %1408 = vrot.lane.b32.xlu1 %v6815_v63, %s6388_s17  ;;  %5649 = vmatprep.subr.bf16.mxu1 %v6386_v17 }
 0x9d3   :  { %1410 = vrot.lane.b32.xlu1 %v5317_v34, %s6390_s19 }
 0x9e5   :  { %v1320_v42 = vpop.f32.mrb[32].mxu0 }
 0x9e6   :  { %v5315_v43 = vpack.c.bf16 %v1320_v42, %v1320_v42  ;;  %v5621_v44 = vpop.f32.mrb[33].mxu0 }
 0x9e7   :  { %v1323_v1 = vpop.f32.mrb[34].mxu0 }
 0x9e8   :  { %v5316_v46 = vpack.c.bf16 %v1323_v1, %v1323_v1  ;;  %v5622_v47 = vpop.f32.mrb[35].mxu0  ;;  %5634 = vmatmul.mubr.msk.bf16.vlgmr.msra.gmra.mrb[36].mxu0 %vm235_vm6, %v5315_v43  ;;  %1394 = vrot.lane.b32.xlu1 %v5315_v43, %s6388_s17 }
 0x9e9   :  { %5645 = vmatprep.mubr.msk.bf16.mxu0 %vm6387_vm1, %v6386_v17 }
 0x9ea   :  { %1396 = vrot.lane.b32.xlu0 %v5316_v46, %s6388_s17  ;;  %5640 = vmatmul.mubr.msk.bf16.vlgmr.msra.gmra.mrb[44].mxu1 %vm235_vm6, %v5316_v46 }
 0x9eb   :  { %5651 = vmatprep.mubr.msk.bf16.mxu1 %vm6387_vm1, %v6386_v17 }
 0x9ec   :  { %1398 = vrot.lane.b32.xlu1 %v5315_v43, %s6390_s19 }
 0x9ee   :  { %1400 = vrot.lane.b32.xlu0 %v5316_v46, %s6390_s19 }
 0x9f0   :  { %1414 = vrot.lane.b32.xlu1 %v5317_v34, %s6389_s18 }
 0x9f2   :  { %1416 = vrot.lane.b32.xlu0 %v6815_v63, %s6389_s18 }
 0x9f4   :  { %1402 = vrot.lane.b32.xlu1 %v5315_v43, %s6389_s18 }
 0x9f6   :  { %1404 = vrot.lane.b32.xlu0 %v5316_v46, %s6389_s18 }
 0x9f8   :  { %1906 = vrot.lane.b32.xlu1 %v5317_v34, %s6391_s0 }
 0xa3d   :  { %v6843_v48 = vpop.permute.xlu1 %1406 }
 0xa3e   :  { %v1514_v49 = vsel %vm235_vm6, %v6843_v48, 0 }
 0xa3f   :  { %5644 = vmatpush3.bf16.xpose.msra.mxu0 %v1514_v49  ;;  %v6855_v52 = vpop.permute.xlu0 %1412 }
 0xa40   :  { %5655 = vmatprep.subr.bf16.mxu0 %v6386_v17  ;;  %v1652_v36 = vsel %vm235_vm6, %v6855_v52, 0 }
 0xa41   :  { %v6848_v16 = vpop.permute.xlu1 %1408 }
 0xa42   :  { %v1560_v50 = vsel %vm235_vm6, %v6848_v16, 0 }
 0xa43   :  { %5650 = vmatpush3.bf16.xpose.msra.mxu1 %v1560_v50 }
 0xa44   :  { %5661 = vmatprep.subr.bf16.mxu1 %v6386_v17 }
 0xa45   :  { %v6853_v55 = vpop.permute.xlu1 %1410 }
 0xa46   :  { %v1606_v8 = vsel %vm235_vm6, %v6853_v55, 0 }
 0xa5a   :  { %v1395_v5 = vpop.permute.xlu1 %1394 }
 0xa5b   :  { %5646 = vmatmul.mubr.msk.bf16.vlgmr.msra.gmra.mrb[40].mxu0 %vm235_vm6, %v1395_v5 }
 0xa5c   :  { %5656 = vmatpush3.bf16.xpose.msra.mxu0 %v1606_v8  ;;  %v1397_v58 = vpop.permute.xlu0 %1396  ;;  %5657 = vmatprep.mubr.msk.bf16.mxu0 %vm6387_vm1, %v6386_v17 }
 0xa5d   :  { %5652 = vmatmul.mubr.msk.bf16.vlgmr.msra.gmra.mrb[48].mxu1 %vm235_vm6, %v1397_v58  ;;  %5667 = vmatprep.subr.bf16.mxu0 %v6386_v17 }
 0xa5e   :  { %5662 = vmatpush3.bf16.xpose.msra.mxu1 %v1652_v36  ;;  %v1399_v53 = vpop.permute.xlu1 %1398  ;;  %5663 = vmatprep.mubr.msk.bf16.mxu1 %vm6387_vm1, %v6386_v17 }
 0xa5f   :  { %5673 = vmatprep.subr.bf16.mxu1 %v6386_v17 }
 0xa60   :  { %v1401_v54 = vpop.permute.xlu0 %1400 }
 0xa62   :  { %v6869_v51 = vpop.permute.xlu1 %1414 }
 0xa63   :  { %5658 = vmatmul.mubr.msk.bf16.vlgmr.msra.gmra.mrb[44].mxu0 %vm235_vm6, %v1399_v53  ;;  %v1698_v56 = vsel %vm235_vm6, %v6869_v51, 0 }
 0xa64   :  { %v6874_v59 = vpop.permute.xlu0 %1416  ;;  %5668 = vmatpush3.bf16.xpose.msra.mxu0 %v1698_v56  ;;  %5669 = vmatprep.mubr.msk.bf16.mxu0 %vm6387_vm1, %v6386_v17 }
 0xa65   :  { %5664 = vmatmul.mubr.msk.bf16.vlgmr.msra.gmra.mrb[52].mxu1 %vm235_vm6, %v1401_v54  ;;  %v1744_v61 = vsel %vm235_vm6, %v6874_v59, 0  ;;  %5679 = vmatprep.subr.bf16.mxu0 %v6386_v17 }
 0xa66   :  { %v1403_v60 = vpop.permute.xlu1 %1402  ;;  %5674 = vmatpush3.bf16.xpose.msra.mxu1 %v1744_v61  ;;  %5675 = vmatprep.mubr.msk.bf16.mxu1 %vm6387_vm1, %v6386_v17 }
 0xa67   :  { %5685 = vmatprep.subr.bf16.mxu1 %v6386_v17 }
 0xa68   :  { %v1405_v3 = vpop.permute.xlu0 %1404 }
 0xa6a   :  { %v1907_v62 = vpop.permute.xlu1 %1906 }
 0xa6b   :  { %v1912_v45 = vsel %vm747_vm8, %v1907_v62, 0  ;;  %5670 = vmatmul.mubr.msk.bf16.vlgmr.msra.gmra.mrb[48].mxu0 %vm235_vm6, %v1403_v60 }
 0xa6c   :  { %5680 = vmatpush3.bf16.msra.mxu0 %v1912_v45  ;;  %5681 = vmatprep.mubr.msk.bf16.mxu0 %vm6387_vm1, %v6386_v17 }
 0xa6d   :  { %5676 = vmatmul.mubr.msk.bf16.vlgmr.msra.gmra.mrb[56].mxu1 %vm235_vm6, %v1405_v3  ;;  %5691 = vmatprep.subr.bf16.mxu0 %v6386_v17 }
 0xa6e   :  { %5687 = vmatprep.mubr.msk.bf16.mxu1 %vm6387_vm1, %v6386_v17 }
 0xabb   :  { %v1458_v57 = vpop.f32.mrb[36].mxu0 }
 0xabc   :  { %v1786_v12 = vmul.f32 0.35355338, %v1458_v57  ;;  %v5635_v13 = vpop.f32.mrb[37].mxu0 }
 0xabd   :  { %v1461_v19 = vpop.f32.mrb[38].mxu0  ;;  %v1504_v20 = vpop.f32.mrb[44].mxu1 }
 0xabe   :  { %v1787_v21 = vmul.f32 0.35355338, %v1504_v20  ;;  %v5636_v22 = vpop.f32.mrb[39].mxu0  ;;  %v5641_v23 = vpop.f32.mrb[45].mxu1  ;;  %v6907_v27 = vadd.f32 %v6901_v6, %v1786_v12 }
 0xabf   :  { %v1507_v24 = vpop.f32.mrb[46].mxu1 }
 0xac0   :  { %v5642_v26 = vpop.f32.mrb[47].mxu1  ;;  %v1810_v28 = vsel %vm235_vm6, %v6907_v27, -inf  ;;  %v1803_v33 = vadd.f32 %v6904_v14, %v1787_v21 }
 0xac1   :  { %1811 = vmax.xlane.f32.xlu1 %v1810_v28 }
 0xac2   :  { %v1813_v34 = vsel %vm235_vm6, %v1803_v33, -inf }
 0xac3   :  { %1814 = vmax.xlane.f32.xlu0 %v1813_v34 }
 0xb2e   :  { %v1550_v35 = vpop.f32.mrb[40].mxu0 }
 0xb2f   :  { %v1788_v31 = vmul.f32 0.35355338, %v1550_v35  ;;  %v5647_v15 = vpop.f32.mrb[41].mxu0 }
 0xb30   :  { %v1553_v38 = vpop.f32.mrb[42].mxu0  ;;  %v1596_v25 = vpop.f32.mrb[48].mxu1  ;;  %v5204_v15 = vcombine.low %v6848_v16, %v6848_v16 }
 0xb31   :  { %v1789_v42 = vmul.f32 0.35355338, %v1596_v25  ;;  %v5648_v43 = vpop.f32.mrb[43].mxu0  ;;  %v5653_v44 = vpop.f32.mrb[49].mxu1  ;;  %v6914_v1 = vadd.f32 %v6901_v6, %v1788_v31  ;;  %v5202_v31 = vcombine.low %v6843_v48, %v6843_v48 }
 0xb32   :  { %v1599_v46 = vpop.f32.mrb[50].mxu1 }
 0xb33   :  { %v5654_v47 = vpop.f32.mrb[51].mxu1  ;;  %v1816_v49 = vsel %vm235_vm6, %v6914_v1, -inf  ;;  %v6919_v50 = vadd.f32 %v6904_v14, %v1789_v42 }
 0xb34   :  { %1817 = vmax.xlane.f32.xlu0 %v1816_v49 }
 0xb35   :  { %v1819_v36 = vsel %vm235_vm6, %v6919_v50, -inf }
 0xb36   :  { %v1642_v5 = vpop.f32.mrb[44].mxu0 }
 0xb37   :  { %v1790_v8 = vmul.f32 0.35355338, %v1642_v5  ;;  %v5659_v58 = vpop.f32.mrb[45].mxu0 }
 0xb38   :  { %v1645_v53 = vpop.f32.mrb[46].mxu0  ;;  %1820 = vmax.xlane.f32.xlu0 %v1819_v36  ;;  %v1688_v54 = vpop.f32.mrb[52].mxu1 }
 0xb39   :  { %v1791_v56 = vmul.f32 0.35355338, %v1688_v54  ;;  %v5660_v61 = vpop.f32.mrb[47].mxu0  ;;  %v5665_v60 = vpop.f32.mrb[53].mxu1  ;;  %v1806_v62 = vadd.f32 %v6901_v6, %v1790_v8 }
 0xb3a   :  { %v1691_v45 = vpop.f32.mrb[54].mxu1 }
 0xb3b   :  { %v5666_v3 = vpop.f32.mrb[55].mxu1  ;;  %v1822_v4 = vsel %vm235_vm6, %v1806_v62, -inf  ;;  %v6926_v7 = vadd.f32 %v6904_v14, %v1791_v56 }
 0xb3c   :  { %1823 = vmax.xlane.f32.xlu1 %v1822_v4 }
 0xb3d   :  { %v1825_v10 = vsel %vm235_vm6, %v6926_v7, -inf }
 0xb3e   :  { %v1734_v11 = vpop.f32.mrb[48].mxu0  ;;  %1826 = vmax.xlane.f32.xlu0 %v1825_v10 }
 0xb3f   :  { %v1792_v57 = vmul.f32 0.35355338, %v1734_v11  ;;  %v5671_v12 = vpop.f32.mrb[49].mxu0 }
 0xb40   :  { %v1737_v13 = vpop.f32.mrb[50].mxu0  ;;  %v1780_v19 = vpop.f32.mrb[56].mxu1 }
 0xb41   :  { %v1793_v20 = vmul.f32 0.35355338, %v1780_v19  ;;  %v5672_v21 = vpop.f32.mrb[51].mxu0  ;;  %v5677_v22 = vpop.f32.mrb[57].mxu1  ;;  %v1808_v23 = vadd.f32 %v6901_v6, %v1792_v57 }
 0xb42   :  { %v1783_v24 = vpop.f32.mrb[58].mxu1  ;;  %v5210_v21 = vcombine.low %v6869_v51, %v6869_v51 }
 0xb43   :  { %v5678_v26 = vpop.f32.mrb[59].mxu1  ;;  %v1828_v28 = vsel %vm235_vm6, %v1808_v23, -inf  ;;  %v6933_v34 = vadd.f32 %v6904_v14, %v1793_v20  ;;  %v5208_v20 = vcombine.low %v6855_v52, %v6855_v52 }
 0xb44   :  { %1829 = vmax.xlane.f32.xlu1 %v1828_v28 }
 0xb45   :  { %v1831_v35 = vsel %vm235_vm6, %v6933_v34, -inf }
 0xb46   :  { %1832 = vmax.xlane.f32.xlu0 %v1831_v35 }
 0xb4e   :  { %v1812_v25 = vpop.xlane.xlu1 %1811 }
 0xb4f   :  { %v1834_v43 = vsub.f32 %v6907_v27, %v1812_v25 }
 0xb50   :  { %v1815_v38 = vpop.xlane.xlu0 %1814 }
 0xb51   :  { %v1835_v42 = vsub.f32 %v1803_v33, %v1815_v38  ;;  %v1842_v46 = vmul.f32 1.442695, %v1834_v43  ;;  %v5206_v33 = vcombine.low %v6853_v55, %v6853_v55 }
 0xb53   :  { %v1844_v44 = vmul.f32 1.442695, %v1835_v42 }
 0xb55   :  { %2004 = vrot.lane.b32.xlu1 %v5202_v31, %s6391_s0  ;;  %6158 = vpow2.f32 %v1844_v44 }
 0xb56   :  { %6160 = vpow2.f32 %v1842_v46 }
 0xb59   :  { %2054 = vrot.lane.b32.xlu1 %v5204_v15, %s6391_s0 }
 0xb5c   :  { %1954 = vrot.lane.b32.xlu0 %v6815_v63, %s6391_s0 }
 0xb5f   :  { %v6946_v48 = vpop.eup %6158 }
 0xb60   :  { %v6948_v47 = vpop.eup %6160  ;;  %v1861_v16 = vsel %vm235_vm6, %v6946_v48, 0.0 }
 0xb61   :  { %v1858_v63 = vsel %vm235_vm6, %v6948_v47, 0.0 }
 0xb7b   :  { %1862 = vadd.xlane.f32.xlu0 %v1861_v16 }
 0xb7d   :  { %1859 = vadd.xlane.f32.xlu1 %v1858_v63 }
 0xb8e   :  { %2104 = vrot.lane.b32.xlu1 %v5206_v33, %s6391_s0 }
 0xbc1   :  { %v1818_v27 = vpop.xlane.xlu0 %1817 }
 0xbc2   :  { %v1836_v49 = vsub.f32 %v6914_v1, %v1818_v27 }
 0xbc4   :  { %v1846_v5 = vmul.f32 1.442695, %v1836_v49 }
 0xbc5   :  { %v1821_v8 = vpop.xlane.xlu0 %1820 }
 0xbc6   :  { %6162 = vpow2.f32 %v1846_v5  ;;  %v1837_v58 = vsub.f32 %v6919_v50, %v1821_v8 }
 0xbc8   :  { %v1848_v36 = vmul.f32 1.442695, %v1837_v58 }
 0xbc9   :  { %v1824_v53 = vpop.xlane.xlu1 %1823 }
 0xbca   :  { %6164 = vpow2.f32 %v1848_v36  ;;  %v1838_v54 = vsub.f32 %v1806_v62, %v1824_v53 }
 0xbcb   :  { %v1827_v61 = vpop.xlane.xlu0 %1826 }
 0xbcc   :  { %v1850_v56 = vmul.f32 1.442695, %v1838_v54  ;;  %v1839_v22 = vsub.f32 %v6926_v7, %v1827_v61 }
 0xbce   :  { %6166 = vpow2.f32 %v1850_v56 }
 0xbd0   :  { %v6959_v60 = vpop.eup %6162 }
 0xbd1   :  { %v1830_v55 = vpop.xlane.xlu1 %1829  ;;  %v1864_v45 = vsel %vm235_vm6, %v6959_v60, 0.0 }
 0xbd2   :  { %v1840_v3 = vsub.f32 %v1808_v23, %v1830_v55  ;;  %1865 = vadd.xlane.f32.xlu1 %v1864_v45  ;;  %v1852_v23 = vmul.f32 1.442695, %v1839_v22 }
 0xbd3   :  { %v1833_v1 = vpop.xlane.xlu0 %1832 }
 0xbd4   :  { %v6963_v4 = vpop.eup %6164  ;;  %v1854_v10 = vmul.f32 1.442695, %v1840_v3  ;;  %v1841_v24 = vsub.f32 %v6933_v34, %v1833_v1 }
 0xbd5   :  { %v1867_v50 = vsel %vm235_vm6, %v6963_v4, 0.0  ;;  %v2005_v28 = vpop.permute.xlu1 %2004 }
 0xbd6   :  { %6168 = vpow2.f32 %v1854_v10  ;;  %1868 = vadd.xlane.f32.xlu0 %v1867_v50  ;;  %v1856_v26 = vmul.f32 1.442695, %v1841_v24  ;;  %v2010_v16 = vsel %vm747_vm8, %v2005_v28, 0 }
 0xbd7   :  { %v1955_v62 = vpop.permute.xlu0 %1954  ;;  %6170 = vpow2.f32 %v1852_v23 }
 0xbd8   :  { %v6967_v11 = vpop.eup %6166  ;;  %v1960_v57 = vsel %vm747_vm8, %v1955_v62, 0  ;;  %6172 = vpow2.f32 %v1856_v26 }
 0xbd9   :  { %5686 = vmatpush3.bf16.msra.mxu1 %v1960_v57  ;;  %v1870_v12 = vsel %vm235_vm6, %v6967_v11, 0.0  ;;  %v2055_v52 = vpop.permute.xlu1 %2054 }
 0xbda   :  { %1871 = vadd.xlane.f32.xlu1 %v1870_v12  ;;  %5697 = vmatprep.subr.bf16.mxu1 %v6386_v17  ;;  %v2060_v44 = vsel %vm747_vm8, %v2055_v52, 0 }
 0xbe0   :  { %v6973_v13 = vpop.eup %6168 }
 0xbe1   :  { %v1876_v19 = vsel %vm235_vm6, %v6973_v13, 0.0  ;;  %v6987_v35 = vpop.eup %6170 }
 0xbe2   :  { %1877 = vadd.xlane.f32.xlu1 %v1876_v19  ;;  %v1873_v15 = vsel %vm235_vm6, %v6987_v35, 0.0  ;;  %v6991_v7 = vpop.eup %6172 }
 0xbec   :  { %2154 = vrot.lane.b32.xlu0 %v5208_v20, %s6391_s0 }
 0xbf3   :  { %2204 = vrot.lane.b32.xlu1 %v5210_v21, %s6391_s0 }
 0xbf7   :  { %2333 = vrot.lane.b32.xlu1 %v6750_v30, %s6393_s23  ;;  %v1879_v30 = vsel %vm235_vm6, %v6991_v7, 0.0 }
 0xc08   :  { %v1863_v31 = vpop.xlane.xlu0 %1862 }
 0xc09   :  { %6174 = vrcp.f32 %v1863_v31 }
 0xc0a   :  { %v1860_v51 = vpop.xlane.xlu1 %1859 }
 0xc0b   :  { %6176 = vrcp.f32 %v1860_v51  ;;  %1874 = vadd.xlane.f32.xlu0 %v1873_v15 }
 0xc0f   :  { %1880 = vadd.xlane.f32.xlu0 %v1879_v30 }
 0xc13   :  { %v6175_v34 = vpop.eup %6174 }
 0xc14   :  { %v1891_v38 = vmul.f32 %v6175_v34, %v6946_v48  ;;  %v5212_v48 = vcombine.low %v6874_v59, %v6874_v59 }
 0xc15   :  { %v6177_v25 = vpop.eup %6176 }
 0xc16   :  { %v1899_v42 = vpack.c.bf16 %v1891_v38, %v1891_v38  ;;  %v1890_v43 = vmul.f32 %v6177_v25, %v6948_v47  ;;  %v2105_v47 = vpop.permute.xlu1 %2104 }
 0xc17   :  { %v2110_v36 = vsel %vm747_vm8, %v2105_v47, 0 }
 0xc18   :  { %5688 = vmatmul.mubr.msk.bf16.vlgmr.msra.gmra.mrb[60].mxu1 %vm235_vm6, %v1899_v42  ;;  %v1898_v46 = vpack.c.bf16 %v1890_v43, %v1890_v43 }
 0xc19   :  { %5698 = vmatpush3.bf16.msra.mxu1 %v2060_v44  ;;  %5699 = vmatprep.mubr.msk.bf16.mxu1 %vm6387_vm1, %v6386_v17 }
 0xc1a   :  { %5682 = vmatmul.mubr.msk.bf16.vlgmr.msra.gmra.mrb[52].mxu0 %vm235_vm6, %v1898_v46  ;;  %5709 = vmatprep.subr.bf16.mxu1 %v6386_v17 }
 0xc1b   :  { %5692 = vmatpush3.bf16.msra.mxu0 %v2010_v16  ;;  %5693 = vmatprep.mubr.msk.bf16.mxu0 %vm6387_vm1, %v6386_v17 }
 0xc1c   :  { %5703 = vmatprep.subr.bf16.mxu0 %v6386_v17 }
 0xc25   :  { %2254 = vrot.lane.b32.xlu0 %v5212_v48, %s6391_s0 }
 0xc5f   :  { %v1866_v63 = vpop.xlane.xlu1 %1865 }
 0xc60   :  { %6178 = vrcp.f32 %v1866_v63 }
 0xc63   :  { %v1869_v33 = vpop.xlane.xlu0 %1868 }
 0xc64   :  { %6180 = vrcp.f32 %v1869_v33 }
 0xc67   :  { %v1872_v27 = vpop.xlane.xlu1 %1871  ;;  %v2155_v54 = vpop.permute.xlu0 %2154 }
 0xc68   :  { %6182 = vrcp.f32 %v1872_v27 }
 0xc6a   :  { %v6179_v49 = vpop.eup %6178 }
 0xc6b   :  { %v1892_v5 = vmul.f32 %v6179_v49, %v6959_v60  ;;  %v2160_v60 = vsel %vm747_vm8, %v2155_v54, 0 }
 0xc6d   :  { %v1900_v8 = vpack.c.bf16 %v1892_v5, %v1892_v5 }
 0xc6e   :  { %v6181_v58 = vpop.eup %6180 }
 0xc6f   :  { %5694 = vmatmul.mubr.msk.bf16.vlgmr.msra.gmra.mrb[56].mxu0 %vm235_vm6, %v1900_v8  ;;  %v1878_v53 = vpop.xlane.xlu1 %1877  ;;  %v1893_v59 = vmul.f32 %v6181_v58, %v6963_v4 }
 0xc70   :  { %5704 = vmatpush3.bf16.msra.mxu0 %v2110_v36  ;;  %6184 = vrcp.f32 %v1878_v53  ;;  %5705 = vmatprep.mubr.msk.bf16.mxu0 %vm6387_vm1, %v6386_v17 }
 0xc71   :  { %v1901_v56 = vpack.c.bf16 %v1893_v59, %v1893_v59  ;;  %5715 = vmatprep.subr.bf16.mxu0 %v6386_v17 }
 0xc72   :  { %v6183_v61 = vpop.eup %6182 }
 0xc73   :  { %5700 = vmatmul.mubr.msk.bf16.vlgmr.msra.gmra.mrb[64].mxu1 %vm235_vm6, %v1901_v56  ;;  %v1894_v55 = vmul.f32 %v6183_v61, %v6967_v11  ;;  %v2205_v45 = vpop.permute.xlu1 %2204 }
 0xc74   :  { %5710 = vmatpush3.bf16.msra.mxu1 %v2160_v60  ;;  %5711 = vmatprep.mubr.msk.bf16.mxu1 %vm6387_vm1, %v6386_v17  ;;  %v2210_v1 = vsel %vm747_vm8, %v2205_v45, 0 }
 0xc75   :  { %v1902_v3 = vpack.c.bf16 %v1894_v55, %v1894_v55  ;;  %5721 = vmatprep.subr.bf16.mxu1 %v6386_v17 }
 0xc77   :  { %5706 = vmatmul.mubr.msk.bf16.vlgmr.msra.gmra.mrb[60].mxu0 %vm235_vm6, %v1902_v3  ;;  %v2334_v30 = vpop.permute.xlu1 %2333 }
 0xc78   :  { %5716 = vmatpush3.bf16.msra.mxu0 %v2210_v1  ;;  %5717 = vmatprep.mubr.msk.bf16.mxu0 %vm6387_vm1, %v6386_v17 }
 0xc79   :  { %5727 = vmatprep.subr.bf16.mxu0 %v6386_v17 }
 0xc7a   :  { %v6185_v4 = vpop.eup %6184 }
 0xc7b   :  { %v1896_v10 = vmul.f32 %v6185_v4, %v6973_v13 }
 0xc7d   :  { %v1904_v50 = vpack.c.bf16 %v1896_v10, %v1896_v10 }
 0xc7f   :  { %5718 = vmatmul.mubr.msk.bf16.vlgmr.msra.gmra.mrb[64].mxu0 %vm235_vm6, %v1904_v50 }
 0xc80   :  { %5731 = vmatprep.mubr.msk.bf16.mxu0 %vm6387_vm1, %v6386_v17  ;;  %5728 = vmatpush3.bf16.msra.mxu0 %v2334_v30 }
 0xc81   :  { %5729 = vmatprep.subr.bf16.mxu0 %v6386_v17 }
 0xc98   :  { %v1875_v62 = vpop.xlane.xlu0 %1874 }
 0xc99   :  { %6186 = vrcp.f32 %v1875_v62 }
 0xc9c   :  { %v1881_v11 = vpop.xlane.xlu0 %1880 }
 0xc9d   :  { %6188 = vrcp.f32 %v1881_v11 }
 0xca0   :  { %v2255_v19 = vpop.permute.xlu0 %2254 }
 0xca1   :  { %v2260_v22 = vsel %vm747_vm8, %v2255_v19, 0 }
 0xca3   :  { %v6187_v57 = vpop.eup %6186 }
 0xca4   :  { %v1895_v12 = vmul.f32 %v6187_v57, %v6987_v35 }
 0xca6   :  { %v1903_v20 = vpack.c.bf16 %v1895_v12, %v1895_v12 }
 0xca7   :  { %v6189_v21 = vpop.eup %6188 }
 0xca8   :  { %5712 = vmatmul.mubr.msk.bf16.vlgmr.msra.gmra.mrb[68].mxu1 %vm235_vm6, %v1903_v20  ;;  %v1897_v13 = vmul.f32 %v6189_v21, %v6991_v7 }
 0xca9   :  { %5722 = vmatpush3.bf16.msra.mxu1 %v2260_v22  ;;  %5723 = vmatprep.mubr.msk.bf16.mxu1 %vm6387_vm1, %v6386_v17 }
 0xcaa   :  { %5735 = vmatprep.subr.bf16.mxu1 %v6386_v17  ;;  %v1905_v23 = vpack.c.bf16 %v1897_v13, %v1897_v13 }
 0xcb0   :  { %5724 = vmatmul.mubr.msk.bf16.vlgmr.msra.gmra.mrb[72].mxu1 %vm235_vm6, %v1905_v23 }
 0xcb1   :  { %5739 = vmatprep.mubr.msk.bf16.mxu1 %vm6387_vm1, %v6386_v17 }
 0xceb   :  { %v1996_v24 = vpop.f32.mrb[60].mxu1 }
 0xcec   :  { %v5689_v26 = vpop.f32.mrb[61].mxu1 }
 0xced   :  { %v1948_v28 = vpop.f32.mrb[52].mxu0  ;;  %v1999_v52 = vpop.f32.mrb[62].mxu1 }
 0xcee   :  { %v5683_v35 = vpop.f32.mrb[53].mxu0  ;;  %v5690_v31 = vpop.f32.mrb[63].mxu1 }
 0xcef   :  { %v1951_v51 = vpop.f32.mrb[54].mxu0 }
 0xcf0   :  { %v5684_v15 = vpop.f32.mrb[55].mxu0 }
 0xd42   :  { %v2046_v7 = vpop.f32.mrb[56].mxu0 }
 0xd43   :  { %v5695_v34 = vpop.f32.mrb[57].mxu0 }
 0xd44   :  { %v2049_v38 = vpop.f32.mrb[58].mxu0 }
 0xd45   :  { %v5696_v25 = vpop.f32.mrb[59].mxu0 }
 0xd46   :  { %v2096_v42 = vpop.f32.mrb[64].mxu1 }
 0xd47   :  { %v6040_v43 = vpack.i.bf16 %v2096_v42, %v2046_v7  ;;  %v5701_v44 = vpop.f32.mrb[65].mxu1 }
 0xd48   :  { %v2099_v46 = vpop.f32.mrb[66].mxu1 }
 0xd49   :  { %6041 = vrot.lane.b32.xlu0 %v6040_v43, %s6394_s24  ;;  %v5702_v16 = vpop.f32.mrb[67].mxu1 }
 0xd4a   :  { %v2146_v48 = vpop.f32.mrb[60].mxu0 }
 0xd4b   :  { %v5707_v47 = vpop.f32.mrb[61].mxu0 }
 0xd4c   :  { %v2149_v63 = vpop.f32.mrb[62].mxu0 }
 0xd4d   :  { %v5708_v33 = vpop.f32.mrb[63].mxu0 }
 0xd4e   :  { %v6092_v33 = vld [vmem:[%s7743_s3 + $0x8] ss:$12 sps:$4 sm:$0xff]  }
 0xd4f   :  { %5736 = vmatpush3.bf16.msra.mxu1 %v6092_v33 }
 0xd50   :  { %5737 = vmatprep.subr.bf16.mxu1 %v6386_v17 }
 0xd52   :  { %v2246_v27 = vpop.f32.mrb[64].mxu0 }
 0xd53   :  { %v5719_v49 = vpop.f32.mrb[65].mxu0 }
 0xd54   :  { %v2249_v5 = vpop.f32.mrb[66].mxu0  ;;  %v6094_v49 = vld [vmem:[%s7744_s4] sm:$0xff]  }
 0xd55   :  { %v5720_v8 = vpop.f32.mrb[67].mxu0  ;;  %v6095_v5 = vld [vmem:[%s7744_s4 + $0x8] sm:$0xff]  }
 0xd7b   :  { %v2196_v58 = vpop.f32.mrb[68].mxu1 }
 0xd7c   :  { %v6045_v36 = vpack.i.bf16 %v2196_v58, %v2146_v48  ;;  %v5713_v53 = vpop.f32.mrb[69].mxu1 }
 0xd7d   :  { %v2199_v59 = vpop.f32.mrb[70].mxu1 }
 0xd7e   :  { %6046 = vrot.lane.b32.xlu1 %v6045_v36, %s6395_s25  ;;  %v5714_v54 = vpop.f32.mrb[71].mxu1 }
 0xd82   :  { %2335 = vrot.lane.b32.xlu1 %v6790_v0, %s6393_s23 }
 0xd83   :  { %v2296_v56 = vpop.f32.mrb[72].mxu1 }
 0xd84   :  { %v6050_v61 = vpack.i.bf16 %v2296_v56, %v2246_v27  ;;  %v5725_v60 = vpop.f32.mrb[73].mxu1  ;;  %v6093_v27 = vld [vmem:[%s7743_s3 + $0x20] ss:$12 sps:$4 sm:$0xff]  }
 0xd85   :  { %v2299_v55 = vpop.f32.mrb[74].mxu1  ;;  %5738 = vmatpush3.bf16.msra.mxu1 %v6093_v27 }
 0xd86   :  { %6051 = vrot.lane.b32.xlu0 %v6050_v61, %s6396_s26  ;;  %v5726_v45 = vpop.f32.mrb[75].mxu1  ;;  %5755 = vmatprep.subr.bf16.mxu1 %v6386_v17 }
 0xdbb   :  { %v6042_v1 = vpop.permute.xlu0 %6041 }
 0xdbc   :  { %v6044_v10 = vunpack.i.h.bf16 %v6042_v1  ;;  %v6043_v50 = vunpack.i.l.bf16 %v6042_v1 }
 0xdbe   :  { %v2327_v0 = vsel %vm235_vm6, %v1996_v24, %v6044_v10  ;;  %v2326_v12 = vsel %vm235_vm6, %v1948_v28, %v6043_v50 }
 0xdf0   :  { %v6047_v3 = vpop.permute.xlu1 %6046 }
 0xdf1   :  { %v6049_v62 = vunpack.i.h.bf16 %v6047_v3  ;;  %v6048_v11 = vunpack.i.l.bf16 %v6047_v3 }
 0xdf3   :  { %v2329_v21 = vsel %vm1153_vm9, %v2327_v0, %v6049_v62  ;;  %v2328_v22 = vsel %vm1153_vm9, %v2326_v12, %v6048_v11  ;;  %v2425_v62 = vsub.s32 6, %v6510_v32  ;;  %v6294_v11 = vld [vmem:[%s7745_s5] sm:$0xff]  ;;  %v2437_v0 = vsub.s32 7, %v6510_v32 }
 0xdf4   :  { %v2336_v4 = vpop.permute.xlu1 %2335 }
 0xdf5   :  { %5730 = vmatpush3.bf16.msra.mxu0 %v2336_v4 }
 0xdf6   :  { %5743 = vmatprep.subr.bf16.mxu0 %v6386_v17 }
 0xdf8   :  { %v6052_v57 = vpop.permute.xlu0 %6051 }
 0xdf9   :  { %v6054_v19 = vunpack.i.h.bf16 %v6052_v57  ;;  %v6053_v20 = vunpack.i.l.bf16 %v6052_v57  ;;  %v2426_v57 = vrot.slane %v6294_v11, %v2425_v62 }
 0xdfb   :  { %v2331_v13 = vsel %vm1156_vm10, %v2329_v21, %v6054_v19  ;;  %v2330_v23 = vsel %vm1156_vm10, %v2328_v22, %v6053_v20  ;;  %v2438_v22 = vrot.slane %v6294_v11, %v2437_v0 }
 0xdfc   :  { %v2332_v26 = vpack.c.bf16 %v2331_v13, %v2330_v23 }
 0xdfe   :  { %5732 = vmatmul.mubr.msk.bf16.vlgmr.msra.gmra.mrb[68].mxu0 %vm97_vm0, %v2332_v26 }
 0xdff   :  { %5751 = vmatprep.mubr.msk.bf16.mxu0 %vm6387_vm1, %v6386_v17  ;;  %5744 = vmatpush3.bf16.msra.mxu0 %v6094_v49 }
 0xe00   :  { %5745 = vmatprep.subr.bf16.mxu0 %v6386_v17 }
 0xe03   :  { %5746 = vmatpush3.bf16.msra.mxu0 %v6095_v5 }
 0xe04   :  { %5747 = vmatprep.subr.bf16.mxu0 %v6386_v17 }
 0xed1   :  { %v2376_v52 = vpop.f32.mrb[68].mxu0 }
 0xed2   :  { %v2383_v24 = vpack.c.bf16 %v2376_v52, %v2376_v52  ;;  %v5733_v35 = vpop.f32.mrb[69].mxu0 }
 0xed3   :  { %v2379_v28 = vpop.f32.mrb[70].mxu0  ;;  %v6096_v35 = vld [vmem:[%s7744_s4 + $0x10] sm:$0xff]  }
 0xed4   :  { %v7059_v31 = vadd.bf16 %v2383_v24, %v6776_v41  ;;  %v2384_v51 = vpack.c.bf16 %v2379_v28, %v2379_v28  ;;  %v5734_v15 = vpop.f32.mrb[71].mxu0  ;;  %5748 = vmatpush3.bf16.msra.mxu0 %v6096_v35  ;;  %v6097_v28 = vld [vmem:[%s7744_s4 + $0x18] sm:$0xff]  }
 0xed5   :  { %5749 = vmatprep.subr.bf16.mxu0 %v6386_v17 }
 0xed6   :  { %v7062_v30 = vadd.bf16 %v2384_v51, %v6779_v39  ;;  %v2387_v7 = vunpack.c.l.bf16 %v7059_v31  ;;  %v2446_v51 = vrot.slane %v6294_v11, %v6895_v9 }
 0xed8   :  { %v2389_v34 = vsel %vm97_vm0, %v2387_v7, 0.0  ;;  %v2388_v38 = vunpack.c.l.bf16 %v7062_v30  ;;  %5750 = vmatpush3.bf16.msra.mxu0 %v6097_v28 }
 0xed9   :  { %2390 = vadd.xlane.f32.xlu0 %v2389_v34  ;;  %5769 = vmatprep.subr.bf16.mxu0 %v6386_v17 }
 0xeda   :  { %v2392_v25 = vsel %vm97_vm0, %v2388_v38, 0.0 }
 0xedb   :  { %2393 = vadd.xlane.f32.xlu1 %v2392_v25 }
 0xf66   :  { %v2391_v42 = vpop.xlane.xlu0 %2390 }
 0xf67   :  { %v2395_v43 = vmul.f32 0.03125, %v2391_v42 }
 0xf68   :  { %v2394_v44 = vpop.xlane.xlu1 %2393 }
 0xf69   :  { %v2397_v41 = vsub.f32 %v2387_v7, %v2395_v43  ;;  %v2396_v46 = vmul.f32 0.03125, %v2394_v44 }
 0xf6b   :  { %v2398_v16 = vsub.f32 %v2388_v38, %v2396_v46  ;;  %v2399_v48 = vmul.f32 %v2397_v41, %v2397_v41  ;;  %v2427_v19 = vmul.f32 %v2426_v57, %v2397_v41  ;;  %v7111_v46 = vsub.s32 1, %v6510_v32 }
 0xf6d   :  { %v2401_v39 = vsel %vm97_vm0, %v2399_v48, 0.0  ;;  %v2400_v47 = vmul.f32 %v2398_v16, %v2398_v16  ;;  %v2428_v20 = vmul.f32 %v2426_v57, %v2398_v16  ;;  %v2514_v16 = vrot.slane %v6294_v11, %v7111_v46 }
 0xf6e   :  { %2402 = vadd.xlane.f32.xlu0 %v2401_v39 }
 0xf6f   :  { %v2404_v63 = vsel %vm97_vm0, %v2400_v47, 0.0 }
 0xf72   :  { %2405 = vadd.xlane.f32.xlu0 %v2404_v63 }
 0xffb   :  { %v2403_v8 = vpop.xlane.xlu0 %2402 }
 0xffc   :  { %v2407_v58 = vmul.f32 0.032258064, %v2403_v8 }
 0xffe   :  { %6190 = vrsqrt.f32 %v2407_v58  ;;  %vm2411_vm3 = vcmp.eq.f32.partialorder %v2407_v58, inf  ;;  %v2414_v56 = vand.u32 2147483648, %v2407_v58  ;;  %vm2413_vm4 = vcmp.eq.f32.partialorder %v2407_v58, 0.0 }
 0xfff   :  { %v2406_v36 = vpop.xlane.xlu0 %2405 }
0x1000   :  { %v2408_v53 = vmul.f32 0.032258064, %v2406_v36 }
0x1002   :  { %6192 = vrsqrt.f32 %v2408_v53  ;;  %vm2418_vm5 = vcmp.eq.f32.partialorder %v2408_v53, inf  ;;  %v2421_v1 = vand.u32 2147483648, %v2408_v53  ;;  %vm2420_vm7 = vcmp.eq.f32.partialorder %v2408_v53, 0.0 }
0x1008   :  { %v6191_v59 = vpop.eup %6190 }
0x1009   :  { %v2410_v54 = vmul.f32 %v6191_v59, %v2407_v58 }
0x100b   :  { %v2412_v61 = vsel %vm2411_vm3, %v2407_v58, %v2410_v54 }
0x100c   :  { %v6193_v60 = vpop.eup %6192  ;;  %v2415_v55 = vsel %vm2413_vm4, %v2414_v56, %v2412_v61 }
0x100d   :  { %v2429_v45 = vadd.f32 1e-06, %v2415_v55  ;;  %v2417_v3 = vmul.f32 %v6193_v60, %v2408_v53 }
0x100f   :  { %6194 = vrcp.f32 %v2429_v45  ;;  %v2419_v4 = vsel %vm2418_vm5, %v2408_v53, %v2417_v3 }
0x1010   :  { %v2422_v10 = vsel %vm2420_vm7, %v2421_v1, %v2419_v4 }
0x1011   :  { %v2430_v50 = vadd.f32 1e-06, %v2422_v10  ;;  %v7129_v10 = vld [vmem:[%s7743_s3 + $0x30] ss:$12 sps:$4 sm:$0xff]  }
0x1013   :  { %6196 = vrcp.f32 %v2430_v50  ;;  %v7135_v50 = vld [vmem:[%s7743_s3 + $0x48] ss:$12 sps:$4 sm:$0xff]  }
0x1019   :  { %v6195_v12 = vpop.eup %6194 }
0x101a   :  { %v2433_v21 = vmul.f32 %v6195_v12, %v2427_v19 }
0x101c   :  { %v2439_v26 = vadd.f32 %v2438_v22, %v2433_v21 }
0x101d   :  { %v6197_v13 = vpop.eup %6196 }
0x101e   :  { %v2434_v23 = vmul.f32 %v6197_v13, %v2428_v20 }
0x1020   :  { %v2440_v52 = vadd.f32 %v2438_v22, %v2434_v23 }
0x1022   :  { %v5319_v24 = vpack.c.bf16 %v2440_v52, %v2439_v26 }
0x1024   :  { %5740 = vmatmul.mubr.msk.bf16.vlgmr.msra.gmra.mrb[76].mxu1 %vm97_vm0, %v5319_v24 }
0x1025   :  { %5759 = vmatprep.mubr.msk.bf16.mxu1 %vm6387_vm1, %v6386_v17  ;;  %5756 = vmatpush3.bf16.msra.mxu1 %v7129_v10 }
0x1026   :  { %5757 = vmatprep.subr.bf16.mxu1 %v6386_v17 }
0x1029   :  { %5758 = vmatpush3.bf16.msra.mxu1 %v7135_v50 }
0x102a   :  { %5763 = vmatprep.subr.bf16.mxu1 %v6386_v17 }
0x10f7   :  { %v2501_v15 = vpop.f32.mrb[76].mxu1 }
0x10f8   :  { %v2502_v7 = vadd.f32 %v2501_v15, %v2446_v51  ;;  %v5741_v34 = vpop.f32.mrb[77].mxu1 }
0x10f9   :  { %v2504_v38 = vpop.f32.mrb[78].mxu1 }
0x10fa   :  { %v2505_v25 = vadd.f32 %v2504_v38, %v2446_v51  ;;  %v5742_v42 = vpop.f32.mrb[79].mxu1  ;;  %v2508_v43 = vmax.f32 %v2502_v7, 0.0  ;;  %v7143_v7 = vld [vmem:[%s7745_s5 + $0x8] sm:$0xff] }
0x10fb   :  { %v2647_v34 = vrot.slane %v7143_v7, %v136_v37  ;;  %v2659_v38 = vrot.slane %v7143_v7, %v148_v40 }
0x10fc   :  { %v2509_v44 = vmax.f32 %v2505_v25, 0.0 }
0x10fe   :  { %v2510_v41 = vpack.c.bf16 %v2509_v44, %v2508_v43 }
0x1100   :  { %5752 = vmatmul.mubr.msk.bf16.vlgmr.msra.gmra.mrb[72].mxu0 %vm2539_vm11, %v2510_v41 }
0x1101   :  { %5771 = vmatprep.mubr.msk.bf16.mxu0 %vm6387_vm1, %v6386_v17 }
0x11d3   :  { %v2577_v48 = vpop.f32.mrb[72].mxu0 }
0x11d4   :  { %v2578_v39 = vadd.f32 %v2577_v48, %v2514_v16  ;;  %v5753_v47 = vpop.f32.mrb[73].mxu0 }
0x11d5   :  { %v2580_v63 = vpop.f32.mrb[74].mxu0 }
0x11d6   :  { %v2584_v33 = vpack.c.bf16 %v2578_v39, %v2578_v39  ;;  %v2581_v27 = vadd.f32 %v2580_v63, %v2514_v16  ;;  %v5754_v49 = vpop.f32.mrb[75].mxu0 }
0x11d8   :  { %v7115_v5 = vadd.bf16 %v2584_v33, %v7059_v31  ;;  %v2585_v8 = vpack.c.bf16 %v2581_v27, %v2581_v27 }
0x11da   :  { %v7118_v58 = vadd.bf16 %v2585_v8, %v7062_v30  ;;  %v2608_v36 = vunpack.c.l.bf16 %v7115_v5 }
0x11dc   :  { %v2610_v53 = vsel %vm97_vm0, %v2608_v36, 0.0  ;;  %v2609_v59 = vunpack.c.l.bf16 %v7118_v58 }
0x11dd   :  { %2611 = vadd.xlane.f32.xlu0 %v2610_v53 }
0x11de   :  { %v2613_v54 = vsel %vm97_vm0, %v2609_v59, 0.0 }
0x11df   :  { %2614 = vadd.xlane.f32.xlu1 %v2613_v54 }
0x126a   :  { %v2612_v56 = vpop.xlane.xlu0 %2611 }
0x126b   :  { %v2616_v61 = vmul.f32 0.03125, %v2612_v56 }
0x126c   :  { %v2615_v60 = vpop.xlane.xlu1 %2614 }
0x126d   :  { %v2618_v55 = vsub.f32 %v2608_v36, %v2616_v61  ;;  %v2617_v31 = vmul.f32 0.03125, %v2615_v60 }
0x126f   :  { %v2619_v45 = vsub.f32 %v2609_v59, %v2617_v31  ;;  %v2620_v3 = vmul.f32 %v2618_v55, %v2618_v55  ;;  %v2648_v25 = vmul.f32 %v2647_v34, %v2618_v55 }
0x1271   :  { %v2622_v30 = vsel %vm97_vm0, %v2620_v3, 0.0  ;;  %v2621_v1 = vmul.f32 %v2619_v45, %v2619_v45  ;;  %v2649_v44 = vmul.f32 %v2647_v34, %v2619_v45 }
0x1272   :  { %2623 = vadd.xlane.f32.xlu0 %v2622_v30 }
0x1273   :  { %v2625_v4 = vsel %vm97_vm0, %v2621_v1, 0.0 }
0x1274   :  { %2626 = vadd.xlane.f32.xlu1 %v2625_v4 }
0x12ff   :  { %v2624_v11 = vpop.xlane.xlu0 %2623 }
0x1300   :  { %v2628_v57 = vmul.f32 0.032258064, %v2624_v11 }
0x1301   :  { %v2627_v12 = vpop.xlane.xlu1 %2626 }
0x1302   :  { %6198 = vrsqrt.f32 %v2628_v57  ;;  %v2629_v19 = vmul.f32 0.032258064, %v2627_v12  ;;  %vm2632_vm12 = vcmp.eq.f32.partialorder %v2628_v57, inf  ;;  %v2635_v22 = vand.u32 2147483648, %v2628_v57 }
0x1303   :  { %vm2634_vm13 = vcmp.eq.f32.partialorder %v2628_v57, 0.0 }
0x1304   :  { %6200 = vrsqrt.f32 %v2629_v19  ;;  %vm2639_vm14 = vcmp.eq.f32.partialorder %v2629_v19, inf  ;;  %v2642_v35 = vand.u32 2147483648, %v2629_v19  ;;  %vm2641_vm15 = vcmp.eq.f32.partialorder %v2629_v19, 0.0 }
0x130c   :  { %v6199_v20 = vpop.eup %6198 }
0x130d   :  { %v2631_v21 = vmul.f32 %v6199_v20, %v2628_v57 }
0x130e   :  { %v6201_v13 = vpop.eup %6200 }
0x130f   :  { %v2633_v23 = vsel %vm2632_vm12, %v2628_v57, %v2631_v21  ;;  %v2638_v52 = vmul.f32 %v6201_v13, %v2629_v19 }
0x1310   :  { %v2636_v26 = vsel %vm2634_vm13, %v2635_v22, %v2633_v23 }
0x1311   :  { %v2650_v24 = vadd.f32 1e-06, %v2636_v26  ;;  %v2640_v28 = vsel %vm2639_vm14, %v2629_v19, %v2638_v52 }
0x1312   :  { %v2643_v51 = vsel %vm2641_vm15, %v2642_v35, %v2640_v28 }
0x1313   :  { %6202 = vrcp.f32 %v2650_v24  ;;  %v2651_v15 = vadd.f32 1e-06, %v2643_v51 }
0x1315   :  { %6204 = vrcp.f32 %v2651_v15 }
0x131d   :  { %v6203_v42 = vpop.eup %6202 }
0x131e   :  { %v2654_v43 = vmul.f32 %v6203_v42, %v2648_v25 }
0x131f   :  { %v6205_v41 = vpop.eup %6204 }
0x1320   :  { %v2660_v16 = vadd.f32 %v2659_v38, %v2654_v43  ;;  %v2655_v48 = vmul.f32 %v6205_v41, %v2649_v44 }
0x1322   :  { %v2661_v39 = vadd.f32 %v2659_v38, %v2655_v48 }
0x1324   :  { %v5320_v47 = vpack.c.bf16 %v2661_v39, %v2660_v16 }
0x1326   :  { %5760 = vmatmul.mubr.msk.bf16.vlgmr.msra.gmra.mrb[80].mxu1 %vm97_vm0, %v5320_v47 }
0x1327   :  { %5765 = vmatprep.mubr.msk.bf16.mxu1 %vm6387_vm1, %v6386_v17 }
0x13f9   :  { %v2718_v63 = vpop.f32.mrb[80].mxu1 }
0x13fa   :  { %v7154_v37 = vpack.c.bf16 %v2718_v63, %v2718_v63  ;;  %v5761_v33 = vpop.f32.mrb[81].mxu1 }
0x13fb   :  { %v2721_v27 = vpop.f32.mrb[82].mxu1 }
0x13fc   :  { %v7156_v40 = vpack.c.bf16 %v2721_v27, %v2721_v27  ;;  %2731 = vrot.lane.b32.xlu0 %v7154_v37, %s6388_s17  ;;  %v5762_v49 = vpop.f32.mrb[83].mxu1 }
0x13fe   :  { %2733 = vrot.lane.b32.xlu1 %v7156_v40, %s6388_s17 }
0x1400   :  { %2739 = vrot.lane.b32.xlu0 %v7154_v37, %s6389_s18 }
0x1402   :  { %2735 = vrot.lane.b32.xlu1 %v7154_v37, %s6390_s19 }
0x1404   :  { %2743 = vrot.lane.b32.xlu0 %v7154_v37, %s6391_s0 }
0x1406   :  { %2737 = vrot.lane.b32.xlu1 %v7156_v40, %s6390_s19 }
0x140a   :  { %2741 = vrot.lane.b32.xlu1 %v7156_v40, %s6389_s18 }
0x140e   :  { %2791 = vrot.lane.b32.xlu1 %v7156_v40, %s6391_s0 }
0x146e   :  { %v2732_v8 = vpop.permute.xlu0 %2731 }
0x146f   :  { %v7174_v36 = vcombine.low %v2732_v8, %v2732_v8 }
0x1470   :  { %v2734_v53 = vpop.permute.xlu1 %2733 }
0x1471   :  { %v7176_v59 = vcombine.low %v2734_v53, %v2734_v53  ;;  %2841 = vrot.lane.b32.xlu0 %v7174_v36, %s6391_s0 }
0x1472   :  { %v2740_v54 = vpop.permute.xlu0 %2739 }
0x1473   :  { %2891 = vrot.lane.b32.xlu1 %v7176_v59, %s6391_s0  ;;  %v7187_v45 = vcombine.low %v2740_v54, %v2740_v54 }
0x1474   :  { %v2736_v56 = vpop.permute.xlu1 %2735 }
0x1475   :  { %v7182_v61 = vcombine.low %v2736_v56, %v2736_v56 }
0x1476   :  { %v2744_v60 = vpop.permute.xlu0 %2743 }
0x1477   :  { %v2749_v55 = vsel %vm235_vm6, %v2744_v60, 0  ;;  %2941 = vrot.lane.b32.xlu0 %v7182_v61, %s6391_s0 }
0x1478   :  { %5764 = vmatpush3.bf16.xpose.msra.mxu1 %v2749_v55  ;;  %v2738_v31 = vpop.permute.xlu1 %2737 }
0x1479   :  { %v7189_v3 = vcombine.low %v2738_v31, %v2738_v31  ;;  %5775 = vmatprep.subr.bf16.mxu1 %v6386_v17 }
0x147b   :  { %3041 = vrot.lane.b32.xlu0 %v7187_v45, %s6391_s0  ;;  %2991 = vrot.lane.b32.xlu1 %v7189_v3, %s6391_s0 }
0x147c   :  { %v2742_v30 = vpop.permute.xlu1 %2741 }
0x147d   :  { %v7196_v1 = vcombine.low %v2742_v30, %v2742_v30 }
0x147f   :  { %5766 = vmatmul.mubr.msk.bf16.vlgmr.msra.gmra.mrb[84].mxu1 %vm235_vm6, %v7154_v37  ;;  %3091 = vrot.lane.b32.xlu1 %v7196_v1, %s6391_s0 }
0x1480   :  { %v2792_v4 = vpop.permute.xlu1 %2791  ;;  %5777 = vmatprep.mubr.msk.bf16.mxu1 %vm6387_vm1, %v6386_v17 }
0x1481   :  { %v2797_v11 = vsel %vm235_vm6, %v2792_v4, 0 }
0x1482   :  { %5770 = vmatpush3.bf16.xpose.msra.mxu0 %v2797_v11 }
0x1483   :  { %5781 = vmatprep.subr.bf16.mxu0 %v6386_v17 }
0x1489   :  { %5772 = vmatmul.mubr.msk.bf16.vlgmr.msra.gmra.mrb[76].mxu0 %vm235_vm6, %v7156_v40 }
0x148a   :  { %5783 = vmatprep.mubr.msk.bf16.mxu0 %vm6387_vm1, %v6386_v17 }
0x14e3   :  { %v2842_v57 = vpop.permute.xlu0 %2841 }
0x14e4   :  { %v2847_v12 = vsel %vm235_vm6, %v2842_v57, 0 }
0x14e5   :  { %5776 = vmatpush3.bf16.xpose.msra.mxu1 %v2847_v12  ;;  %v2892_v19 = vpop.permute.xlu1 %2891 }
0x14e6   :  { %v2897_v20 = vsel %vm235_vm6, %v2892_v19, 0  ;;  %5787 = vmatprep.subr.bf16.mxu1 %v6386_v17 }
0x14e7   :  { %5782 = vmatpush3.bf16.xpose.msra.mxu0 %v2897_v20 }
0x14e8   :  { %5793 = vmatprep.subr.bf16.mxu0 %v6386_v17 }
0x14e9   :  { %v2942_v21 = vpop.permute.xlu0 %2941 }
0x14ea   :  { %v2947_v22 = vsel %vm235_vm6, %v2942_v21, 0 }
0x14ec   :  { %5778 = vmatmul.mubr.msk.bf16.vlgmr.msra.gmra.mrb[88].mxu1 %vm235_vm6, %v2732_v8 }
0x14ed   :  { %5788 = vmatpush3.bf16.xpose.msra.mxu1 %v2947_v22  ;;  %v2992_v13 = vpop.permute.xlu1 %2991  ;;  %5789 = vmatprep.mubr.msk.bf16.mxu1 %vm6387_vm1, %v6386_v17  ;;  %v3042_v26 = vpop.permute.xlu0 %3041 }
0x14ee   :  { %v2997_v23 = vsel %vm235_vm6, %v2992_v13, 0  ;;  %5784 = vmatmul.mubr.msk.bf16.vlgmr.msra.gmra.mrb[80].mxu0 %vm235_vm6, %v2734_v53  ;;  %5799 = vmatprep.subr.bf16.mxu1 %v6386_v17  ;;  %v3047_v24 = vsel %vm235_vm6, %v3042_v26, 0 }
0x14ef   :  { %5794 = vmatpush3.bf16.xpose.msra.mxu0 %v2997_v23  ;;  %5795 = vmatprep.mubr.msk.bf16.mxu0 %vm6387_vm1, %v6386_v17 }
0x14f0   :  { %5805 = vmatprep.subr.bf16.mxu0 %v6386_v17 }
0x14f1   :  { %v3092_v52 = vpop.permute.xlu1 %3091 }
0x14f2   :  { %v3097_v35 = vsel %vm235_vm6, %v3092_v52, 0 }
0x14f4   :  { %5790 = vmatmul.mubr.msk.bf16.vlgmr.msra.gmra.mrb[92].mxu1 %vm235_vm6, %v2736_v56 }
0x14f5   :  { %5800 = vmatpush3.bf16.xpose.msra.mxu1 %v3047_v24  ;;  %5801 = vmatprep.mubr.msk.bf16.mxu1 %vm6387_vm1, %v6386_v17 }
0x14f6   :  { %5796 = vmatmul.mubr.msk.bf16.vlgmr.msra.gmra.mrb[84].mxu0 %vm235_vm6, %v2738_v31  ;;  %5811 = vmatprep.subr.bf16.mxu1 %v6386_v17 }
0x14f7   :  { %5806 = vmatpush3.bf16.xpose.msra.mxu0 %v3097_v35  ;;  %5807 = vmatprep.mubr.msk.bf16.mxu0 %vm6387_vm1, %v6386_v17 }
0x14f8   :  { %5817 = vmatprep.subr.bf16.mxu0 %v6386_v17 }
0x14fc   :  { %5802 = vmatmul.mubr.msk.bf16.vlgmr.msra.gmra.mrb[96].mxu1 %vm235_vm6, %v2740_v54 }
0x14fd   :  { %5813 = vmatprep.mubr.msk.bf16.mxu1 %vm6387_vm1, %v6386_v17 }
0x14fe   :  { %5808 = vmatmul.mubr.msk.bf16.vlgmr.msra.gmra.mrb[88].mxu0 %vm235_vm6, %v2742_v30 }
0x14ff   :  { %5819 = vmatprep.mubr.msk.bf16.mxu0 %vm6387_vm1, %v6386_v17 }
0x1552   :  { %v2785_v28 = vpop.f32.mrb[84].mxu1 }
0x1553   :  { %v3139_v51 = vmul.f32 0.35355338, %v2785_v28  ;;  %v5767_v15 = vpop.f32.mrb[85].mxu1 }
0x1554   :  { %v2788_v34 = vpop.f32.mrb[86].mxu1 }
0x1555   :  { %v3147_v38 = vadd.f32 %v3139_v51, %v6620_v29  ;;  %v5768_v25 = vpop.f32.mrb[87].mxu1 }
0x1557   :  { %v3155_v42 = vsel %vm235_vm6, %v3147_v38, -inf }
0x1558   :  { %3156 = vmax.xlane.f32.xlu0 %v3155_v42 }
0x155c   :  { %v2833_v43 = vpop.f32.mrb[76].mxu0 }
0x155d   :  { %v3140_v44 = vmul.f32 0.35355338, %v2833_v43  ;;  %v5773_v41 = vpop.f32.mrb[77].mxu0 }
0x155e   :  { %v2836_v16 = vpop.f32.mrb[78].mxu0 }
0x155f   :  { %v7243_v48 = vadd.f32 %v3140_v44, %v6620_v29  ;;  %v5774_v39 = vpop.f32.mrb[79].mxu0 }
0x1561   :  { %v3158_v47 = vsel %vm235_vm6, %v7243_v48, -inf }
0x1562   :  { %3159 = vmax.xlane.f32.xlu1 %v3158_v47 }
0x15bf   :  { %v2883_v63 = vpop.f32.mrb[88].mxu1 }
0x15c0   :  { %v3141_v33 = vmul.f32 0.35355338, %v2883_v63  ;;  %v5779_v27 = vpop.f32.mrb[89].mxu1 }
0x15c1   :  { %v2886_v49 = vpop.f32.mrb[90].mxu1  ;;  %v2933_v8 = vpop.f32.mrb[80].mxu0 }
0x15c2   :  { %v7248_v53 = vadd.f32 %v3141_v33, %v6620_v29  ;;  %v3142_v54 = vmul.f32 0.35355338, %v2933_v8  ;;  %v5780_v56 = vpop.f32.mrb[91].mxu1  ;;  %v5785_v60 = vpop.f32.mrb[81].mxu0 }
0x15c3   :  { %v2936_v55 = vpop.f32.mrb[82].mxu0 }
0x15c4   :  { %v7251_v31 = vadd.f32 %v3142_v54, %v6620_v29  ;;  %v5786_v30 = vpop.f32.mrb[83].mxu0  ;;  %v3161_v4 = vsel %vm235_vm6, %v7248_v53, -inf }
0x15c5   :  { %3162 = vmax.xlane.f32.xlu0 %v3161_v4 }
0x15c6   :  { %v3164_v19 = vsel %vm235_vm6, %v7251_v31, -inf }
0x15c7   :  { %v2983_v11 = vpop.f32.mrb[92].mxu1 }
0x15c8   :  { %v3143_v57 = vmul.f32 0.35355338, %v2983_v11  ;;  %v5791_v12 = vpop.f32.mrb[93].mxu1 }
0x15c9   :  { %v3033_v20 = vpop.f32.mrb[84].mxu0  ;;  %3165 = vmax.xlane.f32.xlu0 %v3164_v19  ;;  %v2986_v21 = vpop.f32.mrb[94].mxu1 }
0x15ca   :  { %v7258_v22 = vadd.f32 %v3143_v57, %v6620_v29  ;;  %v3144_v13 = vmul.f32 0.35355338, %v3033_v20  ;;  %v5792_v23 = vpop.f32.mrb[95].mxu1  ;;  %v5797_v26 = vpop.f32.mrb[85].mxu0 }
0x15cb   :  { %v3036_v52 = vpop.f32.mrb[86].mxu0 }
0x15cc   :  { %v3152_v24 = vadd.f32 %v3144_v13, %v6620_v29  ;;  %v5798_v35 = vpop.f32.mrb[87].mxu0  ;;  %v3167_v28 = vsel %vm235_vm6, %v7258_v22, -inf }
0x15cd   :  { %3168 = vmax.xlane.f32.xlu0 %v3167_v28 }
0x15ce   :  { %v3170_v51 = vsel %vm235_vm6, %v3152_v24, -inf }
0x15cf   :  { %3171 = vmax.xlane.f32.xlu1 %v3170_v51  ;;  %v3083_v15 = vpop.f32.mrb[96].mxu1 }
0x15d0   :  { %v3145_v34 = vmul.f32 0.35355338, %v3083_v15  ;;  %v5803_v25 = vpop.f32.mrb[97].mxu1 }
0x15d1   :  { %v3086_v42 = vpop.f32.mrb[98].mxu1  ;;  %v3133_v43 = vpop.f32.mrb[88].mxu0 }
0x15d2   :  { %v7265_v44 = vadd.f32 %v3145_v34, %v6620_v29  ;;  %v5804_v41 = vpop.f32.mrb[99].mxu1  ;;  %v5809_v16 = vpop.f32.mrb[89].mxu0  ;;  %v3146_v8 = vmul.f32 0.35355338, %v3133_v43 }
0x15d3   :  { %v3136_v39 = vpop.f32.mrb[90].mxu0 }
0x15d4   :  { %v5810_v47 = vpop.f32.mrb[91].mxu0  ;;  %v3173_v63 = vsel %vm235_vm6, %v7265_v44, -inf  ;;  %v3154_v54 = vadd.f32 %v3146_v8, %v6620_v29 }
0x15d5   :  { %3174 = vmax.xlane.f32.xlu0 %v3173_v63 }
0x15d6   :  { %v3176_v60 = vsel %vm235_vm6, %v3154_v54, -inf }
0x15e0   :  { %3299 = vrot.lane.b32.xlu1 %v7156_v40, %s6383_s20 }
0x15e4   :  { %3347 = vrot.lane.b32.xlu1 %v7174_v36, %s6383_s20 }
0x15e5   :  { %v3157_v33 = vpop.xlane.xlu0 %3156 }
0x15e6   :  { %v3179_v27 = vsub.f32 %v3147_v38, %v3157_v33 }
0x15e8   :  { %v3187_v49 = vmul.f32 1.442695, %v3179_v27 }
0x15ea   :  { %6206 = vpow2.f32 %v3187_v49 }
0x15eb   :  { %3251 = vrot.lane.b32.xlu0 %v7154_v37, %s6383_s20 }
0x15ef   :  { %v3160_v37 = vpop.xlane.xlu1 %3159 }
0x15f0   :  { %v3180_v36 = vsub.f32 %v7243_v48, %v3160_v37 }
0x15f2   :  { %v3189_v38 = vmul.f32 1.442695, %v3180_v36 }
0x15f4   :  { %v7276_v56 = vpop.eup %6206  ;;  %6208 = vpow2.f32 %v3189_v38 }
0x15f5   :  { %v3203_v40 = vsel %vm235_vm6, %v7276_v56, 0.0 }
0x15fe   :  { %v7284_v55 = vpop.eup %6208 }
0x15ff   :  { %v3206_v29 = vsel %vm235_vm6, %v7284_v55, 0.0 }
0x1608   :  { %3177 = vmax.xlane.f32.xlu1 %v3176_v60 }
0x160a   :  { %3204 = vadd.xlane.f32.xlu0 %v3203_v40 }
0x1619   :  { %3395 = vrot.lane.b32.xlu1 %v7176_v59, %s6383_s20 }
0x163d   :  { %3207 = vadd.xlane.f32.xlu1 %v3206_v29 }
0x164e   :  { %3491 = vrot.lane.b32.xlu1 %v7189_v3, %s6383_s20 }
0x1652   :  { %v3163_v30 = vpop.xlane.xlu0 %3162 }
0x1653   :  { %v3181_v4 = vsub.f32 %v7248_v53, %v3163_v30 }
0x1655   :  { %v3191_v11 = vmul.f32 1.442695, %v3181_v4 }
0x1656   :  { %v3166_v59 = vpop.xlane.xlu0 %3165 }
0x1657   :  { %6210 = vpow2.f32 %v3191_v11  ;;  %v3182_v57 = vsub.f32 %v7251_v31, %v3166_v59 }
0x1659   :  { %v3193_v19 = vmul.f32 1.442695, %v3182_v57 }
0x165a   :  { %v3169_v12 = vpop.xlane.xlu0 %3168 }
0x165b   :  { %6212 = vpow2.f32 %v3193_v19  ;;  %v3183_v15 = vsub.f32 %v7258_v22, %v3169_v12 }
0x165c   :  { %v3172_v48 = vpop.xlane.xlu1 %3171 }
0x165d   :  { %v3184_v20 = vsub.f32 %v3152_v24, %v3172_v48  ;;  %v3195_v34 = vmul.f32 1.442695, %v3183_v15 }
0x165f   :  { %v3197_v53 = vmul.f32 1.442695, %v3184_v20 }
0x1660   :  { %v3300_v21 = vpop.permute.xlu1 %3299 }
0x1661   :  { %v7292_v13 = vpop.eup %6210  ;;  %v3305_v23 = vsel %vm747_vm8, %v3300_v21, 0  ;;  %6214 = vpow2.f32 %v3197_v53 }
0x1662   :  { %5818 = vmatpush3.bf16.msra.mxu0 %v3305_v23  ;;  %v3175_v26 = vpop.xlane.xlu0 %3174  ;;  %v3209_v3 = vsel %vm235_vm6, %v7292_v13, 0.0  ;;  %6216 = vpow2.f32 %v3195_v34 }
0x1663   :  { %3210 = vadd.xlane.f32.xlu0 %v3209_v3  ;;  %5829 = vmatprep.subr.bf16.mxu0 %v6386_v17  ;;  %v3185_v25 = vsub.f32 %v7265_v44, %v3175_v26 }
0x1664   :  { %v3348_v43 = vpop.permute.xlu1 %3347 }
0x1665   :  { %v7300_v24 = vpop.eup %6212  ;;  %v3199_v42 = vmul.f32 1.442695, %v3185_v25  ;;  %v3353_v60 = vsel %vm747_vm8, %v3348_v43, 0 }
0x1666   :  { %v3252_v31 = vpop.permute.xlu0 %3251  ;;  %v3212_v35 = vsel %vm235_vm6, %v7300_v24, 0.0 }
0x1667   :  { %v3257_v52 = vsel %vm747_vm8, %v3252_v31, 0  ;;  %6218 = vpow2.f32 %v3199_v42 }
0x1668   :  { %5812 = vmatpush3.bf16.msra.mxu1 %v3257_v52 }
0x1669   :  { %5823 = vmatprep.subr.bf16.mxu1 %v6386_v17 }
0x166b   :  { %v7304_v28 = vpop.eup %6214 }
0x166c   :  { %v3218_v51 = vsel %vm235_vm6, %v7304_v28, 0.0  ;;  %v7312_v41 = vpop.eup %6216 }
0x166d   :  { %v3215_v63 = vsel %vm235_vm6, %v7312_v41, 0.0 }
0x1671   :  { %v7316_v33 = vpop.eup %6218 }
0x1672   :  { %3213 = vadd.xlane.f32.xlu1 %v3212_v35  ;;  %v3221_v22 = vsel %vm235_vm6, %v7316_v33, 0.0 }
0x1676   :  { %3219 = vadd.xlane.f32.xlu1 %v3218_v51 }
0x1679   :  { %3443 = vrot.lane.b32.xlu0 %v7182_v61, %s6383_s20 }
0x1695   :  { %v3178_v16 = vpop.xlane.xlu1 %3177 }
0x1696   :  { %v3186_v39 = vsub.f32 %v3154_v54, %v3178_v16 }
0x1697   :  { %v3205_v47 = vpop.xlane.xlu0 %3204 }
0x1698   :  { %v3201_v61 = vmul.f32 1.442695, %v3186_v39  ;;  %6220 = vrcp.f32 %v3205_v47  ;;  %3216 = vadd.xlane.f32.xlu0 %v3215_v63 }
0x169a   :  { %6222 = vpow2.f32 %v3201_v61 }
0x169c   :  { %3222 = vadd.xlane.f32.xlu0 %v3221_v22 }
0x16a2   :  { %v6221_v44 = vpop.eup %6220 }
0x16a3   :  { %v3235_v27 = vmul.f32 %v6221_v44, %v7276_v56  ;;  %v3396_v56 = vpop.permute.xlu1 %3395 }
0x16a4   :  { %v7321_v49 = vpop.eup %6222  ;;  %v3401_v29 = vsel %vm747_vm8, %v3396_v56, 0 }
0x16a5   :  { %v3224_v8 = vsel %vm235_vm6, %v7321_v49, 0.0  ;;  %v3243_v54 = vpack.c.bf16 %v3235_v27, %v3235_v27 }
0x16a6   :  { %3225 = vadd.xlane.f32.xlu1 %v3224_v8 }
0x16a7   :  { %5814 = vmatmul.mubr.msk.bf16.vlgmr.msra.gmra.mrb[100].mxu1 %vm235_vm6, %v3243_v54 }
0x16a8   :  { %5824 = vmatpush3.bf16.msra.mxu1 %v3353_v60  ;;  %5825 = vmatprep.mubr.msk.bf16.mxu1 %vm6387_vm1, %v6386_v17 }
0x16a9   :  { %5835 = vmatprep.subr.bf16.mxu1 %v6386_v17 }
0x16b2   :  { %3539 = vrot.lane.b32.xlu0 %v7187_v45, %s6383_s20 }
0x16b6   :  { %3666 = vrot.lane.b32.xlu0 %v7129_v10, %s6393_s23 }
0x16b7   :  { %3587 = vrot.lane.b32.xlu1 %v7196_v1, %s6383_s20 }
0x16ca   :  { %v3208_v40 = vpop.xlane.xlu1 %3207 }
0x16cb   :  { %6224 = vrcp.f32 %v3208_v40 }
0x16ce   :  { %v3492_v1 = vpop.permute.xlu1 %3491 }
0x16cf   :  { %v3497_v21 = vsel %vm747_vm8, %v3492_v1, 0 }
0x16d5   :  { %v6225_v37 = vpop.eup %6224 }
0x16d6   :  { %v3236_v36 = vmul.f32 %v6225_v37, %v7284_v55 }
0x16d8   :  { %v3244_v38 = vpack.c.bf16 %v3236_v36, %v3236_v36 }
0x16da   :  { %5820 = vmatmul.mubr.msk.bf16.vlgmr.msra.gmra.mrb[92].mxu0 %vm235_vm6, %v3244_v38 }
0x16db   :  { %5830 = vmatpush3.bf16.msra.mxu0 %v3401_v29  ;;  %5831 = vmatprep.mubr.msk.bf16.mxu0 %vm6387_vm1, %v6386_v17 }
0x16dc   :  { %5841 = vmatprep.subr.bf16.mxu0 %v6386_v17 }
0x16f0   :  { %v3211_v10 = vpop.xlane.xlu0 %3210 }
0x16f1   :  { %6226 = vrcp.f32 %v3211_v10 }
0x16f4   :  { %v3444_v4 = vpop.permute.xlu0 %3443 }
0x16f5   :  { %v3449_v59 = vsel %vm747_vm8, %v3444_v4, 0 }
0x16fb   :  { %v6227_v45 = vpop.eup %6226 }
0x16fc   :  { %v3237_v30 = vmul.f32 %v6227_v45, %v7292_v13 }
0x16fe   :  { %v3245_v11 = vpack.c.bf16 %v3237_v30, %v3237_v30 }
0x16ff   :  { %v3214_v55 = vpop.xlane.xlu1 %3213 }
0x1700   :  { %6228 = vrcp.f32 %v3214_v55  ;;  %5826 = vmatmul.mubr.msk.bf16.vlgmr.msra.gmra.mrb[104].mxu1 %vm235_vm6, %v3245_v11 }
0x1701   :  { %5836 = vmatpush3.bf16.msra.mxu1 %v3449_v59  ;;  %5837 = vmatprep.mubr.msk.bf16.mxu1 %vm6387_vm1, %v6386_v17 }
0x1702   :  { %5847 = vmatprep.subr.bf16.mxu1 %v6386_v17 }
0x1703   :  { %v3220_v57 = vpop.xlane.xlu1 %3219 }
0x1704   :  { %6230 = vrcp.f32 %v3220_v57 }
0x170a   :  { %v6229_v48 = vpop.eup %6228 }
0x170b   :  { %v3238_v12 = vmul.f32 %v6229_v48, %v7300_v24 }
0x170d   :  { %v3246_v19 = vpack.c.bf16 %v3238_v12, %v3238_v12 }
0x170e   :  { %v6231_v20 = vpop.eup %6230 }
0x170f   :  { %5832 = vmatmul.mubr.msk.bf16.vlgmr.msra.gmra.mrb[96].mxu0 %vm235_vm6, %v3246_v19  ;;  %v3240_v13 = vmul.f32 %v6231_v20, %v7304_v28 }
0x1710   :  { %5842 = vmatpush3.bf16.msra.mxu0 %v3497_v21  ;;  %5843 = vmatprep.mubr.msk.bf16.mxu0 %vm6387_vm1, %v6386_v17 }
0x1711   :  { %5853 = vmatprep.subr.bf16.mxu0 %v6386_v17  ;;  %v3248_v23 = vpack.c.bf16 %v3240_v13, %v3240_v13 }
0x1717   :  { %5844 = vmatmul.mubr.msk.bf16.vlgmr.msra.gmra.mrb[100].mxu0 %vm235_vm6, %v3248_v23 }
0x1718   :  { %5855 = vmatprep.mubr.msk.bf16.mxu0 %vm6387_vm1, %v6386_v17 }
0x1725   :  { %v3217_v26 = vpop.xlane.xlu0 %3216 }
0x1726   :  { %6232 = vrcp.f32 %v3217_v26 }
0x1729   :  { %v3223_v3 = vpop.xlane.xlu0 %3222 }
0x172a   :  { %6234 = vrcp.f32 %v3223_v3 }
0x172d   :  { %v3540_v52 = vpop.permute.xlu0 %3539 }
0x172e   :  { %v3545_v28 = vsel %vm747_vm8, %v3540_v52, 0 }
0x1730   :  { %v6233_v53 = vpop.eup %6232 }
0x1731   :  { %v3239_v31 = vmul.f32 %v6233_v53, %v7312_v41  ;;  %v3667_v40 = vpop.permute.xlu0 %3666 }
0x1733   :  { %v3226_v24 = vpop.xlane.xlu1 %3225  ;;  %v3247_v35 = vpack.c.bf16 %v3239_v31, %v3239_v31 }
0x1734   :  { %v6235_v51 = vpop.eup %6234  ;;  %6236 = vrcp.f32 %v3226_v24 }
0x1735   :  { %5838 = vmatmul.mubr.msk.bf16.vlgmr.msra.gmra.mrb[108].mxu1 %vm235_vm6, %v3247_v35  ;;  %v3241_v15 = vmul.f32 %v6235_v51, %v7316_v33 }
0x1736   :  { %5848 = vmatpush3.bf16.msra.mxu1 %v3545_v28  ;;  %5849 = vmatprep.mubr.msk.bf16.mxu1 %vm6387_vm1, %v6386_v17 }
0x1737   :  { %v3588_v34 = vpop.permute.xlu1 %3587  ;;  %5859 = vmatprep.subr.bf16.mxu1 %v6386_v17  ;;  %v3249_v42 = vpack.c.bf16 %v3241_v15, %v3241_v15 }
0x1738   :  { %v3593_v25 = vsel %vm747_vm8, %v3588_v34, 0 }
0x1739   :  { %5854 = vmatpush3.bf16.msra.mxu0 %v3593_v25 }
0x173a   :  { %5867 = vmatprep.subr.bf16.mxu0 %v6386_v17 }
0x173d   :  { %5850 = vmatmul.mubr.msk.bf16.vlgmr.msra.gmra.mrb[112].mxu1 %vm235_vm6, %v3249_v42 }
0x173e   :  { %v6237_v43 = vpop.eup %6236  ;;  %5863 = vmatprep.mubr.msk.bf16.mxu1 %vm6387_vm1, %v6386_v17  ;;  %5860 = vmatpush3.bf16.msra.mxu1 %v3667_v40 }
0x173f   :  { %v3242_v41 = vmul.f32 %v6237_v43, %v7321_v49  ;;  %5861 = vmatprep.subr.bf16.mxu1 %v6386_v17 }
0x1741   :  { %v3250_v16 = vpack.c.bf16 %v3242_v41, %v3242_v41 }
0x1743   :  { %5856 = vmatmul.mubr.msk.bf16.vlgmr.msra.gmra.mrb[104].mxu0 %vm235_vm6, %v3250_v16 }
0x1744   :  { %5871 = vmatprep.mubr.msk.bf16.mxu0 %vm6387_vm1, %v6386_v17 }
0x177a   :  { %v3293_v39 = vpop.f32.mrb[100].mxu1 }
0x177b   :  { %v5815_v47 = vpop.f32.mrb[101].mxu1 }
0x177c   :  { %v3296_v63 = vpop.f32.mrb[102].mxu1 }
0x177d   :  { %v5816_v33 = vpop.f32.mrb[103].mxu1 }
0x17ad   :  { %v3341_v61 = vpop.f32.mrb[92].mxu0 }
0x17ae   :  { %v5821_v22 = vpop.f32.mrb[93].mxu0 }
0x17af   :  { %v3344_v44 = vpop.f32.mrb[94].mxu0 }
0x17b0   :  { %v5822_v27 = vpop.f32.mrb[95].mxu0 }
0x17d3   :  { %v3389_v8 = vpop.f32.mrb[104].mxu1 }
0x17d4   :  { %v5827_v54 = vpop.f32.mrb[105].mxu1 }
0x17d5   :  { %v3392_v60 = vpop.f32.mrb[106].mxu1 }
0x17d6   :  { %v5828_v56 = vpop.f32.mrb[107].mxu1 }
0x17e2   :  { %v3437_v49 = vpop.f32.mrb[96].mxu0 }
0x17e3   :  { %v6055_v37 = vpack.i.bf16 %v3437_v49, %v3389_v8  ;;  %v5833_v36 = vpop.f32.mrb[97].mxu0 }
0x17e4   :  { %v3440_v38 = vpop.f32.mrb[98].mxu0 }
0x17e5   :  { %v5834_v29 = vpop.f32.mrb[99].mxu0  ;;  %6056 = vrot.lane.b32.xlu1 %v6055_v37, %s6394_s24 }
0x17ea   :  { %v3533_v10 = vpop.f32.mrb[100].mxu0 }
0x17eb   :  { %v5845_v45 = vpop.f32.mrb[101].mxu0 }
0x17ec   :  { %v3536_v1 = vpop.f32.mrb[102].mxu0 }
0x17ed   :  { %v5846_v30 = vpop.f32.mrb[103].mxu0 }
0x1808   :  { %v3485_v4 = vpop.f32.mrb[108].mxu1 }
0x1809   :  { %v6060_v11 = vpack.i.bf16 %v3533_v10, %v3485_v4  ;;  %v5839_v55 = vpop.f32.mrb[109].mxu1 }
0x180a   :  { %v3488_v59 = vpop.f32.mrb[110].mxu1 }
0x180b   :  { %6061 = vrot.lane.b32.xlu0 %v6060_v11, %s6395_s25  ;;  %v5840_v57 = vpop.f32.mrb[111].mxu1 }
0x180f   :  { %3668 = vrot.lane.b32.xlu0 %v7135_v50, %s6393_s23 }
0x1810   :  { %v3581_v48 = vpop.f32.mrb[112].mxu1 }
0x1811   :  { %v5851_v12 = vpop.f32.mrb[113].mxu1 }
0x1812   :  { %v3584_v19 = vpop.f32.mrb[114].mxu1 }
0x1813   :  { %v5852_v20 = vpop.f32.mrb[115].mxu1 }
0x1814   :  { %v6295_v20 = vld [vmem:[#allocation7] sm:$0xff]  }
0x1816   :  { %v3629_v21 = vpop.f32.mrb[104].mxu0 }
0x1817   :  { %v6065_v13 = vpack.i.bf16 %v3629_v21, %v3581_v48  ;;  %v5857_v23 = vpop.f32.mrb[105].mxu0 }
0x1818   :  { %v3632_v26 = vpop.f32.mrb[106].mxu0 }
0x1819   :  { %v5858_v3 = vpop.f32.mrb[107].mxu0  ;;  %6066 = vrot.lane.b32.xlu1 %v6065_v13, %s6396_s26 }
0x1857   :  { %v6057_v52 = vpop.permute.xlu1 %6056 }
0x1858   :  { %v6059_v24 = vunpack.i.h.bf16 %v6057_v52  ;;  %v6058_v35 = vunpack.i.l.bf16 %v6057_v52 }
0x185a   :  { %v3660_v15 = vsel %vm235_vm6, %v3341_v61, %v6059_v24  ;;  %v3659_v34 = vsel %vm235_vm6, %v3293_v39, %v6058_v35 }
0x187d   :  { %v6062_v53 = vpop.permute.xlu0 %6061 }
0x187e   :  { %v6064_v50 = vunpack.i.h.bf16 %v6062_v53  ;;  %v6063_v51 = vunpack.i.l.bf16 %v6062_v53 }
0x1880   :  { %v3662_v43 = vsel %vm1153_vm9, %v3660_v15, %v6064_v50  ;;  %v3661_v41 = vsel %vm1153_vm9, %v3659_v34, %v6063_v51 }
0x1881   :  { %v3669_v31 = vpop.permute.xlu0 %3668 }
0x1882   :  { %5862 = vmatpush3.bf16.msra.mxu1 %v3669_v31 }
0x1883   :  { %5875 = vmatprep.subr.bf16.mxu1 %v6386_v17 }
0x188b   :  { %v6067_v28 = vpop.permute.xlu1 %6066 }
0x188c   :  { %v6069_v25 = vunpack.i.h.bf16 %v6067_v28  ;;  %v6068_v42 = vunpack.i.l.bf16 %v6067_v28  ;;  %v3759_v28 = vrot.slane %v7143_v7, %v1252_v18 }
0x188e   :  { %v3664_v16 = vsel %vm1156_vm10, %v3662_v43, %v6069_v25  ;;  %v3663_v47 = vsel %vm1156_vm10, %v3661_v41, %v6068_v42  ;;  %v3771_v43 = vrot.slane %v7143_v7, %v1264_v2 }
0x188f   :  { %v3665_v63 = vpack.c.bf16 %v3664_v16, %v3663_v47 }
0x1891   :  { %5864 = vmatmul.mubr.msk.bf16.vlgmr.msra.gmra.mrb[116].mxu1 %vm97_vm0, %v3665_v63 }
0x1892   :  { %5879 = vmatprep.mubr.msk.bf16.mxu1 %vm6387_vm1, %v6386_v17 }
0x1964   :  { %v3709_v33 = vpop.f32.mrb[116].mxu1 }
0x1965   :  { %v3716_v61 = vpack.c.bf16 %v3709_v33, %v3709_v33  ;;  %v5865_v22 = vpop.f32.mrb[117].mxu1 }
0x1966   :  { %v3712_v39 = vpop.f32.mrb[118].mxu1 }
0x1967   :  { %v7391_v44 = vadd.bf16 %v3716_v61, %v7115_v5  ;;  %v3717_v27 = vpack.c.bf16 %v3712_v39, %v3712_v39  ;;  %v5866_v8 = vpop.f32.mrb[119].mxu1  ;;  %v7403_v5 = vld [vmem:[%s7743_s3 + $0x34] ss:$12 sps:$4 sm:$0xff]  }
0x1968   :  { %5868 = vmatpush3.bf16.msra.mxu0 %v7403_v5 }
0x1969   :  { %v7394_v54 = vadd.bf16 %v3717_v27, %v7118_v58  ;;  %v3720_v60 = vunpack.c.l.bf16 %v7391_v44  ;;  %5869 = vmatprep.subr.bf16.mxu0 %v6386_v17  ;;  %v7412_v58 = vld [vmem:[%s7743_s3 + $0x4c] ss:$12 sps:$4 sm:$0xff]  }
0x196b   :  { %v3722_v56 = vsel %vm97_vm0, %v3720_v60, 0.0  ;;  %v3721_v40 = vunpack.c.l.bf16 %v7394_v54 }
0x196c   :  { %3723 = vadd.xlane.f32.xlu1 %v3722_v56  ;;  %5870 = vmatpush3.bf16.msra.mxu0 %v7412_v58 }
0x196d   :  { %v3725_v49 = vsel %vm97_vm0, %v3721_v40, 0.0  ;;  %5883 = vmatprep.subr.bf16.mxu0 %v6386_v17 }
0x196e   :  { %3726 = vadd.xlane.f32.xlu0 %v3725_v49 }
0x197d   :  { %3839 = vrot.lane.b32.xlu1 %v7403_v5, %s6391_s0 }
0x19f9   :  { %v3724_v37 = vpop.xlane.xlu1 %3723 }
0x19fa   :  { %v3728_v36 = vmul.f32 0.03125, %v3724_v37 }
0x19fb   :  { %v3727_v38 = vpop.xlane.xlu0 %3726 }
0x19fc   :  { %v3730_v29 = vsub.f32 %v3720_v60, %v3728_v36  ;;  %v3729_v10 = vmul.f32 0.03125, %v3727_v38 }
0x19fd   :  { %v3840_v55 = vpop.permute.xlu1 %3839 }
0x19fe   :  { %v3731_v45 = vsub.f32 %v3721_v40, %v3729_v10  ;;  %v3732_v1 = vmul.f32 %v3730_v29, %v3730_v29  ;;  %5876 = vmatpush3.bf16.msra.mxu1 %v3840_v55  ;;  %v3760_v34 = vmul.f32 %v3759_v28, %v3730_v29 }
0x19ff   :  { %5877 = vmatprep.subr.bf16.mxu1 %v6386_v17 }
0x1a00   :  { %v3734_v30 = vsel %vm97_vm0, %v3732_v1, 0.0  ;;  %v3733_v4 = vmul.f32 %v3731_v45, %v3731_v45  ;;  %v3761_v25 = vmul.f32 %v3759_v28, %v3731_v45 }
0x1a01   :  { %3735 = vadd.xlane.f32.xlu0 %v3734_v30 }
0x1a02   :  { %v3737_v11 = vsel %vm97_vm0, %v3733_v4, 0.0 }
0x1a05   :  { %3738 = vadd.xlane.f32.xlu0 %v3737_v11 }
0x1a1b   :  { %3841 = vrot.lane.b32.xlu0 %v7412_v58, %s6391_s0 }
0x1a8e   :  { %v3736_v59 = vpop.xlane.xlu0 %3735 }
0x1a8f   :  { %v3740_v57 = vmul.f32 0.032258064, %v3736_v59 }
0x1a91   :  { %6238 = vrsqrt.f32 %v3740_v57  ;;  %vm3744_vm2 = vcmp.eq.f32.partialorder %v3740_v57, inf  ;;  %v3747_v23 = vand.u32 2147483648, %v3740_v57  ;;  %vm3746_vm3 = vcmp.eq.f32.partialorder %v3740_v57, 0.0 }
0x1a92   :  { %v3739_v48 = vpop.xlane.xlu0 %3738 }
0x1a93   :  { %v3741_v12 = vmul.f32 0.032258064, %v3739_v48 }
0x1a95   :  { %6240 = vrsqrt.f32 %v3741_v12  ;;  %vm3751_vm4 = vcmp.eq.f32.partialorder %v3741_v12, inf  ;;  %v3754_v24 = vand.u32 2147483648, %v3741_v12  ;;  %vm3753_vm5 = vcmp.eq.f32.partialorder %v3741_v12, 0.0 }
0x1a96   :  { %v3842_v19 = vpop.permute.xlu0 %3841 }
0x1a97   :  { %5878 = vmatpush3.bf16.msra.mxu1 %v3842_v19 }
0x1a98   :  { %5889 = vmatprep.subr.bf16.mxu1 %v6386_v17 }
0x1a9a   :  { %5880 = vmatmul.mubr.msk.bf16.vlgmr.msra.gmra.mrb[120].mxu1 %vm97_vm0, %v6295_v20 }
0x1a9b   :  { %v6239_v21 = vpop.eup %6238  ;;  %5891 = vmatprep.mubr.msk.bf16.mxu1 %vm6387_vm1, %v6386_v17 }
0x1a9c   :  { %v3743_v13 = vmul.f32 %v6239_v21, %v3740_v57 }
0x1a9e   :  { %v3745_v26 = vsel %vm3744_vm2, %v3740_v57, %v3743_v13 }
0x1a9f   :  { %v6241_v3 = vpop.eup %6240  ;;  %v3748_v53 = vsel %vm3746_vm3, %v3747_v23, %v3745_v26 }
0x1aa0   :  { %v3762_v31 = vadd.f32 1e-06, %v3748_v53  ;;  %v3750_v52 = vmul.f32 %v6241_v3, %v3741_v12 }
0x1aa2   :  { %6242 = vrcp.f32 %v3762_v31  ;;  %v3752_v35 = vsel %vm3751_vm4, %v3741_v12, %v3750_v52 }
0x1aa3   :  { %v3755_v50 = vsel %vm3753_vm5, %v3754_v24, %v3752_v35 }
0x1aa4   :  { %v3763_v51 = vadd.f32 1e-06, %v3755_v50 }
0x1aa6   :  { %6244 = vrcp.f32 %v3763_v51 }
0x1aac   :  { %v6243_v15 = vpop.eup %6242 }
0x1aad   :  { %v3766_v42 = vmul.f32 %v6243_v15, %v3760_v34 }
0x1aaf   :  { %v3772_v47 = vadd.f32 %v3771_v43, %v3766_v42 }
0x1ab0   :  { %v6245_v41 = vpop.eup %6244 }
0x1ab1   :  { %v3767_v16 = vmul.f32 %v6245_v41, %v3761_v25 }
0x1ab3   :  { %v3773_v63 = vadd.f32 %v3771_v43, %v3767_v16 }
0x1ab5   :  { %v5323_v33 = vpack.c.bf16 %v3773_v63, %v3772_v47 }
0x1ab7   :  { %5872 = vmatmul.mubr.msk.bf16.vlgmr.msra.gmra.mrb[108].mxu0 %vm97_vm0, %v5323_v33 }
0x1ab8   :  { %5885 = vmatprep.mubr.msk.bf16.mxu0 %vm6387_vm1, %v6386_v17 }
0x1b6d   :  { %v3879_v61 = vpop.f32.mrb[120].mxu1 }
0x1b6e   :  { %v5326_v18 = vpack.c.bf16 %v3879_v61, %v3879_v61  ;;  %v5881_v22 = vpop.f32.mrb[121].mxu1 }
0x1b6f   :  { %v3882_v39 = vpop.f32.mrb[122].mxu1 }
0x1b70   :  { %3904 = vrot.lane.b32.xlu1 %v5326_v18, %s6388_s17  ;;  %v7435_v27 = vpack.c.bf16 %v3882_v39, %v3882_v39  ;;  %v5882_v8 = vpop.f32.mrb[123].mxu1  ;;  %v3920_v2 = vsel %vm235_vm6, %v5326_v18, 0 }
0x1b71   :  { %5884 = vmatpush3.bf16.xpose.msra.mxu0 %v3920_v2 }
0x1b72   :  { %3910 = vrot.lane.b32.xlu0 %v7435_v27, %s6390_s19  ;;  %v3966_v7 = vsel %vm235_vm6, %v7435_v27, 0  ;;  %5895 = vmatprep.subr.bf16.mxu0 %v6386_v17 }
0x1b73   :  { %5890 = vmatpush3.bf16.xpose.msra.mxu1 %v3966_v7 }
0x1b74   :  { %3906 = vrot.lane.b32.xlu1 %v7435_v27, %s6388_s17  ;;  %5901 = vmatprep.subr.bf16.mxu1 %v6386_v17 }
0x1b78   :  { %3908 = vrot.lane.b32.xlu1 %v5326_v18, %s6390_s19 }
0x1b8a   :  { %v3826_v60 = vpop.f32.mrb[108].mxu0 }
0x1b8b   :  { %v5324_v56 = vpack.c.bf16 %v3826_v60, %v3826_v60  ;;  %v5873_v40 = vpop.f32.mrb[109].mxu0 }
0x1b8c   :  { %v3829_v49 = vpop.f32.mrb[110].mxu0 }
0x1b8d   :  { %v5325_v37 = vpack.c.bf16 %v3829_v49, %v3829_v49  ;;  %v5874_v36 = vpop.f32.mrb[111].mxu0  ;;  %5886 = vmatmul.mubr.msk.bf16.vlgmr.msra.gmra.mrb[112].mxu0 %vm235_vm6, %v5324_v56  ;;  %3892 = vrot.lane.b32.xlu1 %v5324_v56, %s6388_s17 }
0x1b8e   :  { %5897 = vmatprep.mubr.msk.bf16.mxu0 %vm6387_vm1, %v6386_v17 }
0x1b8f   :  { %3894 = vrot.lane.b32.xlu0 %v5325_v37, %s6388_s17  ;;  %5892 = vmatmul.mubr.msk.bf16.vlgmr.msra.gmra.mrb[124].mxu1 %vm235_vm6, %v5325_v37 }
0x1b90   :  { %5903 = vmatprep.mubr.msk.bf16.mxu1 %vm6387_vm1, %v6386_v17 }
0x1b91   :  { %3896 = vrot.lane.b32.xlu1 %v5324_v56, %s6390_s19 }
0x1b93   :  { %3898 = vrot.lane.b32.xlu0 %v5325_v37, %s6390_s19 }
0x1b95   :  { %3912 = vrot.lane.b32.xlu1 %v5326_v18, %s6389_s18 }
0x1b97   :  { %3914 = vrot.lane.b32.xlu0 %v7435_v27, %s6389_s18 }
0x1b99   :  { %3900 = vrot.lane.b32.xlu1 %v5324_v56, %s6389_s18 }
0x1b9b   :  { %3902 = vrot.lane.b32.xlu0 %v5325_v37, %s6389_s18 }
0x1b9d   :  { %4396 = vrot.lane.b32.xlu1 %v5326_v18, %s6391_s0 }
0x1be2   :  { %v7463_v38 = vpop.permute.xlu1 %3904 }
0x1be3   :  { %v4012_v29 = vsel %vm235_vm6, %v7463_v38, 0 }
0x1be4   :  { %5896 = vmatpush3.bf16.xpose.msra.mxu0 %v4012_v29  ;;  %v7475_v30 = vpop.permute.xlu0 %3910 }
0x1be5   :  { %5907 = vmatprep.subr.bf16.mxu0 %v6386_v17  ;;  %v4150_v59 = vsel %vm235_vm6, %v7475_v30, 0 }
0x1be6   :  { %v7468_v10 = vpop.permute.xlu1 %3906 }
0x1be7   :  { %v4058_v45 = vsel %vm235_vm6, %v7468_v10, 0 }
0x1be8   :  { %5902 = vmatpush3.bf16.xpose.msra.mxu1 %v4058_v45 }
0x1be9   :  { %5913 = vmatprep.subr.bf16.mxu1 %v6386_v17 }
0x1bea   :  { %v7473_v1 = vpop.permute.xlu1 %3908 }
0x1beb   :  { %v4104_v11 = vsel %vm235_vm6, %v7473_v1, 0 }
0x1bff   :  { %v3893_v4 = vpop.permute.xlu1 %3892 }
0x1c00   :  { %5898 = vmatmul.mubr.msk.bf16.vlgmr.msra.gmra.mrb[116].mxu0 %vm235_vm6, %v3893_v4 }
0x1c01   :  { %5908 = vmatpush3.bf16.xpose.msra.mxu0 %v4104_v11  ;;  %v3895_v55 = vpop.permute.xlu0 %3894  ;;  %5909 = vmatprep.mubr.msk.bf16.mxu0 %vm6387_vm1, %v6386_v17 }
0x1c02   :  { %5904 = vmatmul.mubr.msk.bf16.vlgmr.msra.gmra.mrb[128].mxu1 %vm235_vm6, %v3895_v55  ;;  %5919 = vmatprep.subr.bf16.mxu0 %v6386_v17 }
0x1c03   :  { %5914 = vmatpush3.bf16.xpose.msra.mxu1 %v4150_v59  ;;  %v3897_v57 = vpop.permute.xlu1 %3896  ;;  %5915 = vmatprep.mubr.msk.bf16.mxu1 %vm6387_vm1, %v6386_v17 }
0x1c04   :  { %5925 = vmatprep.subr.bf16.mxu1 %v6386_v17 }
0x1c05   :  { %v3899_v48 = vpop.permute.xlu0 %3898 }
0x1c07   :  { %v7489_v12 = vpop.permute.xlu1 %3912 }
0x1c08   :  { %v4196_v19 = vsel %vm235_vm6, %v7489_v12, 0  ;;  %5910 = vmatmul.mubr.msk.bf16.vlgmr.msra.gmra.mrb[120].mxu0 %vm235_vm6, %v3897_v57 }
0x1c09   :  { %v7494_v20 = vpop.permute.xlu0 %3914  ;;  %5920 = vmatpush3.bf16.xpose.msra.mxu0 %v4196_v19  ;;  %5921 = vmatprep.mubr.msk.bf16.mxu0 %vm6387_vm1, %v6386_v17 }
0x1c0a   :  { %v4242_v21 = vsel %vm235_vm6, %v7494_v20, 0  ;;  %5916 = vmatmul.mubr.msk.bf16.vlgmr.msra.gmra.mrb[132].mxu1 %vm235_vm6, %v3899_v48  ;;  %5931 = vmatprep.subr.bf16.mxu0 %v6386_v17 }
0x1c0b   :  { %v3901_v13 = vpop.permute.xlu1 %3900  ;;  %5926 = vmatpush3.bf16.xpose.msra.mxu1 %v4242_v21  ;;  %5927 = vmatprep.mubr.msk.bf16.mxu1 %vm6387_vm1, %v6386_v17 }
0x1c0c   :  { %5937 = vmatprep.subr.bf16.mxu1 %v6386_v17 }
0x1c0d   :  { %v3903_v3 = vpop.permute.xlu0 %3902 }
0x1c0f   :  { %v4397_v23 = vpop.permute.xlu1 %4396 }
0x1c10   :  { %v4402_v26 = vsel %vm747_vm8, %v4397_v23, 0  ;;  %5922 = vmatmul.mubr.msk.bf16.vlgmr.msra.gmra.mrb[124].mxu0 %vm235_vm6, %v3901_v13 }
0x1c11   :  { %5932 = vmatpush3.bf16.msra.mxu0 %v4402_v26  ;;  %5933 = vmatprep.mubr.msk.bf16.mxu0 %vm6387_vm1, %v6386_v17 }
0x1c12   :  { %5928 = vmatmul.mubr.msk.bf16.vlgmr.msra.gmra.mrb[136].mxu1 %vm235_vm6, %v3903_v3  ;;  %5943 = vmatprep.subr.bf16.mxu0 %v6386_v17 }
0x1c13   :  { %5939 = vmatprep.mubr.msk.bf16.mxu1 %vm6387_vm1, %v6386_v17 }
0x1c60   :  { %v3956_v53 = vpop.f32.mrb[112].mxu0 }
0x1c61   :  { %v4284_v31 = vmul.f32 0.35355338, %v3956_v53  ;;  %v5887_v52 = vpop.f32.mrb[113].mxu0 }
0x1c62   :  { %v3959_v24 = vpop.f32.mrb[114].mxu0  ;;  %v4002_v35 = vpop.f32.mrb[124].mxu1 }
0x1c63   :  { %v7514_v50 = vadd.f32 %v4284_v31, %v6901_v6  ;;  %v4285_v51 = vmul.f32 0.35355338, %v4002_v35  ;;  %v5888_v28 = vpop.f32.mrb[115].mxu0  ;;  %v5893_v15 = vpop.f32.mrb[125].mxu1 }
0x1c64   :  { %v4005_v34 = vpop.f32.mrb[126].mxu1 }
0x1c65   :  { %v7517_v25 = vadd.f32 %v4285_v51, %v6904_v14  ;;  %v5894_v42 = vpop.f32.mrb[127].mxu1  ;;  %v4300_v43 = vsel %vm235_vm6, %v7514_v50, -inf }
0x1c66   :  { %4301 = vmax.xlane.f32.xlu1 %v4300_v43 }
0x1c67   :  { %v4303_v41 = vsel %vm235_vm6, %v7517_v25, -inf }
0x1c68   :  { %4304 = vmax.xlane.f32.xlu0 %v4303_v41  ;;  %v5289_v41 = vcombine.low %v7463_v38, %v7463_v38 }
0x1cd3   :  { %v4048_v16 = vpop.f32.mrb[116].mxu0 }
0x1cd4   :  { %v4286_v47 = vmul.f32 0.35355338, %v4048_v16  ;;  %v5899_v63 = vpop.f32.mrb[117].mxu0 }
0x1cd5   :  { %v4051_v33 = vpop.f32.mrb[118].mxu0  ;;  %v4094_v61 = vpop.f32.mrb[128].mxu1 }
0x1cd6   :  { %v7524_v18 = vadd.f32 %v4286_v47, %v6901_v6  ;;  %v4287_v22 = vmul.f32 0.35355338, %v4094_v61  ;;  %v5900_v39 = vpop.f32.mrb[119].mxu0  ;;  %v5905_v8 = vpop.f32.mrb[129].mxu1 }
0x1cd7   :  { %v4097_v2 = vpop.f32.mrb[130].mxu1 }
0x1cd8   :  { %v7527_v7 = vadd.f32 %v4287_v22, %v6904_v14  ;;  %v5906_v60 = vpop.f32.mrb[131].mxu1  ;;  %v4306_v56 = vsel %vm235_vm6, %v7524_v18, -inf }
0x1cd9   :  { %4307 = vmax.xlane.f32.xlu0 %v4306_v56 }
0x1cda   :  { %v4309_v36 = vsel %vm235_vm6, %v7527_v7, -inf }
0x1cdb   :  { %v4140_v40 = vpop.f32.mrb[120].mxu0 }
0x1cdc   :  { %v4288_v49 = vmul.f32 0.35355338, %v4140_v40  ;;  %v5911_v37 = vpop.f32.mrb[121].mxu0 }
0x1cdd   :  { %v4143_v29 = vpop.f32.mrb[122].mxu0  ;;  %4310 = vmax.xlane.f32.xlu0 %v4309_v36  ;;  %v4186_v45 = vpop.f32.mrb[132].mxu1 }
0x1cde   :  { %v4296_v4 = vadd.f32 %v4288_v49, %v6901_v6  ;;  %v4289_v11 = vmul.f32 0.35355338, %v4186_v45  ;;  %v5912_v55 = vpop.f32.mrb[123].mxu0  ;;  %v5917_v59 = vpop.f32.mrb[133].mxu1 }
0x1cdf   :  { %v4189_v57 = vpop.f32.mrb[134].mxu1 }
0x1ce0   :  { %v7535_v48 = vadd.f32 %v4289_v11, %v6904_v14  ;;  %v5918_v19 = vpop.f32.mrb[135].mxu1  ;;  %v4312_v21 = vsel %vm235_vm6, %v4296_v4, -inf }
0x1ce1   :  { %4313 = vmax.xlane.f32.xlu1 %v4312_v21 }
0x1ce2   :  { %v4315_v13 = vsel %vm235_vm6, %v7535_v48, -inf }
0x1ce3   :  { %v4232_v23 = vpop.f32.mrb[124].mxu0  ;;  %4316 = vmax.xlane.f32.xlu0 %v4315_v13 }
0x1ce4   :  { %v4290_v26 = vmul.f32 0.35355338, %v4232_v23  ;;  %v5923_v3 = vpop.f32.mrb[125].mxu0 }
0x1ce5   :  { %v4235_v53 = vpop.f32.mrb[126].mxu0  ;;  %v4278_v31 = vpop.f32.mrb[136].mxu1  ;;  %v5297_v3 = vcombine.low %v7489_v12, %v7489_v12 }
0x1ce6   :  { %v4298_v52 = vadd.f32 %v4290_v26, %v6901_v6  ;;  %v4291_v24 = vmul.f32 0.35355338, %v4278_v31  ;;  %v5924_v35 = vpop.f32.mrb[127].mxu0  ;;  %v5929_v51 = vpop.f32.mrb[137].mxu1  ;;  %v5291_v6 = vcombine.low %v7468_v10, %v7468_v10  ;;  %v5295_v26 = vcombine.low %v7475_v30, %v7475_v30 }
0x1ce7   :  { %v4281_v28 = vpop.f32.mrb[138].mxu1 }
0x1ce8   :  { %v7542_v15 = vadd.f32 %v4291_v24, %v6904_v14  ;;  %v5930_v34 = vpop.f32.mrb[139].mxu1  ;;  %v4318_v42 = vsel %vm235_vm6, %v4298_v52, -inf }
0x1ce9   :  { %4319 = vmax.xlane.f32.xlu1 %v4318_v42 }
0x1cea   :  { %v4321_v43 = vsel %vm235_vm6, %v7542_v15, -inf }
0x1ceb   :  { %4322 = vmax.xlane.f32.xlu0 %v4321_v43 }
0x1cf3   :  { %v4302_v16 = vpop.xlane.xlu1 %4301 }
0x1cf4   :  { %v4324_v63 = vsub.f32 %v7514_v50, %v4302_v16 }
0x1cf5   :  { %v4305_v14 = vpop.xlane.xlu0 %4304 }
0x1cf6   :  { %v4325_v47 = vsub.f32 %v7517_v25, %v4305_v14  ;;  %v4332_v61 = vmul.f32 1.442695, %v4324_v63  ;;  %v5293_v25 = vcombine.low %v7473_v1, %v7473_v1  ;;  %v5299_v63 = vcombine.low %v7494_v20, %v7494_v20 }
0x1cf8   :  { %v4334_v33 = vmul.f32 1.442695, %v4325_v47 }
0x1cfa   :  { %4494 = vrot.lane.b32.xlu1 %v5289_v41, %s6391_s0  ;;  %6246 = vpow2.f32 %v4334_v33 }
0x1cfb   :  { %6248 = vpow2.f32 %v4332_v61 }
0x1cfe   :  { %4544 = vrot.lane.b32.xlu1 %v5291_v6, %s6391_s0 }
0x1d01   :  { %4444 = vrot.lane.b32.xlu0 %v7435_v27, %s6391_s0 }
0x1d04   :  { %v7557_v38 = vpop.eup %6246 }
0x1d05   :  { %v7559_v22 = vpop.eup %6248  ;;  %v4351_v10 = vsel %vm235_vm6, %v7557_v38, 0.0 }
0x1d06   :  { %v4348_v27 = vsel %vm235_vm6, %v7559_v22, 0.0 }
0x1d20   :  { %4352 = vadd.xlane.f32.xlu0 %v4351_v10 }
0x1d22   :  { %4349 = vadd.xlane.f32.xlu1 %v4348_v27 }
0x1d33   :  { %4594 = vrot.lane.b32.xlu1 %v5293_v25, %s6391_s0 }
0x1d66   :  { %v4308_v50 = vpop.xlane.xlu0 %4307 }
0x1d67   :  { %v4326_v39 = vsub.f32 %v7524_v18, %v4308_v50 }
0x1d69   :  { %v4336_v8 = vmul.f32 1.442695, %v4326_v39 }
0x1d6a   :  { %v4311_v2 = vpop.xlane.xlu0 %4310 }
0x1d6b   :  { %6250 = vpow2.f32 %v4336_v8  ;;  %v4327_v60 = vsub.f32 %v7527_v7, %v4311_v2 }
0x1d6d   :  { %v4338_v56 = vmul.f32 1.442695, %v4327_v60 }
0x1d6e   :  { %v4314_v40 = vpop.xlane.xlu1 %4313 }
0x1d6f   :  { %6252 = vpow2.f32 %v4338_v56  ;;  %v4328_v49 = vsub.f32 %v4296_v4, %v4314_v40 }
0x1d70   :  { %v4317_v36 = vpop.xlane.xlu0 %4316 }
0x1d71   :  { %v4340_v37 = vmul.f32 1.442695, %v4328_v49  ;;  %v4329_v53 = vsub.f32 %v7535_v48, %v4317_v36 }
0x1d73   :  { %6254 = vpow2.f32 %v4340_v37  ;;  %v4342_v31 = vmul.f32 1.442695, %v4329_v53 }
0x1d75   :  { %v7570_v29 = vpop.eup %6250 }
0x1d76   :  { %v4320_v1 = vpop.xlane.xlu1 %4319  ;;  %v4354_v45 = vsel %vm235_vm6, %v7570_v29, 0.0 }
0x1d77   :  { %v4330_v11 = vsub.f32 %v4298_v52, %v4320_v1  ;;  %4355 = vadd.xlane.f32.xlu1 %v4354_v45 }
0x1d78   :  { %v4323_v18 = vpop.xlane.xlu0 %4322 }
0x1d79   :  { %v7574_v55 = vpop.eup %6252  ;;  %v4344_v59 = vmul.f32 1.442695, %v4330_v11  ;;  %v4331_v52 = vsub.f32 %v7542_v15, %v4323_v18 }
0x1d7a   :  { %v4357_v7 = vsel %vm235_vm6, %v7574_v55, 0.0  ;;  %v4495_v35 = vpop.permute.xlu1 %4494 }
0x1d7b   :  { %6256 = vpow2.f32 %v4344_v59  ;;  %4358 = vadd.xlane.f32.xlu0 %v4357_v7  ;;  %v4346_v24 = vmul.f32 1.442695, %v4331_v52  ;;  %v4500_v47 = vsel %vm747_vm8, %v4495_v35, 0 }
0x1d7c   :  { %v4445_v4 = vpop.permute.xlu0 %4444  ;;  %6258 = vpow2.f32 %v4342_v31 }
0x1d7d   :  { %v7578_v57 = vpop.eup %6254  ;;  %v4450_v19 = vsel %vm747_vm8, %v4445_v4, 0  ;;  %6260 = vpow2.f32 %v4346_v24 }
0x1d7e   :  { %5938 = vmatpush3.bf16.msra.mxu1 %v4450_v19  ;;  %v4360_v21 = vsel %vm235_vm6, %v7578_v57, 0.0  ;;  %v4545_v30 = vpop.permute.xlu1 %4544 }
0x1d7f   :  { %4361 = vadd.xlane.f32.xlu1 %v4360_v21  ;;  %5949 = vmatprep.subr.bf16.mxu1 %v6386_v17  ;;  %v4550_v14 = vsel %vm747_vm8, %v4545_v30, 0 }
0x1d85   :  { %v7584_v13 = vpop.eup %6256 }
0x1d86   :  { %v4366_v23 = vsel %vm235_vm6, %v7584_v13, 0.0  ;;  %v7598_v51 = vpop.eup %6258 }
0x1d87   :  { %4367 = vadd.xlane.f32.xlu1 %v4366_v23  ;;  %v4363_v34 = vsel %vm235_vm6, %v7598_v51, 0.0  ;;  %v7602_v48 = vpop.eup %6260 }
0x1d91   :  { %4644 = vrot.lane.b32.xlu0 %v5295_v26, %s6391_s0 }
0x1d98   :  { %4694 = vrot.lane.b32.xlu1 %v5297_v3, %s6391_s0 }
0x1d9c   :  { %4823 = vrot.lane.b32.xlu1 %v7403_v5, %s6393_s23  ;;  %v4369_v5 = vsel %vm235_vm6, %v7602_v48, 0.0 }
0x1dad   :  { %v4353_v28 = vpop.xlane.xlu0 %4352 }
0x1dae   :  { %6262 = vrcp.f32 %v4353_v28 }
0x1daf   :  { %v4350_v12 = vpop.xlane.xlu1 %4349 }
0x1db0   :  { %6264 = vrcp.f32 %v4350_v12  ;;  %4364 = vadd.xlane.f32.xlu0 %v4363_v34 }
0x1db3   :  { %v4595_v33 = vpop.permute.xlu1 %4594 }
0x1db4   :  { %4370 = vadd.xlane.f32.xlu0 %v4369_v5  ;;  %v4600_v39 = vsel %vm747_vm8, %v4595_v33, 0 }
0x1db8   :  { %v6263_v15 = vpop.eup %6262 }
0x1db9   :  { %v4381_v42 = vmul.f32 %v6263_v15, %v7557_v38 }
0x1dba   :  { %v6265_v43 = vpop.eup %6264 }
0x1dbb   :  { %v4380_v41 = vmul.f32 %v6265_v43, %v7559_v22  ;;  %v4389_v6 = vpack.c.bf16 %v4381_v42, %v4381_v42 }
0x1dbd   :  { %5940 = vmatmul.mubr.msk.bf16.vlgmr.msra.gmra.mrb[140].mxu1 %vm235_vm6, %v4389_v6  ;;  %v4388_v16 = vpack.c.bf16 %v4380_v41, %v4380_v41 }
0x1dbe   :  { %5950 = vmatpush3.bf16.msra.mxu1 %v4550_v14  ;;  %5951 = vmatprep.mubr.msk.bf16.mxu1 %vm6387_vm1, %v6386_v17 }
0x1dbf   :  { %5934 = vmatmul.mubr.msk.bf16.vlgmr.msra.gmra.mrb[128].mxu0 %vm235_vm6, %v4388_v16  ;;  %5961 = vmatprep.subr.bf16.mxu1 %v6386_v17 }
0x1dc0   :  { %5944 = vmatpush3.bf16.msra.mxu0 %v4500_v47  ;;  %5945 = vmatprep.mubr.msk.bf16.mxu0 %vm6387_vm1, %v6386_v17 }
0x1dc1   :  { %5955 = vmatprep.subr.bf16.mxu0 %v6386_v17 }
0x1dca   :  { %4744 = vrot.lane.b32.xlu0 %v5299_v63, %s6391_s0 }
0x1e04   :  { %v4356_v61 = vpop.xlane.xlu1 %4355 }
0x1e05   :  { %6266 = vrcp.f32 %v4356_v61 }
0x1e08   :  { %v4359_v38 = vpop.xlane.xlu0 %4358 }
0x1e09   :  { %6268 = vrcp.f32 %v4359_v38 }
0x1e0c   :  { %v4362_v22 = vpop.xlane.xlu1 %4361  ;;  %v4645_v2 = vpop.permute.xlu0 %4644 }
0x1e0d   :  { %6270 = vrcp.f32 %v4362_v22  ;;  %v4650_v49 = vsel %vm747_vm8, %v4645_v2, 0 }
0x1e0f   :  { %v6267_v10 = vpop.eup %6266 }
0x1e10   :  { %v4382_v27 = vmul.f32 %v6267_v10, %v7570_v29 }
0x1e12   :  { %v4390_v25 = vpack.c.bf16 %v4382_v27, %v4382_v27 }
0x1e13   :  { %v6269_v50 = vpop.eup %6268 }
0x1e14   :  { %v4383_v8 = vmul.f32 %v6269_v50, %v7574_v55  ;;  %5946 = vmatmul.mubr.msk.bf16.vlgmr.msra.gmra.mrb[132].mxu0 %vm235_vm6, %v4390_v25  ;;  %v4368_v20 = vpop.xlane.xlu1 %4367 }
0x1e15   :  { %5956 = vmatpush3.bf16.msra.mxu0 %v4600_v39  ;;  %6272 = vrcp.f32 %v4368_v20  ;;  %5957 = vmatprep.mubr.msk.bf16.mxu0 %vm6387_vm1, %v6386_v17 }
0x1e16   :  { %v4391_v60 = vpack.c.bf16 %v4383_v8, %v4383_v8  ;;  %5967 = vmatprep.subr.bf16.mxu0 %v6386_v17 }
0x1e17   :  { %v6271_v56 = vpop.eup %6270 }
0x1e18   :  { %v4384_v40 = vmul.f32 %v6271_v56, %v7578_v57  ;;  %5952 = vmatmul.mubr.msk.bf16.vlgmr.msra.gmra.mrb[144].mxu1 %vm235_vm6, %v4391_v60  ;;  %v4695_v37 = vpop.permute.xlu1 %4694 }
0x1e19   :  { %5962 = vmatpush3.bf16.msra.mxu1 %v4650_v49  ;;  %5963 = vmatprep.mubr.msk.bf16.mxu1 %vm6387_vm1, %v6386_v17  ;;  %v4700_v29 = vsel %vm747_vm8, %v4695_v37, 0 }
0x1e1a   :  { %v4392_v36 = vpack.c.bf16 %v4384_v40, %v4384_v40  ;;  %5973 = vmatprep.subr.bf16.mxu1 %v6386_v17 }
0x1e1c   :  { %5958 = vmatmul.mubr.msk.bf16.vlgmr.msra.gmra.mrb[136].mxu0 %vm235_vm6, %v4392_v36 }
0x1e1d   :  { %5968 = vmatpush3.bf16.msra.mxu0 %v4700_v29  ;;  %5969 = vmatprep.mubr.msk.bf16.mxu0 %vm6387_vm1, %v6386_v17 }
0x1e1e   :  { %5979 = vmatprep.subr.bf16.mxu0 %v6386_v17 }
0x1e1f   :  { %v6273_v1 = vpop.eup %6272 }
0x1e20   :  { %v4386_v45 = vmul.f32 %v6273_v1, %v7584_v13 }
0x1e22   :  { %v4394_v11 = vpack.c.bf16 %v4386_v45, %v4386_v45 }
0x1e24   :  { %5970 = vmatmul.mubr.msk.bf16.vlgmr.msra.gmra.mrb[140].mxu0 %vm235_vm6, %v4394_v11 }
0x1e25   :  { %5983 = vmatprep.mubr.msk.bf16.mxu0 %vm6387_vm1, %v6386_v17 }
0x1e3d   :  { %v4365_v18 = vpop.xlane.xlu0 %4364 }
0x1e3e   :  { %6274 = vrcp.f32 %v4365_v18 }
0x1e41   :  { %v4371_v55 = vpop.xlane.xlu0 %4370 }
0x1e42   :  { %6276 = vrcp.f32 %v4371_v55 }
0x1e45   :  { %v4745_v4 = vpop.permute.xlu0 %4744 }
0x1e46   :  { %v4750_v21 = vsel %vm747_vm8, %v4745_v4, 0 }
0x1e48   :  { %v6275_v59 = vpop.eup %6274 }
0x1e49   :  { %v4385_v7 = vmul.f32 %v6275_v59, %v7598_v51  ;;  %v4824_v51 = vpop.permute.xlu1 %4823 }
0x1e4a   :  { %5980 = vmatpush3.bf16.msra.mxu0 %v4824_v51 }
0x1e4b   :  { %v4393_v57 = vpack.c.bf16 %v4385_v7, %v4385_v7  ;;  %5981 = vmatprep.subr.bf16.mxu0 %v6386_v17 }
0x1e4c   :  { %v6277_v19 = vpop.eup %6276 }
0x1e4d   :  { %5964 = vmatmul.mubr.msk.bf16.vlgmr.msra.gmra.mrb[148].mxu1 %vm235_vm6, %v4393_v57  ;;  %v4387_v13 = vmul.f32 %v6277_v19, %v7602_v48 }
0x1e4e   :  { %5974 = vmatpush3.bf16.msra.mxu1 %v4750_v21  ;;  %5975 = vmatprep.mubr.msk.bf16.mxu1 %vm6387_vm1, %v6386_v17 }
0x1e4f   :  { %5987 = vmatprep.subr.bf16.mxu1 %v6386_v17  ;;  %v4395_v23 = vpack.c.bf16 %v4387_v13, %v4387_v13 }
0x1e55   :  { %5976 = vmatmul.mubr.msk.bf16.vlgmr.msra.gmra.mrb[152].mxu1 %vm235_vm6, %v4395_v23 }
0x1e56   :  { %5991 = vmatprep.mubr.msk.bf16.mxu1 %vm6387_vm1, %v6386_v17 }
0x1e90   :  { %v4486_v26 = vpop.f32.mrb[140].mxu1 }
0x1e91   :  { %v5941_v3 = vpop.f32.mrb[141].mxu1 }
0x1e92   :  { %v4438_v53 = vpop.f32.mrb[128].mxu0  ;;  %v4489_v31 = vpop.f32.mrb[142].mxu1 }
0x1e93   :  { %v5935_v52 = vpop.f32.mrb[129].mxu0  ;;  %v5942_v24 = vpop.f32.mrb[143].mxu1 }
0x1e94   :  { %v4441_v35 = vpop.f32.mrb[130].mxu0 }
0x1e95   :  { %v5936_v30 = vpop.f32.mrb[131].mxu0 }
0x1ee7   :  { %v4536_v28 = vpop.f32.mrb[132].mxu0 }
0x1ee8   :  { %v5947_v12 = vpop.f32.mrb[133].mxu0 }
0x1ee9   :  { %v4539_v34 = vpop.f32.mrb[134].mxu0 }
0x1eea   :  { %v5948_v48 = vpop.f32.mrb[135].mxu0 }
0x1eeb   :  { %v4586_v5 = vpop.f32.mrb[144].mxu1 }
0x1eec   :  { %v6070_v15 = vpack.i.bf16 %v4586_v5, %v4536_v28  ;;  %v5953_v42 = vpop.f32.mrb[145].mxu1 }
0x1eed   :  { %v4589_v43 = vpop.f32.mrb[146].mxu1 }
0x1eee   :  { %6071 = vrot.lane.b32.xlu0 %v6070_v15, %s6394_s24  ;;  %v5954_v41 = vpop.f32.mrb[147].mxu1 }
0x1eef   :  { %v4636_v6 = vpop.f32.mrb[136].mxu0  ;;  %v6104_v41 = vld [vmem:[%s7743_s3 + $0x38] ss:$12 sps:$4 sm:$0xff]  }
0x1ef0   :  { %v5959_v14 = vpop.f32.mrb[137].mxu0  ;;  %5988 = vmatpush3.bf16.msra.mxu1 %v6104_v41 }
0x1ef1   :  { %v4639_v16 = vpop.f32.mrb[138].mxu0  ;;  %5989 = vmatprep.subr.bf16.mxu1 %v6386_v17  ;;  %v6106_v14 = vld [vmem:[%s7744_s4 + $0x20] sm:$0xff]  }
0x1ef2   :  { %v5960_v47 = vpop.f32.mrb[139].mxu0  ;;  %v6107_v16 = vld [vmem:[%s7744_s4 + $0x28] sm:$0xff]  }
0x1ef7   :  { %v4736_v63 = vpop.f32.mrb[140].mxu0 }
0x1ef8   :  { %v5971_v33 = vpop.f32.mrb[141].mxu0 }
0x1ef9   :  { %v4739_v61 = vpop.f32.mrb[142].mxu0 }
0x1efa   :  { %v5972_v38 = vpop.f32.mrb[143].mxu0 }
0x1f20   :  { %v4686_v22 = vpop.f32.mrb[148].mxu1 }
0x1f21   :  { %v6075_v10 = vpack.i.bf16 %v4686_v22, %v4636_v6  ;;  %v5965_v27 = vpop.f32.mrb[149].mxu1  ;;  %v6105_v6 = vld [vmem:[%s7743_s3 + $0x50] ss:$12 sps:$4 sm:$0xff]  }
0x1f22   :  { %v4689_v25 = vpop.f32.mrb[150].mxu1  ;;  %5990 = vmatpush3.bf16.msra.mxu1 %v6105_v6 }
0x1f23   :  { %6076 = vrot.lane.b32.xlu1 %v6075_v10, %s6395_s25  ;;  %v5966_v50 = vpop.f32.mrb[151].mxu1 }
0x1f27   :  { %4825 = vrot.lane.b32.xlu1 %v7412_v58, %s6393_s23 }
0x1f28   :  { %v4786_v39 = vpop.f32.mrb[152].mxu1 }
0x1f29   :  { %v6080_v8 = vpack.i.bf16 %v4786_v39, %v4736_v63  ;;  %v5977_v20 = vpop.f32.mrb[153].mxu1 }
0x1f2a   :  { %v4789_v2 = vpop.f32.mrb[154].mxu1 }
0x1f2b   :  { %6081 = vrot.lane.b32.xlu0 %v6080_v8, %s6396_s26  ;;  %v5978_v60 = vpop.f32.mrb[155].mxu1 }
0x1f60   :  { %v6072_v40 = vpop.permute.xlu0 %6071 }
0x1f61   :  { %v6074_v37 = vunpack.i.h.bf16 %v6072_v40  ;;  %v6073_v36 = vunpack.i.l.bf16 %v6072_v40  ;;  %v6296_v40 = vld [vmem:[%s7745_s5 + $0x8] sm:$0xff] }
0x1f62   :  { %v4936_v32 = vrot.slane %v6296_v40, %v6895_v9 }
0x1f63   :  { %v4817_v58 = vsel %vm235_vm6, %v4486_v26, %v6074_v37  ;;  %v4816_v11 = vsel %vm235_vm6, %v4438_v53, %v6073_v36 }
0x1f95   :  { %v6077_v56 = vpop.permute.xlu1 %6076 }
0x1f96   :  { %v6079_v29 = vunpack.i.h.bf16 %v6077_v56  ;;  %v6078_v1 = vunpack.i.l.bf16 %v6077_v56 }
0x1f98   :  { %v4819_v59 = vsel %vm1153_vm9, %v4817_v58, %v6079_v29  ;;  %v4818_v7 = vsel %vm1153_vm9, %v4816_v11, %v6078_v1 }
0x1f99   :  { %v4826_v49 = vpop.permute.xlu1 %4825 }
0x1f9a   :  { %5982 = vmatpush3.bf16.msra.mxu0 %v4826_v49  ;;  %v4916_v49 = vrot.slane %v6296_v40, %v2425_v62  ;;  %v6109_v62 = vld [vmem:[%s7744_s4 + $0x38] sm:$0xff]  }
0x1f9b   :  { %5995 = vmatprep.subr.bf16.mxu0 %v6386_v17 }
0x1f9d   :  { %v6082_v45 = vpop.permute.xlu0 %6081 }
0x1f9e   :  { %v6084_v18 = vunpack.i.h.bf16 %v6082_v45  ;;  %v6083_v55 = vunpack.i.l.bf16 %v6082_v45  ;;  %v4928_v45 = vrot.slane %v6296_v40, %v2437_v0 }
0x1fa0   :  { %v4821_v4 = vsel %vm1156_vm10, %v4819_v59, %v6084_v18  ;;  %v4820_v57 = vsel %vm1156_vm10, %v4818_v7, %v6083_v55  ;;  %v6108_v7 = vld [vmem:[%s7744_s4 + $0x30] sm:$0xff]  }
0x1fa1   :  { %v4822_v19 = vpack.c.bf16 %v4821_v4, %v4820_v57 }
0x1fa3   :  { %5984 = vmatmul.mubr.msk.bf16.vlgmr.msra.gmra.mrb[144].mxu0 %vm97_vm0, %v4822_v19 }
0x1fa4   :  { %6003 = vmatprep.mubr.msk.bf16.mxu0 %vm6387_vm1, %v6386_v17  ;;  %5996 = vmatpush3.bf16.msra.mxu0 %v6106_v14 }
0x1fa5   :  { %5997 = vmatprep.subr.bf16.mxu0 %v6386_v17 }
0x1fa8   :  { %5998 = vmatpush3.bf16.msra.mxu0 %v6107_v16 }
0x1fa9   :  { %5999 = vmatprep.subr.bf16.mxu0 %v6386_v17 }
0x1fac   :  { %6000 = vmatpush3.bf16.msra.mxu0 %v6108_v7 }
0x1fad   :  { %6001 = vmatprep.subr.bf16.mxu0 %v6386_v17  ;;  %v5004_v17 = vrot.slane %v6296_v40, %v7111_v46 }
0x1fb0   :  { %6002 = vmatpush3.bf16.msra.mxu0 %v6109_v62 }
0x2076   :  { %v4866_v21 = vpop.f32.mrb[144].mxu0 }
0x2077   :  { %v4873_v13 = vpack.c.bf16 %v4866_v21, %v4866_v21  ;;  %v5985_v23 = vpop.f32.mrb[145].mxu0 }
0x2078   :  { %v4869_v26 = vpop.f32.mrb[146].mxu0 }
0x2079   :  { %v7670_v3 = vadd.bf16 %v4873_v13, %v7391_v44  ;;  %v4874_v53 = vpack.c.bf16 %v4869_v26, %v4869_v26  ;;  %v5986_v31 = vpop.f32.mrb[147].mxu0 }
0x207b   :  { %v7673_v52 = vadd.bf16 %v4874_v53, %v7394_v54  ;;  %v4877_v24 = vunpack.c.l.bf16 %v7670_v3 }
0x207d   :  { %v4879_v35 = vsel %vm97_vm0, %v4877_v24, 0.0  ;;  %v4878_v30 = vunpack.c.l.bf16 %v7673_v52 }
0x207e   :  { %4880 = vadd.xlane.f32.xlu0 %v4879_v35 }
0x207f   :  { %v4882_v51 = vsel %vm97_vm0, %v4878_v30, 0.0 }
0x2080   :  { %4883 = vadd.xlane.f32.xlu1 %v4882_v51 }
0x210b   :  { %v4881_v28 = vpop.xlane.xlu0 %4880 }
0x210c   :  { %v4885_v12 = vmul.f32 0.03125, %v4881_v28 }
0x210d   :  { %v4884_v34 = vpop.xlane.xlu1 %4883 }
0x210e   :  { %v4887_v44 = vsub.f32 %v4877_v24, %v4885_v12  ;;  %v4886_v48 = vmul.f32 0.03125, %v4884_v34 }
0x2110   :  { %v4888_v5 = vsub.f32 %v4878_v30, %v4886_v48  ;;  %v4889_v15 = vmul.f32 %v4887_v44, %v4887_v44  ;;  %v4917_v36 = vmul.f32 %v4916_v49, %v4887_v44 }
0x2112   :  { %v4891_v54 = vsel %vm97_vm0, %v4889_v15, 0.0  ;;  %v4890_v42 = vmul.f32 %v4888_v5, %v4888_v5  ;;  %v4918_v29 = vmul.f32 %v4916_v49, %v4888_v5 }
0x2113   :  { %4892 = vadd.xlane.f32.xlu0 %v4891_v54 }
0x2114   :  { %v4894_v43 = vsel %vm97_vm0, %v4890_v42, 0.0 }
0x2117   :  { %4895 = vadd.xlane.f32.xlu0 %v4894_v43 }
0x21a0   :  { %v4893_v47 = vpop.xlane.xlu0 %4892 }
0x21a1   :  { %v4897_v63 = vmul.f32 0.032258064, %v4893_v47 }
0x21a3   :  { %6278 = vrsqrt.f32 %v4897_v63  ;;  %vm4901_vm1 = vcmp.eq.f32.partialorder %v4897_v63, inf  ;;  %v4904_v10 = vand.u32 2147483648, %v4897_v63  ;;  %vm4903_vm6 = vcmp.eq.f32.partialorder %v4897_v63, 0.0 }
0x21a4   :  { %v4896_v33 = vpop.xlane.xlu0 %4895 }
0x21a5   :  { %v4898_v61 = vmul.f32 0.032258064, %v4896_v33 }
0x21a7   :  { %6280 = vrsqrt.f32 %v4898_v61  ;;  %vm4908_vm8 = vcmp.eq.f32.partialorder %v4898_v61, inf  ;;  %v4911_v20 = vand.u32 2147483648, %v4898_v61  ;;  %vm4910_vm9 = vcmp.eq.f32.partialorder %v4898_v61, 0.0 }
0x21ad   :  { %v6279_v38 = vpop.eup %6278 }
0x21ae   :  { %v4900_v22 = vmul.f32 %v6279_v38, %v4897_v63 }
0x21b0   :  { %v4902_v27 = vsel %vm4901_vm1, %v4897_v63, %v4900_v22 }
0x21b1   :  { %v6281_v25 = vpop.eup %6280  ;;  %v4905_v50 = vsel %vm4903_vm6, %v4904_v10, %v4902_v27 }
0x21b2   :  { %v4919_v39 = vadd.f32 1e-06, %v4905_v50  ;;  %v4907_v8 = vmul.f32 %v6281_v25, %v4898_v61 }
0x21b4   :  { %6282 = vrcp.f32 %v4919_v39  ;;  %v4909_v2 = vsel %vm4908_vm8, %v4898_v61, %v4907_v8 }
0x21b5   :  { %v4912_v60 = vsel %vm4910_vm9, %v4911_v20, %v4909_v2 }
0x21b6   :  { %v4920_v56 = vadd.f32 1e-06, %v4912_v60 }
0x21b8   :  { %6284 = vrcp.f32 %v4920_v56 }
0x21be   :  { %v6283_v37 = vpop.eup %6282 }
0x21bf   :  { %v4923_v1 = vmul.f32 %v6283_v37, %v4917_v36  ;;  %v5077_v36 = vld [vmem:[%s7746_s6] sm:$0x3]  ;;  %s6351_s6 = scalar_lea.vmem %s5140_s27, 256 }
0x21c0   :  { %p6352_p5 = scmp.ne.s32.totalorder %s5140_s27, %s6351_s6  ;;  %p6357_p7 = scmp.lt.s32.totalorder %s6351_s6, %s6351_s6 }
0x21c1   :  { %v4929_v18 = vadd.f32 %v4928_v45, %v4923_v1  ;;  %v5129_v1 = vrot.slane %v5077_v36, %v7111_v46 }
0x21c2   :  { %v6285_v58 = vpop.eup %6284  ;;  %p6358_p8 = por %p6357_p7, %p6356_p6 }
0x21c3   :  { %v4924_v11 = vmul.f32 %v6285_v58, %v4918_v29  ;;  %v5117_v29 = vrot.slane %v5077_v36, %v6895_v9 }
0x21c4   :  { %p6359_p9 = pnand %p6358_p8, %p6352_p5 }
0x21c5   :  { %v4930_v55 = vadd.f32 %v4928_v45, %v4924_v11 }
0x21c7   :  { %v5328_v59 = vpack.c.bf16 %v4930_v55, %v4929_v18 }
0x21c9   :  { %5992 = vmatmul.mubr.msk.bf16.vlgmr.msra.gmra.mrb[156].mxu1 %vm97_vm0, %v5328_v59 }
0x229c   :  { %v4991_v0 = vpop.f32.mrb[156].mxu1 }
0x229d   :  { %v4992_v4 = vadd.f32 %v4991_v0, %v4936_v32  ;;  %v5993_v57 = vpop.f32.mrb[157].mxu1 }
0x229e   :  { %v4994_v19 = vpop.f32.mrb[158].mxu1 }
0x229f   :  { %v4995_v21 = vadd.f32 %v4994_v19, %v4936_v32  ;;  %v5994_v13 = vpop.f32.mrb[159].mxu1  ;;  %v4998_v23 = vmax.f32 %v4992_v4, 0.0 }
0x22a1   :  { %v4999_v26 = vmax.f32 %v4995_v21, 0.0 }
0x22a3   :  { %v5000_v53 = vpack.c.bf16 %v4999_v26, %v4998_v23 }
0x22a5   :  { %6004 = vmatmul.mubr.msk.bf16.vlgmr.msra.gmra.mrb[148].mxu0 %vm2539_vm11, %v5000_v53 }
0x2378   :  { %v5066_v31 = vpop.f32.mrb[148].mxu0 }
0x2379   :  { %v5067_v24 = vadd.f32 %v5066_v31, %v5004_v17  ;;  %v6005_v35 = vpop.f32.mrb[149].mxu0 }
0x237a   :  { %v5069_v30 = vpop.f32.mrb[150].mxu0 }
0x237b   :  { %v5073_v51 = vpack.c.bf16 %v5067_v24, %v5067_v24  ;;  %v5070_v28 = vadd.f32 %v5069_v30, %v5004_v17  ;;  %v6006_v12 = vpop.f32.mrb[151].mxu0 }
0x237d   :  { %v5075_v34 = vadd.bf16 %v5073_v51, %v7670_v3  ;;  %v5074_v44 = vpack.c.bf16 %v5070_v28, %v5070_v28 }
0x237f   :  { %v5078_v48 = vunpack.c.l.bf16 %v5075_v34  ;;  %v5076_v5 = vadd.bf16 %v5074_v44, %v7673_v52 }
0x2381   :  { %v5079_v15 = vunpack.c.l.bf16 %v5076_v5  ;;  %v5080_v54 = vsel %vm97_vm0, %v5078_v48, 0.0 }
0x2382   :  { %5081 = vadd.xlane.f32.xlu0 %v5080_v54 }
0x2383   :  { %v5083_v42 = vsel %vm97_vm0, %v5079_v15, 0.0 }
0x2384   :  { %5084 = vadd.xlane.f32.xlu1 %v5083_v42 }
0x240f   :  { %v5082_v43 = vpop.xlane.xlu0 %5081 }
0x2410   :  { %v5086_v41 = vmul.f32 0.03125, %v5082_v43 }
0x2411   :  { %v5085_v6 = vpop.xlane.xlu1 %5084 }
0x2412   :  { %v5088_v14 = vsub.f32 %v5078_v48, %v5086_v41  ;;  %v5087_v16 = vmul.f32 0.03125, %v5085_v6 }
0x2414   :  { %v5089_v47 = vsub.f32 %v5079_v15, %v5087_v16  ;;  %v5090_v63 = vmul.f32 %v5088_v14, %v5088_v14  ;;  %v5118_v45 = vmul.f32 %v5117_v29, %v5088_v14 }
0x2416   :  { %v5092_v3 = vsel %vm97_vm0, %v5090_v63, 0.0  ;;  %v5091_v33 = vmul.f32 %v5089_v47, %v5089_v47  ;;  %v5119_v18 = vmul.f32 %v5117_v29, %v5089_v47 }
0x2417   :  { %5093 = vadd.xlane.f32.xlu0 %v5092_v3 }
0x2418   :  { %v5095_v52 = vsel %vm97_vm0, %v5091_v33, 0.0 }
0x2419   :  { %5096 = vadd.xlane.f32.xlu1 %v5095_v52 }
0x24a4   :  { %v5094_v61 = vpop.xlane.xlu0 %5093 }
0x24a5   :  { %v5098_v38 = vmul.f32 0.032258064, %v5094_v61 }
0x24a6   :  { %v5097_v22 = vpop.xlane.xlu1 %5096 }
0x24a7   :  { %6286 = vrsqrt.f32 %v5098_v38  ;;  %v5099_v10 = vmul.f32 0.032258064, %v5097_v22  ;;  %vm5102_vm10 = vcmp.eq.f32.partialorder %v5098_v38, inf  ;;  %v5105_v50 = vand.u32 2147483648, %v5098_v38 }
0x24a8   :  { %vm5104_vm7 = vcmp.eq.f32.partialorder %v5098_v38, 0.0 }
0x24a9   :  { %6288 = vrsqrt.f32 %v5099_v10  ;;  %vm5109_vm11 = vcmp.eq.f32.partialorder %v5099_v10, inf  ;;  %v5112_v56 = vand.u32 2147483648, %v5099_v10  ;;  %vm5111_vm12 = vcmp.eq.f32.partialorder %v5099_v10, 0.0 }
0x24b1   :  { %v6287_v27 = vpop.eup %6286 }
0x24b2   :  { %v5101_v25 = vmul.f32 %v6287_v27, %v5098_v38 }
0x24b3   :  { %v6289_v39 = vpop.eup %6288 }
0x24b4   :  { %v5103_v8 = vsel %vm5102_vm10, %v5098_v38, %v5101_v25  ;;  %v5108_v2 = vmul.f32 %v6289_v39, %v5099_v10 }
0x24b5   :  { %v5106_v20 = vsel %vm5104_vm7, %v5105_v50, %v5103_v8 }
0x24b6   :  { %v5120_v60 = vadd.f32 1e-06, %v5106_v20  ;;  %v5110_v40 = vsel %vm5109_vm11, %v5099_v10, %v5108_v2 }
0x24b7   :  { %v5113_v49 = vsel %vm5111_vm12, %v5112_v56, %v5110_v40 }
0x24b8   :  { %6290 = vrcp.f32 %v5120_v60  ;;  %v5121_v37 = vadd.f32 1e-06, %v5113_v49 }
0x24ba   :  { %6292 = vrcp.f32 %v5121_v37 }
0x24c2   :  { %v6291_v58 = vpop.eup %6290 }
0x24c3   :  { %v5124_v11 = vmul.f32 %v6291_v58, %v5118_v45 }
0x24c4   :  { %v6293_v55 = vpop.eup %6292 }
0x24c5   :  { %v5130_v59 = vadd.f32 %v5129_v1, %v5124_v11  ;;  %v5125_v7 = vmul.f32 %v6293_v55, %v5119_v18 }
0x24c7   :  { %5132 = vst.msk [vmem:[#allocation9] sm:$0xff] %vm97_vm0, %v5130_v59  ;;  %v5131_v62 = vadd.f32 %v5129_v1, %v5125_v7 }
0x24c9   :  { %5133 = vst.msk [vmem:[#allocation9 + $0x8] sm:$0xff] %vm97_vm0, %v5131_v62 }
0x24ca   :  { %6362 = shalt.err (!%p6359_p9)
}
0x24cb   :  { %s6363_s30 = scalar_lea.hbm %s7747_s7, 256 }
0x24cc   :  { %p6364_p10 = scmp.ne.s32.totalorder %s7747_s7, %s6363_s30  ;;  %p6367_p11 = scmp.lt.u32.totalorder %s6363_s30, %s7747_s7 }
0x24ce   :  { %p6369_p12 = pnand %p6367_p11, %p6364_p10 }
0x24d0   :  { %6372 = shalt.err (!%p6369_p12)
}
0x24d1   :  { %s6398_s1 = smov 128  }
0x24d2   :  { %5145 = dma.vmem_to_hbm [thread:$0]  %s5140_s27, 256, %s7747_s7, [#allocation6], %s6398_s1, %s6398_s1, %s6394_s24  }
0x24d3   :  { %6379 = dma.done.wait [#allocation6], 256  }
0x24d4   :  { %6380 = vsyncadd [#allocation6], 4294967040 }
0x24d5   :  { %5149 = vsyncpa [#allocation5], 1 }
0x24d6   :  { %5150 = vsyncpa [#allocation8], 1 }
0x24d7   :  { %5151 = vsyncpa [#allocation6], 1 }

</bundles_post_ra>
